<compile_context>
chip_gen: v7x
topology: tpu7x:2x2x1
jax: 0.10.0
libtpu: 0.0.40
codegen_flags: <defaults>
</compile_context>

<pallas_src>
from typing import NamedTuple

import numpy as np
import jax
import jax.numpy as jnp
from jax.experimental import pallas as pl
from jax.experimental.pallas import tpu as pltpu


def _round_up(x, m):
    return ((x + m - 1) // m) * m


# --------------------------------------------------------------------------- #
# Kernel
# --------------------------------------------------------------------------- #
def _gabor_kernel(x_ref, rhs_ref, grhs_ref, vec_ref, o_ref):
    # x_ref:    (tm, K)     tile of flattened inputs (any float dtype)
    # rhs_ref:  (K, 2*Fp)   fused RHS = [ W.T | mu.T * gamma ]        (f32)
    # grhs_ref: (K, Fp)     every row = -0.5 * gamma                  (f32)
    # vec_ref:  (2, Fp)     row 0: bias ; row 1: -0.5*gamma*||mu||^2  (f32)
    # o_ref:    (tm, Fp)    output tile
    Fp = o_ref.shape[-1]
    x = x_ref[...].astype(jnp.float32)

    # Single fused MXU pass; halves split at the lane-aligned boundary Fp.
    fused = jnp.dot(x, rhs_ref[...], preferred_element_type=jnp.float32)
    # ||x||^2 term via the MXU instead of an XLU lane-reduce + VPU mul/add:
    #   (x*x) @ grhs  ->  -0.5 * gamma[f] * sum_k x_k^2
    xsq_g = jnp.dot(x * x, grhs_ref[...], preferred_element_type=jnp.float32)

    lin = fused[:, :Fp] + vec_ref[0:1, :]                 # x @ W.T + b
    exp_arg = fused[:, Fp:] + (xsq_g + vec_ref[1:2, :])   # -0.5 * D * gamma

    o_ref[...] = (jnp.sin(lin) * jnp.exp(exp_arg)).astype(o_ref.dtype)


# --------------------------------------------------------------------------- #
# One-time parameter folding (hoist out of the per-call path)
# --------------------------------------------------------------------------- #
class GaborFolded(NamedTuple):
    rhs: jax.Array       # (K, 2*Fp)
    grhs: jax.Array      # (K, Fp)
    vec: jax.Array       # (2, Fp)
    out_features: int    # logical F (before lane padding)
    in_features: int     # K


def fold_gabor_params(weight, bias, mu, gamma) -> GaborFolded:
    """Fold (weight, bias, mu, gamma) into the packed kernel operands.

    Call this ONCE per parameter set; reuse the result across forward passes.
    out_features is padded up to a multiple of 128 so all kernel splits/stores
    stay lane-dense; padded columns produce exact zeros and are sliced off.
    """
    w32 = weight.astype(jnp.float32)
    mu32 = mu.astype(jnp.float32)
    g32 = gamma.astype(jnp.float32)
    b32 = bias.astype(jnp.float32)

    F, K = w32.shape
    Fp = _round_up(F, 128)
    if Fp != F:
        w32 = jnp.pad(w32, ((0, Fp - F), (0, 0)))
        mu32 = jnp.pad(mu32, ((0, Fp - F), (0, 0)))
        g32 = jnp.pad(g32, (0, Fp - F))
        b32 = jnp.pad(b32, (0, Fp - F))

    rhs = jnp.concatenate([w32.T, (mu32 * g32[:, None]).T], axis=1)   # (K, 2Fp)
    grhs = jnp.broadcast_to(-0.5 * g32, (K, Fp))                      # (K, Fp)
    musq = jnp.sum(mu32 * mu32, axis=-1)                              # (Fp,)
    vec = jnp.stack([b32, -0.5 * g32 * musq], axis=0)                 # (2, Fp)
    return GaborFolded(rhs=rhs, grhs=grhs, vec=vec,
                       out_features=F, in_features=K)


# --------------------------------------------------------------------------- #
# Tile-size / VMEM selection (lane- and sublane-padded accounting)
# --------------------------------------------------------------------------- #
def _select_tile_and_vmem(N, K, Fp, x_itemsize, out_itemsize, tm_req):
    Kp = _round_up(K, 128)                       # lane padding of the x tile
    # Resident operand blocks (x2: Pallas allocates double buffers per spec).
    fixed = 2 * (Kp * 2 * Fp * 4 + Kp * Fp * 4 + 8 * Fp * 4)
    # Per-row footprint: double-buffered x / out tiles + f32 in-kernel
    # intermediates: x cast + x*x (2*Kp), fused (2*Fp), ~3 elementwise temps.
    per_row = (2 * (Kp * x_itemsize + Fp * out_itemsize)
               + 4 * (2 * Kp + 2 * Fp + 3 * Fp))
    budget = 40 << 20                            # fits v7x's 64 MiB VMEM w/ headroom
    max_tm = max(8, ((budget - fixed) // max(per_row, 1)) // 8 * 8)
    tm = max(8, min(_round_up(tm_req, 8), _round_up(N, 8), max_tm))
    footprint = fixed + tm * per_row
    vmem_limit = int(footprint * 1.25) + (2 << 20)
    vmem_limit = max(16 << 20, min(vmem_limit, 56 << 20))
    return tm, vmem_limit


# --------------------------------------------------------------------------- #
# Forward wrappers
# --------------------------------------------------------------------------- #
def gabor_layer_folded(x, folded: GaborFolded, *, tm=4096, out_dtype=None,
                       dimension_semantics=("parallel",)):
    """Forward pass from pre-folded parameters. x: (..., in_features).

    For HBM-bound deployments pass out_dtype=jnp.bfloat16 (and bf16 x) to cut
    store traffic.  On v7x pass dimension_semantics=(pltpu.CORE_PARALLEL,) to
    split the row grid across both TensorCores.
    """
    K = folded.in_features
    F = folded.out_features
    Fp = folded.rhs.shape[1] // 2
    assert x.shape[-1] == K, (x.shape, K)

    batch_shape = x.shape[:-1]
    out_dtype = x.dtype if out_dtype is None else out_dtype
    x2d = x.reshape(-1, K)
    N = x2d.shape[0]

    x_item = jnp.dtype(x2d.dtype).itemsize
    o_item = jnp.dtype(out_dtype).itemsize
    tm, vmem_limit = _select_tile_and_vmem(N, K, Fp, x_item, o_item, tm)

    grid = (pl.cdiv(N, tm),)   # partial last tile is masked; no jnp.pad copy

    cost = pl.CostEstimate(
        flops=int(2 * N * K * 3 * Fp + 8 * N * Fp),
        transcendentals=int(2 * N * Fp),
        bytes_accessed=int(N * (K * x_item + Fp * o_item)
                           + (3 * K * Fp + 2 * Fp) * 4),
    )

    out = pl.pallas_call(
        _gabor_kernel,
        out_shape=jax.ShapeDtypeStruct((N, Fp), out_dtype),
        grid_spec=pltpu.PrefetchScalarGridSpec(
            num_scalar_prefetch=0,
            grid=grid,
            in_specs=[
                pl.BlockSpec((tm, K), lambda i: (i, 0)),
                pl.BlockSpec((K, 2 * Fp), lambda i: (0, 0)),
                pl.BlockSpec((K, Fp), lambda i: (0, 0)),
                pl.BlockSpec((2, Fp), lambda i: (0, 0)),
            ],
            out_specs=pl.BlockSpec((tm, Fp), lambda i: (i, 0)),
        ),
        compiler_params=pltpu.CompilerParams(
            dimension_semantics=dimension_semantics,
            vmem_limit_bytes=vmem_limit),
        cost_estimate=cost,
    )(x2d, folded.rhs, folded.grhs, folded.vec)

    if Fp != F:
        out = out[:, :F]
    return out.reshape(*batch_shape, F)


def gabor_layer(x, weight, bias, mu, gamma, **kwargs):
    """Convenience wrapper: folds parameters every call (prefer folding once)."""
    return gabor_layer_folded(x, fold_gabor_params(weight, bias, mu, gamma),
                              **kwargs)


# --------------------------------------------------------------------------- #
# Parameter init (mirrors GaborLayer.__init__) and pure-JAX reference
# --------------------------------------------------------------------------- #
def init_gabor_params(key, in_features, out_features, weight_scale,
                      alpha=1.0, beta=1.0):
    k_w, k_b, k_mu, k_g = jax.random.split(key, 4)
    bound = 1.0 / np.sqrt(in_features)
    weight = jax.random.uniform(k_w, (out_features, in_features),
                                minval=-bound, maxval=bound, dtype=jnp.float32)
    gamma = jax.random.gamma(k_g, alpha, (out_features,), dtype=jnp.float32) / beta
    weight = weight * (weight_scale * jnp.sqrt(gamma)[:, None])
    bias = jax.random.uniform(k_b, (out_features,),
                              minval=-np.pi, maxval=np.pi, dtype=jnp.float32)
    mu = 2.0 * jax.random.uniform(k_mu, (out_features, in_features),
                                  dtype=jnp.float32) - 1.0
    return weight, bias, mu, gamma


def gabor_reference(x, weight, bias, mu, gamma):
    D = (jnp.sum(x ** 2, axis=-1)[..., None]
         + jnp.sum(mu ** 2, axis=-1)[None, :]
         - 2.0 * x @ mu.T)
    return jnp.sin(x @ weight.T + bias) * jnp.exp(-0.5 * D * gamma[None, :])


# --------------------------------------------------------------------------- #
if __name__ == "__main__":
    # Accurate f32 matmuls for both kernel and reference so the check is tight.
    jax.config.update("jax_default_matmul_precision", "highest")

    key = jax.random.PRNGKey(0)
    k_param, k_x1, k_x2 = jax.random.split(key, 3)

    in_features, out_features = 32, 128
    weight_scale = 256.0 / 4.0   # typical MFN scale: input_scale / sqrt(n_layers)

    weight, bias, mu, gamma = init_gabor_params(
        k_param, in_features, out_features, weight_scale, alpha=6.0, beta=1.0)

    # Fold the parameters ONCE (hoisted out of the per-forward path).
    folded = fold_gabor_params(weight, bias, mu, gamma)

    # Case 1: coordinate-like batch, N divisible by 8, single-tile grid.
    x1 = jax.random.uniform(k_x1, (2, 128, in_features),
                            minval=-1.0, maxval=1.0, dtype=jnp.float32)
    y1 = jax.block_until_ready(gabor_layer_folded(x1, folded))
    y1_ref = gabor_reference(x1, weight, bias, mu, gamma)
    assert y1.shape == (2, 128, out_features)
    np.testing.assert_allclose(np.asarray(y1), np.asarray(y1_ref),
                               rtol=1e-4, atol=2e-4)

    # Case 2: ragged flattened batch with a small forced tile -> multi-step grid
    # plus a masked partial last tile (no jnp.pad copy of x).
    x2 = jax.random.uniform(k_x2, (3, 100, in_features),
                            minval=-1.0, maxval=1.0, dtype=jnp.float32)
    y2 = jax.block_until_ready(gabor_layer_folded(x2, folded, tm=128))
    y2_ref = gabor_reference(x2, weight, bias, mu, gamma)
    assert y2.shape == (3, 100, out_features)
    np.testing.assert_allclose(np.asarray(y2), np.asarray(y2_ref),
                               rtol=1e-4, atol=2e-4)

    # Case 3: bf16 output (cuts the dominant HBM store traffic).
    y3 = jax.block_until_ready(
        gabor_layer_folded(x1, folded, out_dtype=jnp.bfloat16))
    assert y3.dtype == jnp.bfloat16
    np.testing.assert_allclose(np.asarray(y3, dtype=np.float32),
                               np.asarray(y1_ref), rtol=2e-2, atol=2e-2)

    print("KERNEL_OK")
</pallas_src>

<mosaic_0001>
module attributes {stable_mosaic.version = 11 : i64} {
  func.func @_gabor_kernel(%arg0: i32, %arg1: memref<256x32xf32, #tpu.memory_space<vmem>>, %arg2: memref<32x256xf32, #tpu.memory_space<vmem>>, %arg3: memref<32x128xf32, #tpu.memory_space<vmem>>, %arg4: memref<2x128xf32, #tpu.memory_space<vmem>>, %arg5: memref<256x128xf32, #tpu.memory_space<vmem>>) attributes {dimension_semantics = [#tpu.dimension_semantics<parallel>], iteration_bounds = array<i64: 1>, scalar_prefetch = 0 : i64, scratch_operands = 0 : i64, tpu.core_type = #tpu.core_type<tc>, window_params = [{transform_indices = @transform_0, window_bounds = array<i64: 256, 32>}, {pipeline_mode = #tpu.pipeline_mode<synchronous>, transform_indices = @transform_1, window_bounds = array<i64: 32, 256>}, {pipeline_mode = #tpu.pipeline_mode<synchronous>, transform_indices = @transform_2, window_bounds = array<i64: 32, 128>}, {pipeline_mode = #tpu.pipeline_mode<synchronous>, transform_indices = @transform_3, window_bounds = array<i64: 2, 128>}, {transform_indices = @transform_4, window_bounds = array<i64: 256, 128>}]} {
    %c0 = arith.constant 0 : index
    %c0_0 = arith.constant 0 : index
    %0 = vector.load %arg1[%c0, %c0_0] : memref<256x32xf32, #tpu.memory_space<vmem>>, vector<256x32xf32>
    %c0_1 = arith.constant 0 : index
    %c0_2 = arith.constant 0 : index
    %1 = vector.load %arg2[%c0_1, %c0_2] : memref<32x256xf32, #tpu.memory_space<vmem>>, vector<32x256xf32>
    %cst = arith.constant dense<0.000000e+00> : vector<256x256xf32>
    %2 = tpu.matmul %0, %1, %cst {dimension_numbers = #tpu.dot_dimension_numbers<[1], [0], [0], [1], [0, 0, 1, 1], [], []>, precision = #tpu.contract_precision<fp32>} : vector<256x32xf32>, vector<32x256xf32>, vector<256x256xf32> -> vector<256x256xf32>
    %3 = arith.mulf %0, %0 : vector<256x32xf32>
    %c0_3 = arith.constant 0 : index
    %c0_4 = arith.constant 0 : index
    %4 = vector.load %arg3[%c0_3, %c0_4] : memref<32x128xf32, #tpu.memory_space<vmem>>, vector<32x128xf32>
    %cst_5 = arith.constant dense<0.000000e+00> : vector<256x128xf32>
    %5 = tpu.matmul %3, %4, %cst_5 {dimension_numbers = #tpu.dot_dimension_numbers<[1], [0], [0], [1], [0, 0, 1, 1], [], []>, precision = #tpu.contract_precision<fp32>} : vector<256x32xf32>, vector<32x128xf32>, vector<256x128xf32> -> vector<256x128xf32>
    %6 = vector.extract_strided_slice %2 {offsets = [0, 0], sizes = [256, 128], strides = [1, 1]} : vector<256x256xf32> to vector<256x128xf32>
    %c0_6 = arith.constant 0 : index
    %c0_7 = arith.constant 0 : index
    %7 = vector.load %arg4[%c0_6, %c0_7] : memref<2x128xf32, #tpu.memory_space<vmem>>, vector<1x128xf32>
    %8 = vector.broadcast %7 : vector<1x128xf32> to vector<256x128xf32>
    %9 = arith.addf %6, %8 : vector<256x128xf32>
    %10 = vector.extract_strided_slice %2 {offsets = [0, 128], sizes = [256, 128], strides = [1, 1]} : vector<256x256xf32> to vector<256x128xf32>
    %c1 = arith.constant 1 : index
    %c0_8 = arith.constant 0 : index
    %11 = vector.load %arg4[%c1, %c0_8] : memref<2x128xf32, #tpu.memory_space<vmem>>, vector<1x128xf32>
    %12 = vector.broadcast %11 : vector<1x128xf32> to vector<256x128xf32>
    %13 = arith.addf %5, %12 : vector<256x128xf32>
    %14 = arith.addf %10, %13 : vector<256x128xf32>
    %15 = math.sin %9 : vector<256x128xf32>
    %16 = math.exp %14 : vector<256x128xf32>
    %17 = arith.mulf %15, %16 : vector<256x128xf32>
    %c0_9 = arith.constant 0 : index
    %c0_10 = arith.constant 0 : index
    %18 = vector.load %arg5[%c0_9, %c0_10] : memref<256x128xf32, #tpu.memory_space<vmem>>, vector<256x128xf32>
    tpu.vector_store %arg5[%c0_9, %c0_10], %17 {strides = array<i32>} : memref<256x128xf32, #tpu.memory_space<vmem>>, vector<256x128xf32>,
    return
  }
  func.func @transform_0(%arg0: i32) -> (i32, i32) {
    %c0_i32 = arith.constant 0 : i32
    %c0_i32_0 = arith.constant 0 : i32
    return %arg0, %c0_i32 : i32, i32
  }
  func.func @transform_1(%arg0: i32) -> (i32, i32) {
    %c0_i32 = arith.constant 0 : i32
    %c0_i32_0 = arith.constant 0 : i32
    %c0_i32_1 = arith.constant 0 : i32
    return %c0_i32, %c0_i32_0 : i32, i32
  }
  func.func @transform_2(%arg0: i32) -> (i32, i32) {
    %c0_i32 = arith.constant 0 : i32
    %c0_i32_0 = arith.constant 0 : i32
    %c0_i32_1 = arith.constant 0 : i32
    return %c0_i32, %c0_i32_0 : i32, i32
  }
  func.func @transform_3(%arg0: i32) -> (i32, i32) {
    %c0_i32 = arith.constant 0 : i32
    %c0_i32_0 = arith.constant 0 : i32
    %c0_i32_1 = arith.constant 0 : i32
    return %c0_i32, %c0_i32_0 : i32, i32
  }
  func.func @transform_4(%arg0: i32) -> (i32, i32) {
    %c0_i32 = arith.constant 0 : i32
    %c0_i32_0 = arith.constant 0 : i32
    return %arg0, %c0_i32 : i32, i32
  }
}

</mosaic_0001>

<bundles_post_ra>
// kernel: tpu_custom_call.1
= control target key start
LH: loop header
LB: loop body
LE: loop exit
PB: predicated region body
PF: predicated region fallthrough
CT: control target
= control target key end

     0   :  { %vm58_vm0 = vcmask 261120   ;;  %v14855_v9 = vmov 0.0   ;;  %s14805_s0 = inlined_call_operand.vmem [shape: f32[256,32], index: 0, kind: input, shape index: {}]   ;;  %s14806_s1 = inlined_call_operand.vmem [shape: f32[32,256], index: 1, kind: input, shape index: {}]   ;;  %s14807_s2 = inlined_call_operand.vmem [shape: f32[32,128], index: 2, kind: input, shape index: {}]   ;;  %s14808_s3 = inlined_call_operand.vmem [shape: f32[2,128], index: 3, kind: input, shape index: {}]   ;;  %s14809_s4 = inlined_call_operand.hbm [shape: f32[256,128], index: 4, kind: output, shape index: {}]  }
   0x1   :  { %v51_v0 = vld [vmem:[%s14806_s1 + $0x8] sm:$0xff]  ;;  %v53_v1 = vld [vmem:[%s14806_s1 + $0x18] sm:$0xff]  ;;  %v50_v2 = vld [vmem:[%s14806_s1] sm:$0xff]  ;;  %227 = vmatprep.mubr.f32.mxu1 %v14855_v9  ;;  %684 = vmatprep.mubr.f32.mxu0 %v14855_v9 }
   0x2   :  { %v155_v3 = vand.u32 4294901760, %v51_v0  ;;  %v159_v4 = vand.u32 4294901760, %v53_v1  ;;  %v52_v5 = vld [vmem:[%s14806_s1 + $0x10] sm:$0xff]  ;;  %v157_v6 = vand.u32 4294901760, %v50_v2  ;;  %v55_v7 = vld [vmem:[%s14806_s1 + $0x28] sm:$0xff]  ;;  %v57_v8 = vld [vmem:[%s14806_s1 + $0x38] sm:$0xff] }
   0x3   :  { %v161_v10 = vand.u32 4294901760, %v52_v5  ;;  %v163_v11 = vand.u32 4294901760, %v55_v7  ;;  %v167_v12 = vand.u32 4294901760, %v57_v8  ;;  %v54_v13 = vld [vmem:[%s14806_s1 + $0x20] sm:$0xff]  ;;  %v56_v14 = vld [vmem:[%s14806_s1 + $0x30] sm:$0xff]  ;;  %v9463_v31 = vld [vmem:[%s14805_s0 + $0x8] sm:$0xff] }
   0x4   :  { %v9433_v15 = vld [vmem:[%s14805_s0] sm:$0xff]  ;;  %v9435_v16 = vpack.c.bf16 %v159_v4, %v155_v3  ;;  %v9437_v17 = vsub.f32 %v51_v0, %v155_v3  ;;  %v9439_v18 = vsub.f32 %v53_v1, %v159_v4  ;;  %v9441_v19 = vsub.f32 %v50_v2, %v157_v6  ;;  %v9507_v54 = vld [vmem:[%s14805_s0 + $0x10] sm:$0xff]  ;;  %v9516_v58 = vld [vmem:[%s14805_s0 + $0x18] sm:$0xff] }
   0x5   :  { %v9443_v20 = vpack.c.bf16 %v161_v10, %v157_v6  ;;  %v9445_v21 = vsub.f32 %v52_v5, %v161_v10  ;;  %v9447_v22 = vpack.c.bf16 %v167_v12, %v163_v11  ;;  %v9450_v23 = vsub.f32 %v55_v7, %v163_v11  ;;  %v9525_v63 = vld [vmem:[%s14805_s0 + $0x20] sm:$0xff] }
   0x6   :  { %15163 = vst [vmem:[#allocation5_spill] sm:$0xff] %v9435_v16  ;;  %15164 = vst [vmem:[#allocation6_spill] sm:$0xff] %v9441_v19  ;;  %8396 = vmatprep.subr.bf16.mxu1 %v9435_v16  ;;  %v165_v24 = vand.u32 4294901760, %v54_v13  ;;  %v169_v25 = vand.u32 4294901760, %v56_v14  ;;  %v60_v26 = vsel %vm58_vm0, %v9433_v15, 0  ;;  %v14827_v28 = vand.u32 4294901760, %v9437_v17 }
   0x7   :  { %15165 = vst [vmem:[#allocation7_spill] sm:$0xff] %v9443_v20  ;;  %15166 = vst [vmem:[#allocation8_spill] sm:$0xff] %v9445_v21  ;;  %8398 = vmatpush1.bf16.msra.mxu1 %v9443_v20  ;;  %v9455_v27 = vand.u32 4294901760, %v60_v26  ;;  %v14826_v29 = vand.u32 4294901760, %v9439_v18  ;;  %v14825_v30 = vand.u32 4294901760, %v9441_v19  ;;  %v9466_v32 = vsub.f32 %v57_v8, %v167_v12 }
   0x8   :  { %15167 = vst [vmem:[#allocation9_spill] sm:$0xff] %v9447_v22  ;;  %15168 = vst [vmem:[#allocation10_spill] sm:$0xff] %v9450_v23  ;;  %8400 = vmatprep.subr.bf16.mxu1 %v9447_v22  ;;  %v9468_v33 = vpack.c.bf16 %v169_v25, %v165_v24  ;;  %v9470_v34 = vsub.f32 %v54_v13, %v165_v24  ;;  %v14823_v35 = vand.u32 4294901760, %v9445_v21  ;;  %v63_v42 = vsel %vm58_vm0, %v9463_v31, 0 }
   0x9   :  { %15169 = vst [vmem:[#allocation11_spill] sm:$0xff] %v9455_v27  ;;  %15170 = vst [vmem:[#allocation12_spill] sm:$0xff] %v9466_v32  ;;  %v9474_v36 = vsub.f32 %v60_v26, %v9455_v27  ;;  %v583_v37 = vsub.f32 %v9437_v17, %v14827_v28  ;;  %v595_v38 = vsub.f32 %v9439_v18, %v14826_v29  ;;  %v14822_v43 = vand.u32 4294901760, %v9450_v23 }
   0xa   :  { %15171 = vst [vmem:[#allocation13_spill] sm:$0xff] %v9468_v33  ;;  %15172 = vst [vmem:[#allocation14_spill] sm:$0xff] %v9470_v34  ;;  %v589_v39 = vsub.f32 %v9441_v19, %v14825_v30  ;;  %v9485_v40 = vsub.f32 %v56_v14, %v169_v25  ;;  %v601_v41 = vsub.f32 %v9445_v21, %v14823_v35  ;;  %v9495_v49 = vand.u32 4294901760, %v63_v42 }
   0xb   :  { %15173 = vst [vmem:[#allocation15_spill] sm:$0xff] %v9474_v36  ;;  %8402 = vmatpush1.bf16.msra.mxu1 %v9468_v33  ;;  %v14819_v44 = vand.u32 4294901760, %v9474_v36  ;;  %v584_v45 = vand.u32 4294901760, %v583_v37  ;;  %v596_v46 = vand.u32 4294901760, %v595_v38  ;;  %v607_v50 = vsub.f32 %v9450_v23, %v14822_v43 }
   0xc   :  { %15174 = vst [vmem:[#allocation16_spill] sm:$0xff] %v9485_v40  ;;  %v590_v47 = vand.u32 4294901760, %v589_v39  ;;  %v602_v48 = vand.u32 4294901760, %v601_v41  ;;  %15175 = vst [vmem:[#allocation17_spill] sm:$0xff] %v9495_v49  ;;  %v14821_v53 = vand.u32 4294901760, %v9466_v32  ;;  %v9510_v56 = vsub.f32 %v63_v42, %v9495_v49 }
   0xd   :  { %v231_v51 = vsub.f32 %v9474_v36, %v14819_v44  ;;  %v8403_v52 = vpack.c.bf16 %v596_v46, %v584_v45  ;;  %v14818_v57 = vand.u32 4294901760, %v9470_v34  ;;  %v608_v60 = vand.u32 4294901760, %v607_v50 }
   0xe   :  { %v8405_v55 = vpack.c.bf16 %v602_v48, %v590_v47  ;;  %15176 = vst [vmem:[#allocation18_spill] sm:$0xff] %v9510_v56  ;;  %v619_v61 = vsub.f32 %v9466_v32, %v14821_v53  ;;  %v14817_v62 = vand.u32 4294901760, %v9485_v40 }
   0xf   :  { %v232_v59 = vand.u32 4294901760, %v231_v51  ;;  %8404 = vmatprep.subr.bf16.mxu0 %v8403_v52  ;;  %8491 = vmatprep.subr.bf16.mxu1 %v8403_v52 }
  0x10   :  { %9 = vsyncpa [#allocation3], 0  ;;  %8406 = vmatpush1.bf16.msra.mxu0 %v8405_v55  ;;  %v14815_v0 = vand.u32 4294901760, %v9510_v56  ;;  %v613_v1 = vsub.f32 %v9470_v34, %v14818_v57  ;;  %v66_v2 = vsel %vm58_vm0, %v9507_v54, 0  ;;  %v620_v3 = vand.u32 4294901760, %v619_v61  ;;  %v9543_v7 = vld [vmem:[%s14805_s0 + $0x28] sm:$0xff] }
  0x11   :  { %233 = vmatmul.mubr.f32.vlgmr.msra.gmra.mrb[0].mxu1 %v232_v59  ;;  %v625_v4 = vsub.f32 %v9485_v40, %v14817_v62  ;;  %v9536_v5 = vand.u32 4294901760, %v66_v2  ;;  %v8411_v6 = vpack.c.bf16 %v9439_v18, %v9437_v17  ;;  %v9548_v8 = vld [vmem:[%s14805_s0 + $0x30] sm:$0xff]  ;;  %v69_v12 = vsel %vm58_vm0, %v9516_v58, 0  ;;  %v9572_v42 = vld [vmem:[%s14805_s0 + $0x38] sm:$0xff] }
  0x12   :  { %238 = vmatprep.mubr.f32.mxu1 %v14855_v9  ;;  %v242_v10 = vsub.f32 %v9510_v56, %v14815_v0  ;;  %v614_v11 = vand.u32 4294901760, %v613_v1  ;;  %v72_v13 = vsel %vm58_vm0, %v9525_v63, 0  ;;  %8493 = vmatpush1.bf16.msra.mxu1 %v8405_v55  ;;  %v8407_v14 = vpack.c.bf16 %v620_v3, %v608_v60  ;;  %v9600_v1 = vld [vmem:[%s14805_s0 + $0x40] sm:$0xff]  ;;  %v9720_v35 = vld [vmem:[%s14805_s0 + $0x70] sm:$0xff] }
  0x13   :  { %15177 = vst [vmem:[#allocation19_spill] sm:$0xff] %v9536_v5  ;;  %v626_v24 = vand.u32 4294901760, %v625_v4  ;;  %v9559_v25 = vsub.f32 %v66_v2, %v9536_v5  ;;  %v9561_v26 = vand.u32 4294901760, %v69_v12  ;;  %v9563_v38 = vand.u32 4294901760, %v72_v13  ;;  %15199 = vst [vmem:[#allocation41_spill] sm:$0xff] %v9720_v35 }
  0x14   :  { %v243_v37 = vand.u32 4294901760, %v242_v10  ;;  %v75_v39 = vsel %vm58_vm0, %v9543_v7, 0  ;;  %v78_v41 = vsel %vm58_vm0, %v9548_v8, 0  ;;  %8408 = vmatprep.subr.bf16.mxu0 %v8407_v14  ;;  %8492 = vmatprep.subr.bf16.mxu1 %v8407_v14  ;;  %v8413_v50 = vpack.c.bf16 %v9445_v21, %v9441_v19 }
  0x15   :  { %15178 = vst [vmem:[#allocation20_spill] sm:$0xff] %v9559_v25  ;;  %15179 = vst [vmem:[#allocation21_spill] sm:$0xff] %v9561_v26  ;;  %v8409_v45 = vpack.c.bf16 %v626_v24, %v614_v11  ;;  %v14814_v46 = vand.u32 4294901760, %v9559_v25  ;;  %v9576_v47 = vsub.f32 %v69_v12, %v9561_v26  ;;  %v9578_v48 = vand.u32 4294901760, %v75_v39  ;;  %v9621_v24 = vld [vmem:[%s14805_s0 + $0x48] sm:$0xff] }
  0x16   :  { %15180 = vst [vmem:[#allocation22_spill] sm:$0xff] %v9563_v38  ;;  %244 = vmatmul.mubr.f32.gmra.mrb[2].mxu1 %v243_v37  ;;  %v9583_v51 = vsub.f32 %v72_v13, %v9563_v38  ;;  %v9585_v52 = vand.u32 4294901760, %v78_v41  ;;  %v81_v61 = vsel %vm58_vm0, %v9572_v42, 0  ;;  %v84_v11 = vsel %vm58_vm0, %v9600_v1, 0 }
  0x17   :  { %15181 = vst [vmem:[#allocation23_spill] sm:$0xff] %v9576_v47  ;;  %15182 = vst [vmem:[#allocation24_spill] sm:$0xff] %v9578_v48  ;;  %8410 = vmatpush1.bf16.msra.mxu0 %v8409_v45  ;;  %249 = vmatprep.mubr.f32.mxu1 %v14855_v9  ;;  %v253_v55 = vsub.f32 %v9559_v25, %v14814_v46  ;;  %v14813_v59 = vand.u32 4294901760, %v9576_v47  ;;  %v9593_v60 = vsub.f32 %v75_v39, %v9578_v48 }
  0x18   :  { %15183 = vst [vmem:[#allocation25_spill] sm:$0xff] %v9583_v51  ;;  %15184 = vst [vmem:[#allocation26_spill] sm:$0xff] %v9585_v52  ;;  %8412 = vmatprep.subr.bf16.mxu0 %v8411_v6  ;;  %v14810_v2 = vand.u32 4294901760, %v9583_v51  ;;  %8494 = vmatpush1.bf16.msra.mxu1 %v8409_v45  ;;  %v9607_v10 = vand.u32 4294901760, %v81_v61  ;;  %v9616_v14 = vsub.f32 %v78_v41, %v9585_v52  ;;  %v9628_v39 = vand.u32 4294901760, %v84_v11 }
  0x19   :  { %15185 = vst [vmem:[#allocation27_spill] sm:$0xff] %v9593_v60  ;;  %v254_v3 = vand.u32 4294901760, %v253_v55  ;;  %v264_v4 = vsub.f32 %v9576_v47, %v14813_v59  ;;  %v14811_v13 = vand.u32 4294901760, %v9593_v60  ;;  %v8415_v37 = vpack.c.bf16 %v9466_v32, %v9450_v23 }
  0x1a   :  { %686 = vmatmul.mubr.f32.vlgmr.msra.gmra.mrb[0].mxu0 %v9455_v27  ;;  %15186 = vst [vmem:[#allocation28_spill] sm:$0xff] %v9607_v10  ;;  %v275_v6 = vsub.f32 %v9583_v51, %v14810_v2  ;;  %15187 = vst [vmem:[#allocation29_spill] sm:$0xff] %v9616_v14  ;;  %v87_v41 = vsel %vm58_vm0, %v9621_v24, 0  ;;  %v8417_v45 = vpack.c.bf16 %v9485_v40, %v9470_v34  ;;  %v9646_v2 = vld [vmem:[%s14805_s0 + $0x50] sm:$0xff]  ;;  %v9836_v40 = vld [vmem:[%s14807_s2 + $0x8] sm:$0xff] }
  0x1b   :  { %255 = vmatmul.mubr.f32.gmra.mrb[4].mxu1 %v254_v3  ;;  %8414 = vmatpush1.bf16.msra.mxu0 %v8413_v50  ;;  %v265_v12 = vand.u32 4294901760, %v264_v4  ;;  %15188 = vst [vmem:[#allocation30_spill] sm:$0xff] %v9628_v39  ;;  %v286_v55 = vsub.f32 %v9593_v60, %v14811_v13  ;;  %v14812_v3 = vand.u32 4294901760, %v9616_v14  ;;  %v9640_v4 = vsub.f32 %v81_v61, %v9607_v10 }
  0x1c   :  { %260 = vmatprep.mubr.f32.mxu1 %v14855_v9  ;;  %691 = vmatprep.mubr.f32.mxu0 %v14855_v9  ;;  %v276_v50 = vand.u32 4294901760, %v275_v6  ;;  %v9658_v13 = vsub.f32 %v84_v11, %v9628_v39  ;;  %v14869_v32 = vand.u32 4294901760, %v9836_v40 }
  0x1d   :  { %15189 = vst [vmem:[#allocation31_spill] sm:$0xff] %v9640_v4  ;;  %8416 = vmatprep.subr.bf16.mxu0 %v8415_v37  ;;  %v287_v61 = vand.u32 4294901760, %v286_v55  ;;  %v297_v6 = vsub.f32 %v9616_v14, %v14812_v3  ;;  %v14816_v37 = vand.u32 4294901760, %v9640_v4 }
  0x1e   :  { %693 = vmatmul.mubr.f32.gmra.mrb[2].mxu0 %v9495_v49  ;;  %15191 = vst [vmem:[#allocation33_spill] sm:$0xff] %v9658_v13  ;;  %v14820_v59 = vand.u32 4294901760, %v9658_v13 }
  0x1f   :  { %266 = vmatmul.mubr.f32.gmra.mrb[6].mxu1 %v265_v12  ;;  %698 = vmatprep.mubr.f32.mxu0 %v14855_v9  ;;  %v9649_v12 = vand.u32 4294901760, %v87_v41  ;;  %v298_v11 = vand.u32 4294901760, %v297_v6  ;;  %v308_v3 = vsub.f32 %v9640_v4, %v14816_v37 }
  0x20   :  { %271 = vmatprep.mubr.f32.mxu1 %v14855_v9  ;;  %8418 = vmatpush1.bf16.msra.mxu0 %v8417_v45  ;;  %v90_v45 = vsel %vm58_vm0, %v9646_v2, 0  ;;  %v319_v37 = vsub.f32 %v9658_v13, %v14820_v59 }
  0x21   :  { %15190 = vst [vmem:[#allocation32_spill] sm:$0xff] %v9649_v12  ;;  %8420 = vmatprep.subr.bf16.mxu0 %v9435_v16  ;;  %v9670_v55 = vsub.f32 %v87_v41, %v9649_v12  ;;  %v9677_v46 = vand.u32 4294901760, %v90_v45  ;;  %v9685_v41 = vld [vmem:[%s14805_s0 + $0x60] sm:$0xff]  ;;  %v309_v6 = vand.u32 4294901760, %v308_v3 }
  0x22   :  { %700 = vmatmul.mubr.f32.gmra.mrb[4].mxu0 %v9536_v5  ;;  %15194 = vst [vmem:[#allocation36_spill] sm:$0xff] %v9685_v41  ;;  %v96_v44 = vsel %vm58_vm0, %v9685_v41, 0 }
  0x23   :  { %277 = vmatmul.mubr.f32.gmra.mrb[8].mxu1 %v276_v50  ;;  %705 = vmatprep.mubr.f32.mxu0 %v14855_v9  ;;  %v9666_v50 = vld [vmem:[%s14805_s0 + $0x58] sm:$0xff]  ;;  %15192 = vst [vmem:[#allocation34_spill] sm:$0xff] %v9670_v55  ;;  %15193 = vst [vmem:[#allocation35_spill] sm:$0xff] %v9677_v46  ;;  %v9694_v62 = vsub.f32 %v90_v45, %v9677_v46  ;;  %v320_v45 = vand.u32 4294901760, %v319_v37  ;;  %v9715_v43 = vand.u32 4294901760, %v96_v44 }
  0x24   :  { %282 = vmatprep.mubr.f32.mxu1 %v14855_v9  ;;  %v93_v0 = vsel %vm58_vm0, %v9666_v50, 0 }
  0x25   :  { %v9696_v57 = vand.u32 4294901760, %v93_v0  ;;  %v14828_v59 = vand.u32 4294901760, %v9694_v62  ;;  %15198 = vst [vmem:[#allocation40_spill] sm:$0xff] %v9715_v43  ;;  %v9734_v29 = vsub.f32 %v96_v44, %v9715_v43 }
  0x26   :  { %707 = vmatmul.mubr.f32.gmra.mrb[6].mxu0 %v9561_v26 }
  0x27   :  { %288 = vmatmul.mubr.f32.gmra.mrb[10].mxu1 %v287_v61  ;;  %712 = vmatprep.mubr.f32.mxu0 %v14855_v9  ;;  %v14824_v61 = vand.u32 4294901760, %v9670_v55  ;;  %15195 = vst [vmem:[#allocation37_spill] sm:$0xff] %v9696_v57  ;;  %v9713_v53 = vsub.f32 %v93_v0, %v9696_v57  ;;  %v341_v0 = vsub.f32 %v9694_v62, %v14828_v59  ;;  %15200 = vst [vmem:[#allocation42_spill] sm:$0xff] %v9734_v29 }
  0x28   :  { %293 = vmatprep.mubr.f32.mxu1 %v14855_v9 }
  0x29   :  { %v330_v3 = vsub.f32 %v9670_v55, %v14824_v61  ;;  %15197 = vst [vmem:[#allocation39_spill] sm:$0xff] %v9713_v53  ;;  %v102_v61 = vsel %vm58_vm0, %v9720_v35, 0  ;;  %v14837_v30 = vand.u32 4294901760, %v9713_v53  ;;  %v342_v44 = vand.u32 4294901760, %v341_v0 }
  0x2a   :  { %714 = vmatmul.mubr.f32.gmra.mrb[8].mxu0 %v9563_v38 }
  0x2b   :  { %299 = vmatmul.mubr.f32.gmra.mrb[12].mxu1 %v298_v11  ;;  %719 = vmatprep.mubr.f32.mxu0 %v14855_v9  ;;  %v9704_v11 = vld [vmem:[%s14805_s0 + $0x68] sm:$0xff]  ;;  %v331_v37 = vand.u32 4294901760, %v330_v3  ;;  %v9741_v3 = vld [vmem:[%s14805_s0 + $0x78] sm:$0xff] }
  0x2c   :  { %304 = vmatprep.mubr.f32.mxu1 %v14855_v9  ;;  %15196 = vst [vmem:[#allocation38_spill] sm:$0xff] %v9704_v11  ;;  %15202 = vst [vmem:[#allocation44_spill] sm:$0xff] %v9741_v3  ;;  %v105_v59 = vsel %vm58_vm0, %v9741_v3, 0 }
  0x2e   :  { %721 = vmatmul.mubr.f32.gmra.mrb[10].mxu0 %v9578_v48  ;;  %v14844_v48 = vand.u32 4294901760, %v9734_v29 }
  0x2f   :  { %310 = vmatmul.mubr.f32.gmra.mrb[14].mxu1 %v309_v6  ;;  %726 = vmatprep.mubr.f32.mxu0 %v14855_v9  ;;  %v99_v6 = vsel %vm58_vm0, %v9704_v11, 0 }
  0x30   :  { %315 = vmatprep.mubr.f32.mxu1 %v14855_v9  ;;  %v9736_v28 = vand.u32 4294901760, %v99_v6 }
  0x32   :  { %728 = vmatmul.mubr.f32.gmra.mrb[12].mxu0 %v9585_v52  ;;  %15201 = vst [vmem:[#allocation43_spill] sm:$0xff] %v9736_v28  ;;  %v352_v52 = vsub.f32 %v9713_v53, %v14837_v30  ;;  %v9755_v38 = vsub.f32 %v99_v6, %v9736_v28  ;;  %v363_v6 = vsub.f32 %v9734_v29, %v14844_v48 }
  0x33   :  { %321 = vmatmul.mubr.f32.gmra.mrb[16].mxu1 %v320_v45  ;;  %733 = vmatprep.mubr.f32.mxu0 %v14855_v9  ;;  %v9745_v45 = vand.u32 4294901760, %v102_v61 }
  0x34   :  { %326 = vmatprep.mubr.f32.mxu1 %v14855_v9  ;;  %v353_v30 = vand.u32 4294901760, %v352_v52  ;;  %v14849_v26 = vand.u32 4294901760, %v9755_v38  ;;  %v364_v48 = vand.u32 4294901760, %v363_v6 }
  0x35   :  { %15203 = vst [vmem:[#allocation45_spill] sm:$0xff] %v9745_v45  ;;  %v9774_v5 = vsub.f32 %v102_v61, %v9745_v45 }
  0x36   :  { %735 = vmatmul.mubr.f32.gmra.mrb[14].mxu0 %v9607_v10  ;;  %v9760_v10 = vld [vmem:[%s14805_s0 + $0x80] sm:$0xff]  ;;  %v374_v61 = vsub.f32 %v9755_v38, %v14849_v26 }
  0x37   :  { %332 = vmatmul.mubr.f32.gmra.mrb[18].mxu1 %v331_v37  ;;  %740 = vmatprep.mubr.f32.mxu0 %v14855_v9  ;;  %15204 = vst [vmem:[#allocation46_spill] sm:$0xff] %v9760_v10  ;;  %v9764_v37 = vand.u32 4294901760, %v105_v59  ;;  %v108_v0 = vsel %vm58_vm0, %v9760_v10, 0 }
  0x38   :  { %337 = vmatprep.mubr.f32.mxu1 %v14855_v9  ;;  %v375_v49 = vand.u32 4294901760, %v374_v61 }
  0x39   :  { %15205 = vst [vmem:[#allocation47_spill] sm:$0xff] %v9764_v37  ;;  %v9784_v52 = vsub.f32 %v105_v59, %v9764_v37  ;;  %v9799_v59 = vld [vmem:[%s14805_s0 + $0x90] sm:$0xff] }
  0x3a   :  { %742 = vmatmul.mubr.f32.gmra.mrb[16].mxu0 %v9628_v39  ;;  %v9780_v39 = vld [vmem:[%s14805_s0 + $0x88] sm:$0xff]  ;;  %15208 = vst [vmem:[#allocation50_spill] sm:$0xff] %v9799_v59 }
  0x3b   :  { %343 = vmatmul.mubr.f32.gmra.mrb[20].mxu1 %v342_v44  ;;  %747 = vmatprep.mubr.f32.mxu0 %v14855_v9  ;;  %15206 = vst [vmem:[#allocation48_spill] sm:$0xff] %v9780_v39  ;;  %v9786_v44 = vand.u32 4294901760, %v108_v0  ;;  %v111_v27 = vsel %vm58_vm0, %v9780_v39, 0 }
  0x3c   :  { %348 = vmatprep.mubr.f32.mxu1 %v14855_v9  ;;  %v9806_v26 = vand.u32 4294901760, %v111_v27 }
  0x3d   :  { %15207 = vst [vmem:[#allocation49_spill] sm:$0xff] %v9786_v44  ;;  %v9804_v6 = vsub.f32 %v108_v0, %v9786_v44  ;;  %v9818_v0 = vld [vmem:[%s14805_s0 + $0x98] sm:$0xff] }
  0x3e   :  { %749 = vmatmul.mubr.f32.gmra.mrb[18].mxu0 %v9649_v12  ;;  %15209 = vst [vmem:[#allocation51_spill] sm:$0xff] %v9806_v26  ;;  %v15210_v12 = vand.u32 4294901760, %v9774_v5  ;;  %15211 = vst [vmem:[#allocation52_spill] sm:$0xff] %v9818_v0  ;;  %v117_v23 = vsel %vm58_vm0, %v9818_v0, 0 }
  0x3f   :  { %354 = vmatmul.mubr.f32.gmra.mrb[22].mxu1 %v353_v30  ;;  %754 = vmatprep.mubr.f32.mxu0 %v14855_v9  ;;  %v14861_v30 = vand.u32 4294901760, %v9784_v52 }
  0x40   :  { %359 = vmatprep.mubr.f32.mxu1 %v14855_v9  ;;  %v385_v16 = vsub.f32 %v9774_v5, %v15210_v12  ;;  %v9826_v12 = vsub.f32 %v111_v27, %v9806_v26  ;;  %v9844_v27 = vld [vmem:[%s14805_s0 + $0xa0] sm:$0xff] }
  0x41   :  { %15214 = vst [vmem:[#allocation54_spill] sm:$0xff] %v9844_v27  ;;  %v120_v39 = vsel %vm58_vm0, %v9844_v27, 0 }
  0x42   :  { %756 = vmatmul.mubr.f32.gmra.mrb[20].mxu0 %v9677_v46  ;;  %v114_v46 = vsel %vm58_vm0, %v9799_v59, 0  ;;  %v386_v34 = vand.u32 4294901760, %v385_v16  ;;  %v14874_v0 = vand.u32 4294901760, %v9826_v12 }
  0x43   :  { %365 = vmatmul.mubr.f32.gmra.mrb[24].mxu1 %v364_v48  ;;  %761 = vmatprep.mubr.f32.mxu0 %v14855_v9  ;;  %v396_v48 = vsub.f32 %v9784_v52, %v14861_v30  ;;  %v9839_v30 = vand.u32 4294901760, %v114_v46 }
  0x44   :  { %370 = vmatprep.mubr.f32.mxu1 %v14855_v9  ;;  %v9831_v9 = vld [vmem:[%s14807_s2] sm:$0xff] }
  0x45   :  { %15213 = vst [vmem:[#allocation53_spill] sm:$0xff] %v9839_v30  ;;  %v14870_v61 = vand.u32 4294901760, %v9831_v9  ;;  %v397_v21 = vand.u32 4294901760, %v396_v48  ;;  %v9866_v19 = vsub.f32 %v114_v46, %v9839_v30  ;;  %v9878_v48 = vand.u32 4294901760, %v120_v39 }
  0x46   :  { %763 = vmatmul.mubr.f32.gmra.mrb[22].mxu0 %v9696_v57  ;;  %v15212_v57 = vmov 0.0   ;;  %v418_v46 = vsub.f32 %v9826_v12, %v14874_v0 }
  0x47   :  { %376 = vmatmul.mubr.f32.gmra.mrb[26].mxu1 %v375_v49  ;;  %768 = vmatprep.mubr.f32.mxu0 %v15212_v57  ;;  %v9855_v16 = vpack.c.bf16 %v14869_v32, %v14870_v61  ;;  %v15215_v49 = vand.u32 4294901760, %v9804_v6  ;;  %v9868_v32 = vand.u32 4294901760, %v117_v23  ;;  %15218 = vst [vmem:[#allocation57_spill] sm:$0xff] %v9878_v48  ;;  %v14881_v61 = vand.u32 4294901760, %v9866_v19 }
  0x48   :  { %381 = vmatprep.mubr.f32.mxu1 %v15212_v57  ;;  %v9907_v10 = vsub.f32 %v120_v39, %v9878_v48 }
  0x49   :  { %v407_v59 = vsub.f32 %v9804_v6, %v15215_v49  ;;  %15216 = vst [vmem:[#allocation55_spill] sm:$0xff] %v9868_v32  ;;  %v9874_v49 = vld [vmem:[%s14805_s0 + $0xa8] sm:$0xff]  ;;  %8444 = vmatprep.subr.bf16.mxu1 %v9855_v16 }
  0x4a   :  { %770 = vmatmul.mubr.f32.gmra.mrb[24].mxu0 %v9715_v43  ;;  %15217 = vst [vmem:[#allocation56_spill] sm:$0xff] %v9874_v49  ;;  %v9886_v43 = vsub.f32 %v117_v23, %v9868_v32  ;;  %v123_v27 = vsel %vm58_vm0, %v9874_v49, 0  ;;  %v419_v23 = vand.u32 4294901760, %v418_v46 }
  0x4b   :  { %387 = vmatmul.mubr.f32.gmra.mrb[28].mxu1 %v386_v34  ;;  %775 = vmatprep.mubr.f32.mxu0 %v15212_v57  ;;  %v408_v34 = vand.u32 4294901760, %v407_v59  ;;  %v9893_v59 = vld [vmem:[%s14805_s0 + $0xb0] sm:$0xff] }
  0x4c   :  { %392 = vmatprep.mubr.f32.mxu1 %v15212_v57  ;;  %15219 = vst [vmem:[#allocation58_spill] sm:$0xff] %v9893_v59  ;;  %v126_v0 = vsel %vm58_vm0, %v9893_v59, 0  ;;  %v14886_v49 = vand.u32 4294901760, %v9886_v43  ;;  %v14889_v59 = vand.u32 4294901760, %v9907_v10 }
  0x4e   :  { %777 = vmatmul.mubr.f32.gmra.mrb[26].mxu0 %v9736_v28  ;;  %v429_v28 = vsub.f32 %v9866_v19, %v14881_v61  ;;  %v440_v39 = vsub.f32 %v9886_v43, %v14886_v49 }
  0x4f   :  { %398 = vmatmul.mubr.f32.gmra.mrb[30].mxu1 %v397_v21  ;;  %782 = vmatprep.mubr.f32.mxu0 %v15212_v57  ;;  %v9897_v21 = vand.u32 4294901760, %v123_v27 }
  0x50   :  { %403 = vmatprep.mubr.f32.mxu1 %v15212_v57  ;;  %v430_v61 = vand.u32 4294901760, %v429_v28  ;;  %v441_v28 = vand.u32 4294901760, %v440_v39  ;;  %v15226_v39 = vand.u32 4294901760, %v9437_v17 }
  0x51   :  { %15220 = vst [vmem:[#allocation59_spill] sm:$0xff] %v9897_v21  ;;  %v9926_v3 = vsub.f32 %v123_v27, %v9897_v21  ;;  %v451_v27 = vsub.f32 %v9907_v10, %v14889_v59  ;;  %v15227_v59 = vand.u32 4294901760, %v9439_v18  ;;  %v9977_v18 = vld [vmem:[%s14805_s0 + $0xd0] sm:$0xff] }
  0x52   :  { %784 = vmatmul.mubr.f32.gmra.mrb[28].mxu0 %v9745_v45  ;;  %v9912_v45 = vld [vmem:[%s14805_s0 + $0xb8] sm:$0xff]  ;;  %15230 = vst [vmem:[#allocation66_spill] sm:$0xff] %v9977_v18 }
  0x53   :  { %409 = vmatmul.mubr.f32.gmra.mrb[32].mxu1 %v408_v34  ;;  %789 = vmatprep.mubr.f32.mxu0 %v15212_v57  ;;  %15221 = vst [vmem:[#allocation60_spill] sm:$0xff] %v9912_v45  ;;  %v9916_v34 = vand.u32 4294901760, %v126_v0  ;;  %v129_v46 = vsel %vm58_vm0, %v9912_v45, 0 }
  0x54   :  { %414 = vmatprep.mubr.f32.mxu1 %v15212_v57 }
  0x55   :  { %15222 = vst [vmem:[#allocation61_spill] sm:$0xff] %v9916_v34  ;;  %v9943_v45 = vsub.f32 %v126_v0, %v9916_v34  ;;  %v8427_v0 = vpack.c.bf16 %v15227_v59, %v15226_v39  ;;  %v138_v39 = vsel %vm58_vm0, %v9977_v18, 0  ;;  %v10012_v18 = vld [vmem:[%s14805_s0 + $0xe0] sm:$0xff] }
  0x56   :  { %791 = vmatmul.mubr.f32.gmra.mrb[30].mxu0 %v9764_v37  ;;  %v9932_v37 = vld [vmem:[%s14805_s0 + $0xc0] sm:$0xff]  ;;  %15236 = vst [vmem:[#allocation72_spill] sm:$0xff] %v10012_v18 }
  0x57   :  { %420 = vmatmul.mubr.f32.gmra.mrb[34].mxu1 %v419_v23  ;;  %989 = vmatprep.mubr.f32.mxu0 %v15212_v57  ;;  %15223 = vst [vmem:[#allocation62_spill] sm:$0xff] %v9932_v37  ;;  %v9935_v23 = vand.u32 4294901760, %v129_v46 }
  0x58   :  { %425 = vmatprep.mubr.f32.mxu1 %v15212_v57 }
  0x59   :  { %15224 = vst [vmem:[#allocation63_spill] sm:$0xff] %v9935_v23  ;;  %v9961_v49 = vsub.f32 %v129_v46, %v9935_v23 }
  0x5a   :  { %992 = vmatmul.mubr.f32.vlgmr.msra.gmra.mrb[0].mxu0 %v9474_v36  ;;  %v132_v36 = vsel %vm58_vm0, %v9932_v37, 0  ;;  %v15228_v37 = vand.u32 4294901760, %v9926_v3 }
  0x5b   :  { %431 = vmatmul.mubr.f32.gmra.mrb[36].mxu1 %v430_v61  ;;  %8422 = vmatpush1.bf16.msra.mxu0 %v9443_v20  ;;  %v9952_v61 = vld [vmem:[%s14805_s0 + $0xc8] sm:$0xff]  ;;  %v452_v20 = vand.u32 4294901760, %v451_v27  ;;  %v9968_v11 = vand.u32 4294901760, %v132_v36 }
  0x5c   :  { %436 = vmatprep.mubr.f32.mxu1 %v15212_v57  ;;  %997 = vmatprep.mubr.f32.mxu0 %v15212_v57  ;;  %15225 = vst [vmem:[#allocation64_spill] sm:$0xff] %v9952_v61  ;;  %v462_v35 = vsub.f32 %v9926_v3, %v15228_v37  ;;  %v135_v17 = vsel %vm58_vm0, %v9952_v61, 0  ;;  %v14898_v37 = vand.u32 4294901760, %v9961_v49 }
  0x5d   :  { %8424 = vmatprep.subr.bf16.mxu0 %v9447_v22  ;;  %v14895_v22 = vand.u32 4294901760, %v9943_v45  ;;  %15229 = vst [vmem:[#allocation65_spill] sm:$0xff] %v9968_v11  ;;  %v9988_v27 = vand.u32 4294901760, %v135_v17 }
  0x5e   :  { %1000 = vmatmul.mubr.f32.gmra.mrb[2].mxu0 %v9510_v56  ;;  %v463_v59 = vand.u32 4294901760, %v462_v35  ;;  %v484_v35 = vsub.f32 %v9961_v49, %v14898_v37  ;;  %v144_v37 = vsel %vm58_vm0, %v10012_v18, 0 }
  0x5f   :  { %442 = vmatmul.mubr.f32.gmra.mrb[38].mxu1 %v441_v28  ;;  %1005 = vmatprep.mubr.f32.mxu0 %v15212_v57  ;;  %v473_v46 = vsub.f32 %v9943_v45, %v14895_v22  ;;  %v9986_v28 = vsub.f32 %v132_v36, %v9968_v11  ;;  %15232 = vst [vmem:[#allocation68_spill] sm:$0xff] %v9988_v27 }
  0x60   :  { %447 = vmatprep.mubr.f32.mxu1 %v15212_v57  ;;  %8426 = vmatpush1.bf16.msra.mxu0 %v9468_v33  ;;  %v10005_v22 = vsub.f32 %v135_v17, %v9988_v27  ;;  %v10007_v33 = vand.u32 4294901760, %v138_v39 }
  0x61   :  { %8428 = vmatprep.subr.bf16.mxu0 %v8427_v0  ;;  %15231 = vst [vmem:[#allocation67_spill] sm:$0xff] %v9986_v28  ;;  %v474_v36 = vand.u32 4294901760, %v473_v46  ;;  %v14902_v0 = vand.u32 4294901760, %v9986_v28  ;;  %v485_v46 = vand.u32 4294901760, %v484_v35  ;;  %v10033_v35 = vld [vmem:[%s14805_s0 + $0xe8] sm:$0xff] }
  0x62   :  { %1008 = vmatmul.mubr.f32.gmra.mrb[4].mxu0 %v9559_v25  ;;  %15234 = vst [vmem:[#allocation70_spill] sm:$0xff] %v10005_v22  ;;  %15235 = vst [vmem:[#allocation71_spill] sm:$0xff] %v10007_v33  ;;  %v14907_v61 = vand.u32 4294901760, %v10005_v22 }
  0x63   :  { %453 = vmatmul.mubr.f32.gmra.mrb[40].mxu1 %v452_v20  ;;  %1013 = vmatprep.mubr.f32.mxu0 %v15212_v57  ;;  %v9996_v20 = vld [vmem:[%s14805_s0 + $0xd8] sm:$0xff]  ;;  %v495_v17 = vsub.f32 %v9986_v28, %v14902_v0  ;;  %15239 = vst [vmem:[#allocation75_spill] sm:$0xff] %v10033_v35  ;;  %v147_v0 = vsel %vm58_vm0, %v10033_v35, 0 }
  0x64   :  { %458 = vmatprep.mubr.f32.mxu1 %v15212_v57  ;;  %15233 = vst [vmem:[#allocation69_spill] sm:$0xff] %v9996_v20  ;;  %v506_v18 = vsub.f32 %v10005_v22, %v14907_v61 }
  0x66   :  { %1016 = vmatmul.mubr.f32.gmra.mrb[6].mxu0 %v9576_v47  ;;  %v10026_v47 = vsub.f32 %v138_v39, %v10007_v33  ;;  %v496_v39 = vand.u32 4294901760, %v495_v17  ;;  %v507_v61 = vand.u32 4294901760, %v506_v18 }
  0x67   :  { %464 = vmatmul.mubr.f32.gmra.mrb[42].mxu1 %v463_v59  ;;  %1021 = vmatprep.mubr.f32.mxu0 %v15212_v57  ;;  %v141_v59 = vsel %vm58_vm0, %v9996_v20, 0 }
  0x68   :  { %469 = vmatprep.mubr.f32.mxu1 %v15212_v57  ;;  %15237 = vst [vmem:[#allocation73_spill] sm:$0xff] %v10026_v47  ;;  %v10028_v25 = vand.u32 4294901760, %v141_v59  ;;  %v14911_v20 = vand.u32 4294901760, %v10026_v47 }
  0x6a   :  { %1024 = vmatmul.mubr.f32.gmra.mrb[8].mxu0 %v9583_v51  ;;  %15238 = vst [vmem:[#allocation74_spill] sm:$0xff] %v10028_v25  ;;  %v10047_v51 = vsub.f32 %v141_v59, %v10028_v25  ;;  %v517_v59 = vsub.f32 %v10026_v47, %v14911_v20 }
  0x6b   :  { %475 = vmatmul.mubr.f32.gmra.mrb[44].mxu1 %v474_v36  ;;  %1029 = vmatprep.mubr.f32.mxu0 %v15212_v57  ;;  %v10037_v36 = vand.u32 4294901760, %v144_v37 }
  0x6c   :  { %480 = vmatprep.mubr.f32.mxu1 %v15212_v57  ;;  %15241 = vst [vmem:[#allocation77_spill] sm:$0xff] %v10047_v51  ;;  %v14915_v35 = vand.u32 4294901760, %v10047_v51  ;;  %v518_v20 = vand.u32 4294901760, %v517_v59 }
  0x6d   :  { %15240 = vst [vmem:[#allocation76_spill] sm:$0xff] %v10037_v36  ;;  %v10066_v56 = vsub.f32 %v144_v37, %v10037_v36 }
  0x6e   :  { %1032 = vmatmul.mubr.f32.gmra.mrb[10].mxu0 %v9593_v60  ;;  %v10052_v60 = vld [vmem:[%s14805_s0 + $0xf0] sm:$0xff]  ;;  %v528_v37 = vsub.f32 %v10047_v51, %v14915_v35 }
  0x6f   :  { %486 = vmatmul.mubr.f32.gmra.mrb[46].mxu1 %v485_v46  ;;  %1037 = vmatprep.mubr.f32.mxu0 %v15212_v57  ;;  %15242 = vst [vmem:[#allocation78_spill] sm:$0xff] %v10052_v60  ;;  %v10056_v46 = vand.u32 4294901760, %v147_v0  ;;  %v150_v17 = vsel %vm58_vm0, %v10052_v60, 0  ;;  %15244 = vst [vmem:[#allocation80_spill] sm:$0xff] %v10066_v56  ;;  %v14917_v60 = vand.u32 4294901760, %v10066_v56 }
  0x70   :  { %491 = vmatprep.mubr.f32.mxu1 %v15212_v57 }
  0x71   :  { %15243 = vst [vmem:[#allocation79_spill] sm:$0xff] %v10056_v46  ;;  %v10085_v41 = vsub.f32 %v147_v0, %v10056_v46  ;;  %v539_v59 = vsub.f32 %v10066_v56, %v14917_v60 }
  0x72   :  { %1040 = vmatmul.mubr.f32.gmra.mrb[12].mxu0 %v9616_v14  ;;  %v10071_v14 = vld [vmem:[%s14805_s0 + $0xf8] sm:$0xff] }
  0x73   :  { %497 = vmatmul.mubr.f32.gmra.mrb[48].mxu1 %v496_v39  ;;  %1045 = vmatprep.mubr.f32.mxu0 %v15212_v57  ;;  %15245 = vst [vmem:[#allocation81_spill] sm:$0xff] %v10071_v14  ;;  %v10075_v39 = vand.u32 4294901760, %v150_v17  ;;  %v153_v18 = vsel %vm58_vm0, %v10071_v14, 0  ;;  %15247 = vst [vmem:[#allocation83_spill] sm:$0xff] %v10085_v41  ;;  %v14919_v35 = vand.u32 4294901760, %v10085_v41 }
  0x74   :  { %502 = vmatprep.mubr.f32.mxu1 %v15212_v57 }
  0x75   :  { %15246 = vst [vmem:[#allocation82_spill] sm:$0xff] %v10075_v39  ;;  %v10097_v14 = vsub.f32 %v150_v17, %v10075_v39  ;;  %v550_v0 = vsub.f32 %v10085_v41, %v14919_v35  ;;  %v15251_v17 = vand.u32 4294901760, %v9831_v9 }
  0x76   :  { %1048 = vmatmul.mubr.f32.gmra.mrb[14].mxu0 %v9640_v4  ;;  %v10089_v4 = vand.u32 4294901760, %v153_v18 }
  0x77   :  { %508 = vmatmul.mubr.f32.gmra.mrb[50].mxu1 %v507_v61  ;;  %1053 = vmatprep.mubr.f32.mxu0 %v15212_v57  ;;  %v529_v61 = vand.u32 4294901760, %v528_v37  ;;  %15249 = vst [vmem:[#allocation85_spill] sm:$0xff] %v10097_v14  ;;  %v14922_v37 = vand.u32 4294901760, %v10097_v14  ;;  %v551_v35 = vand.u32 4294901760, %v550_v0 }
  0x78   :  { %513 = vmatprep.mubr.f32.mxu1 %v15212_v57  ;;  %15248 = vst [vmem:[#allocation84_spill] sm:$0xff] %v10089_v4  ;;  %v10107_v60 = vsub.f32 %v153_v18, %v10089_v4 }
  0x79   :  { %v561_v18 = vsub.f32 %v10097_v14, %v14922_v37 }
  0x7a   :  { %1056 = vmatmul.mubr.f32.gmra.mrb[16].mxu0 %v9658_v13  ;;  %15250 = vst [vmem:[#allocation86_spill] sm:$0xff] %v10107_v60  ;;  %v10113_v13 = vsub.f32 %v9831_v9, %v15251_v17  ;;  %v10139_v17 = vld [vmem:[%s14807_s2 + $0x10] sm:$0xff] }
  0x7b   :  { %519 = vmatmul.mubr.f32.gmra.mrb[52].mxu1 %v518_v20  ;;  %1061 = vmatprep.mubr.f32.mxu0 %v15212_v57  ;;  %v540_v20 = vand.u32 4294901760, %v539_v59  ;;  %v562_v9 = vand.u32 4294901760, %v561_v18  ;;  %v14928_v18 = vand.u32 4294901760, %v10139_v17 }
  0x7c   :  { %524 = vmatprep.mubr.f32.mxu1 %v15212_v57  ;;  %15252 = vst [vmem:[#allocation87_spill] sm:$0xff] %v10113_v13 }
  0x7e   :  { %1064 = vmatmul.mubr.f32.gmra.mrb[18].mxu0 %v9670_v55  ;;  %v14921_v55 = vand.u32 4294901760, %v10107_v60 }
  0x7f   :  { %530 = vmatmul.mubr.f32.gmra.mrb[54].mxu1 %v529_v61  ;;  %1069 = vmatprep.mubr.f32.mxu0 %v15212_v57  ;;  %v15253_v61 = vand.u32 4294901760, %v9836_v40 }
  0x80   :  { %535 = vmatprep.mubr.f32.mxu1 %v15212_v57 }
  0x81   :  { %v10119_v59 = vsub.f32 %v9836_v40, %v15253_v61  ;;  %v572_v40 = vsub.f32 %v10107_v60, %v14921_v55 }
  0x82   :  { %1072 = vmatmul.mubr.f32.gmra.mrb[20].mxu0 %v9694_v62 }
  0x83   :  { %15254 = vst [vmem:[#allocation88_spill] sm:$0xff] %v10119_v59  ;;  %541 = vmatmul.mubr.f32.gmra.mrb[56].mxu1 %v540_v20  ;;  %1077 = vmatprep.mubr.f32.mxu0 %v15212_v57  ;;  %v14926_v20 = vand.u32 4294901760, %v10113_v13  ;;  %v14925_v0 = vand.u32 4294901760, %v10119_v59  ;;  %v573_v61 = vand.u32 4294901760, %v572_v40 }
  0x84   :  { %546 = vmatprep.mubr.f32.mxu1 %v15212_v57 }
  0x85   :  { %v2784_v37 = vsub.f32 %v10113_v13, %v14926_v20  ;;  %v2222_v20 = vmul.f32 %v9543_v7, %v9543_v7 }
  0x86   :  { %1080 = vmatmul.mubr.f32.gmra.mrb[22].mxu0 %v9713_v53 }
  0x87   :  { %552 = vmatmul.mubr.f32.gmra.mrb[58].mxu1 %v551_v35  ;;  %1085 = vmatprep.mubr.f32.mxu0 %v15212_v57  ;;  %v10144_v35 = vld [vmem:[%s14807_s2 + $0x18] sm:$0xff]  ;;  %v2785_v40 = vand.u32 4294901760, %v2784_v37  ;;  %v2311_v7 = vsel %vm58_vm0, %v2222_v20, 0  ;;  %v2226_v20 = vmul.f32 %v9621_v24, %v9621_v24 }
  0x88   :  { %557 = vmatprep.mubr.f32.mxu1 %v15212_v57  ;;  %v14927_v55 = vand.u32 4294901760, %v10144_v35 }
  0x8a   :  { %1088 = vmatmul.mubr.f32.gmra.mrb[24].mxu0 %v9734_v29  ;;  %v2791_v29 = vsub.f32 %v10119_v59, %v14925_v0 }
  0x8b   :  { %563 = vmatmul.mubr.f32.gmra.mrb[60].mxu1 %v562_v9  ;;  %1093 = vmatprep.mubr.f32.mxu0 %v15212_v57  ;;  %v10163_v9 = vpack.c.bf16 %v14927_v55, %v14928_v18  ;;  %v2223_v18 = vmul.f32 %v9548_v8, %v9548_v8 }
  0x8c   :  { %568 = vmatprep.mubr.f32.mxu1 %v15212_v57  ;;  %v2792_v53 = vand.u32 4294901760, %v2791_v29  ;;  %v2217_v29 = vmul.f32 %v9433_v15, %v9433_v15 }
  0x8d   :  { %15255 = vst [vmem:[#allocation89_spill] sm:$0xff] %v10163_v9 }
  0x8e   :  { %1096 = vmatmul.mubr.f32.gmra.mrb[26].mxu0 %v9755_v38  ;;  %v2296_v37 = vsel %vm58_vm0, %v2217_v29, 0 }
  0x8f   :  { %574 = vmatmul.mubr.f32.gmra.mrb[62].mxu1 %v573_v61  ;;  %1101 = vmatprep.mubr.f32.mxu0 %v15212_v57  ;;  %v10171_v61 = vpack.c.bf16 %v2792_v53, %v2785_v40  ;;  %v2218_v53 = vmul.f32 %v9463_v31, %v9463_v31  ;;  %v2219_v40 = vmul.f32 %v9507_v54, %v9507_v54  ;;  %v10219_v15 = vand.u32 4294901760, %v2296_v37 }
  0x90   :  { %796 = vmatprep.mubr.f32.mxu1 %v15212_v57  ;;  %v2220_v31 = vmul.f32 %v9516_v58, %v9516_v58  ;;  %v2221_v54 = vmul.f32 %v9525_v63, %v9525_v63 }
  0x91   :  { %v2299_v0 = vsel %vm58_vm0, %v2218_v53, 0  ;;  %v2302_v29 = vsel %vm58_vm0, %v2219_v40, 0  ;;  %v10236_v53 = vsub.f32 %v2296_v37, %v10219_v15  ;;  %v15257_v37 = vand.u32 4294901760, %v10139_v17 }
  0x92   :  { %1104 = vmatmul.mubr.f32.gmra.mrb[28].mxu0 %v9774_v5  ;;  %v10232_v55 = vand.u32 4294901760, %v2299_v0  ;;  %v10240_v58 = vand.u32 4294901760, %v2302_v29  ;;  %v2305_v40 = vsel %vm58_vm0, %v2220_v31, 0  ;;  %v2308_v63 = vsel %vm58_vm0, %v2221_v54, 0 }
  0x93   :  { %798 = vmatmul.mubr.f32.vlgmr.msra.gmra.mrb[32].mxu1 %v9786_v44  ;;  %1109 = vmatprep.mubr.f32.mxu0 %v15212_v57  ;;  %15256 = vst [vmem:[#allocation90_spill] sm:$0xff] %v10236_v53  ;;  %v10263_v54 = vand.u32 4294901760, %v2305_v40 }
  0x94   :  { %803 = vmatprep.mubr.f32.mxu1 %v15212_v57  ;;  %8446 = vmatpush3.bf16.msra.mxu1 %v9855_v16  ;;  %v10259_v31 = vsub.f32 %v2299_v0, %v10232_v55  ;;  %v10268_v8 = vsub.f32 %v2302_v29, %v10240_v58  ;;  %v10275_v0 = vand.u32 4294901760, %v2311_v7  ;;  %v15261_v29 = vand.u32 4294901760, %v10236_v53 }
  0x95   :  { %8448 = vmatprep.subr.bf16.mxu1 %v10163_v9 }
  0x96   :  { %1112 = vmatmul.mubr.f32.gmra.mrb[30].mxu0 %v9784_v52  ;;  %15259 = vst [vmem:[#allocation91_spill] sm:$0xff] %v10259_v31  ;;  %15260 = vst [vmem:[#allocation92_spill] sm:$0xff] %v10268_v8 }
  0x97   :  { %805 = vmatmul.mubr.f32.gmra.mrb[34].mxu1 %v9806_v26  ;;  %1117 = vmatprep.mubr.f32.mxu0 %v15212_v57  ;;  %v15270_v26 = vld [vmem:[#allocation36_spill] sm:$0xff] }
  0x98   :  { %810 = vmatprep.mubr.f32.mxu1 %v15212_v57  ;;  %8450 = vmatpush3.bf16.msra.mxu1 %v10163_v9 }
  0x99   :  { %8452 = vmatprep.subr.bf16.mxu1 %v10171_v61 }
  0x9a   :  { %1120 = vmatmul.mubr.f32.gmra.mrb[32].mxu0 %v9804_v6 }
  0x9b   :  { %812 = vmatmul.mubr.f32.gmra.mrb[36].mxu1 %v9839_v30  ;;  %1125 = vmatprep.mubr.f32.mxu0 %v15212_v57 }
  0x9c   :  { %817 = vmatprep.mubr.f32.mxu1 %v15212_v57 }
  0x9e   :  { %1128 = vmatmul.mubr.f32.gmra.mrb[34].mxu0 %v9826_v12 }
  0x9f   :  { %819 = vmatmul.mubr.f32.gmra.mrb[38].mxu1 %v9868_v32  ;;  %1133 = vmatprep.mubr.f32.mxu0 %v15212_v57  ;;  %v2323_v32 = vsel %vm58_vm0, %v2226_v20, 0 }
  0xa0   :  { %824 = vmatprep.mubr.f32.mxu1 %v15212_v57 }
  0xa2   :  { %1136 = vmatmul.mubr.f32.gmra.mrb[36].mxu0 %v9866_v19 }
  0xa3   :  { %826 = vmatmul.mubr.f32.gmra.mrb[40].mxu1 %v9878_v48  ;;  %1141 = vmatprep.mubr.f32.mxu0 %v15212_v57 }
  0xa4   :  { %831 = vmatprep.mubr.f32.mxu1 %v15212_v57 }
  0xa6   :  { %1144 = vmatmul.mubr.f32.gmra.mrb[38].mxu0 %v9886_v43 }
  0xa7   :  { %833 = vmatmul.mubr.f32.gmra.mrb[42].mxu1 %v9897_v21  ;;  %1149 = vmatprep.mubr.f32.mxu0 %v15212_v57 }
  0xa8   :  { %838 = vmatprep.mubr.f32.mxu1 %v15212_v57 }
  0xaa   :  { %1152 = vmatmul.mubr.f32.gmra.mrb[40].mxu0 %v9907_v10 }
  0xab   :  { %840 = vmatmul.mubr.f32.gmra.mrb[44].mxu1 %v9916_v34  ;;  %1157 = vmatprep.mubr.f32.mxu0 %v15212_v57 }
  0xac   :  { %845 = vmatprep.mubr.f32.mxu1 %v15212_v57 }
  0xae   :  { %1160 = vmatmul.mubr.f32.gmra.mrb[42].mxu0 %v9926_v3 }
  0xaf   :  { %847 = vmatmul.mubr.f32.gmra.mrb[46].mxu1 %v9935_v23  ;;  %1165 = vmatprep.mubr.f32.mxu0 %v15212_v57  ;;  %v10288_v23 = vsub.f32 %v2305_v40, %v10263_v54 }
  0xb0   :  { %852 = vmatprep.mubr.f32.mxu1 %v15212_v57 }
  0xb1   :  { %15262 = vst [vmem:[#allocation93_spill] sm:$0xff] %v10288_v23  ;;  %v15271_v20 = vand.u32 4294901760, %v10288_v23 }
  0xb2   :  { %1168 = vmatmul.mubr.f32.gmra.mrb[44].mxu0 %v9943_v45 }
  0xb3   :  { %854 = vmatmul.mubr.f32.gmra.mrb[48].mxu1 %v9968_v11  ;;  %1173 = vmatprep.mubr.f32.mxu0 %v15212_v57  ;;  %v2463_v11 = vsub.f32 %v10236_v53, %v15261_v29  ;;  %v10301_v29 = vsub.f32 %v2311_v7, %v10275_v0  ;;  %v15267_v7 = vand.u32 4294901760, %v10259_v31 }
  0xb4   :  { %859 = vmatprep.mubr.f32.mxu1 %v15212_v57 }
  0xb5   :  { %15264 = vst [vmem:[#allocation95_spill] sm:$0xff] %v10301_v29 }
  0xb6   :  { %1176 = vmatmul.mubr.f32.gmra.mrb[46].mxu0 %v9961_v49 }
  0xb7   :  { %861 = vmatmul.mubr.f32.gmra.mrb[50].mxu1 %v9988_v27  ;;  %1181 = vmatprep.mubr.f32.mxu0 %v15212_v57 }
  0xb8   :  { %866 = vmatprep.mubr.f32.mxu1 %v15212_v57 }
  0xba   :  { %1184 = vmatmul.mubr.f32.gmra.mrb[48].mxu0 %v9986_v28 }
  0xbb   :  { %868 = vmatmul.mubr.f32.gmra.mrb[52].mxu1 %v10007_v33  ;;  %1189 = vmatprep.mubr.f32.mxu0 %v15212_v57  ;;  %v10251_v33 = vsub.f32 %v10139_v17, %v15257_v37  ;;  %v10270_v17 = vand.u32 4294901760, %v2308_v63  ;;  %v2314_v37 = vsel %vm58_vm0, %v2223_v18, 0 }
  0xbc   :  { %873 = vmatprep.mubr.f32.mxu1 %v15212_v57  ;;  %v10303_v40 = vand.u32 4294901760, %v2314_v37 }
  0xbd   :  { %v10294_v18 = vsub.f32 %v2308_v63, %v10270_v17  ;;  %v2228_v63 = vmul.f32 %v9666_v50, %v9666_v50  ;;  %v2464_v50 = vand.u32 4294901760, %v2463_v11 }
  0xbe   :  { %1192 = vmatmul.mubr.f32.gmra.mrb[50].mxu0 %v10005_v22  ;;  %v10335_v30 = vsub.f32 %v2314_v37, %v10303_v40  ;;  %v10348_v37 = vand.u32 4294901760, %v2323_v32 }
  0xbf   :  { %875 = vmatmul.mubr.f32.gmra.mrb[54].mxu1 %v10028_v25  ;;  %1197 = vmatprep.mubr.f32.mxu0 %v15212_v57  ;;  %v15258_v25 = vand.u32 4294901760, %v10144_v35  ;;  %15263 = vst [vmem:[#allocation94_spill] sm:$0xff] %v10294_v18  ;;  %v2329_v11 = vsel %vm58_vm0, %v2228_v63, 0  ;;  %v15275_v63 = vld [vmem:[#allocation41_spill] sm:$0xff] }
  0xc0   :  { %880 = vmatprep.mubr.f32.mxu1 %v15212_v57  ;;  %15269 = vst [vmem:[#allocation96_spill] sm:$0xff] %v10335_v30 }
  0xc1   :  { %v10256_v27 = vsub.f32 %v10144_v35, %v15258_v25  ;;  %v2224_v25 = vmul.f32 %v9572_v42, %v9572_v42  ;;  %v2225_v35 = vmul.f32 %v9600_v1, %v9600_v1  ;;  %v2227_v1 = vmul.f32 %v9646_v2, %v9646_v2 }
  0xc2   :  { %1200 = vmatmul.mubr.f32.gmra.mrb[52].mxu0 %v10026_v47 }
  0xc3   :  { %882 = vmatmul.mubr.f32.gmra.mrb[56].mxu1 %v10037_v36  ;;  %1205 = vmatprep.mubr.f32.mxu0 %v15212_v57  ;;  %v2317_v36 = vsel %vm58_vm0, %v2224_v25, 0  ;;  %v2320_v42 = vsel %vm58_vm0, %v2225_v35, 0  ;;  %v15265_v25 = vand.u32 4294901760, %v10251_v33  ;;  %v15266_v24 = vand.u32 4294901760, %v10256_v27 }
  0xc4   :  { %887 = vmatprep.mubr.f32.mxu1 %v15212_v57  ;;  %v2473_v35 = vsub.f32 %v10259_v31, %v15267_v7  ;;  %v10321_v2 = vand.u32 4294901760, %v2317_v36  ;;  %v2493_v7 = vsub.f32 %v10288_v23, %v15271_v20  ;;  %v2231_v20 = vmul.f32 %v15275_v63, %v15275_v63 }
  0xc5   :  { %v2805_v34 = vsub.f32 %v10256_v27, %v15266_v24  ;;  %v10328_v24 = vand.u32 4294901760, %v2320_v42  ;;  %v15276_v23 = vand.u32 4294901760, %v10294_v18 }
  0xc6   :  { %1208 = vmatmul.mubr.f32.gmra.mrb[54].mxu0 %v10047_v51  ;;  %v10346_v21 = vsub.f32 %v2317_v36, %v10321_v2  ;;  %v2494_v63 = vand.u32 4294901760, %v2493_v7 }
  0xc7   :  { %889 = vmatmul.mubr.f32.gmra.mrb[58].mxu1 %v10056_v46  ;;  %1213 = vmatprep.mubr.f32.mxu0 %v15212_v57  ;;  %v2798_v46 = vsub.f32 %v10251_v33, %v15265_v25  ;;  %v15268_v25 = vand.u32 4294901760, %v10268_v8  ;;  %v2806_v9 = vand.u32 4294901760, %v2805_v34  ;;  %v10355_v34 = vsub.f32 %v2320_v42, %v10328_v24 }
  0xc8   :  { %894 = vmatprep.mubr.f32.mxu1 %v15212_v57  ;;  %15272 = vst [vmem:[#allocation36_spill] sm:$0xff] %v10346_v21  ;;  %v2503_v31 = vsub.f32 %v10294_v18, %v15276_v23 }
  0xc9   :  { %v2483_v48 = vsub.f32 %v10268_v8, %v15268_v25  ;;  %v2229_v25 = vmul.f32 %v15270_v26, %v15270_v26  ;;  %v2799_v44 = vand.u32 4294901760, %v2798_v46  ;;  %v15273_v8 = vld [vmem:[#allocation38_spill] sm:$0xff]  ;;  %v2474_v26 = vand.u32 4294901760, %v2473_v35 }
  0xca   :  { %1216 = vmatmul.mubr.f32.gmra.mrb[56].mxu0 %v10066_v56  ;;  %15274 = vst [vmem:[#allocation38_spill] sm:$0xff] %v10355_v34  ;;  %v15277_v35 = vand.u32 4294901760, %v10301_v29 }
  0xcb   :  { %896 = vmatmul.mubr.f32.gmra.mrb[60].mxu1 %v10075_v39  ;;  %1221 = vmatprep.mubr.f32.mxu0 %v15212_v57  ;;  %v2326_v39 = vsel %vm58_vm0, %v2227_v1, 0  ;;  %v2230_v1 = vmul.f32 %v15273_v8, %v15273_v8  ;;  %v2484_v36 = vand.u32 4294901760, %v2483_v48  ;;  %v2332_v53 = vsel %vm58_vm0, %v2229_v25, 0 }
  0xcc   :  { %901 = vmatprep.mubr.f32.mxu1 %v15212_v57  ;;  %v10357_v46 = vand.u32 4294901760, %v2326_v39  ;;  %v2513_v42 = vsub.f32 %v10301_v29, %v15277_v35  ;;  %v2504_v25 = vand.u32 4294901760, %v2503_v31  ;;  %v10400_v31 = vpack.c.bf16 %v10119_v59, %v10113_v13  ;;  %v15298_v13 = vld [vmem:[#allocation12_spill] sm:$0xff] }
  0xcd   :  { %v2335_v23 = vsel %vm58_vm0, %v2230_v1, 0 }
  0xce   :  { %1224 = vmatmul.mubr.f32.gmra.mrb[58].mxu0 %v10085_v41  ;;  %v8455_v41 = vpack.c.bf16 %v2806_v9, %v2799_v44  ;;  %v10380_v35 = vsub.f32 %v2326_v39, %v10357_v46  ;;  %v2338_v44 = vsel %vm58_vm0, %v2231_v20, 0  ;;  %v15280_v9 = vld [vmem:[#allocation44_spill] sm:$0xff]  ;;  %v2514_v39 = vand.u32 4294901760, %v2513_v42  ;;  %v15284_v20 = vld [vmem:[#allocation46_spill] sm:$0xff] }
  0xcf   :  { %903 = vmatmul.mubr.f32.gmra.mrb[62].mxu1 %v10089_v4  ;;  %1229 = vmatprep.mubr.f32.mxu0 %v15212_v57  ;;  %v10365_v4 = vand.u32 4294901760, %v2329_v11  ;;  %v2232_v7 = vmul.f32 %v15280_v9, %v15280_v9  ;;  %v10394_v8 = vand.u32 4294901760, %v2335_v23  ;;  %v2233_v29 = vmul.f32 %v15284_v20, %v15284_v20  ;;  %v15287_v9 = vld [vmem:[#allocation8_spill] sm:$0xff] }
  0xd0   :  { %8067 = vmatprep.mubr.f32.mxu1 %v2464_v50  ;;  %v10374_v50 = vsub.f32 %v2323_v32, %v10348_v37  ;;  %15279 = vst [vmem:[#allocation97_spill] sm:$0xff] %v10380_v35  ;;  %v15281_v32 = vand.u32 4294901760, %v10335_v30  ;;  %v15291_v20 = vand.u32 4294901760, %v10355_v34 }
  0xd1   :  { %v10389_v1 = vsub.f32 %v2329_v11, %v10365_v4  ;;  %15283 = vst [vmem:[#allocation98_spill] sm:$0xff] %v10394_v8 }
  0xd2   :  { %1232 = vmatmul.mubr.f32.gmra.mrb[60].mxu0 %v10097_v14  ;;  %15278 = vst [vmem:[#allocation41_spill] sm:$0xff] %v10374_v50  ;;  %v2523_v48 = vsub.f32 %v10335_v30, %v15281_v32  ;;  %v15288_v32 = vand.u32 4294901760, %v15287_v9  ;;  %v10411_v14 = vand.u32 4294901760, %v2338_v44  ;;  %v2341_v9 = vsel %vm58_vm0, %v2232_v7, 0  ;;  %v15296_v7 = vld [vmem:[#allocation10_spill] sm:$0xff] }
  0xd3   :  { %8068 = vmatmul.mubr.f32.vlgmr.msra.gmra.mrb[64].mxu1 %v2474_v26  ;;  %1237 = vmatprep.mubr.f32.mxu0 %v15212_v57  ;;  %15282 = vst [vmem:[#allocation44_spill] sm:$0xff] %v10389_v1  ;;  %v10391_v26 = vand.u32 4294901760, %v2332_v53  ;;  %v15297_v59 = vand.u32 4294901760, %v15296_v7  ;;  %v10444_v56 = vand.u32 4294901760, %v2341_v9 }
  0xd4   :  { %8070 = vmatprep.mubr.f32.mxu1 %v2484_v36  ;;  %8454 = vmatpush3.bf16.msra.mxu1 %v10171_v61  ;;  %v15285_v36 = vld [vmem:[#allocation6_spill] sm:$0xff]  ;;  %v15289_v61 = vand.u32 4294901760, %v10346_v21  ;;  %15290 = vst [vmem:[#allocation46_spill] sm:$0xff] %v10411_v14 }
  0xd5   :  { %8456 = vmatprep.subr.bf16.mxu1 %v8455_v41  ;;  %v15286_v11 = vand.u32 4294901760, %v15285_v36 }
  0xd6   :  { %1240 = vmatmul.mubr.f32.gmra.mrb[62].mxu0 %v10107_v60  ;;  %v2533_v42 = vsub.f32 %v10346_v21, %v15289_v61  ;;  %v2543_v60 = vsub.f32 %v10355_v34, %v15291_v20  ;;  %v2524_v61 = vand.u32 4294901760, %v2523_v48  ;;  %v10423_v21 = vsub.f32 %v2332_v53, %v10391_v26  ;;  %v15295_v34 = vld [vmem:[#allocation50_spill] sm:$0xff]  ;;  %v15300_v48 = vld [vmem:[#allocation15_spill] sm:$0xff] }
  0xd7   :  { %v8429_v30 = vpack.c.bf16 %v15288_v32, %v15286_v11  ;;  %8071 = vmatmul.mubr.f32.gmra.mrb[66].mxu1 %v2494_v63  ;;  %1318 = vmatprep.mubr.f32.mxu0 %v15212_v57  ;;  %v15292_v11 = vld [vmem:[#allocation48_spill] sm:$0xff]  ;;  %v10426_v63 = vsub.f32 %v2335_v23, %v10394_v8  ;;  %v2344_v20 = vsel %vm58_vm0, %v2233_v29, 0  ;;  %v2235_v36 = vmul.f32 %v15295_v34, %v15295_v34 }
  0xd8   :  { %v2234_v32 = vmul.f32 %v15292_v11, %v15292_v11  ;;  %8073 = vmatprep.mubr.f32.mxu1 %v2504_v25  ;;  %15293 = vst [vmem:[#allocation6_spill] sm:$0xff] %v10423_v21  ;;  %8458 = vmatpush3.bf16.msra.mxu1 %v8455_v41  ;;  %v15299_v11 = vand.u32 4294901760, %v15298_v13  ;;  %v15301_v18 = vand.u32 4294901760, %v15300_v48  ;;  %v2534_v53 = vand.u32 4294901760, %v2533_v42  ;;  %15304 = vst [vmem:[#allocation50_spill] sm:$0xff] %v10444_v56  ;;  %v15308_v48 = vld [vmem:[#allocation54_spill] sm:$0xff] }
  0xd9   :  { %15294 = vst [vmem:[#allocation8_spill] sm:$0xff] %v10426_v63  ;;  %8460 = vmatprep.subr.bf16.mxu1 %v10400_v31  ;;  %v15302_v41 = vand.u32 4294901760, %v10374_v50  ;;  %v10442_v29 = vsub.f32 %v2338_v44, %v10411_v14  ;;  %v2544_v34 = vand.u32 4294901760, %v2543_v60  ;;  %v15305_v13 = vand.u32 4294901760, %v10380_v35  ;;  %v15309_v60 = vld [vmem:[#allocation14_spill] sm:$0xff] }
  0xda   :  { %v8431_v25 = vpack.c.bf16 %v15299_v11, %v15297_v59  ;;  %1322 = vmatmul.mubr.f32.vlgmr.msra.gmra.mrb[0].mxu0 %v15301_v18  ;;  %v2347_v7 = vsel %vm58_vm0, %v2234_v32, 0  ;;  %v15306_v18 = vld [vmem:[#allocation52_spill] sm:$0xff]  ;;  %v10454_v11 = vand.u32 4294901760, %v2344_v20  ;;  %v15313_v32 = vand.u32 4294901760, %v10389_v1  ;;  %v15314_v44 = vld [vmem:[#allocation18_spill] sm:$0xff] }
  0xdb   :  { %v2553_v23 = vsub.f32 %v10374_v50, %v15302_v41  ;;  %15303 = vst [vmem:[#allocation48_spill] sm:$0xff] %v10442_v29  ;;  %8074 = vmatmul.mubr.f32.gmra.mrb[68].mxu1 %v2514_v39  ;;  %8430 = vmatpush1.bf16.msra.mxu0 %v8429_v30  ;;  %v2563_v59 = vsub.f32 %v10380_v35, %v15305_v13  ;;  %v15310_v39 = vand.u32 4294901760, %v15309_v60  ;;  %v15311_v41 = vld [vmem:[#allocation16_spill] sm:$0xff]  ;;  %v15315_v51 = vand.u32 4294901760, %v15314_v44 }
  0xdc   :  { %v2236_v42 = vmul.f32 %v15306_v18, %v15306_v18  ;;  %1327 = vmatprep.mubr.f32.mxu0 %v15212_v57  ;;  %8076 = vmatprep.mubr.f32.mxu1 %v2524_v61  ;;  %15307 = vst [vmem:[#allocation10_spill] sm:$0xff] %v10454_v11  ;;  %v2237_v30 = vmul.f32 %v15308_v48, %v15308_v48  ;;  %v15312_v50 = vand.u32 4294901760, %v15311_v41  ;;  %v14997_v18 = vand.u32 4294901760, %v10426_v63  ;;  %v15323_v48 = vld [vmem:[#allocation5_spill] sm:$0xff] }
  0xdd   :  { %v2573_v35 = vsub.f32 %v10389_v1, %v15313_v32  ;;  %v2350_v61 = vsel %vm58_vm0, %v2235_v36, 0  ;;  %8432 = vmatprep.subr.bf16.mxu0 %v8431_v25  ;;  %v2554_v47 = vand.u32 4294901760, %v2553_v23  ;;  %v10471_v60 = vsub.f32 %v2341_v9, %v10444_v56  ;;  %v15318_v32 = vld [vmem:[#allocation56_spill] sm:$0xff]  ;;  %v15319_v25 = vld [vmem:[#allocation58_spill] sm:$0xff] }
  0xde   :  { %v8433_v13 = vpack.c.bf16 %v15312_v50, %v15310_v39  ;;  %1331 = vmatmul.mubr.f32.gmra.mrb[2].mxu0 %v15315_v51  ;;  %v10473_v41 = vand.u32 4294901760, %v2347_v7  ;;  %v2564_v50 = vand.u32 4294901760, %v2563_v59  ;;  %v2353_v39 = vsel %vm58_vm0, %v2236_v42, 0 }
  0xdf   :  { %15316 = vst [vmem:[#allocation12_spill] sm:$0xff] %v10471_v60  ;;  %8077 = vmatmul.mubr.f32.gmra.mrb[70].mxu1 %v2534_v53  ;;  %1336 = vmatprep.mubr.f32.mxu0 %v15212_v57  ;;  %v2238_v36 = vmul.f32 %v15318_v32, %v15318_v32  ;;  %v2239_v51 = vmul.f32 %v15319_v25, %v15319_v25  ;;  %v15320_v23 = vand.u32 4294901760, %v10423_v21  ;;  %v10487_v53 = vand.u32 4294901760, %v2350_v61 }
  0xe0   :  { %15317 = vst [vmem:[#allocation15_spill] sm:$0xff] %v10473_v41  ;;  %8079 = vmatprep.mubr.f32.mxu1 %v2544_v34  ;;  %v10485_v44 = vsub.f32 %v2344_v20, %v10454_v11  ;;  %v2356_v59 = vsel %vm58_vm0, %v2237_v30, 0  ;;  %8434 = vmatpush1.bf16.msra.mxu0 %v8433_v13  ;;  %v2574_v42 = vand.u32 4294901760, %v2573_v35  ;;  %v2593_v32 = vsub.f32 %v10426_v63, %v14997_v18  ;;  %v15324_v34 = vld [vmem:[#allocation20_spill] sm:$0xff] }
  0xe1   :  { %v2583_v9 = vsub.f32 %v10423_v21, %v15320_v23  ;;  %15322 = vst [vmem:[#allocation54_spill] sm:$0xff] %v10487_v53  ;;  %8436 = vmatprep.subr.bf16.mxu0 %v15323_v48  ;;  %v15325_v25 = vand.u32 4294901760, %v15324_v34  ;;  %v15326_v23 = vand.u32 4294901760, %v10442_v29  ;;  %v10501_v1 = vsub.f32 %v2347_v7, %v10473_v41  ;;  %v15330_v34 = vld [vmem:[#allocation60_spill] sm:$0xff]  ;;  %v15332_v21 = vld [vmem:[#allocation62_spill] sm:$0xff] }
  0xe2   :  { %15321 = vst [vmem:[#allocation52_spill] sm:$0xff] %v10485_v44  ;;  %v10503_v30 = vand.u32 4294901760, %v2353_v39  ;;  %v10506_v35 = vand.u32 4294901760, %v2356_v59  ;;  %v2359_v13 = vsel %vm58_vm0, %v2238_v36, 0  ;;  %v2362_v48 = vsel %vm58_vm0, %v2239_v51, 0  ;;  %v15335_v36 = vld [vmem:[#allocation23_spill] sm:$0xff] }
  0xe3   :  { %1340 = vmatmul.mubr.f32.gmra.mrb[4].mxu0 %v15325_v25  ;;  %v2603_v20 = vsub.f32 %v10442_v29, %v15326_v23  ;;  %15327 = vst [vmem:[#allocation14_spill] sm:$0xff] %v10501_v1  ;;  %8080 = vmatmul.mubr.f32.gmra.mrb[72].mxu1 %v2554_v47  ;;  %v2240_v25 = vmul.f32 %v15330_v34, %v15330_v34  ;;  %v2584_v23 = vand.u32 4294901760, %v2583_v9  ;;  %v2594_v63 = vand.u32 4294901760, %v2593_v32 }
  0xe4   :  { %15328 = vst [vmem:[#allocation16_spill] sm:$0xff] %v10503_v30  ;;  %1345 = vmatprep.mubr.f32.mxu0 %v15212_v57  ;;  %15329 = vst [vmem:[#allocation18_spill] sm:$0xff] %v10506_v35  ;;  %8082 = vmatprep.mubr.f32.mxu1 %v2564_v50  ;;  %v10514_v7 = vsub.f32 %v2350_v61, %v10487_v53  ;;  %v2241_v47 = vmul.f32 %v15332_v21, %v15332_v21  ;;  %v10518_v29 = vpop.f32.mrb[0].mxu1  ;;  %v15336_v51 = vand.u32 4294901760, %v15335_v36 }
  0xe5   :  { %15333 = vst [vmem:[#allocation58_spill] sm:$0xff] %v10518_v29  ;;  %v10520_v22 = vpop.f32.mrb[1].mxu1  ;;  %v15337_v34 = vand.u32 4294901760, %v10471_v60  ;;  %v10528_v9 = vsub.f32 %v2353_v39, %v10503_v30  ;;  %v10530_v61 = vand.u32 4294901760, %v2359_v13  ;;  %v10532_v18 = vand.u32 4294901760, %v2362_v48 }
  0xe6   :  { %15331 = vst [vmem:[#allocation56_spill] sm:$0xff] %v10514_v7  ;;  %15334 = vst [vmem:[#allocation5_spill] sm:$0xff] %v10520_v22  ;;  %v2604_v21 = vand.u32 4294901760, %v2603_v20  ;;  %v10537_v36 = vsub.f32 %v2356_v59, %v10506_v35  ;;  %v2368_v29 = vsel %vm58_vm0, %v2241_v47, 0  ;;  %v15344_v20 = vld [vmem:[#allocation66_spill] sm:$0xff]  ;;  %v15346_v59 = vld [vmem:[#allocation25_spill] sm:$0xff] }
  0xe7   :  { %1349 = vmatmul.mubr.f32.gmra.mrb[6].mxu0 %v15336_v51  ;;  %v2613_v50 = vsub.f32 %v10471_v60, %v15337_v34  ;;  %15338 = vst [vmem:[#allocation20_spill] sm:$0xff] %v10528_v9  ;;  %15339 = vst [vmem:[#allocation60_spill] sm:$0xff] %v10530_v61  ;;  %8083 = vmatmul.mubr.f32.gmra.mrb[74].mxu1 %v2574_v42  ;;  %v2365_v51 = vsel %vm58_vm0, %v2240_v25, 0  ;;  %v15342_v34 = vand.u32 4294901760, %v10485_v44  ;;  %v15343_v42 = vld [vmem:[#allocation64_spill] sm:$0xff]  ;;  %v15347_v35 = vand.u32 4294901760, %v15346_v59 }
  0xe8   :  { %15340 = vst [vmem:[#allocation62_spill] sm:$0xff] %v10532_v18  ;;  %1354 = vmatprep.mubr.f32.mxu0 %v15212_v57  ;;  %15341 = vst [vmem:[#allocation23_spill] sm:$0xff] %v10537_v36  ;;  %8085 = vmatprep.mubr.f32.mxu1 %v2584_v23  ;;  %v2242_v60 = vmul.f32 %v15343_v42, %v15343_v42  ;;  %v2243_v32 = vmul.f32 %v15344_v20, %v15344_v20  ;;  %v10560_v47 = vand.u32 4294901760, %v2365_v51 }
  0xe9   :  { %v2623_v39 = vsub.f32 %v10485_v44, %v15342_v34  ;;  %v10549_v28 = vpop.f32.mrb[2].mxu1  ;;  %v10555_v23 = vsub.f32 %v2359_v13, %v10530_v61  ;;  %v10558_v34 = vsub.f32 %v2362_v48, %v10532_v18  ;;  %v2614_v42 = vand.u32 4294901760, %v2613_v50  ;;  %v15356_v18 = vld [vmem:[#allocation72_spill] sm:$0xff] }
  0xea   :  { %15345 = vst [vmem:[#allocation64_spill] sm:$0xff] %v10549_v28  ;;  %15350 = vst [vmem:[#allocation99_spill] sm:$0xff] %v10560_v47  ;;  %v10562_v22 = vpop.f32.mrb[3].mxu1  ;;  %v15352_v20 = vand.u32 4294901760, %v10501_v1  ;;  %v10569_v25 = vand.u32 4294901760, %v2368_v29  ;;  %v15354_v48 = vand.u32 4294901760, %v10514_v7 }
  0xeb   :  { %1358 = vmatmul.mubr.f32.gmra.mrb[8].mxu0 %v15347_v35  ;;  %15348 = vst [vmem:[#allocation66_spill] sm:$0xff] %v10555_v23  ;;  %15349 = vst [vmem:[#allocation25_spill] sm:$0xff] %v10558_v34  ;;  %8086 = vmatmul.mubr.f32.gmra.mrb[76].mxu1 %v2594_v63  ;;  %v2624_v13 = vand.u32 4294901760, %v2623_v39  ;;  %v15355_v63 = vld [vmem:[#allocation69_spill] sm:$0xff]  ;;  %v2374_v50 = vsel %vm58_vm0, %v2243_v32, 0 }
  0xec   :  { %15351 = vst [vmem:[#allocation100_spill] sm:$0xff] %v10562_v22  ;;  %1363 = vmatprep.mubr.f32.mxu0 %v15212_v57  ;;  %v2633_v35 = vsub.f32 %v10501_v1, %v15352_v20  ;;  %15353 = vst [vmem:[#allocation101_spill] sm:$0xff] %v10569_v25  ;;  %8088 = vmatprep.mubr.f32.mxu1 %v2604_v21  ;;  %v2643_v28 = vsub.f32 %v10514_v7, %v15354_v48  ;;  %v2371_v22 = vsel %vm58_vm0, %v2242_v60, 0  ;;  %v15357_v1 = vld [vmem:[#allocation27_spill] sm:$0xff]  ;;  %v15368_v7 = vld [vmem:[#allocation78_spill] sm:$0xff] }
  0xed   :  { %v2244_v44 = vmul.f32 %v15355_v63, %v15355_v63  ;;  %v2245_v20 = vmul.f32 %v15356_v18, %v15356_v18  ;;  %v15358_v59 = vand.u32 4294901760, %v15357_v1  ;;  %v15359_v21 = vand.u32 4294901760, %v10528_v9 }
  0xee   :  { %v10588_v60 = vsub.f32 %v2365_v51, %v10560_v47  ;;  %v10590_v63 = vpop.f32.mrb[4].mxu1  ;;  %v2634_v18 = vand.u32 4294901760, %v2633_v35  ;;  %v15362_v1 = vand.u32 4294901760, %v10537_v36  ;;  %v2644_v51 = vand.u32 4294901760, %v2643_v28  ;;  %v15378_v47 = vld [vmem:[#allocation81_spill] sm:$0xff] }
  0xef   :  { %1367 = vmatmul.mubr.f32.gmra.mrb[10].mxu0 %v15358_v59  ;;  %v2653_v39 = vsub.f32 %v10528_v9, %v15359_v21  ;;  %15361 = vst [vmem:[#allocation72_spill] sm:$0xff] %v10590_v63  ;;  %8089 = vmatmul.mubr.f32.gmra.mrb[78].mxu1 %v2614_v42  ;;  %v10597_v59 = vsub.f32 %v2368_v29, %v10569_v25  ;;  %v10599_v21 = vand.u32 4294901760, %v2371_v22  ;;  %v10601_v61 = vpop.f32.mrb[5].mxu1  ;;  %v10603_v48 = vand.u32 4294901760, %v2374_v50  ;;  %v15367_v63 = vld [vmem:[#allocation75_spill] sm:$0xff]  ;;  %v15369_v29 = vld [vmem:[#allocation29_spill] sm:$0xff] }
  0xf0   :  { %15360 = vst [vmem:[#allocation69_spill] sm:$0xff] %v10588_v60  ;;  %1372 = vmatprep.mubr.f32.mxu0 %v15212_v57  ;;  %v2663_v32 = vsub.f32 %v10537_v36, %v15362_v1  ;;  %15365 = vst [vmem:[#allocation103_spill] sm:$0xff] %v10601_v61  ;;  %8091 = vmatprep.mubr.f32.mxu1 %v2624_v13  ;;  %v2377_v42 = vsel %vm58_vm0, %v2244_v44, 0  ;;  %v2246_v35 = vmul.f32 %v15367_v63, %v15367_v63 }
  0xf1   :  { %15363 = vst [vmem:[#allocation27_spill] sm:$0xff] %v10597_v59  ;;  %15364 = vst [vmem:[#allocation102_spill] sm:$0xff] %v10599_v21  ;;  %v2380_v9 = vsel %vm58_vm0, %v2245_v20, 0  ;;  %v2247_v1 = vmul.f32 %v15368_v7, %v15368_v7  ;;  %v15370_v36 = vand.u32 4294901760, %v15369_v29  ;;  %v2654_v25 = vand.u32 4294901760, %v2653_v39 }
  0xf2   :  { %15366 = vst [vmem:[#allocation104_spill] sm:$0xff] %v10603_v48  ;;  %v15371_v61 = vand.u32 4294901760, %v10555_v23  ;;  %v15372_v13 = vand.u32 4294901760, %v10558_v34  ;;  %v10620_v63 = vpop.f32.mrb[6].mxu1  ;;  %v2664_v7 = vand.u32 4294901760, %v2663_v32  ;;  %v10627_v39 = vand.u32 4294901760, %v2377_v42 }
  0xf3   :  { %1376 = vmatmul.mubr.f32.gmra.mrb[12].mxu0 %v15370_v36  ;;  %15373 = vst [vmem:[#allocation75_spill] sm:$0xff] %v10620_v63  ;;  %8092 = vmatmul.mubr.f32.gmra.mrb[80].mxu1 %v2634_v18  ;;  %v10625_v36 = vsub.f32 %v2371_v22, %v10599_v21  ;;  %v10632_v29 = vsub.f32 %v2374_v50, %v10603_v48  ;;  %v2383_v18 = vsel %vm58_vm0, %v2246_v35, 0  ;;  %v2386_v20 = vsel %vm58_vm0, %v2247_v1, 0  ;;  %v15379_v63 = vld [vmem:[#allocation31_spill] sm:$0xff] }
  0xf4   :  { %v2673_v28 = vsub.f32 %v10555_v23, %v15371_v61  ;;  %v2683_v44 = vsub.f32 %v10558_v34, %v15372_v13  ;;  %1381 = vmatprep.mubr.f32.mxu0 %v15212_v57  ;;  %15374 = vst [vmem:[#allocation78_spill] sm:$0xff] %v10627_v39  ;;  %v10629_v61 = vpop.f32.mrb[7].mxu1  ;;  %8094 = vmatprep.mubr.f32.mxu1 %v2644_v51  ;;  %v10634_v13 = vand.u32 4294901760, %v2380_v9  ;;  %v15380_v22 = vand.u32 4294901760, %v15379_v63 }
  0xf5   :  { %15375 = vst [vmem:[#allocation29_spill] sm:$0xff] %v10629_v61  ;;  %15376 = vst [vmem:[#allocation105_spill] sm:$0xff] %v10632_v29  ;;  %v2248_v32 = vmul.f32 %v15378_v47, %v15378_v47  ;;  %v15381_v61 = vand.u32 4294901760, %v10588_v60  ;;  %v15383_v35 = vand.u32 4294901760, %v10597_v59  ;;  %v10653_v63 = vsub.f32 %v2377_v42, %v10627_v39 }
  0xf6   :  { %15377 = vst [vmem:[#allocation106_spill] sm:$0xff] %v10634_v13  ;;  %v2674_v34 = vand.u32 4294901760, %v2673_v28  ;;  %v2684_v23 = vand.u32 4294901760, %v2683_v44  ;;  %v10645_v50 = vpop.f32.mrb[8].mxu1  ;;  %v10655_v28 = vand.u32 4294901760, %v2383_v18 }
  0xf7   :  { %1385 = vmatmul.mubr.f32.gmra.mrb[14].mxu0 %v15380_v22  ;;  %v2693_v51 = vsub.f32 %v10588_v60, %v15381_v61  ;;  %15382 = vst [vmem:[#allocation81_spill] sm:$0xff] %v10645_v50  ;;  %8095 = vmatmul.mubr.f32.gmra.mrb[82].mxu1 %v2654_v25  ;;  %v2703_v47 = vsub.f32 %v10597_v59, %v15383_v35  ;;  %v10657_v44 = vpop.f32.mrb[9].mxu1  ;;  %v10663_v22 = vand.u32 4294901760, %v2386_v20  ;;  %v2389_v50 = vsel %vm58_vm0, %v2248_v32, 0  ;;  %v15387_v35 = vld [vmem:[#allocation33_spill] sm:$0xff] }
  0xf8   :  { %1390 = vmatprep.mubr.f32.mxu0 %v15212_v57  ;;  %15384 = vst [vmem:[#allocation31_spill] sm:$0xff] %v10655_v28  ;;  %15385 = vst [vmem:[#allocation107_spill] sm:$0xff] %v10657_v44  ;;  %8097 = vmatprep.mubr.f32.mxu1 %v2664_v7  ;;  %v10661_v25 = vsub.f32 %v2380_v9, %v10634_v13  ;;  %v15388_v59 = vand.u32 4294901760, %v15387_v35  ;;  %v15390_v7 = vand.u32 4294901760, %v10625_v36  ;;  %v10678_v60 = vand.u32 4294901760, %v2389_v50 }
  0xf9   :  { %15386 = vst [vmem:[#allocation108_spill] sm:$0xff] %v10663_v22  ;;  %v2694_v1 = vand.u32 4294901760, %v2693_v51  ;;  %v10676_v44 = vsub.f32 %v2383_v18, %v10655_v28  ;;  %v15393_v51 = vand.u32 4294901760, %v10632_v29 }
  0xfa   :  { %v10668_v42 = vpop.f32.mrb[10].mxu1  ;;  %v2713_v61 = vsub.f32 %v10625_v36, %v15390_v7  ;;  %15391 = vst [vmem:[#allocation109_spill] sm:$0xff] %v10678_v60  ;;  %v15394_v7 = vld [vmem:[#allocation34_spill] sm:$0xff]  ;;  %v10699_v35 = vsub.f32 %v2389_v50, %v10678_v60 }
  0xfb   :  { %1394 = vmatmul.mubr.f32.gmra.mrb[16].mxu0 %v15388_v59  ;;  %15389 = vst [vmem:[#allocation33_spill] sm:$0xff] %v10668_v42  ;;  %8098 = vmatmul.mubr.f32.gmra.mrb[84].mxu1 %v2674_v34  ;;  %v10680_v32 = vpop.f32.mrb[11].mxu1  ;;  %v2704_v59 = vand.u32 4294901760, %v2703_v47  ;;  %v2723_v34 = vsub.f32 %v10632_v29, %v15393_v51  ;;  %v10687_v42 = vsub.f32 %v2386_v20, %v10663_v22  ;;  %v15395_v9 = vand.u32 4294901760, %v15394_v7 }
  0xfc   :  { %1399 = vmatprep.mubr.f32.mxu0 %v15212_v57  ;;  %15392 = vst [vmem:[#allocation110_spill] sm:$0xff] %v10680_v32  ;;  %8100 = vmatprep.mubr.f32.mxu1 %v2684_v23  ;;  %v2714_v32 = vand.u32 4294901760, %v2713_v61  ;;  %v15397_v23 = vand.u32 4294901760, %v10653_v63  ;;  %v15036_v51 = vand.u32 4294901760, %v10676_v44  ;;  %v15400_v61 = vand.u32 4294901760, %v9694_v62 }
  0xfd   :  { %v2724_v7 = vand.u32 4294901760, %v2723_v34  ;;  %v15038_v34 = vand.u32 4294901760, %v10699_v35 }
  0xfe   :  { %v10691_v18 = vpop.f32.mrb[12].mxu1  ;;  %v2733_v47 = vsub.f32 %v10653_v63, %v15397_v23 }
  0xff   :  { %1403 = vmatmul.mubr.f32.gmra.mrb[18].mxu0 %v15395_v9  ;;  %15396 = vst [vmem:[#allocation34_spill] sm:$0xff] %v10691_v18  ;;  %8101 = vmatmul.mubr.f32.gmra.mrb[86].mxu1 %v2694_v1  ;;  %v10701_v20 = vpop.f32.mrb[13].mxu1  ;;  %v15399_v9 = vand.u32 4294901760, %v10661_v25  ;;  %v15037_v18 = vand.u32 4294901760, %v10687_v42 }
 0x100   :  { %1408 = vmatprep.mubr.f32.mxu0 %v15212_v57  ;;  %15398 = vst [vmem:[#allocation111_spill] sm:$0xff] %v10701_v20  ;;  %8103 = vmatprep.mubr.f32.mxu1 %v2704_v59  ;;  %v2734_v50 = vand.u32 4294901760, %v2733_v47  ;;  %v2753_v59 = vsub.f32 %v10676_v44, %v15036_v51  ;;  %v2773_v51 = vsub.f32 %v10699_v35, %v15038_v34 }
 0x101   :  { %v2743_v1 = vsub.f32 %v10661_v25, %v15399_v9  ;;  %v2763_v62 = vsub.f32 %v10687_v42, %v15037_v18 }
 0x102   :  { %v10709_v29 = vpop.f32.mrb[14].mxu1  ;;  %v2754_v47 = vand.u32 4294901760, %v2753_v59  ;;  %v15411_v59 = vand.u32 4294901760, %v9755_v38 }
 0x103   :  { %1412 = vmatmul.mubr.f32.gmra.mrb[20].mxu0 %v15400_v61  ;;  %15401 = vst [vmem:[#allocation112_spill] sm:$0xff] %v10709_v29  ;;  %8104 = vmatmul.mubr.f32.gmra.mrb[88].mxu1 %v2714_v32  ;;  %v10716_v23 = vpop.f32.mrb[15].mxu1  ;;  %v2744_v9 = vand.u32 4294901760, %v2743_v1  ;;  %v15403_v61 = vld [vmem:[#allocation39_spill] sm:$0xff]  ;;  %v15407_v1 = vld [vmem:[#allocation42_spill] sm:$0xff] }
 0x104   :  { %1417 = vmatprep.mubr.f32.mxu0 %v15212_v57  ;;  %15402 = vst [vmem:[#allocation113_spill] sm:$0xff] %v10716_v23  ;;  %8106 = vmatprep.mubr.f32.mxu1 %v2724_v7  ;;  %v15404_v29 = vand.u32 4294901760, %v15403_v61  ;;  %v2764_v7 = vand.u32 4294901760, %v2763_v62  ;;  %v15408_v20 = vand.u32 4294901760, %v15407_v1  ;;  %v15420_v1 = vand.u32 4294901760, %v9804_v6 }
 0x106   :  { %v10723_v32 = vpop.f32.mrb[16].mxu1 }
 0x107   :  { %1421 = vmatmul.mubr.f32.gmra.mrb[22].mxu0 %v15404_v29  ;;  %15405 = vst [vmem:[#allocation39_spill] sm:$0xff] %v10723_v32  ;;  %8107 = vmatmul.mubr.f32.gmra.mrb[90].mxu1 %v2734_v50  ;;  %v10729_v23 = vpop.f32.mrb[17].mxu1  ;;  %v2774_v29 = vand.u32 4294901760, %v2773_v51  ;;  %v15414_v51 = vand.u32 4294901760, %v9774_v5  ;;  %v15481_v32 = vld [vmem:[#allocation6_spill] sm:$0xff] }
 0x108   :  { %1426 = vmatprep.mubr.f32.mxu0 %v15212_v57  ;;  %15406 = vst [vmem:[#allocation114_spill] sm:$0xff] %v10729_v23  ;;  %8109 = vmatprep.mubr.f32.mxu1 %v2744_v9 }
 0x10a   :  { %v10733_v18 = vpop.f32.mrb[18].mxu1 }
 0x10b   :  { %1430 = vmatmul.mubr.f32.gmra.mrb[24].mxu0 %v15408_v20  ;;  %15409 = vst [vmem:[#allocation42_spill] sm:$0xff] %v10733_v18  ;;  %8110 = vmatmul.mubr.f32.gmra.mrb[92].mxu1 %v2754_v47  ;;  %v10736_v50 = vpop.f32.mrb[19].mxu1  ;;  %v8463_v20 = vpack.c.bf16 %v10256_v27, %v10251_v33  ;;  %v15417_v47 = vand.u32 4294901760, %v9784_v52  ;;  %v15479_v18 = vld [vmem:[#allocation44_spill] sm:$0xff] }
 0x10c   :  { %1435 = vmatprep.mubr.f32.mxu0 %v15212_v57  ;;  %15410 = vst [vmem:[#allocation115_spill] sm:$0xff] %v10736_v50  ;;  %8112 = vmatprep.mubr.f32.mxu1 %v2764_v7  ;;  %v15477_v50 = vld [vmem:[#allocation21_spill] sm:$0xff] }
 0x10e   :  { %v10740_v61 = vpop.f32.mrb[20].mxu1 }
 0x10f   :  { %1439 = vmatmul.mubr.f32.gmra.mrb[26].mxu0 %v15411_v59  ;;  %15412 = vst [vmem:[#allocation116_spill] sm:$0xff] %v10740_v61  ;;  %8113 = vmatmul.mubr.f32.gmra.mrb[94].mxu1 %v2774_v29  ;;  %v10743_v9 = vpop.f32.mrb[21].mxu1  ;;  %v15423_v29 = vand.u32 4294901760, %v9826_v12  ;;  %v15475_v61 = vld [vmem:[#allocation41_spill] sm:$0xff] }
 0x110   :  { %1444 = vmatprep.mubr.f32.mxu0 %v15212_v57  ;;  %15413 = vst [vmem:[#allocation117_spill] sm:$0xff] %v10743_v9  ;;  %8123 = vmatprep.mubr.f32.mxu1 %v10219_v15  ;;  %v15474_v9 = vld [vmem:[#allocation19_spill] sm:$0xff] }
 0x112   :  { %v10750_v62 = vpop.f32.mrb[22].mxu1 }
 0x113   :  { %1448 = vmatmul.mubr.f32.gmra.mrb[28].mxu0 %v15414_v51  ;;  %15415 = vst [vmem:[#allocation118_spill] sm:$0xff] %v10750_v62  ;;  %8124 = vmatmul.mubr.f32.vlgmr.msra.gmra.mrb[64].mxu1 %v10232_v55  ;;  %v10754_v38 = vpop.f32.mrb[23].mxu1  ;;  %v15473_v62 = vld [vmem:[#allocation13_spill] sm:$0xff] }
 0x114   :  { %1453 = vmatprep.mubr.f32.mxu0 %v15212_v57  ;;  %15416 = vst [vmem:[#allocation119_spill] sm:$0xff] %v10754_v38  ;;  %8126 = vmatprep.mubr.f32.mxu1 %v10240_v58  ;;  %v15472_v38 = vld [vmem:[#allocation38_spill] sm:$0xff] }
 0x115   :  { %8462 = vmatpush3.bf16.msra.mxu1 %v10400_v31 }
 0x116   :  { %8464 = vmatprep.subr.bf16.mxu1 %v8463_v20  ;;  %v10760_v7 = vpop.f32.mrb[24].mxu1 }
 0x117   :  { %1457 = vmatmul.mubr.f32.gmra.mrb[30].mxu0 %v15417_v47  ;;  %15418 = vst [vmem:[#allocation120_spill] sm:$0xff] %v10760_v7  ;;  %8127 = vmatmul.mubr.f32.gmra.mrb[66].mxu1 %v10263_v54  ;;  %v10764_v5 = vpop.f32.mrb[25].mxu1  ;;  %v15429_v47 = vand.u32 4294901760, %v9886_v43  ;;  %v15432_v43 = vand.u32 4294901760, %v9943_v45  ;;  %v15437_v45 = vld [vmem:[#allocation60_spill] sm:$0xff]  ;;  %v15465_v7 = vld [vmem:[#allocation11_spill] sm:$0xff] }
 0x118   :  { %1462 = vmatprep.mubr.f32.mxu0 %v15212_v57  ;;  %15419 = vst [vmem:[#allocation121_spill] sm:$0xff] %v10764_v5  ;;  %8129 = vmatprep.mubr.f32.mxu1 %v10270_v17 }
 0x119   :  { %8466 = vmatpush3.bf16.msra.mxu1 %v8463_v20  ;;  %v15426_v20 = vand.u32 4294901760, %v9866_v19  ;;  %v15430_v19 = vand.u32 4294901760, %v9907_v10  ;;  %v15433_v10 = vand.u32 4294901760, %v9961_v49  ;;  %v15441_v49 = vld [vmem:[#allocation99_spill] sm:$0xff] }
 0x11a   :  { %8468 = vmatprep.subr.bf16.mxu1 %v9855_v16  ;;  %v10770_v31 = vpop.f32.mrb[26].mxu1 }
 0x11b   :  { %1466 = vmatmul.mubr.f32.gmra.mrb[32].mxu0 %v15420_v1  ;;  %15421 = vst [vmem:[#allocation122_spill] sm:$0xff] %v10770_v31  ;;  %8130 = vmatmul.mubr.f32.gmra.mrb[68].mxu1 %v10275_v0  ;;  %v10774_v52 = vpop.f32.mrb[27].mxu1  ;;  %v15431_v1 = vand.u32 4294901760, %v9926_v3  ;;  %v15434_v3 = vld [vmem:[#allocation18_spill] sm:$0xff] }
 0x11c   :  { %1471 = vmatprep.mubr.f32.mxu0 %v15212_v57  ;;  %15422 = vst [vmem:[#allocation123_spill] sm:$0xff] %v10774_v52  ;;  %8132 = vmatprep.mubr.f32.mxu1 %v10303_v40  ;;  %v15461_v31 = vld [vmem:[#allocation86_spill] sm:$0xff] }
 0x11d   :  { %v15462_v5 = vand.u32 4294901760, %v15461_v31  ;;  %v15468_v31 = vld [vmem:[#allocation96_spill] sm:$0xff] }
 0x11e   :  { %v10779_v59 = vpop.f32.mrb[28].mxu1 }
 0x11f   :  { %1475 = vmatmul.mubr.f32.gmra.mrb[34].mxu0 %v15423_v29  ;;  %15424 = vst [vmem:[#allocation124_spill] sm:$0xff] %v10779_v59  ;;  %8133 = vmatmul.mubr.f32.gmra.mrb[70].mxu1 %v10321_v2  ;;  %v10783_v6 = vpop.f32.mrb[29].mxu1  ;;  %v15435_v29 = vld [vmem:[#allocation67_spill] sm:$0xff] }
 0x120   :  { %1480 = vmatprep.mubr.f32.mxu0 %v15212_v57  ;;  %15425 = vst [vmem:[#allocation125_spill] sm:$0xff] %v10783_v6  ;;  %8135 = vmatprep.mubr.f32.mxu1 %v10328_v24  ;;  %v15459_v6 = vld [vmem:[#allocation88_spill] sm:$0xff] }
 0x121   :  { %v15460_v59 = vand.u32 4294901760, %v15459_v6  ;;  %v15467_v6 = vld [vmem:[#allocation7_spill] sm:$0xff] }
 0x122   :  { %v10788_v51 = vpop.f32.mrb[30].mxu1 }
 0x123   :  { %1484 = vmatmul.mubr.f32.gmra.mrb[36].mxu0 %v15426_v20  ;;  %15427 = vst [vmem:[#allocation126_spill] sm:$0xff] %v10788_v51  ;;  %8136 = vmatmul.mubr.f32.gmra.mrb[72].mxu1 %v10348_v37  ;;  %v10792_v12 = vpop.f32.mrb[31].mxu1  ;;  %v15436_v20 = vand.u32 4294901760, %v15435_v29  ;;  %v15445_v29 = vld [vmem:[#allocation77_spill] sm:$0xff] }
 0x124   :  { %1489 = vmatprep.mubr.f32.mxu0 %v15212_v57  ;;  %15428 = vst [vmem:[#allocation127_spill] sm:$0xff] %v10792_v12  ;;  %8138 = vmatprep.mubr.f32.mxu1 %v10357_v46  ;;  %v15456_v51 = vld [vmem:[#allocation89_spill] sm:$0xff] }
 0x127   :  { %1493 = vmatmul.mubr.f32.gmra.mrb[38].mxu0 %v15429_v47  ;;  %8139 = vmatmul.mubr.f32.gmra.mrb[74].mxu1 %v10365_v4  ;;  %v15438_v47 = vld [vmem:[#allocation62_spill] sm:$0xff] }
 0x128   :  { %1498 = vmatprep.mubr.f32.mxu0 %v15212_v57  ;;  %8141 = vmatprep.mubr.f32.mxu1 %v10391_v26 }
 0x12b   :  { %1502 = vmatmul.mubr.f32.gmra.mrb[40].mxu0 %v15430_v19  ;;  %8142 = vmatmul.mubr.f32.gmra.mrb[76].mxu1 %v10394_v8  ;;  %v15439_v19 = vld [vmem:[#allocation70_spill] sm:$0xff]  ;;  %v15528_v8 = vld [vmem:[#allocation45_spill] sm:$0xff] }
 0x12c   :  { %1507 = vmatprep.mubr.f32.mxu0 %v15212_v57  ;;  %8144 = vmatprep.mubr.f32.mxu1 %v10411_v14  ;;  %v15527_v14 = vand.u32 4294901760, %v10256_v27 }
 0x12f   :  { %1511 = vmatmul.mubr.f32.gmra.mrb[42].mxu0 %v15431_v1  ;;  %8145 = vmatmul.mubr.f32.gmra.mrb[78].mxu1 %v10444_v56  ;;  %v15440_v1 = vand.u32 4294901760, %v15439_v19  ;;  %v15447_v19 = vld [vmem:[#allocation80_spill] sm:$0xff] }
 0x130   :  { %1516 = vmatprep.mubr.f32.mxu0 %v15212_v57  ;;  %8147 = vmatprep.mubr.f32.mxu1 %v10454_v11  ;;  %v15509_v11 = vld [vmem:[#allocation69_spill] sm:$0xff] }
 0x133   :  { %1520 = vmatmul.mubr.f32.gmra.mrb[44].mxu0 %v15432_v43  ;;  %8148 = vmatmul.mubr.f32.gmra.mrb[80].mxu1 %v10473_v41  ;;  %v15442_v43 = vld [vmem:[#allocation101_spill] sm:$0xff]  ;;  %v15504_v41 = vld [vmem:[#allocation66_spill] sm:$0xff] }
 0x134   :  { %1525 = vmatprep.mubr.f32.mxu0 %v15212_v57  ;;  %8150 = vmatprep.mubr.f32.mxu1 %v10487_v53 }
 0x137   :  { %1529 = vmatmul.mubr.f32.gmra.mrb[46].mxu0 %v15433_v10  ;;  %8151 = vmatmul.mubr.f32.gmra.mrb[82].mxu1 %v10503_v30  ;;  %v15443_v10 = vld [vmem:[#allocation73_spill] sm:$0xff]  ;;  %v15501_v30 = vld [vmem:[#allocation23_spill] sm:$0xff] }
 0x138   :  { %1534 = vmatprep.mubr.f32.mxu0 %v15212_v57  ;;  %8153 = vmatprep.mubr.f32.mxu1 %v15434_v3  ;;  %v15444_v34 = vand.u32 4294901760, %v15443_v10  ;;  %v15499_v3 = vld [vmem:[#allocation20_spill] sm:$0xff] }
 0x13b   :  { %1538 = vmatmul.mubr.f32.gmra.mrb[48].mxu0 %v15436_v20  ;;  %8154 = vmatmul.mubr.f32.gmra.mrb[84].mxu1 %v15437_v45  ;;  %v15446_v20 = vand.u32 4294901760, %v15445_v29  ;;  %v15451_v29 = vld [vmem:[#allocation90_spill] sm:$0xff] }
 0x13c   :  { %1543 = vmatprep.mubr.f32.mxu0 %v15212_v57  ;;  %8156 = vmatprep.mubr.f32.mxu1 %v15438_v47  ;;  %v15496_v47 = vld [vmem:[#allocation56_spill] sm:$0xff] }
 0x13f   :  { %1547 = vmatmul.mubr.f32.gmra.mrb[50].mxu0 %v15440_v1  ;;  %8157 = vmatmul.mubr.f32.gmra.mrb[86].mxu1 %v15441_v49  ;;  %v15448_v1 = vand.u32 4294901760, %v15447_v19  ;;  %v15454_v19 = vld [vmem:[#allocation91_spill] sm:$0xff]  ;;  %v15494_v49 = vld [vmem:[#allocation14_spill] sm:$0xff] }
 0x140   :  { %1552 = vmatprep.mubr.f32.mxu0 %v15212_v57  ;;  %8159 = vmatprep.mubr.f32.mxu1 %v15442_v43 }
 0x143   :  { %1556 = vmatmul.mubr.f32.gmra.mrb[52].mxu0 %v15444_v34  ;;  %8160 = vmatmul.mubr.f32.gmra.mrb[88].mxu1 %v10599_v21  ;;  %v15449_v34 = vld [vmem:[#allocation83_spill] sm:$0xff]  ;;  %v15491_v21 = vld [vmem:[#allocation52_spill] sm:$0xff] }
 0x144   :  { %1561 = vmatprep.mubr.f32.mxu0 %v15212_v57  ;;  %8162 = vmatprep.mubr.f32.mxu1 %v10603_v48  ;;  %v15450_v10 = vand.u32 4294901760, %v15449_v34  ;;  %v15457_v34 = vld [vmem:[#allocation87_spill] sm:$0xff]  ;;  %v15489_v48 = vld [vmem:[#allocation12_spill] sm:$0xff] }
 0x147   :  { %1565 = vmatmul.mubr.f32.gmra.mrb[54].mxu0 %v15446_v20  ;;  %8163 = vmatmul.mubr.f32.gmra.mrb[90].mxu1 %v10627_v39  ;;  %v15452_v20 = vld [vmem:[#allocation85_spill] sm:$0xff] }
 0x148   :  { %1570 = vmatprep.mubr.f32.mxu0 %v15212_v57  ;;  %8165 = vmatprep.mubr.f32.mxu1 %v10634_v13  ;;  %v15453_v12 = vand.u32 4294901760, %v15452_v20  ;;  %v15464_v20 = vld [vmem:[#allocation94_spill] sm:$0xff]  ;;  %v15486_v13 = vld [vmem:[#allocation48_spill] sm:$0xff] }
 0x14b   :  { %1574 = vmatmul.mubr.f32.gmra.mrb[56].mxu0 %v15448_v1  ;;  %8166 = vmatmul.mubr.f32.gmra.mrb[92].mxu1 %v10655_v28  ;;  %v15455_v1 = vld [vmem:[#allocation92_spill] sm:$0xff] }
 0x14c   :  { %1579 = vmatprep.mubr.f32.mxu0 %v15212_v57  ;;  %8168 = vmatprep.mubr.f32.mxu1 %v10663_v22  ;;  %v15484_v22 = vld [vmem:[#allocation8_spill] sm:$0xff] }
 0x14f   :  { %1583 = vmatmul.mubr.f32.gmra.mrb[58].mxu0 %v15450_v10  ;;  %8169 = vmatmul.mubr.f32.gmra.mrb[94].mxu1 %v10678_v60  ;;  %v15458_v10 = vand.u32 4294901760, %v15457_v34  ;;  %v15466_v34 = vld [vmem:[#allocation95_spill] sm:$0xff] }
 0x150   :  { %1588 = vmatprep.mubr.f32.mxu0 %v15212_v57  ;;  %8179 = vmatprep.mubr.f32.mxu1 %v15451_v29 }
 0x151   :  { %v10861_v52 = vpack.c.bf16 %v15460_v59, %v15458_v10  ;;  %v15470_v59 = vld [vmem:[#allocation17_spill] sm:$0xff]  ;;  %v15471_v10 = vld [vmem:[#allocation36_spill] sm:$0xff] }
 0x153   :  { %1592 = vmatmul.mubr.f32.gmra.mrb[60].mxu0 %v15453_v12  ;;  %8180 = vmatmul.mubr.f32.vlgmr.msra.gmra.mrb[64].mxu1 %v15454_v19  ;;  %v15463_v12 = vld [vmem:[#allocation93_spill] sm:$0xff] }
 0x154   :  { %1597 = vmatprep.mubr.f32.mxu0 %v15212_v57  ;;  %8182 = vmatprep.mubr.f32.mxu1 %v15455_v1 }
 0x155   :  { %8470 = vmatpush3.bf16.msra.mxu1 %v9855_v16 }
 0x156   :  { %8472 = vmatprep.subr.bf16.mxu1 %v15456_v51 }
 0x157   :  { %1601 = vmatmul.mubr.f32.gmra.mrb[62].mxu0 %v15462_v5  ;;  %8183 = vmatmul.mubr.f32.gmra.mrb[66].mxu1 %v15463_v12  ;;  %v15469_v5 = vld [vmem:[#allocation9_spill] sm:$0xff] }
 0x158   :  { %1695 = vmatprep.mubr.f32.mxu0 %v15212_v57  ;;  %8185 = vmatprep.mubr.f32.mxu1 %v15464_v20 }
 0x159   :  { %8474 = vmatpush3.bf16.msra.mxu1 %v15456_v51 }
 0x15a   :  { %8476 = vmatprep.subr.bf16.mxu1 %v10861_v52 }
 0x15b   :  { %1697 = vmatmul.mubr.f32.vlgmr.msra.gmra.mrb[0].mxu0 %v15465_v7  ;;  %8186 = vmatmul.mubr.f32.gmra.mrb[68].mxu1 %v15466_v34 }
 0x15c   :  { %8438 = vmatpush1.bf16.msra.mxu0 %v15467_v6  ;;  %1702 = vmatprep.mubr.f32.mxu0 %v15212_v57  ;;  %v15476_v6 = vld [vmem:[#allocation97_spill] sm:$0xff] }
 0x15d   :  { %8188 = vmatprep.mubr.f32.mxu1 %v15468_v31  ;;  %8440 = vmatprep.subr.bf16.mxu0 %v15469_v5 }
 0x15f   :  { %1704 = vmatmul.mubr.f32.gmra.mrb[2].mxu0 %v15470_v59  ;;  %8189 = vmatmul.mubr.f32.gmra.mrb[70].mxu1 %v15471_v10 }
 0x160   :  { %1709 = vmatprep.mubr.f32.mxu0 %v15212_v57  ;;  %8191 = vmatprep.mubr.f32.mxu1 %v15472_v38 }
 0x161   :  { %8442 = vmatpush1.bf16.msra.mxu0 %v15473_v62  ;;  %v15482_v62 = vld [vmem:[#allocation22_spill] sm:$0xff] }
 0x163   :  { %1711 = vmatmul.mubr.f32.gmra.mrb[4].mxu0 %v15474_v9  ;;  %8192 = vmatmul.mubr.f32.gmra.mrb[72].mxu1 %v15475_v61 }
 0x164   :  { %1716 = vmatprep.mubr.f32.mxu0 %v15212_v57  ;;  %8194 = vmatprep.mubr.f32.mxu1 %v15476_v6 }
 0x166   :  { %v10886_v5 = vpop.f32.mrb[32].mxu1 }
 0x167   :  { %1718 = vmatmul.mubr.f32.gmra.mrb[6].mxu0 %v15477_v50  ;;  %15478 = vst [vmem:[#allocation67_spill] sm:$0xff] %v10886_v5  ;;  %8195 = vmatmul.mubr.f32.gmra.mrb[74].mxu1 %v15479_v18  ;;  %v10890_v23 = vpop.f32.mrb[33].mxu1  ;;  %v15487_v5 = vld [vmem:[#allocation24_spill] sm:$0xff] }
 0x168   :  { %1723 = vmatprep.mubr.f32.mxu0 %v15212_v57  ;;  %15480 = vst [vmem:[#allocation70_spill] sm:$0xff] %v10890_v23  ;;  %8197 = vmatprep.mubr.f32.mxu1 %v15481_v32 }
 0x16a   :  { %v10894_v60 = vpop.f32.mrb[34].mxu1 }
 0x16b   :  { %1725 = vmatmul.mubr.f32.gmra.mrb[8].mxu0 %v15482_v62  ;;  %15483 = vst [vmem:[#allocation73_spill] sm:$0xff] %v10894_v60  ;;  %8198 = vmatmul.mubr.f32.gmra.mrb[76].mxu1 %v15484_v22  ;;  %v10898_v28 = vpop.f32.mrb[35].mxu1  ;;  %v15492_v60 = vld [vmem:[#allocation26_spill] sm:$0xff] }
 0x16c   :  { %1730 = vmatprep.mubr.f32.mxu0 %v15212_v57  ;;  %15485 = vst [vmem:[#allocation77_spill] sm:$0xff] %v10898_v28  ;;  %8200 = vmatprep.mubr.f32.mxu1 %v15486_v13 }
 0x16e   :  { %v10902_v39 = vpop.f32.mrb[36].mxu1 }
 0x16f   :  { %1732 = vmatmul.mubr.f32.gmra.mrb[10].mxu0 %v15487_v5  ;;  %15488 = vst [vmem:[#allocation80_spill] sm:$0xff] %v10902_v39  ;;  %8201 = vmatmul.mubr.f32.gmra.mrb[78].mxu1 %v15489_v48  ;;  %v10906_v23 = vpop.f32.mrb[37].mxu1  ;;  %v15497_v39 = vld [vmem:[#allocation28_spill] sm:$0xff] }
 0x170   :  { %1737 = vmatprep.mubr.f32.mxu0 %v15212_v57  ;;  %15490 = vst [vmem:[#allocation83_spill] sm:$0xff] %v10906_v23  ;;  %8203 = vmatprep.mubr.f32.mxu1 %v15491_v21 }
 0x172   :  { %v10910_v43 = vpop.f32.mrb[38].mxu1 }
 0x173   :  { %1739 = vmatmul.mubr.f32.gmra.mrb[12].mxu0 %v15492_v60  ;;  %15493 = vst [vmem:[#allocation90_spill] sm:$0xff] %v10910_v43  ;;  %8204 = vmatmul.mubr.f32.gmra.mrb[80].mxu1 %v15494_v49  ;;  %v10914_v28 = vpop.f32.mrb[39].mxu1  ;;  %v15502_v43 = vld [vmem:[#allocation30_spill] sm:$0xff] }
 0x174   :  { %1744 = vmatprep.mubr.f32.mxu0 %v15212_v57  ;;  %15495 = vst [vmem:[#allocation85_spill] sm:$0xff] %v10914_v28  ;;  %8206 = vmatprep.mubr.f32.mxu1 %v15496_v47 }
 0x176   :  { %v10918_v45 = vpop.f32.mrb[40].mxu1 }
 0x177   :  { %1746 = vmatmul.mubr.f32.gmra.mrb[14].mxu0 %v15497_v39  ;;  %15498 = vst [vmem:[#allocation91_spill] sm:$0xff] %v10918_v45  ;;  %8207 = vmatmul.mubr.f32.gmra.mrb[82].mxu1 %v15499_v3  ;;  %v10922_v23 = vpop.f32.mrb[41].mxu1  ;;  %v15506_v39 = vld [vmem:[#allocation25_spill] sm:$0xff]  ;;  %v15507_v45 = vld [vmem:[#allocation32_spill] sm:$0xff] }
 0x178   :  { %1751 = vmatprep.mubr.f32.mxu0 %v15212_v57  ;;  %15500 = vst [vmem:[#allocation92_spill] sm:$0xff] %v10922_v23  ;;  %8209 = vmatprep.mubr.f32.mxu1 %v15501_v30 }
 0x17a   :  { %v10926_v53 = vpop.f32.mrb[42].mxu1 }
 0x17b   :  { %1753 = vmatmul.mubr.f32.gmra.mrb[16].mxu0 %v15502_v43  ;;  %15503 = vst [vmem:[#allocation89_spill] sm:$0xff] %v10926_v53  ;;  %8210 = vmatmul.mubr.f32.gmra.mrb[84].mxu1 %v15504_v41  ;;  %v10930_v28 = vpop.f32.mrb[43].mxu1  ;;  %v15511_v43 = vld [vmem:[#allocation27_spill] sm:$0xff] }
 0x17c   :  { %1758 = vmatprep.mubr.f32.mxu0 %v15212_v57  ;;  %15505 = vst [vmem:[#allocation87_spill] sm:$0xff] %v10930_v28  ;;  %8212 = vmatprep.mubr.f32.mxu1 %v15506_v39  ;;  %v15512_v53 = vld [vmem:[#allocation35_spill] sm:$0xff] }
 0x17e   :  { %v10934_v60 = vpop.f32.mrb[44].mxu1 }
 0x17f   :  { %1760 = vmatmul.mubr.f32.gmra.mrb[18].mxu0 %v15507_v45  ;;  %15508 = vst [vmem:[#allocation88_spill] sm:$0xff] %v10934_v60  ;;  %8213 = vmatmul.mubr.f32.gmra.mrb[86].mxu1 %v15509_v11  ;;  %v10938_v23 = vpop.f32.mrb[45].mxu1  ;;  %v15515_v45 = vld [vmem:[#allocation105_spill] sm:$0xff] }
 0x180   :  { %1765 = vmatprep.mubr.f32.mxu0 %v15212_v57  ;;  %15510 = vst [vmem:[#allocation86_spill] sm:$0xff] %v10938_v23  ;;  %8215 = vmatprep.mubr.f32.mxu1 %v15511_v43  ;;  %v15516_v60 = vld [vmem:[#allocation37_spill] sm:$0xff] }
 0x182   :  { %v10942_v56 = vpop.f32.mrb[46].mxu1 }
 0x183   :  { %1767 = vmatmul.mubr.f32.gmra.mrb[20].mxu0 %v15512_v53  ;;  %15513 = vst [vmem:[#allocation93_spill] sm:$0xff] %v10942_v56  ;;  %8216 = vmatmul.mubr.f32.gmra.mrb[88].mxu1 %v10625_v36  ;;  %v10946_v28 = vpop.f32.mrb[47].mxu1  ;;  %v15519_v56 = vld [vmem:[#allocation40_spill] sm:$0xff] }
 0x184   :  { %1772 = vmatprep.mubr.f32.mxu0 %v15212_v57  ;;  %15514 = vst [vmem:[#allocation94_spill] sm:$0xff] %v10946_v28  ;;  %8218 = vmatprep.mubr.f32.mxu1 %v15515_v45 }
 0x186   :  { %v10950_v5 = vpop.f32.mrb[48].mxu1 }
 0x187   :  { %1774 = vmatmul.mubr.f32.gmra.mrb[22].mxu0 %v15516_v60  ;;  %15517 = vst [vmem:[#allocation11_spill] sm:$0xff] %v10950_v5  ;;  %8219 = vmatmul.mubr.f32.gmra.mrb[90].mxu1 %v10653_v63  ;;  %v10954_v23 = vpop.f32.mrb[49].mxu1  ;;  %v15522_v5 = vld [vmem:[#allocation43_spill] sm:$0xff] }
 0x188   :  { %1779 = vmatprep.mubr.f32.mxu0 %v15212_v57  ;;  %15518 = vst [vmem:[#allocation95_spill] sm:$0xff] %v10954_v23  ;;  %8221 = vmatprep.mubr.f32.mxu1 %v10661_v25 }
 0x18a   :  { %v10958_v53 = vpop.f32.mrb[50].mxu1 }
 0x18b   :  { %1781 = vmatmul.mubr.f32.gmra.mrb[24].mxu0 %v15519_v56  ;;  %15520 = vst [vmem:[#allocation7_spill] sm:$0xff] %v10958_v53  ;;  %8222 = vmatmul.mubr.f32.gmra.mrb[92].mxu1 %v10676_v44  ;;  %v10962_v28 = vpop.f32.mrb[51].mxu1  ;;  %v15525_v53 = vand.u32 4294901760, %v15451_v29  ;;  %v15526_v56 = vand.u32 4294901760, %v10251_v33  ;;  %v15533_v33 = vld [vmem:[#allocation47_spill] sm:$0xff] }
 0x18c   :  { %1786 = vmatprep.mubr.f32.mxu0 %v15212_v57  ;;  %15521 = vst [vmem:[#allocation96_spill] sm:$0xff] %v10962_v28  ;;  %8224 = vmatprep.mubr.f32.mxu1 %v10687_v42 }
 0x18d   :  { %v8479_v28 = vpack.c.bf16 %v15527_v14, %v15526_v56  ;;  %v15535_v14 = vand.u32 4294901760, %v15463_v12 }
 0x18e   :  { %v10966_v60 = vpop.f32.mrb[52].mxu1 }
 0x18f   :  { %1788 = vmatmul.mubr.f32.gmra.mrb[26].mxu0 %v15522_v5  ;;  %15523 = vst [vmem:[#allocation9_spill] sm:$0xff] %v10966_v60  ;;  %8225 = vmatmul.mubr.f32.gmra.mrb[94].mxu1 %v10699_v35  ;;  %v10970_v23 = vpop.f32.mrb[53].mxu1  ;;  %v15530_v60 = vand.u32 4294901760, %v15454_v19  ;;  %v15542_v19 = vand.u32 4294901760, %v15468_v31  ;;  %v15550_v31 = vand.u32 4294901760, %v15475_v61  ;;  %v15557_v61 = vand.u32 4294901760, %v15484_v22 }
 0x190   :  { %1793 = vmatprep.mubr.f32.mxu0 %v15212_v57  ;;  %15524 = vst [vmem:[#allocation17_spill] sm:$0xff] %v10970_v23  ;;  %8235 = vmatprep.mubr.f32.mxu1 %v15525_v53  ;;  %v15532_v23 = vand.u32 4294901760, %v15455_v1  ;;  %v15537_v53 = vand.u32 4294901760, %v15464_v20  ;;  %v15543_v1 = vld [vmem:[#allocation51_spill] sm:$0xff]  ;;  %v15563_v22 = vand.u32 4294901760, %v15494_v49  ;;  %v15569_v49 = vand.u32 4294901760, %v15504_v41 }
 0x191   :  { %v15575_v41 = vand.u32 4294901760, %v10625_v36  ;;  %v15581_v36 = vand.u32 4294901760, %v10676_v44  ;;  %v15586_v44 = vld [vmem:[#allocation84_spill] sm:$0xff] }
 0x192   :  { %v10979_v62 = vpop.f32.mrb[54].mxu1 }
 0x193   :  { %1795 = vmatmul.mubr.f32.gmra.mrb[28].mxu0 %v15528_v8  ;;  %15529 = vst [vmem:[#allocation36_spill] sm:$0xff] %v10979_v62  ;;  %8236 = vmatmul.mubr.f32.vlgmr.msra.gmra.mrb[64].mxu1 %v15530_v60  ;;  %v10984_v5 = vpop.f32.mrb[55].mxu1  ;;  %v15538_v60 = vld [vmem:[#allocation49_spill] sm:$0xff] }
 0x194   :  { %1800 = vmatprep.mubr.f32.mxu0 %v15212_v57  ;;  %15531 = vst [vmem:[#allocation38_spill] sm:$0xff] %v10984_v5  ;;  %8238 = vmatprep.mubr.f32.mxu1 %v15532_v23 }
 0x195   :  { %8478 = vmatpush3.bf16.msra.mxu1 %v10861_v52  ;;  %v15540_v52 = vand.u32 4294901760, %v15466_v34  ;;  %v15547_v34 = vand.u32 4294901760, %v15472_v38  ;;  %v15555_v38 = vand.u32 4294901760, %v15481_v32  ;;  %v15561_v32 = vand.u32 4294901760, %v15491_v21 }
 0x196   :  { %8480 = vmatprep.subr.bf16.mxu1 %v8479_v28  ;;  %v10990_v56 = vpop.f32.mrb[56].mxu1  ;;  %v15567_v21 = vand.u32 4294901760, %v15501_v30  ;;  %v15573_v30 = vand.u32 4294901760, %v15511_v43  ;;  %v15579_v43 = vand.u32 4294901760, %v10661_v25  ;;  %v15585_v25 = vld [vmem:[#allocation82_spill] sm:$0xff] }
 0x197   :  { %1802 = vmatmul.mubr.f32.gmra.mrb[30].mxu0 %v15533_v33  ;;  %15534 = vst [vmem:[#allocation13_spill] sm:$0xff] %v10990_v56  ;;  %8239 = vmatmul.mubr.f32.gmra.mrb[66].mxu1 %v15535_v14  ;;  %v10995_v27 = vpop.f32.mrb[57].mxu1  ;;  %v15548_v14 = vld [vmem:[#allocation53_spill] sm:$0xff] }
 0x198   :  { %1807 = vmatprep.mubr.f32.mxu0 %v15212_v57  ;;  %15536 = vst [vmem:[#allocation19_spill] sm:$0xff] %v10995_v27  ;;  %8241 = vmatprep.mubr.f32.mxu1 %v15537_v53 }
 0x199   :  { %8482 = vmatpush3.bf16.msra.mxu1 %v8479_v28  ;;  %v15545_v28 = vand.u32 4294901760, %v15471_v10  ;;  %v15552_v10 = vand.u32 4294901760, %v15476_v6  ;;  %v15558_v6 = vand.u32 4294901760, %v15486_v13  ;;  %v15564_v13 = vand.u32 4294901760, %v15496_v47 }
 0x19a   :  { %8484 = vmatprep.subr.bf16.mxu1 %v9855_v16  ;;  %v11001_v23 = vpop.f32.mrb[58].mxu1  ;;  %v15570_v47 = vand.u32 4294901760, %v15506_v39  ;;  %v15576_v39 = vand.u32 4294901760, %v15515_v45  ;;  %v15582_v45 = vand.u32 4294901760, %v10687_v42  ;;  %v15588_v42 = vld [vmem:[#allocation98_spill] sm:$0xff] }
 0x19b   :  { %1809 = vmatmul.mubr.f32.gmra.mrb[32].mxu0 %v15538_v60  ;;  %15539 = vst [vmem:[#allocation41_spill] sm:$0xff] %v11001_v23  ;;  %8242 = vmatmul.mubr.f32.gmra.mrb[68].mxu1 %v15540_v52  ;;  %v11006_v29 = vpop.f32.mrb[59].mxu1 }
 0x19c   :  { %1814 = vmatprep.mubr.f32.mxu0 %v15212_v57  ;;  %15541 = vst [vmem:[#allocation97_spill] sm:$0xff] %v11006_v29  ;;  %8244 = vmatprep.mubr.f32.mxu1 %v15542_v19  ;;  %v15553_v19 = vld [vmem:[#allocation55_spill] sm:$0xff]  ;;  %v15644_v29 = vmov 1326507024  }
 0x19e   :  { %v11011_v12 = vpop.f32.mrb[60].mxu1 }
 0x19f   :  { %1816 = vmatmul.mubr.f32.gmra.mrb[34].mxu0 %v15543_v1  ;;  %15544 = vst [vmem:[#allocation21_spill] sm:$0xff] %v11011_v12  ;;  %8245 = vmatmul.mubr.f32.gmra.mrb[70].mxu1 %v15545_v28  ;;  %v11016_v20 = vpop.f32.mrb[61].mxu1  ;;  %v15554_v28 = vand.u32 4294901760, %v15479_v18  ;;  %v15560_v18 = vand.u32 4294901760, %v15489_v48  ;;  %v15566_v48 = vand.u32 4294901760, %v15499_v3  ;;  %v15572_v3 = vand.u32 4294901760, %v15509_v11 }
 0x1a0   :  { %1821 = vmatprep.mubr.f32.mxu0 %v15212_v57  ;;  %15546 = vst [vmem:[#allocation44_spill] sm:$0xff] %v11016_v20  ;;  %8247 = vmatprep.mubr.f32.mxu1 %v15547_v34  ;;  %v15556_v34 = vld [vmem:[#allocation57_spill] sm:$0xff]  ;;  %v15578_v11 = vand.u32 4294901760, %v10653_v63  ;;  %v15584_v63 = vand.u32 4294901760, %v10699_v35  ;;  %v15589_v35 = vld [vmem:[#allocation46_spill] sm:$0xff] }
 0x1a2   :  { %v11021_v53 = vpop.f32.mrb[62].mxu1 }
 0x1a3   :  { %1823 = vmatmul.mubr.f32.gmra.mrb[36].mxu0 %v15548_v14  ;;  %15549 = vst [vmem:[#allocation6_spill] sm:$0xff] %v11021_v53  ;;  %8248 = vmatmul.mubr.f32.gmra.mrb[72].mxu1 %v15550_v31  ;;  %v11026_v52 = vpop.f32.mrb[63].mxu1  ;;  %v15559_v31 = vld [vmem:[#allocation59_spill] sm:$0xff] }
 0x1a4   :  { %1828 = vmatprep.mubr.f32.mxu0 %v15212_v57  ;;  %15551 = vst [vmem:[#allocation8_spill] sm:$0xff] %v11026_v52  ;;  %8250 = vmatprep.mubr.f32.mxu1 %v15552_v10  ;;  %v15562_v10 = vld [vmem:[#allocation61_spill] sm:$0xff] }
 0x1a7   :  { %1830 = vmatmul.mubr.f32.gmra.mrb[38].mxu0 %v15553_v19  ;;  %8251 = vmatmul.mubr.f32.gmra.mrb[74].mxu1 %v15554_v28  ;;  %v15565_v28 = vld [vmem:[#allocation63_spill] sm:$0xff] }
 0x1a8   :  { %1835 = vmatprep.mubr.f32.mxu0 %v15212_v57  ;;  %8253 = vmatprep.mubr.f32.mxu1 %v15555_v38  ;;  %v15568_v38 = vld [vmem:[#allocation65_spill] sm:$0xff] }
 0x1ab   :  { %1837 = vmatmul.mubr.f32.gmra.mrb[40].mxu0 %v15556_v34  ;;  %8254 = vmatmul.mubr.f32.gmra.mrb[76].mxu1 %v15557_v61  ;;  %v15571_v61 = vld [vmem:[#allocation68_spill] sm:$0xff] }
 0x1ac   :  { %1842 = vmatprep.mubr.f32.mxu0 %v15212_v57  ;;  %8256 = vmatprep.mubr.f32.mxu1 %v15558_v6  ;;  %v15574_v6 = vld [vmem:[#allocation71_spill] sm:$0xff] }
 0x1af   :  { %1844 = vmatmul.mubr.f32.gmra.mrb[42].mxu0 %v15559_v31  ;;  %8257 = vmatmul.mubr.f32.gmra.mrb[78].mxu1 %v15560_v18  ;;  %v15577_v18 = vld [vmem:[#allocation74_spill] sm:$0xff] }
 0x1b0   :  { %1849 = vmatprep.mubr.f32.mxu0 %v15212_v57  ;;  %8259 = vmatprep.mubr.f32.mxu1 %v15561_v32  ;;  %v15580_v32 = vld [vmem:[#allocation76_spill] sm:$0xff] }
 0x1b3   :  { %1851 = vmatmul.mubr.f32.gmra.mrb[44].mxu0 %v15562_v10  ;;  %8260 = vmatmul.mubr.f32.gmra.mrb[80].mxu1 %v15563_v22  ;;  %v15583_v22 = vld [vmem:[#allocation79_spill] sm:$0xff] }
 0x1b4   :  { %1856 = vmatprep.mubr.f32.mxu0 %v15212_v57  ;;  %8262 = vmatprep.mubr.f32.mxu1 %v15564_v13  ;;  %v15595_v13 = vld [vmem:[#allocation54_spill] sm:$0xff] }
 0x1b7   :  { %1858 = vmatmul.mubr.f32.gmra.mrb[46].mxu0 %v15565_v28  ;;  %8263 = vmatmul.mubr.f32.gmra.mrb[82].mxu1 %v15566_v48  ;;  %v15596_v48 = vld [vmem:[#allocation28_spill] sm:$0xff] }
 0x1b8   :  { %1863 = vmatprep.mubr.f32.mxu0 %v15212_v57  ;;  %8265 = vmatprep.mubr.f32.mxu1 %v15567_v21  ;;  %v15597_v21 = vld [vmem:[#allocation16_spill] sm:$0xff] }
 0x1bb   :  { %1865 = vmatmul.mubr.f32.gmra.mrb[48].mxu0 %v15568_v38  ;;  %8266 = vmatmul.mubr.f32.gmra.mrb[84].mxu1 %v15569_v49  ;;  %v15598_v49 = vld [vmem:[#allocation18_spill] sm:$0xff] }
 0x1bc   :  { %1870 = vmatprep.mubr.f32.mxu0 %v15212_v57  ;;  %8268 = vmatprep.mubr.f32.mxu1 %v15570_v47  ;;  %v15599_v47 = vld [vmem:[#allocation30_spill] sm:$0xff] }
 0x1bf   :  { %1872 = vmatmul.mubr.f32.gmra.mrb[50].mxu0 %v15571_v61  ;;  %8269 = vmatmul.mubr.f32.gmra.mrb[86].mxu1 %v15572_v3  ;;  %v15600_v3 = vld [vmem:[#allocation60_spill] sm:$0xff] }
 0x1c0   :  { %1877 = vmatprep.mubr.f32.mxu0 %v15212_v57  ;;  %8271 = vmatprep.mubr.f32.mxu1 %v15573_v30  ;;  %v15601_v30 = vld [vmem:[#allocation62_spill] sm:$0xff] }
 0x1c3   :  { %1879 = vmatmul.mubr.f32.gmra.mrb[52].mxu0 %v15574_v6  ;;  %8272 = vmatmul.mubr.f32.gmra.mrb[88].mxu1 %v15575_v41  ;;  %v15602_v41 = vld [vmem:[#allocation32_spill] sm:$0xff] }
 0x1c4   :  { %1884 = vmatprep.mubr.f32.mxu0 %v15212_v57  ;;  %8274 = vmatprep.mubr.f32.mxu1 %v15576_v39  ;;  %v15603_v39 = vld [vmem:[#allocation99_spill] sm:$0xff] }
 0x1c7   :  { %1886 = vmatmul.mubr.f32.gmra.mrb[54].mxu0 %v15577_v18  ;;  %8275 = vmatmul.mubr.f32.gmra.mrb[90].mxu1 %v15578_v11  ;;  %v15604_v11 = vld [vmem:[#allocation101_spill] sm:$0xff] }
 0x1c8   :  { %1891 = vmatprep.mubr.f32.mxu0 %v15212_v57  ;;  %8277 = vmatprep.mubr.f32.mxu1 %v15579_v43  ;;  %v15605_v43 = vld [vmem:[#allocation35_spill] sm:$0xff] }
 0x1cb   :  { %1893 = vmatmul.mubr.f32.gmra.mrb[56].mxu0 %v15580_v32  ;;  %8278 = vmatmul.mubr.f32.gmra.mrb[92].mxu1 %v15581_v36  ;;  %v15606_v36 = vld [vmem:[#allocation102_spill] sm:$0xff] }
 0x1cc   :  { %1898 = vmatprep.mubr.f32.mxu0 %v15212_v57  ;;  %8280 = vmatprep.mubr.f32.mxu1 %v15582_v45  ;;  %v15607_v45 = vld [vmem:[#allocation104_spill] sm:$0xff] }
 0x1cf   :  { %1900 = vmatmul.mubr.f32.gmra.mrb[58].mxu0 %v15583_v22  ;;  %8281 = vmatmul.mubr.f32.gmra.mrb[94].mxu1 %v15584_v63  ;;  %v15608_v63 = vld [vmem:[#allocation37_spill] sm:$0xff] }
 0x1d0   :  { %1905 = vmatprep.mubr.f32.mxu0 %v15212_v57  ;;  %8291 = vmatprep.mubr.f32.mxu1 %v10219_v15 }
 0x1d3   :  { %1907 = vmatmul.mubr.f32.gmra.mrb[60].mxu0 %v15585_v25  ;;  %8292 = vmatmul.mubr.f32.vlgmr.msra.gmra.mrb[64].mxu1 %v10232_v55 }
 0x1d4   :  { %1912 = vmatprep.mubr.f32.mxu0 %v15212_v57  ;;  %8294 = vmatprep.mubr.f32.mxu1 %v10240_v58 }
 0x1d5   :  { %8486 = vmatpush3.bf16.msra.mxu1 %v9855_v16  ;;  %v15587_v16 = vld [vmem:[#allocation22_spill] sm:$0xff] }
 0x1d6   :  { %8488 = vmatprep.subr.bf16.mxu1 %v15456_v51 }
 0x1d7   :  { %1914 = vmatmul.mubr.f32.gmra.mrb[62].mxu0 %v15586_v44  ;;  %8295 = vmatmul.mubr.f32.gmra.mrb[66].mxu1 %v10263_v54 }
 0x1d8   :  { %1992 = vmatprep.mubr.f32.mxu0 %v15212_v57  ;;  %8297 = vmatprep.mubr.f32.mxu1 %v10270_v17 }
 0x1d9   :  { %8490 = vmatpush3.bf16.msra.mxu1 %v15456_v51  ;;  %v15593_v51 = vld [vmem:[#allocation26_spill] sm:$0xff] }
 0x1db   :  { %1994 = vmatmul.mubr.f32.vlgmr.msra.gmra.mrb[0].mxu0 %v15465_v7  ;;  %8298 = vmatmul.mubr.f32.gmra.mrb[68].mxu1 %v10275_v0  ;;  %v15591_v7 = vld [vmem:[#allocation50_spill] sm:$0xff] }
 0x1dc   :  { %1999 = vmatprep.mubr.f32.mxu0 %v15212_v57  ;;  %8300 = vmatprep.mubr.f32.mxu1 %v10303_v40 }
 0x1df   :  { %2001 = vmatmul.mubr.f32.gmra.mrb[2].mxu0 %v15470_v59  ;;  %8301 = vmatmul.mubr.f32.gmra.mrb[70].mxu1 %v10321_v2  ;;  %v15594_v59 = vld [vmem:[#allocation15_spill] sm:$0xff] }
 0x1e0   :  { %2006 = vmatprep.mubr.f32.mxu0 %v15212_v57  ;;  %8303 = vmatprep.mubr.f32.mxu1 %v10328_v24 }
 0x1e3   :  { %2008 = vmatmul.mubr.f32.gmra.mrb[4].mxu0 %v15474_v9  ;;  %8304 = vmatmul.mubr.f32.gmra.mrb[72].mxu1 %v10348_v37  ;;  %v15590_v9 = vld [vmem:[#allocation24_spill] sm:$0xff] }
 0x1e4   :  { %2013 = vmatprep.mubr.f32.mxu0 %v15212_v57  ;;  %8306 = vmatprep.mubr.f32.mxu1 %v10357_v46 }
 0x1e7   :  { %2015 = vmatmul.mubr.f32.gmra.mrb[6].mxu0 %v15477_v50  ;;  %8307 = vmatmul.mubr.f32.gmra.mrb[74].mxu1 %v10365_v4  ;;  %v15592_v50 = vld [vmem:[#allocation10_spill] sm:$0xff] }
 0x1e8   :  { %2020 = vmatprep.mubr.f32.mxu0 %v15212_v57  ;;  %8309 = vmatprep.mubr.f32.mxu1 %v10391_v26 }
 0x1eb   :  { %2022 = vmatmul.mubr.f32.gmra.mrb[8].mxu0 %v15587_v16  ;;  %8310 = vmatmul.mubr.f32.gmra.mrb[76].mxu1 %v15588_v42  ;;  %v15609_v16 = vld [vmem:[#allocation78_spill] sm:$0xff] }
 0x1ec   :  { %2027 = vmatprep.mubr.f32.mxu0 %v15212_v57  ;;  %8312 = vmatprep.mubr.f32.mxu1 %v15589_v35 }
 0x1ef   :  { %2029 = vmatmul.mubr.f32.gmra.mrb[10].mxu0 %v15590_v9  ;;  %8313 = vmatmul.mubr.f32.gmra.mrb[78].mxu1 %v15591_v7  ;;  %v15610_v9 = vld [vmem:[#allocation106_spill] sm:$0xff] }
 0x1f0   :  { %2034 = vmatprep.mubr.f32.mxu0 %v15212_v57  ;;  %8315 = vmatprep.mubr.f32.mxu1 %v15592_v50 }
 0x1f3   :  { %2036 = vmatmul.mubr.f32.gmra.mrb[12].mxu0 %v15593_v51  ;;  %8316 = vmatmul.mubr.f32.gmra.mrb[80].mxu1 %v15594_v59  ;;  %v15611_v51 = vld [vmem:[#allocation40_spill] sm:$0xff] }
 0x1f4   :  { %2041 = vmatprep.mubr.f32.mxu0 %v15212_v57  ;;  %8318 = vmatprep.mubr.f32.mxu1 %v15595_v13 }
 0x1f7   :  { %2043 = vmatmul.mubr.f32.gmra.mrb[14].mxu0 %v15596_v48  ;;  %8319 = vmatmul.mubr.f32.gmra.mrb[82].mxu1 %v15597_v21  ;;  %v15612_v48 = vld [vmem:[#allocation31_spill] sm:$0xff] }
 0x1f8   :  { %2048 = vmatprep.mubr.f32.mxu0 %v15212_v57  ;;  %8321 = vmatprep.mubr.f32.mxu1 %v15598_v49 }
 0x1fb   :  { %2050 = vmatmul.mubr.f32.gmra.mrb[16].mxu0 %v15599_v47  ;;  %8322 = vmatmul.mubr.f32.gmra.mrb[84].mxu1 %v15600_v3  ;;  %v15613_v47 = vld [vmem:[#allocation108_spill] sm:$0xff] }
 0x1fc   :  { %2055 = vmatprep.mubr.f32.mxu0 %v15212_v57  ;;  %8324 = vmatprep.mubr.f32.mxu1 %v15601_v30 }
 0x1ff   :  { %2057 = vmatmul.mubr.f32.gmra.mrb[18].mxu0 %v15602_v41  ;;  %8325 = vmatmul.mubr.f32.gmra.mrb[86].mxu1 %v15603_v39  ;;  %v15614_v41 = vld [vmem:[#allocation43_spill] sm:$0xff] }
 0x200   :  { %2062 = vmatprep.mubr.f32.mxu0 %v15212_v57  ;;  %8327 = vmatprep.mubr.f32.mxu1 %v15604_v11 }
 0x203   :  { %2064 = vmatmul.mubr.f32.gmra.mrb[20].mxu0 %v15605_v43  ;;  %8328 = vmatmul.mubr.f32.gmra.mrb[88].mxu1 %v15606_v36  ;;  %v15615_v43 = vld [vmem:[#allocation109_spill] sm:$0xff] }
 0x204   :  { %2069 = vmatprep.mubr.f32.mxu0 %v15212_v57  ;;  %8330 = vmatprep.mubr.f32.mxu1 %v15607_v45 }
 0x207   :  { %2071 = vmatmul.mubr.f32.gmra.mrb[22].mxu0 %v15608_v63  ;;  %8331 = vmatmul.mubr.f32.gmra.mrb[90].mxu1 %v15609_v16 }
 0x208   :  { %2076 = vmatprep.mubr.f32.mxu0 %v15212_v57  ;;  %8333 = vmatprep.mubr.f32.mxu1 %v15610_v9 }
 0x20b   :  { %2078 = vmatmul.mubr.f32.gmra.mrb[24].mxu0 %v15611_v51  ;;  %8334 = vmatmul.mubr.f32.gmra.mrb[92].mxu1 %v15612_v48  ;;  %v15070_v51 = vmov 2475754826  }
 0x20c   :  { %2083 = vmatprep.mubr.f32.mxu0 %v15212_v57  ;;  %8336 = vmatprep.mubr.f32.mxu1 %v15613_v47 }
 0x20f   :  { %2085 = vmatmul.mubr.f32.gmra.mrb[26].mxu0 %v15614_v41  ;;  %8337 = vmatmul.mubr.f32.gmra.mrb[94].mxu1 %v15615_v43 }
 0x210   :  { %2090 = vmatprep.mubr.f32.mxu0 %v15212_v57  ;;  %8347 = vmatprep.mubr.f32.mxu1 %v10219_v15  ;;  %v15616_v15 = vld [vmem:[#allocation58_spill] sm:$0xff] }
 0x213   :  { %2092 = vmatmul.mubr.f32.gmra.mrb[28].mxu0 %v15528_v8  ;;  %8348 = vmatmul.mubr.f32.vlgmr.msra.gmra.mrb[64].mxu1 %v10232_v55  ;;  %v11231_v55 = vld [vmem:[%s14808_s3] ss:$0 sm:$0xff] }
 0x214   :  { %2097 = vmatprep.mubr.f32.mxu0 %v15212_v57  ;;  %8350 = vmatprep.mubr.f32.mxu1 %v10240_v58 }
 0x217   :  { %2099 = vmatmul.mubr.f32.gmra.mrb[30].mxu0 %v15533_v33  ;;  %8351 = vmatmul.mubr.f32.gmra.mrb[66].mxu1 %v10263_v54 }
 0x218   :  { %2104 = vmatprep.mubr.f32.mxu0 %v15212_v57  ;;  %8353 = vmatprep.mubr.f32.mxu1 %v10270_v17  ;;  %v15617_v17 = vld [vmem:[#allocation5_spill] sm:$0xff] }
 0x21b   :  { %2106 = vmatmul.mubr.f32.gmra.mrb[32].mxu0 %v15538_v60  ;;  %8354 = vmatmul.mubr.f32.gmra.mrb[68].mxu1 %v10275_v0 }
 0x21c   :  { %2111 = vmatprep.mubr.f32.mxu0 %v15212_v57  ;;  %8356 = vmatprep.mubr.f32.mxu1 %v10303_v40 }
 0x21f   :  { %2113 = vmatmul.mubr.f32.gmra.mrb[34].mxu0 %v15543_v1  ;;  %8357 = vmatmul.mubr.f32.gmra.mrb[70].mxu1 %v10321_v2 }
 0x220   :  { %2118 = vmatprep.mubr.f32.mxu0 %v15212_v57  ;;  %8359 = vmatprep.mubr.f32.mxu1 %v10328_v24 }
 0x223   :  { %2120 = vmatmul.mubr.f32.gmra.mrb[36].mxu0 %v15548_v14  ;;  %8360 = vmatmul.mubr.f32.gmra.mrb[72].mxu1 %v10348_v37 }
 0x224   :  { %2125 = vmatprep.mubr.f32.mxu0 %v15212_v57  ;;  %8362 = vmatprep.mubr.f32.mxu1 %v10357_v46  ;;  %v15620_v46 = vld [vmem:[#allocation64_spill] sm:$0xff] }
 0x227   :  { %2127 = vmatmul.mubr.f32.gmra.mrb[38].mxu0 %v15553_v19  ;;  %8363 = vmatmul.mubr.f32.gmra.mrb[74].mxu1 %v10365_v4 }
 0x228   :  { %2132 = vmatprep.mubr.f32.mxu0 %v15212_v57  ;;  %8365 = vmatprep.mubr.f32.mxu1 %v10391_v26  ;;  %v15621_v26 = vld [vmem:[#allocation100_spill] sm:$0xff] }
 0x22b   :  { %2134 = vmatmul.mubr.f32.gmra.mrb[40].mxu0 %v15556_v34  ;;  %8366 = vmatmul.mubr.f32.gmra.mrb[76].mxu1 %v15588_v42 }
 0x22c   :  { %2139 = vmatprep.mubr.f32.mxu0 %v15212_v57  ;;  %8368 = vmatprep.mubr.f32.mxu1 %v15589_v35 }
 0x22f   :  { %2141 = vmatmul.mubr.f32.gmra.mrb[42].mxu0 %v15559_v31  ;;  %8369 = vmatmul.mubr.f32.gmra.mrb[78].mxu1 %v15591_v7  ;;  %v15624_v31 = vld [vmem:[#allocation72_spill] sm:$0xff] }
 0x230   :  { %2146 = vmatprep.mubr.f32.mxu0 %v15212_v57  ;;  %8371 = vmatprep.mubr.f32.mxu1 %v15592_v50 }
 0x233   :  { %2148 = vmatmul.mubr.f32.gmra.mrb[44].mxu0 %v15562_v10  ;;  %8372 = vmatmul.mubr.f32.gmra.mrb[80].mxu1 %v15594_v59 }
 0x234   :  { %2153 = vmatprep.mubr.f32.mxu0 %v15212_v57  ;;  %8374 = vmatprep.mubr.f32.mxu1 %v15595_v13 }
 0x237   :  { %2155 = vmatmul.mubr.f32.gmra.mrb[46].mxu0 %v15565_v28  ;;  %8375 = vmatmul.mubr.f32.gmra.mrb[82].mxu1 %v15597_v21 }
 0x238   :  { %2160 = vmatprep.mubr.f32.mxu0 %v15212_v57  ;;  %8377 = vmatprep.mubr.f32.mxu1 %v15598_v49 }
 0x23b   :  { %2162 = vmatmul.mubr.f32.gmra.mrb[48].mxu0 %v15568_v38  ;;  %8378 = vmatmul.mubr.f32.gmra.mrb[84].mxu1 %v15600_v3 }
 0x23c   :  { %2167 = vmatprep.mubr.f32.mxu0 %v15212_v57  ;;  %8380 = vmatprep.mubr.f32.mxu1 %v15601_v30 }
 0x23f   :  { %2169 = vmatmul.mubr.f32.gmra.mrb[50].mxu0 %v15571_v61  ;;  %8381 = vmatmul.mubr.f32.gmra.mrb[86].mxu1 %v15603_v39 }
 0x240   :  { %2174 = vmatprep.mubr.f32.mxu0 %v15212_v57  ;;  %8383 = vmatprep.mubr.f32.mxu1 %v15604_v11  ;;  %v15628_v11 = vld [vmem:[#allocation75_spill] sm:$0xff] }
 0x243   :  { %2176 = vmatmul.mubr.f32.gmra.mrb[52].mxu0 %v15574_v6  ;;  %8384 = vmatmul.mubr.f32.gmra.mrb[88].mxu1 %v15606_v36 }
 0x244   :  { %2181 = vmatprep.mubr.f32.mxu0 %v15212_v57  ;;  %8386 = vmatprep.mubr.f32.mxu1 %v15607_v45 }
 0x247   :  { %2183 = vmatmul.mubr.f32.gmra.mrb[54].mxu0 %v15577_v18  ;;  %8387 = vmatmul.mubr.f32.gmra.mrb[90].mxu1 %v15609_v16  ;;  %v15072_v16 = vmov 683565275  }
 0x248   :  { %2188 = vmatprep.mubr.f32.mxu0 %v15212_v57  ;;  %8389 = vmatprep.mubr.f32.mxu1 %v15610_v9 }
 0x24b   :  { %2190 = vmatmul.mubr.f32.gmra.mrb[56].mxu0 %v15580_v32  ;;  %8390 = vmatmul.mubr.f32.gmra.mrb[92].mxu1 %v15612_v48  ;;  %v15626_v32 = vld [vmem:[#allocation103_spill] sm:$0xff] }
 0x24c   :  { %2195 = vmatprep.mubr.f32.mxu0 %v15212_v57  ;;  %8392 = vmatprep.mubr.f32.mxu1 %v15613_v47 }
 0x24f   :  { %2197 = vmatmul.mubr.f32.gmra.mrb[58].mxu0 %v15583_v22  ;;  %8393 = vmatmul.mubr.f32.gmra.mrb[94].mxu1 %v15615_v43  ;;  %v15074_v43 = vmov 2131351028  }
 0x250   :  { %2202 = vmatprep.mubr.f32.mxu0 %v15212_v57 }
 0x253   :  { %2204 = vmatmul.mubr.f32.gmra.mrb[60].mxu0 %v15585_v25 }
 0x254   :  { %2209 = vmatprep.mubr.f32.mxu0 %v15212_v57 }
 0x257   :  { %2211 = vmatmul.mubr.f32.gmra.mrb[62].mxu0 %v15586_v44 }
 0x2ae   :  { %v1995_v4 = vpop.f32.mrb[0].mxu0 }
 0x2af   :  { %v8495_v58 = vadd.f32 %v1995_v4, %v15616_v15  ;;  %v1997_v54 = vpop.f32.mrb[1].mxu0  ;;  %v15076_v15 = vmov 2102212464  }
 0x2b0   :  { %v11235_v0 = vadd.f32 %v1997_v54, %v15617_v17  ;;  %v15081_v54 = vmov 920167782  }
 0x2b1   :  { %v11238_v40 = vadd.f32 %v8495_v58, %v11231_v55 }
 0x2b2   :  { %15618 = vst [vmem:[#allocation48_spill] sm:$0xff] %v11235_v0  ;;  %v2002_v2 = vpop.f32.mrb[2].mxu0 }
 0x2b3   :  { %15619 = vst [vmem:[#allocation12_spill] sm:$0xff] %v11238_v40  ;;  %v15069_v57 = vand.u32 2147483647, %v11238_v40  ;;  %v4244_v24 = vand.u32 2139095040, %v11238_v40  ;;  %v2004_v37 = vpop.f32.mrb[3].mxu0  ;;  %v8497_v8 = vadd.f32 %v2002_v2, %v15620_v46 }
 0x2b4   :  { %v11244_v33 = vadd.f32 %v2004_v37, %v15621_v26  ;;  %v15078_v26 = vmov 1326507024  }
 0x2b5   :  { %v4245_v60 = vshrl.u32 %v4244_v24, 23  ;;  %v4248_v1 = vand.u32 8388607, %v15069_v57  ;;  %v11249_v14 = vadd.f32 %v8497_v8, %v11231_v55 }
 0x2b6   :  { %15622 = vst [vmem:[#allocation52_spill] sm:$0xff] %v11244_v33  ;;  %v2009_v19 = vpop.f32.mrb[4].mxu0 }
 0x2b7   :  { %15623 = vst [vmem:[#allocation14_spill] sm:$0xff] %v11249_v14  ;;  %v7715_v34 = vadd.s32 4294967169, %v4245_v60  ;;  %v8499_v10 = vadd.f32 %v2009_v19, %v15624_v31  ;;  %v2011_v28 = vpop.f32.mrb[5].mxu0  ;;  %v15067_v38 = vand.u32 2147483647, %v11249_v14  ;;  %v4348_v61 = vand.u32 2139095040, %v11249_v14 }
 0x2b8   :  { %v11258_v22 = vadd.f32 %v2011_v28, %v15626_v32  ;;  %v4249_v25 = vor.u32 8388608, %v4248_v1 }
 0x2b9   :  { %v4251_v6 = vadd.s32 1, %v7715_v34  ;;  %v11255_v18 = vadd.f32 %v8499_v10, %v11231_v55  ;;  %v4349_v44 = vshrl.u32 %v4348_v61, 23  ;;  %v11262_v42 = vand.u32 8388607, %v15067_v38 }
 0x2ba   :  { %15627 = vst [vmem:[#allocation20_spill] sm:$0xff] %v11258_v22  ;;  %v2016_v35 = vpop.f32.mrb[6].mxu0  ;;  %v11267_v3 = vshll.u32 %v4249_v25, 8 }
 0x2bb   :  { %15625 = vst [vmem:[#allocation56_spill] sm:$0xff] %v11255_v18  ;;  %vm4252_vm1 = vcmp.gt.s32.totalorder %v4251_v6, 0  ;;  %v4452_v7 = vand.u32 2139095040, %v11255_v18  ;;  %v11265_v50 = vpop.f32.mrb[7].mxu0  ;;  %v7719_v13 = vadd.s32 4294967169, %v4349_v44  ;;  %v4353_v30 = vor.u32 8388608, %v11262_v42 }
 0x2bc   :  { %v4253_v59 = vsel %vm4252_vm1, %v4251_v6, 0  ;;  %v11271_v36 = vadd.f32 %v2016_v35, %v15628_v11 }
 0x2bd   :  { %v4254_v21 = vshrl.u32 %v4253_v59, 5  ;;  %v4255_v49 = vand.u32 31, %v4253_v59  ;;  %v4453_v39 = vshrl.u32 %v4452_v7, 23  ;;  %v4355_v47 = vadd.s32 1, %v7719_v13 }
 0x2be   :  { %v11273_v45 = vpop.f32.mrb[8].mxu0 }
 0x2bf   :  { %v4256_v63 = vsub.s32 32, %v4255_v49  ;;  %v4258_v9 = vshll.u32 %v15072_v16, %v4255_v49  ;;  %v4261_v48 = vshll.u32 %v15070_v51, %v4255_v49  ;;  %v11277_v41 = vpop.f32.mrb[9].mxu0  ;;  %v4264_v4 = vshll.u32 %v15074_v43, %v4255_v49 }
 0x2c0   :  { %v4267_v58 = vshll.u32 %v15076_v15, %v4255_v49  ;;  %v4270_v17 = vshll.u32 %v15081_v54, %v4255_v49  ;;  %vm4273_vm2 = vcmp.lt.s32.totalorder %v4254_v21, 1  ;;  %vm4274_vm3 = vcmp.lt.s32.totalorder %v4254_v21, 2 }
 0x2c1   :  { %v4259_v2 = vshrl.u32 %v15070_v51, %v4256_v63  ;;  %v4262_v24 = vshrl.u32 %v15074_v43, %v4256_v63  ;;  %v4265_v37 = vshrl.u32 %v15076_v15, %v4256_v63  ;;  %v4257_v46 = vshrl.u32 %v15072_v16, %v4256_v63 }
 0x2c2   :  { %v4268_v8 = vshrl.u32 %v15081_v54, %v4256_v63  ;;  %v4271_v60 = vshrl.u32 %v15078_v26, %v4256_v63  ;;  %vm4275_vm4 = vcmp.lt.s32.totalorder %v4254_v21, 3  ;;  %v11288_v1 = vpop.f32.mrb[10].mxu0  ;;  %vm4356_vm5 = vcmp.gt.s32.totalorder %v4355_v47, 0 }
 0x2c3   :  { %v4260_v19 = vor.u32 %v4259_v2, %v4258_v9  ;;  %v4263_v34 = vor.u32 %v4262_v24, %v4261_v48  ;;  %v4266_v31 = vor.u32 %v4265_v37, %v4264_v4  ;;  %v11290_v10 = vpop.f32.mrb[11].mxu0  ;;  %vm4276_vm6 = vcmp.lt.s32.totalorder %v4254_v21, 4 }
 0x2c4   :  { %v4269_v28 = vor.u32 %v4268_v8, %v4267_v58  ;;  %v4272_v61 = vor.u32 %v4271_v60, %v4270_v17  ;;  %v4357_v6 = vsel %vm4356_vm5, %v4355_v47, 0  ;;  %v11317_v60 = vshll.u32 %v4353_v30, 8 }
 0x2c5   :  { %v4277_v32 = vsel %vm4273_vm2, %v4257_v46, %v4260_v19  ;;  %v4278_v25 = vsel %vm4276_vm6, %v4266_v31, 2102212464  ;;  %v4281_v44 = vsel %vm4273_vm2, %v4260_v19, %v4263_v34  ;;  %v4285_v42 = vsel %vm4273_vm2, %v4263_v34, %v4266_v31 }
 0x2c6   :  { %v4279_v35 = vsel %vm4275_vm4, %v4263_v34, %v4278_v25  ;;  %v4282_v7 = vsel %vm4276_vm6, %v4269_v28, 920167782  ;;  %v4286_v59 = vsel %vm4276_vm6, %v4272_v61, 1326507024  ;;  %v11296_v13 = vshrl.u32 %v4357_v6, 5  ;;  %v11298_v49 = vpop.f32.mrb[12].mxu0 }
 0x2c7   :  { %v4280_v11 = vsel %vm4274_vm3, %v4277_v32, %v4279_v35  ;;  %v4283_v63 = vsel %vm4275_vm4, %v4266_v31, %v4282_v7  ;;  %v4287_v9 = vsel %vm4275_vm4, %v4269_v28, %v4286_v59  ;;  %v4359_v48 = vand.u32 31, %v4357_v6  ;;  %v11303_v47 = vpop.f32.mrb[13].mxu0 }
 0x2c8   :  { %v4284_v4 = vsel %vm4274_vm3, %v4281_v44, %v4283_v63  ;;  %v4288_v58 = vsel %vm4274_vm3, %v4285_v42, %v4287_v9  ;;  %v4296_v46 = vmul.u32 %v11267_v3, %v4280_v11  ;;  %v7723_v19 = vadd.s32 4294967169, %v4453_v39 }
 0x2c9   :  { %v11308_v17 = vmul.u32.u64.low %v11267_v3, %v4288_v58  ;;  %v11309_v2 = vmul.u32.u64.high %v11267_v3, %v4288_v58, %v11308_v17  ;;  %v11312_v24 = vmul.u32.u64.low %v11267_v3, %v4284_v4  ;;  %v11313_v37 = vmul.u32.u64.high %v11267_v3, %v4284_v4, %v11312_v24 }
 0x2ca   :  { %v4360_v8 = vsub.s32 32, %v4359_v48  ;;  %v11319_v34 = vpop.f32.mrb[14].mxu0  ;;  %v4362_v21 = vshll.u32 %v15072_v16, %v4359_v48  ;;  %v4365_v31 = vshll.u32 %v15070_v51, %v4359_v48  ;;  %v4368_v28 = vshll.u32 %v15074_v43, %v4359_v48 }
 0x2cb   :  { %vm4377_vm7 = vcmp.lt.s32.totalorder %v11296_v13, 1  ;;  %v11325_v61 = vpop.f32.mrb[15].mxu0  ;;  %v4371_v39 = vshll.u32 %v15076_v15, %v4359_v48  ;;  %vm4298_vm8 = vc.u32 %v11309_v2, %v11312_v24  ;;  %v4299_v32 = vadd.s32 1, %v11313_v37 }
 0x2cc   :  { %v4363_v6 = vshrl.u32 %v15070_v51, %v4360_v8  ;;  %v4366_v3 = vshrl.u32 %v15074_v43, %v4360_v8  ;;  %v4369_v30 = vshrl.u32 %v15076_v15, %v4360_v8  ;;  %v4372_v25 = vshrl.u32 %v15081_v54, %v4360_v8 }
 0x2cd   :  { %v4374_v44 = vshll.u32 %v15081_v54, %v4359_v48  ;;  %v4375_v59 = vshrl.u32 %v15078_v26, %v4360_v8  ;;  %v4300_v63 = vsel %vm4298_vm8, %v4299_v32, %v11313_v37  ;;  %vm4378_vm9 = vcmp.lt.s32.totalorder %v11296_v13, 2 }
 0x2ce   :  { %v4364_v42 = vor.u32 %v4363_v6, %v4362_v21  ;;  %v4367_v35 = vor.u32 %v4366_v3, %v4365_v31  ;;  %v4370_v7 = vor.u32 %v4369_v30, %v4368_v28  ;;  %v11337_v11 = vpop.f32.mrb[16].mxu0  ;;  %v4373_v9 = vor.u32 %v4372_v25, %v4371_v39 }
 0x2cf   :  { %vm4380_vm10 = vcmp.lt.s32.totalorder %v11296_v13, 4  ;;  %v4301_v4 = vadd.s32 %v4300_v63, %v4296_v46  ;;  %v4361_v58 = vshrl.u32 %v15072_v16, %v4360_v8  ;;  %v4376_v17 = vor.u32 %v4375_v59, %v4374_v44 }
 0x2d0   :  { %v4382_v38 = vsel %vm4380_vm10, %v4370_v7, 2102212464  ;;  %vm4379_vm11 = vcmp.lt.s32.totalorder %v11296_v13, 3  ;;  %v4385_v48 = vsel %vm4377_vm7, %v4364_v42, %v4367_v35  ;;  %v4386_v21 = vsel %vm4380_vm10, %v4373_v9, 920167782 }
 0x2d1   :  { %v4389_v31 = vsel %vm4377_vm7, %v4367_v35, %v4370_v7  ;;  %v4302_v37 = vadd.s32 536870912, %v4301_v4  ;;  %v4381_v28 = vsel %vm4377_vm7, %v4361_v58, %v4364_v42  ;;  %v4387_v6 = vsel %vm4379_vm11, %v4370_v7, %v4386_v21  ;;  %v15629_v58 = vld [vmem:[#allocation29_spill] sm:$0xff] }
 0x2d2   :  { %v4390_v3 = vsel %vm4380_vm10, %v4376_v17, 1326507024  ;;  %v4383_v46 = vsel %vm4379_vm11, %v4367_v35, %v4382_v38  ;;  %v4388_v8 = vsel %vm4378_vm9, %v4385_v48, %v4387_v6  ;;  %v4459_v39 = vadd.s32 1, %v7723_v19  ;;  %v15631_v48 = vld [vmem:[#allocation81_spill] sm:$0xff] }
 0x2d3   :  { %v4391_v30 = vsel %vm4379_vm11, %v4373_v9, %v4390_v3  ;;  %v11352_v32 = vshrl.u32 %v4302_v37, 30  ;;  %v11357_v44 = vmul.u32.u64.low %v11317_v60, %v4388_v8  ;;  %v11358_v59 = vmul.u32.u64.high %v11317_v60, %v4388_v8, %v11357_v44 }
 0x2d4   :  { %v4392_v25 = vsel %vm4378_vm9, %v4389_v31, %v4391_v30  ;;  %v15068_v38 = vand.u32 2147483647, %v11255_v18  ;;  %vm4460_vm12 = vcmp.gt.s32.totalorder %v4459_v39, 0  ;;  %v4384_v19 = vsel %vm4378_vm9, %v4381_v28, %v4383_v46 }
 0x2d5   :  { %v11362_v42 = vmul.u32.u64.low %v11317_v60, %v4392_v25  ;;  %v11363_v7 = vmul.u32.u64.high %v11317_v60, %v4392_v25, %v11362_v42  ;;  %v4304_v35 = vshll.u32 %v11352_v32, 30  ;;  %v4461_v63 = vsel %vm4460_vm12, %v4459_v39, 0 }
 0x2d6   :  { %v4463_v9 = vand.u32 31, %v4461_v63  ;;  %v11371_v17 = vadd.f32 %v11265_v50, %v15629_v58  ;;  %v11375_v21 = vadd.f32 %v11273_v45, %v15631_v48  ;;  %v4403_v37 = vadd.s32 1, %v11358_v59 }
 0x2d7   :  { %v4305_v31 = vsub.s32 %v4301_v4, %v4304_v35  ;;  %v4400_v6 = vmul.u32 %v11317_v60, %v4384_v19  ;;  %vm4402_vm13 = vc.u32 %v11363_v7, %v11357_v44  ;;  %v4456_v13 = vand.u32 8388607, %v15068_v38 }
 0x2d8   :  { %15630 = vst [vmem:[#allocation23_spill] sm:$0xff] %v11371_v17  ;;  %v4464_v28 = vsub.s32 32, %v4463_v9  ;;  %v4404_v50 = vsel %vm4402_vm13, %v4403_v37, %v11358_v59  ;;  %v4466_v60 = vshll.u32 %v15072_v16, %v4463_v9  ;;  %v4469_v35 = vshll.u32 %v15070_v51, %v4463_v9  ;;  %v11393_v59 = vpop.f32.mrb[17].mxu0 }
 0x2d9   :  { %v4307_v3 = vsub.s32 0, %v4305_v31  ;;  %v11384_v46 = vadd.s32 %v4404_v50, %v4400_v6  ;;  %v4457_v30 = vor.u32 8388608, %v4456_v13  ;;  %v4462_v58 = vshrl.u32 %v4461_v63, 5  ;;  %v11401_v16 = vpop.f32.mrb[18].mxu0 }
 0x2da   :  { %v4467_v45 = vshrl.u32 %v15070_v51, %v4464_v28  ;;  %v4470_v4 = vshrl.u32 %v15074_v43, %v4464_v28  ;;  %v4473_v39 = vshrl.u32 %v15076_v15, %v4464_v28  ;;  %v4476_v19 = vshrl.u32 %v15081_v54, %v4464_v28 }
 0x2db   :  { %v7716_v8 = vmin.u32 %v4307_v3, %v4305_v31  ;;  %v4406_v42 = vadd.s32 536870912, %v11384_v46  ;;  %v4472_v48 = vshll.u32 %v15074_v43, %v4463_v9  ;;  %v4475_v37 = vshll.u32 %v15076_v15, %v4463_v9 }
 0x2dc   :  { %v4479_v6 = vshrl.u32 %v15078_v26, %v4464_v28  ;;  %v4468_v3 = vor.u32 %v4467_v45, %v4466_v60  ;;  %v4471_v50 = vor.u32 %v4470_v4, %v4469_v35  ;;  %v4478_v51 = vshll.u32 %v15081_v54, %v4463_v9 }
 0x2dd   :  { %v4309_v25 = vclz %v7716_v8  ;;  %v4297_v8 = vadd.s32 %v11312_v24, %v11309_v2  ;;  %v4474_v38 = vor.u32 %v4473_v39, %v4472_v48  ;;  %v4477_v57 = vor.u32 %v4476_v19, %v4475_v37 }
 0x2de   :  { %v11403_v63 = vshrl.u32 %v4406_v42, 30  ;;  %v15632_v43 = vmov 683565275   ;;  %v4497_v15 = vshll.u32 %v4457_v30, 8  ;;  %v4480_v26 = vor.u32 %v4479_v6, %v4478_v51 }
 0x2df   :  { %v7717_v13 = vadd.s32 4294967294, %v4309_v25  ;;  %v4465_v52 = vshrl.u32 %v15632_v43, %v4464_v28  ;;  %vm4481_vm15 = vcmp.lt.s32.totalorder %v4462_v58, 1  ;;  %vm4482_vm0 = vcmp.lt.s32.totalorder %v4462_v58, 2 }
 0x2e0   :  { %vm4484_vm1 = vcmp.lt.s32.totalorder %v4462_v58, 4  ;;  %v4489_v2 = vsel %vm4481_vm15, %v4468_v3, %v4471_v50  ;;  %vm4483_vm2 = vcmp.lt.s32.totalorder %v4462_v58, 3  ;;  %v4493_v42 = vsel %vm4481_vm15, %v4471_v50, %v4474_v38 }
 0x2e1   :  { %vm7718_vm14 = vcmp.lt.s32.totalorder %v7717_v13, 0  ;;  %v4486_v60 = vsel %vm4484_vm1, %v4474_v38, 2102212464  ;;  %v4490_v9 = vsel %vm4484_vm1, %v4477_v57, 920167782  ;;  %v4485_v19 = vsel %vm4481_vm15, %v4465_v52, %v4468_v3 }
 0x2e2   :  { %v4312_v53 = vsel %vm7718_vm14, 0, %v7717_v13  ;;  %v4491_v35 = vsel %vm4483_vm2, %v4474_v38, %v4490_v9  ;;  %v4494_v30 = vsel %vm4484_vm1, %v4480_v26, 1326507024  ;;  %v11409_v51 = vadd.f32 %v11271_v36, %v11231_v55 }
 0x2e3   :  { %v4313_v45 = vsub.s32 32, %v4312_v53  ;;  %v4317_v4 = vsub.s32 4294967266, %v4312_v53  ;;  %v4314_v24 = vshll.u32 %v4305_v31, %v4312_v53  ;;  %v4492_v28 = vsel %vm4482_vm0, %v4489_v2, %v4491_v35 }
 0x2e4   :  { %15633 = vst [vmem:[#allocation66_spill] sm:$0xff] %v11409_v51  ;;  %v4487_v6 = vsel %vm4483_vm2, %v4471_v50, %v4486_v60  ;;  %v4495_v13 = vsel %vm4483_vm2, %v4477_v57, %v4494_v30  ;;  %v4408_v53 = vshll.u32 %v11403_v63, 30  ;;  %v4556_v36 = vand.u32 2139095040, %v11409_v51  ;;  %v15634_v60 = vld [vmem:[#allocation107_spill] sm:$0xff] }
 0x2e5   :  { %v4315_v39 = vshrl.u32 %v4297_v8, %v4313_v45  ;;  %v4318_v25 = vadd.s32 127, %v4317_v4  ;;  %v4496_v31 = vsel %vm4482_vm0, %v4493_v42, %v4495_v13  ;;  %v4488_v26 = vsel %vm4482_vm0, %v4485_v19, %v4487_v6 }
 0x2e6   :  { %v11413_v8 = vmul.u32.u64.low %v4497_v15, %v4492_v28  ;;  %v11414_v45 = vmul.u32.u64.high %v4497_v15, %v4492_v28, %v11413_v8  ;;  %v11417_v38 = vmul.u32.u64.low %v4497_v15, %v4496_v31  ;;  %v11418_v3 = vmul.u32.u64.high %v4497_v15, %v4496_v31, %v11417_v38 }
 0x2e7   :  { %v4316_v48 = vor.u32 %v4315_v39, %v4314_v24  ;;  %v4319_v37 = vshll.u32 %v4318_v25, 23  ;;  %v11423_v57 = vsub.s32 %v11384_v46, %v4408_v53  ;;  %v4557_v24 = vshrl.u32 %v4556_v36, 23 }
 0x2e8   :  { %v4507_v50 = vadd.s32 1, %v11414_v45  ;;  %v11428_v9 = vadd.f32 %v11277_v41, %v15634_v60  ;;  %v4504_v25 = vmul.u32 %v4497_v15, %v4488_v26  ;;  %vm4506_vm3 = vc.u32 %v11418_v3, %v11413_v8 }
 0x2e9   :  { %v4320_v52 = vor.u32 4788187, %v4319_v37  ;;  %v4323_v2 = vcvt.s32.f32 %v4316_v48  ;;  %v7727_v19 = vadd.s32 4294967169, %v4557_v24  ;;  %vm4243_vm4 = vcmp.lt.s32.totalorder %v11238_v40, 0  ;;  %v11460_v24 = vpop.f32.mrb[19].mxu0 }
 0x2ea   :  { %15635 = vst [vmem:[#allocation25_spill] sm:$0xff] %v11428_v9  ;;  %v4508_v58 = vsel %vm4506_vm3, %v4507_v50, %v11414_v45  ;;  %v4411_v46 = vsub.s32 0, %v11423_v57  ;;  %v15636_v28 = vand.u32 2147483647, %v11238_v40  ;;  %v15080_v53 = vand.u32 2147483647, %v11409_v51 }
 0x2eb   :  { %v4321_v4 = vand.u32 2147483647, %v4320_v52  ;;  %v4509_v42 = vadd.s32 %v4508_v58, %v4504_v25  ;;  %v4563_v15 = vadd.s32 1, %v7727_v19  ;;  %v11458_v50 = vadd.f32 %v11375_v21, %v11231_v55 }
 0x2ec   :  { %vm11437_vm5 = vcmp.le.f32.partialorder %v15636_v28, 0.7853982  ;;  %v7720_v6 = vmin.u32 %v4411_v46, %v11423_v57  ;;  %v4560_v26 = vand.u32 8388607, %v15080_v53  ;;  %v11469_v53 = vpop.f32.mrb[20].mxu0  ;;  %vm4347_vm3 = vcmp.lt.s32.totalorder %v11249_v14, 0 }
 0x2ed   :  { %v4324_v39 = vmul.f32 %v4323_v2, %v4321_v4  ;;  %v4510_v37 = vadd.s32 536870912, %v4509_v42  ;;  %vm4564_vm6 = vcmp.gt.s32.totalorder %v4563_v15, 0  ;;  %v15639_v4 = vmov 2475754826   ;;  %15640 = vst [vmem:[#allocation69_spill] sm:$0xff] %v11458_v50  ;;  %15643 = vst [vmem:[#allocation27_spill] sm:$0xff] %v11469_v53 }
 0x2ee   :  { %v4565_v13 = vsel %vm4564_vm6, %v4563_v15, 0  ;;  %v4413_v38 = vclz %v7720_v6  ;;  %v4561_v56 = vor.u32 8388608, %v4560_v26  ;;  %v4660_v5 = vand.u32 2139095040, %v11458_v50 }
 0x2ef   :  { %v4325_v35 = vxor.u32 2147483648, %v4324_v39  ;;  %v4567_v31 = vand.u32 31, %v4565_v13  ;;  %v11450_v45 = vshrl.u32 %v4510_v37, 30  ;;  %v4566_v28 = vshrl.u32 %v4565_v13, 5 }
 0x2f0   :  { %v7721_v27 = vadd.s32 4294967294, %v4413_v38  ;;  %v4601_v38 = vshll.u32 %v4561_v56, 8  ;;  %v4661_v26 = vshrl.u32 %v4660_v5, 23  ;;  %v15646_v5 = vld [vmem:[#allocation110_spill] sm:$0xff] }
 0x2f1   :  { %v4326_v41 = vsel %vm4243_vm4, %v4325_v35, %v4324_v39  ;;  %v4568_v52 = vsub.s32 32, %v4567_v31  ;;  %v4570_v36 = vshll.u32 %v15632_v43, %v4567_v31  ;;  %v4573_v60 = vshll.u32 %v15639_v4, %v4567_v31 }
 0x2f2   :  { %v11446_v48 = vsel %vm11437_vm5, %v11238_v40, %v4326_v41  ;;  %v15641_v39 = vmov 2131351028   ;;  %v15642_v35 = vmov 2102212464   ;;  %v4512_v46 = vshll.u32 %v11450_v45, 30 }
 0x2f3   :  { %v4571_v2 = vshrl.u32 %v15639_v4, %v4568_v52  ;;  %v4574_v25 = vshrl.u32 %v15641_v39, %v4568_v52  ;;  %v4576_v58 = vshll.u32 %v15641_v39, %v4567_v31  ;;  %v4577_v19 = vshrl.u32 %v15642_v35, %v4568_v52 }
 0x2f4   :  { %v4579_v41 = vshll.u32 %v15642_v35, %v4567_v31  ;;  %v4580_v15 = vshrl.u32 %v15081_v54, %v4568_v52  ;;  %v4582_v12 = vshll.u32 %v15081_v54, %v4567_v31  ;;  %v4583_v23 = vshrl.u32 %v15644_v29, %v4568_v52 }
 0x2f5   :  { %v4572_v37 = vor.u32 %v4571_v2, %v4570_v36  ;;  %v4575_v21 = vor.u32 %v4574_v25, %v4573_v60  ;;  %v4578_v6 = vor.u32 %v4577_v19, %v4576_v58  ;;  %v11474_v62 = vsub.s32 %v4509_v42, %v4512_v46 }
 0x2f6   :  { %v4581_v20 = vor.u32 %v4580_v15, %v4579_v41  ;;  %v4584_v13 = vor.u32 %v4583_v23, %v4582_v12  ;;  %vm4585_vm7 = vcmp.lt.s32.totalorder %v4566_v28, 1  ;;  %vm4588_vm8 = vcmp.lt.s32.totalorder %v4566_v28, 4 }
 0x2f7   :  { %vm4587_vm9 = vcmp.lt.s32.totalorder %v4566_v28, 3  ;;  %v4590_v36 = vsel %vm4588_vm8, %v4578_v6, 2102212464  ;;  %v4593_v2 = vsel %vm4585_vm7, %v4572_v37, %v4575_v21  ;;  %v4569_v25 = vshrl.u32 %v15632_v43, %v4568_v52 }
 0x2f8   :  { %v4594_v60 = vsel %vm4588_vm8, %v4581_v20, 920167782  ;;  %vm4586_vm10 = vcmp.lt.s32.totalorder %v4566_v28, 2  ;;  %v4597_v31 = vsel %vm4585_vm7, %v4575_v21, %v4578_v6  ;;  %v4598_v41 = vsel %vm4588_vm8, %v4584_v13, 1326507024  ;;  %v15648_v13 = vld [vmem:[#allocation34_spill] sm:$0xff] }
 0x2f9   :  { %v4595_v58 = vsel %vm4587_vm9, %v4578_v6, %v4594_v60  ;;  %v4589_v15 = vsel %vm4585_vm7, %v4569_v25, %v4572_v37  ;;  %v4591_v54 = vsel %vm4587_vm9, %v4575_v21, %v4590_v36  ;;  %v4599_v42 = vsel %vm4587_vm9, %v4581_v20, %v4598_v41  ;;  %v15649_v60 = vld [vmem:[#allocation111_spill] sm:$0xff] }
 0x2fa   :  { %v4596_v19 = vsel %vm4586_vm10, %v4593_v2, %v4595_v58  ;;  %vm7722_vm11 = vcmp.lt.s32.totalorder %v7721_v27, 0  ;;  %v4600_v23 = vsel %vm4586_vm10, %v4597_v31, %v4599_v42  ;;  %v4515_v9 = vsub.s32 0, %v11474_v62  ;;  %v15645_v2 = vld [vmem:[#allocation33_spill] sm:$0xff] }
 0x2fb   :  { %v11477_v12 = vmul.u32.u64.low %v4601_v38, %v4596_v19  ;;  %v11478_v46 = vmul.u32.u64.high %v4601_v38, %v4596_v19, %v11477_v12  ;;  %v11482_v22 = vmul.u32.u64.low %v4601_v38, %v4600_v23  ;;  %v11483_v52 = vmul.u32.u64.high %v4601_v38, %v4600_v23, %v11482_v22  ;;  %v11514_v23 = vpop.f32.mrb[21].mxu0 }
 0x2fc   :  { %v4592_v28 = vsel %vm4586_vm10, %v4589_v15, %v4591_v54  ;;  %v7731_v6 = vadd.s32 4294967169, %v4661_v26  ;;  %v8505_v56 = vadd.f32 %v11288_v1, %v15645_v2  ;;  %v11489_v37 = vadd.f32 %v11290_v10, %v15646_v5  ;;  %15652 = vst [vmem:[#allocation49_spill] sm:$0xff] %v11514_v23 }
 0x2fd   :  { %v11491_v20 = vsel %vm7722_vm11, 0, %v7721_v27  ;;  %v15083_v21 = vand.u32 2147483647, %v11458_v50  ;;  %v11496_v36 = vadd.f32 %v11298_v49, %v15648_v13  ;;  %v11500_v22 = vadd.f32 %v11303_v47, %v15649_v60 }
 0x2fe   :  { %15647 = vst [vmem:[#allocation105_spill] sm:$0xff] %v11489_v37  ;;  %v4611_v54 = vadd.s32 1, %v11478_v46  ;;  %v4667_v25 = vadd.s32 1, %v7731_v6  ;;  %v4608_v1 = vmul.u32 %v4601_v38, %v4592_v28  ;;  %vm4610_vm12 = vc.u32 %v11483_v52, %v11477_v12 }
 0x2ff   :  { %15650 = vst [vmem:[#allocation45_spill] sm:$0xff] %v11500_v22  ;;  %v4421_v27 = vsub.s32 4294967266, %v11491_v20  ;;  %v7724_v10 = vmin.u32 %v4515_v9, %v11474_v62  ;;  %v4664_v31 = vand.u32 8388607, %v15083_v21  ;;  %v11511_v19 = vadd.f32 %v8505_v56, %v11231_v55 }
 0x300   :  { %v4612_v58 = vsel %vm4610_vm12, %v4611_v54, %v11478_v46  ;;  %vm4668_vm13 = vcmp.gt.s32.totalorder %v4667_v25, 0  ;;  %v4417_v22 = vsub.s32 32, %v11491_v20  ;;  %v4418_v0 = vshll.u32 %v11423_v57, %v11491_v20 }
 0x301   :  { %v4613_v49 = vadd.s32 %v4612_v58, %v4608_v1  ;;  %v4669_v47 = vsel %vm4668_vm13, %v4667_v25, 0  ;;  %15651 = vst [vmem:[#allocation47_spill] sm:$0xff] %v11511_v19  ;;  %v4422_v26 = vadd.s32 127, %v4421_v27  ;;  %v4517_v15 = vclz %v7724_v10  ;;  %v11525_v10 = vpop.f32.mrb[22].mxu0 }
 0x302   :  { %v4671_v41 = vand.u32 31, %v4669_v47  ;;  %v4665_v28 = vor.u32 8388608, %v4664_v31  ;;  %v4764_v6 = vand.u32 2139095040, %v11511_v19  ;;  %v4670_v60 = vshrl.u32 %v4669_v47, 5  ;;  %15654 = vst [vmem:[#allocation51_spill] sm:$0xff] %v11525_v10 }
 0x303   :  { %v4614_v9 = vadd.s32 536870912, %v4613_v49  ;;  %v15653_v1 = vmov 920167782   ;;  %v4401_v58 = vadd.s32 %v11357_v44, %v11363_v7  ;;  %v4431_v31 = vsub.s32 4, %v11403_v63 }
 0x304   :  { %v4672_v42 = vsub.s32 32, %v4671_v41  ;;  %v4674_v46 = vshll.u32 %v15632_v43, %v4671_v41  ;;  %v4677_v5 = vshll.u32 %v15639_v4, %v4671_v41  ;;  %v4680_v54 = vshll.u32 %v15641_v39, %v4671_v41 }
 0x305   :  { %v4683_v25 = vshll.u32 %v15642_v35, %v4671_v41  ;;  %v11531_v37 = vshrl.u32 %v4614_v9, 30  ;;  %v4423_v33 = vshll.u32 %v4422_v26, 23  ;;  %v4686_v23 = vshll.u32 %v15653_v1, %v4671_v41 }
 0x306   :  { %v4675_v2 = vshrl.u32 %v15639_v4, %v4672_v42  ;;  %v4678_v56 = vshrl.u32 %v15641_v39, %v4672_v42  ;;  %v4681_v13 = vshrl.u32 %v15642_v35, %v4672_v42  ;;  %v4684_v27 = vshrl.u32 %v15653_v1, %v4672_v42 }
 0x307   :  { %v4687_v10 = vshrl.u32 %v15644_v29, %v4672_v42  ;;  %v7725_v53 = vadd.s32 4294967294, %v4517_v15  ;;  %vm4689_vm14 = vcmp.lt.s32.totalorder %v4670_v60, 1  ;;  %v4705_v44 = vshll.u32 %v4665_v28, 8 }
 0x308   :  { %v4676_v21 = vor.u32 %v4675_v2, %v4674_v46  ;;  %v4679_v38 = vor.u32 %v4678_v56, %v4677_v5  ;;  %v4682_v47 = vor.u32 %v4681_v13, %v4680_v54  ;;  %v4685_v17 = vor.u32 %v4684_v27, %v4683_v25 }
 0x309   :  { %v4765_v7 = vshrl.u32 %v4764_v6, 23  ;;  %v4673_v46 = vshrl.u32 %v15632_v43, %v4672_v42  ;;  %v4688_v2 = vor.u32 %v4687_v10, %v4686_v23  ;;  %vm4692_vm15 = vcmp.lt.s32.totalorder %v4670_v60, 4 }
 0x30a   :  { %v4697_v9 = vsel %vm4689_vm14, %v4676_v21, %v4679_v38  ;;  %v4616_v5 = vshll.u32 %v11531_v37, 30  ;;  %vm4691_vm0 = vcmp.lt.s32.totalorder %v4670_v60, 3  ;;  %v4694_v56 = vsel %vm4692_vm15, %v4682_v47, 2102212464 }
 0x30b   :  { %v4698_v57 = vsel %vm4692_vm15, %v4685_v17, 920167782  ;;  %vm4690_vm1 = vcmp.lt.s32.totalorder %v4670_v60, 2  ;;  %v4701_v41 = vsel %vm4689_vm14, %v4679_v38, %v4682_v47  ;;  %v4702_v26 = vsel %vm4692_vm15, %v4688_v2, 1326507024 }
 0x30c   :  { %v4699_v20 = vsel %vm4691_vm0, %v4682_v47, %v4698_v57  ;;  %v4419_v15 = vshrl.u32 %v4401_v58, %v4417_v22  ;;  %v4693_v28 = vsel %vm4689_vm14, %v4673_v46, %v4676_v21  ;;  %v4703_v42 = vsel %vm4691_vm0, %v4685_v17, %v4702_v26  ;;  %v15655_v22 = vld [vmem:[#allocation112_spill] sm:$0xff]  ;;  %v15656_v17 = vld [vmem:[#allocation113_spill] sm:$0xff] }
 0x30d   :  { %v4700_v6 = vsel %vm4690_vm1, %v4697_v9, %v4699_v20  ;;  %v4695_v23 = vsel %vm4691_vm0, %v4679_v38, %v4694_v56  ;;  %v4704_v13 = vsel %vm4690_vm1, %v4701_v41, %v4703_v42  ;;  %vm7726_vm2 = vcmp.lt.s32.totalorder %v7725_v53, 0  ;;  %v15658_v9 = vld [vmem:[#allocation39_spill] sm:$0xff]  ;;  %v15659_v20 = vld [vmem:[#allocation114_spill] sm:$0xff] }
 0x30e   :  { %v11544_v54 = vmul.u32.u64.low %v4705_v44, %v4700_v6  ;;  %v11545_v25 = vmul.u32.u64.high %v4705_v44, %v4700_v6, %v11544_v54  ;;  %v11548_v27 = vmul.u32.u64.low %v4705_v44, %v4704_v13  ;;  %v11549_v10 = vmul.u32.u64.high %v4705_v44, %v4704_v13, %v11548_v27 }
 0x30f   :  { %v7735_v57 = vadd.s32 4294967169, %v4765_v7  ;;  %v4424_v47 = vor.u32 4788187, %v4423_v33  ;;  %v11551_v2 = vsub.s32 %v4613_v49, %v4616_v5  ;;  %v11555_v21 = vadd.f32 %v11319_v34, %v15655_v22 }
 0x310   :  { %v11559_v38 = vadd.f32 %v11325_v61, %v15656_v17  ;;  %v4696_v58 = vsel %vm4690_vm1, %v4693_v28, %v4695_v23  ;;  %v11564_v56 = vadd.f32 %v11337_v11, %v15658_v9  ;;  %v11568_v33 = vadd.f32 %v11393_v59, %v15659_v20  ;;  %v11598_v28 = vpop.f32.mrb[23].mxu0 }
 0x311   :  { %v4771_v46 = vadd.s32 1, %v7735_v57  ;;  %v11571_v49 = vsel %vm7726_vm2, 0, %v7725_v53  ;;  %v4715_v34 = vadd.s32 1, %v11545_v25  ;;  %v15661_v61 = vsub.s32 4, %v11352_v32 }
 0x312   :  { %15657 = vst [vmem:[#allocation53_spill] sm:$0xff] %v11559_v38  ;;  %15660 = vst [vmem:[#allocation55_spill] sm:$0xff] %v11568_v33  ;;  %v4420_v7 = vor.u32 %v4419_v15, %v4418_v0  ;;  %v11584_v11 = vsel %vm4347_vm3, %v4431_v31, %v11403_v63  ;;  %v4619_v59 = vsub.s32 0, %v11551_v2  ;;  %v4712_v5 = vmul.u32 %v4705_v44, %v4696_v58 }
 0x313   :  { %v11579_v60 = vsel %vm4243_vm4, %v15661_v61, %v11352_v32  ;;  %vm4714_vm6 = vc.u32 %v11549_v10, %v11544_v54  ;;  %vm4772_vm7 = vcmp.gt.s32.totalorder %v4771_v46, 0  ;;  %v4425_v53 = vand.u32 2147483647, %v4424_v47 }
 0x314   :  { %v4525_v41 = vsub.s32 4294967266, %v11571_v49  ;;  %v4716_v26 = vsel %vm4714_vm6, %v4715_v34, %v11545_v25  ;;  %v4773_v32 = vsel %vm4772_vm7, %v4771_v46, 0  ;;  %v15662_v0 = vand.u32 2147483647, %v11249_v14  ;;  %v11614_v46 = vpop.f32.mrb[24].mxu0 }
 0x315   :  { %v4717_v63 = vadd.s32 %v4716_v26, %v4712_v5  ;;  %v15084_v31 = vand.u32 2147483647, %v11511_v19  ;;  %v4775_v44 = vand.u32 31, %v4773_v32  ;;  %v4427_v42 = vcvt.s32.f32 %v4420_v7 }
 0x316   :  { %vm11593_vm4 = vcmp.le.f32.partialorder %v15662_v0, 0.7853982  ;;  %vm4451_vm8 = vcmp.lt.s32.totalorder %v11255_v18, 0  ;;  %v4505_v13 = vadd.s32 %v11413_v8, %v11418_v3  ;;  %v7728_v25 = vmin.u32 %v4619_v59, %v11551_v2 }
 0x317   :  { %v4718_v27 = vadd.s32 536870912, %v4717_v63  ;;  %v4776_v57 = vsub.s32 32, %v4775_v44  ;;  %v11610_v47 = vmul.f32 %v4427_v42, %v4425_v53  ;;  %v4521_v22 = vsub.s32 32, %v11571_v49 }
 0x318   :  { %v4526_v17 = vadd.s32 127, %v4525_v41  ;;  %v4535_v58 = vsub.s32 4, %v11450_v45  ;;  %v4768_v9 = vand.u32 8388607, %v15084_v31  ;;  %v4778_v20 = vshll.u32 %v15632_v43, %v4775_v44 }
 0x319   :  { %v4779_v8 = vshrl.u32 %v15639_v4, %v4776_v57  ;;  %v4782_v3 = vshrl.u32 %v15641_v39, %v4776_v57  ;;  %v4781_v34 = vshll.u32 %v15639_v4, %v4775_v44  ;;  %v4785_v61 = vshrl.u32 %v15642_v35, %v4776_v57 }
 0x31a   :  { %v4787_v7 = vshll.u32 %v15642_v35, %v4775_v44  ;;  %v4788_v59 = vshrl.u32 %v15653_v1, %v4776_v57  ;;  %v4621_v5 = vclz %v7728_v25  ;;  %v11625_v53 = vshrl.u32 %v4718_v27, 30 }
 0x31b   :  { %v4774_v41 = vshrl.u32 %v4773_v32, 5  ;;  %v4784_v26 = vshll.u32 %v15641_v39, %v4775_v44  ;;  %v4780_v0 = vor.u32 %v4779_v8, %v4778_v20  ;;  %v4783_v42 = vor.u32 %v4782_v3, %v4781_v34 }
 0x31c   :  { %v4789_v31 = vor.u32 %v4788_v59, %v4787_v7  ;;  %v4791_v23 = vshrl.u32 %v15644_v29, %v4776_v57  ;;  %v15665_v6 = vand.u32 2147483647, %v11255_v18  ;;  %v4527_v38 = vshll.u32 %v4526_v17, 23 }
 0x31d   :  { %v4769_v40 = vor.u32 8388608, %v4768_v9  ;;  %v4790_v25 = vshll.u32 %v15653_v1, %v4775_v44  ;;  %v11638_v32 = vadd.f32 %v11496_v36, %v11231_v55  ;;  %v4429_v27 = vxor.u32 2147483648, %v11610_v47 }
 0x31e   :  { %vm11631_vm9 = vcmp.le.f32.partialorder %v15665_v6, 0.7853982  ;;  %v4522_v20 = vshll.u32 %v11474_v62, %v11571_v49  ;;  %v4536_v6 = vsel %vm4451_vm8, %v4535_v58, %v11450_v45  ;;  %v4786_v8 = vor.u32 %v4785_v61, %v4784_v26 }
 0x31f   :  { %15668 = vst [vmem:[#allocation57_spill] sm:$0xff] %v11638_v32  ;;  %v4720_v3 = vshll.u32 %v11625_v53, 30  ;;  %v4792_v17 = vor.u32 %v4791_v23, %v4790_v25  ;;  %vm4793_vm10 = vcmp.lt.s32.totalorder %v4774_v41, 1  ;;  %vm4796_vm11 = vcmp.lt.s32.totalorder %v4774_v41, 4 }
 0x320   :  { %v4523_v44 = vshrl.u32 %v4505_v13, %v4521_v22  ;;  %v7729_v9 = vadd.s32 4294967294, %v4621_v5  ;;  %v4801_v36 = vsel %vm4793_vm10, %v4780_v0, %v4783_v42  ;;  %v4802_v34 = vsel %vm4796_vm11, %v4789_v31, 920167782 }
 0x321   :  { %v4528_v7 = vor.u32 4788187, %v4527_v38  ;;  %vm4795_vm12 = vcmp.lt.s32.totalorder %v4774_v41, 3  ;;  %v4809_v59 = vshll.u32 %v4769_v40, 8  ;;  %v4868_v62 = vand.u32 2139095040, %v11638_v32 }
 0x322   :  { %vm4794_vm13 = vcmp.lt.s32.totalorder %v4774_v41, 2  ;;  %v4798_v45 = vsel %vm4796_vm11, %v4786_v8, 2102212464  ;;  %v4803_v49 = vsel %vm4795_vm12, %v4786_v8, %v4802_v34  ;;  %v4805_v58 = vsel %vm4793_vm10, %v4783_v42, %v4786_v8 }
 0x323   :  { %v11652_v23 = vsub.s32 %v4717_v63, %v4720_v3  ;;  %v4777_v13 = vshrl.u32 %v15632_v43, %v4776_v57  ;;  %v4804_v22 = vsel %vm4794_vm13, %v4801_v36, %v4803_v49  ;;  %v4806_v61 = vsel %vm4796_vm11, %v4792_v17, 1326507024 }
 0x324   :  { %vm7730_vm14 = vcmp.lt.s32.totalorder %v7729_v9, 0  ;;  %v4807_v38 = vsel %vm4795_vm12, %v4789_v31, %v4806_v61  ;;  %v11657_v5 = vmul.u32.u64.low %v4809_v59, %v4804_v22  ;;  %v11658_v40 = vmul.u32.u64.high %v4809_v59, %v4804_v22, %v11657_v5  ;;  %v15669_v22 = vld [vmem:[#allocation42_spill] sm:$0xff] }
 0x325   :  { %v4797_v26 = vsel %vm4793_vm10, %v4777_v13, %v4780_v0  ;;  %v4799_v25 = vsel %vm4795_vm12, %v4783_v42, %v4798_v45  ;;  %v4808_v34 = vsel %vm4794_vm13, %v4805_v58, %v4807_v38  ;;  %v4869_v8 = vshrl.u32 %v4868_v62, 23 }
 0x326   :  { %v4524_v63 = vor.u32 %v4523_v44, %v4522_v20  ;;  %v4538_v57 = vsel %vm11631_vm9, 0, %v4536_v6  ;;  %v11665_v3 = vmul.u32.u64.low %v4809_v59, %v4808_v34  ;;  %v11666_v36 = vmul.u32.u64.high %v4809_v59, %v4808_v34, %v11665_v3 }
 0x327   :  { %v11668_v17 = vsel %vm7730_vm14, 0, %v7729_v9  ;;  %v4723_v31 = vsub.s32 0, %v11652_v23  ;;  %v7739_v49 = vadd.s32 4294967169, %v4869_v8  ;;  %v11673_v61 = vadd.f32 %v11401_v16, %v15669_v22 }
 0x328   :  { %v4529_v0 = vand.u32 2147483647, %v4528_v7  ;;  %v4800_v42 = vsel %vm4794_vm13, %v4797_v26, %v4799_v25  ;;  %v4819_v20 = vadd.s32 1, %v11658_v40  ;;  %v15670_v6 = vsel %vm11437_vm5, 0, %v11579_v60 }
 0x329   :  { %v4334_v44 = vadd.s32 3, %v15670_v6  ;;  %v4430_v9 = vsel %vm4347_vm3, %v4429_v27, %v11610_v47  ;;  %v15671_v62 = vsel %vm11593_vm4, 0, %v11584_v11  ;;  %v4875_v45 = vadd.s32 1, %v7739_v49 }
 0x32a   :  { %v4438_v16 = vadd.s32 3, %v15671_v62  ;;  %v4531_v7 = vcvt.s32.f32 %v4524_v63  ;;  %v4542_v41 = vadd.s32 3, %v4538_v57  ;;  %v4629_v58 = vsub.s32 4294967266, %v11668_v17 }
 0x32b   :  { %vm4818_vm15 = vc.u32 %v11666_v36, %v11657_v5  ;;  %v7732_v30 = vmin.u32 %v4723_v31, %v11652_v23  ;;  %v4816_v60 = vmul.u32 %v4809_v59, %v4800_v42  ;;  %vm4876_vm5 = vcmp.gt.s32.totalorder %v4875_v45, 0 }
 0x32c   :  { %v4820_v13 = vsel %vm4818_vm15, %v4819_v20, %v11658_v40  ;;  %v11696_v47 = vsel %vm11593_vm4, %v11249_v14, %v4430_v9  ;;  %v4532_v11 = vmul.f32 %v4531_v7, %v4529_v0  ;;  %v4877_v27 = vsel %vm4876_vm5, %v4875_v45, 0 }
 0x32d   :  { %v11700_v38 = vadd.f32 %v11555_v21, %v11231_v55  ;;  %9145 = vcosq.f32 %v11446_v48  ;;  %v11703_v26 = vadd.s32 %v4820_v13, %v4816_v60  ;;  %v15087_v59 = vand.u32 2147483647, %v11638_v32 }
 0x32e   :  { %v4879_v25 = vand.u32 31, %v4877_v27  ;;  %9147 = vsinq.f32 %v11446_v48  ;;  %v11707_v40 = vand.u32 3, %v4334_v44  ;;  %v11709_v15 = vand.u32 3, %v4438_v16  ;;  %v11729_v16 = vpop.f32.mrb[25].mxu0 }
 0x32f   :  { %15672 = vst [vmem:[#allocation59_spill] sm:$0xff] %v11700_v38  ;;  %v11711_v34 = vand.u32 3, %v4542_v41  ;;  %9149 = vcosq.f32 %v11696_v47  ;;  %v4630_v8 = vadd.s32 127, %v4629_v58  ;;  %v4725_v55 = vclz %v7732_v30  ;;  %v11739_v14 = vpop.f32.mrb[26].mxu0 }
 0x330   :  { %15673 = vst [vmem:[#allocation61_spill] sm:$0xff] %v11707_v40  ;;  %15674 = vst [vmem:[#allocation63_spill] sm:$0xff] %v11709_v15  ;;  %v4880_v21 = vsub.s32 32, %v4879_v25  ;;  %v4533_v63 = vxor.u32 2147483648, %v4532_v11  ;;  %v4609_v57 = vadd.s32 %v11477_v12, %v11483_v52  ;;  %v4625_v3 = vsub.s32 32, %v11668_v17 }
 0x331   :  { %15675 = vst [vmem:[#allocation65_spill] sm:$0xff] %v11711_v34  ;;  %v4972_v31 = vand.u32 2139095040, %v11700_v38  ;;  %v4822_v48 = vadd.s32 536870912, %v11703_v26  ;;  %v4872_v49 = vand.u32 8388607, %v15087_v59  ;;  %v4882_v42 = vshll.u32 %v15632_v43, %v4879_v25 }
 0x332   :  { %v4883_v22 = vshrl.u32 %v15639_v4, %v4880_v21  ;;  %v4886_v0 = vshrl.u32 %v15641_v39, %v4880_v21  ;;  %v4885_v20 = vshll.u32 %v15639_v4, %v4879_v25  ;;  %v4889_v6 = vshrl.u32 %v15642_v35, %v4880_v21 }
 0x333   :  { %v4892_v12 = vshrl.u32 %v15653_v1, %v4880_v21  ;;  %v4631_v52 = vshll.u32 %v4630_v8, 23  ;;  %v7733_v44 = vadd.s32 4294967294, %v4725_v55  ;;  %v4888_v9 = vshll.u32 %v15641_v39, %v4879_v25 }
 0x334   :  { %v4891_v62 = vshll.u32 %v15642_v35, %v4879_v25  ;;  %vm4555_vm0 = vcmp.lt.s32.totalorder %v11409_v51, 0  ;;  %v4878_v45 = vshrl.u32 %v4877_v27, 5  ;;  %v4884_v7 = vor.u32 %v4883_v22, %v4882_v42 }
 0x335   :  { %v4887_v41 = vor.u32 %v4886_v0, %v4885_v20  ;;  %v4973_v58 = vshrl.u32 %v4972_v31, 23  ;;  %v4890_v30 = vor.u32 %v4889_v6, %v4888_v9  ;;  %v4894_v13 = vshll.u32 %v15653_v1, %v4879_v25 }
 0x336   :  { %v4893_v60 = vor.u32 %v4892_v12, %v4891_v62  ;;  %v4895_v59 = vshrl.u32 %v15644_v29, %v4880_v21  ;;  %v4534_v8 = vsel %vm4451_vm8, %v4533_v63, %v4532_v11  ;;  %v4639_v55 = vsub.s32 4, %v11531_v37 }
 0x337   :  { %v11737_v34 = vshrl.u32 %v4822_v48, 30  ;;  %v4873_v40 = vor.u32 8388608, %v4872_v49  ;;  %v11741_v27 = vpop.eup %9145  ;;  %v15677_v31 = vand.u32 2147483647, %v11409_v51  ;;  %v4627_v25 = vshrl.u32 %v4609_v57, %v4625_v3 }
 0x338   :  { %15676 = vst [vmem:[#allocation68_spill] sm:$0xff] %v11741_v27  ;;  %v4632_v0 = vor.u32 4788187, %v4631_v52  ;;  %vm7734_vm2 = vcmp.lt.s32.totalorder %v7733_v44, 0  ;;  %v4896_v42 = vor.u32 %v4895_v59, %v4894_v13  ;;  %v11749_v11 = vpop.eup %9147  ;;  %v4881_v63 = vshrl.u32 %v15632_v43, %v4880_v21 }
 0x339   :  { %vm11745_vm1 = vcmp.le.f32.partialorder %v15677_v31, 0.7853982  ;;  %15680 = vst [vmem:[#allocation71_spill] sm:$0xff] %v11749_v11  ;;  %vm4897_vm3 = vcmp.lt.s32.totalorder %v4878_v45, 1  ;;  %vm4900_vm6 = vcmp.lt.s32.totalorder %v4878_v45, 4  ;;  %v7743_v48 = vadd.s32 4294967169, %v4973_v58  ;;  %v11752_v49 = vpop.eup %9149 }
 0x33a   :  { %15681 = vst [vmem:[#allocation74_spill] sm:$0xff] %v11752_v49  ;;  %vm4899_vm7 = vcmp.lt.s32.totalorder %v4878_v45, 3  ;;  %v4902_v20 = vsel %vm4900_vm6, %v4890_v30, 2102212464  ;;  %v4905_v6 = vsel %vm4897_vm3, %v4884_v7, %v4887_v41  ;;  %v4906_v12 = vsel %vm4900_vm6, %v4893_v60, 920167782 }
 0x33b   :  { %v4824_v9 = vshll.u32 %v11737_v34, 30  ;;  %vm4898_vm4 = vcmp.lt.s32.totalorder %v4878_v45, 2  ;;  %v4907_v57 = vsel %vm4899_vm7, %v4890_v30, %v4906_v12  ;;  %v4913_v3 = vshll.u32 %v4873_v40, 8 }
 0x33c   :  { %v4901_v52 = vsel %vm4897_vm3, %v4881_v63, %v4884_v7  ;;  %v4908_v59 = vsel %vm4898_vm4, %v4905_v6, %v4907_v57  ;;  %v4909_v62 = vsel %vm4897_vm3, %v4887_v41, %v4890_v30  ;;  %v4910_v13 = vsel %vm4900_vm6, %v4896_v42, 1326507024  ;;  %v11803_v57 = vld [vmem:[%s14808_s3] ss:$0 sm:$0xff] }
 0x33d   :  { %vm4659_vm8 = vcmp.lt.s32.totalorder %v11458_v50, 0  ;;  %v4903_v21 = vsel %vm4899_vm7, %v4887_v41, %v4902_v20  ;;  %v4911_v58 = vsel %vm4899_vm7, %v4893_v60, %v4910_v13  ;;  %v4626_v11 = vshll.u32 %v11551_v2, %v11668_v17 }
 0x33e   :  { %v11757_v31 = vmul.u32.u64.low %v4913_v3, %v4908_v59  ;;  %v11758_v27 = vmul.u32.u64.high %v4913_v3, %v4908_v59, %v11757_v31  ;;  %v4640_v40 = vsel %vm4555_vm0, %v4639_v55, %v11531_v37  ;;  %v4912_v7 = vsel %vm4898_vm4, %v4909_v62, %v4911_v58  ;;  %v11823_v58 = vpop.f32.mrb[27].mxu0 }
 0x33f   :  { %v4979_v63 = vadd.s32 1, %v7743_v48  ;;  %v11768_v30 = vsel %vm7734_vm2, 0, %v7733_v44  ;;  %v11771_v41 = vsub.s32 %v11703_v26, %v4824_v9  ;;  %9151 = vsinq.f32 %v11696_v47 }
 0x340   :  { %v11773_v60 = vmul.u32.u64.low %v4913_v3, %v4912_v7  ;;  %v11774_v42 = vmul.u32.u64.high %v4913_v3, %v4912_v7, %v11773_v60  ;;  %v4628_v20 = vor.u32 %v4627_v25, %v4626_v11  ;;  %v4904_v2 = vsel %vm4898_vm4, %v4901_v52, %v4903_v21 }
 0x341   :  { %vm4980_vm10 = vcmp.gt.s32.totalorder %v4979_v63, 0  ;;  %v11781_v37 = vsel %vm11631_vm9, %v11255_v18, %v4534_v8  ;;  %v4633_v17 = vand.u32 2147483647, %v4632_v0  ;;  %v4642_v44 = vsel %vm11745_vm1, 0, %v4640_v40 }
 0x342   :  { %v4923_v26 = vadd.s32 1, %v11758_v27  ;;  %v4729_v55 = vsub.s32 32, %v11768_v30  ;;  %v4743_v48 = vsub.s32 4, %v11625_v53  ;;  %v15094_v47 = vand.u32 2147483647, %v11700_v38 }
 0x343   :  { %v4981_v45 = vsel %vm4980_vm10, %v4979_v63, 0  ;;  %v4733_v25 = vsub.s32 4294967266, %v11768_v30  ;;  %v4827_v11 = vsub.s32 0, %v11771_v41  ;;  %v4920_v33 = vmul.u32 %v4913_v3, %v4904_v2 }
 0x344   :  { %vm4922_vm9 = vc.u32 %v11774_v42, %v11757_v31  ;;  %v4635_v8 = vcvt.s32.f32 %v4628_v20  ;;  %v15682_v0 = vand.u32 2147483647, %v11458_v50  ;;  %v4983_v9 = vand.u32 31, %v4981_v45 }
 0x345   :  { %v4924_v12 = vsel %vm4922_vm9, %v4923_v26, %v11758_v27  ;;  %v11807_v3 = vadd.f32 %v11803_v57, %v11564_v56  ;;  %9153 = vcosq.f32 %v11781_v37  ;;  %v11810_v52 = vadd.s32 3, %v4642_v44 }
 0x346   :  { %vm11795_vm11 = vcmp.le.f32.partialorder %v15682_v0, 0.7853982  ;;  %v4713_v59 = vadd.s32 %v11544_v54, %v11549_v10  ;;  %v4925_v62 = vadd.s32 %v4924_v12, %v4920_v33  ;;  %v11814_v13 = vmul.f32 %v4635_v8, %v4633_v17 }
 0x347   :  { %15685 = vst [vmem:[#allocation76_spill] sm:$0xff] %v11807_v3  ;;  %v11819_v27 = vsel %vm4659_vm8, %v4743_v48, %v11625_v53  ;;  %v4976_v21 = vand.u32 8388607, %v15094_v47  ;;  %v4984_v56 = vsub.s32 32, %v4983_v9  ;;  %v4734_v7 = vadd.s32 127, %v4733_v25 }
 0x348   :  { %v4731_v40 = vshrl.u32 %v4713_v59, %v4729_v55  ;;  %v7736_v63 = vmin.u32 %v4827_v11, %v11771_v41  ;;  %v4926_v60 = vadd.s32 536870912, %v4925_v62  ;;  %v4986_v54 = vshll.u32 %v15632_v43, %v4983_v9  ;;  %v11835_v55 = vpop.f32.mrb[28].mxu0 }
 0x349   :  { %v4987_v10 = vshrl.u32 %v15639_v4, %v4984_v56  ;;  %v4990_v20 = vshrl.u32 %v15641_v39, %v4984_v56  ;;  %v5076_v53 = vand.u32 2139095040, %v11807_v3  ;;  %v4989_v17 = vshll.u32 %v15639_v4, %v4983_v9  ;;  %15686 = vst [vmem:[#allocation79_spill] sm:$0xff] %v11835_v55  ;;  %v11837_v48 = vpop.eup %9151 }
 0x34a   :  { %v11830_v2 = vshrl.u32 %v4926_v60, 30  ;;  %v4993_v44 = vshrl.u32 %v15642_v35, %v4984_v56  ;;  %v4996_v26 = vshrl.u32 %v15653_v1, %v4984_v56  ;;  %15687 = vst [vmem:[#allocation82_spill] sm:$0xff] %v11837_v48  ;;  %v4977_v25 = vor.u32 8388608, %v4976_v21 }
 0x34b   :  { %v4982_v11 = vshrl.u32 %v4981_v45, 5  ;;  %v4995_v33 = vshll.u32 %v15642_v35, %v4983_v9  ;;  %v4999_v8 = vshrl.u32 %v15644_v29, %v4984_v56  ;;  %v4829_v0 = vclz %v7736_v63 }
 0x34c   :  { %v4988_v12 = vor.u32 %v4987_v10, %v4986_v54  ;;  %v4991_v59 = vor.u32 %v4990_v20, %v4989_v17  ;;  %v4992_v60 = vshll.u32 %v15641_v39, %v4983_v9  ;;  %v4730_v47 = vshll.u32 %v11652_v23, %v11768_v30 }
 0x34d   :  { %v4997_v18 = vor.u32 %v4996_v26, %v4995_v33  ;;  %v4998_v15 = vshll.u32 %v15653_v1, %v4983_v9  ;;  %v5077_v49 = vshrl.u32 %v5076_v53, 23  ;;  %v4637_v48 = vxor.u32 2147483648, %v11814_v13 }
 0x34e   :  { %v4746_v45 = vsel %vm11795_vm11, 0, %v11819_v27  ;;  %v4928_v21 = vshll.u32 %v11830_v2, 30  ;;  %v4994_v63 = vor.u32 %v4993_v44, %v4992_v60  ;;  %v4732_v54 = vor.u32 %v4731_v40, %v4730_v47 }
 0x34f   :  { %v4735_v10 = vshll.u32 %v4734_v7, 23  ;;  %v5000_v20 = vor.u32 %v4999_v8, %v4998_v15  ;;  %vm5001_vm12 = vcmp.lt.s32.totalorder %v4982_v11, 1  ;;  %v11850_v17 = vpop.eup %9153  ;;  %v7737_v23 = vadd.s32 4294967294, %v4829_v0 }
 0x350   :  { %15688 = vst [vmem:[#allocation84_spill] sm:$0xff] %v11850_v17  ;;  %vm5004_vm13 = vcmp.lt.s32.totalorder %v4982_v11, 4  ;;  %v5009_v30 = vsel %vm5001_vm12, %v4988_v12, %v4991_v59  ;;  %v5017_v9 = vshll.u32 %v4977_v25, 8  ;;  %vm5002_vm14 = vcmp.lt.s32.totalorder %v4982_v11, 2 }
 0x351   :  { %vm5003_vm15 = vcmp.lt.s32.totalorder %v4982_v11, 3  ;;  %v5010_v53 = vsel %vm5004_vm13, %v4997_v18, 920167782  ;;  %v7747_v26 = vadd.s32 4294967169, %v5077_v49  ;;  %v11853_v33 = vsub.s32 %v4925_v62, %v4928_v21 }
 0x352   :  { %v5006_v27 = vsel %vm5004_vm13, %v4994_v63, 2102212464  ;;  %v5011_v55 = vsel %vm5003_vm15, %v4994_v63, %v5010_v53  ;;  %v5013_v47 = vsel %vm5001_vm12, %v4991_v59, %v4994_v63  ;;  %v4736_v40 = vor.u32 4788187, %v4735_v10 }
 0x353   :  { %v4985_v15 = vshrl.u32 %v15632_v43, %v4984_v56  ;;  %v5012_v7 = vsel %vm5002_vm14, %v5009_v30, %v5011_v55  ;;  %v5014_v44 = vsel %vm5004_vm13, %v5000_v20, 1326507024  ;;  %vm7738_vm5 = vcmp.lt.s32.totalorder %v7737_v23, 0  ;;  %v15689_v56 = vld [vmem:[#allocation115_spill] sm:$0xff] }
 0x354   :  { %v5015_v8 = vsel %vm5003_vm15, %v4997_v18, %v5014_v44  ;;  %v11858_v0 = vmul.u32.u64.low %v5017_v9, %v5012_v7  ;;  %v11859_v25 = vmul.u32.u64.high %v5017_v9, %v5012_v7, %v11858_v0  ;;  %v5007_v62 = vsel %vm5003_vm15, %v4991_v59, %v5006_v27 }
 0x355   :  { %v5005_v49 = vsel %vm5001_vm12, %v4985_v15, %v4988_v12  ;;  %v5016_v60 = vsel %vm5002_vm14, %v5013_v47, %v5015_v8  ;;  %v5083_v21 = vadd.s32 1, %v7747_v26  ;;  %v4931_v63 = vsub.s32 0, %v11853_v33  ;;  %v11907_v8 = vpop.f32.mrb[64].mxu1 }
 0x356   :  { %v11865_v10 = vmul.u32.u64.low %v5017_v9, %v5016_v60  ;;  %v11866_v53 = vmul.u32.u64.high %v5017_v9, %v5016_v60, %v11865_v10  ;;  %v11870_v55 = vadd.f32 %v11460_v24, %v15689_v56  ;;  %9155 = vsinq.f32 %v11781_v37  ;;  %15692 = vst [vmem:[#allocation46_spill] sm:$0xff] %v11907_v8 }
 0x357   :  { %v4638_v18 = vsel %vm4555_vm0, %v4637_v48, %v11814_v13  ;;  %v11877_v12 = vand.u32 3, %v11810_v52  ;;  %vm5084_vm2 = vcmp.gt.s32.totalorder %v5083_v21, 0  ;;  %v4737_v59 = vand.u32 2147483647, %v4736_v40 }
 0x358   :  { %15690 = vst [vmem:[#allocation22_spill] sm:$0xff] %v11870_v55  ;;  %v5008_v20 = vsel %vm5002_vm14, %v5005_v49, %v5007_v62  ;;  %v5027_v30 = vadd.s32 1, %v11859_v25  ;;  %v5085_v26 = vsel %vm5084_vm2, %v5083_v21, 0  ;;  %v11881_v27 = vadd.s32 3, %v4746_v45 }
 0x359   :  { %15691 = vst [vmem:[#allocation98_spill] sm:$0xff] %v11877_v12  ;;  %v11884_v24 = vsel %vm7738_vm5, 0, %v7737_v23  ;;  %v15100_v37 = vand.u32 2147483647, %v11807_v3  ;;  %v5087_v47 = vand.u32 31, %v5085_v26  ;;  %v11890_v52 = vsel %vm11745_vm1, %v11409_v51, %v4638_v18 }
 0x35a   :  { %v4739_v13 = vcvt.s32.f32 %v4732_v54  ;;  %v4817_v48 = vadd.s32 %v11657_v5, %v11666_v36  ;;  %v7740_v11 = vmin.u32 %v4931_v63, %v11853_v33  ;;  %v4847_v45 = vsub.s32 4, %v11737_v34 }
 0x35b   :  { %v5024_v40 = vmul.u32 %v5017_v9, %v5008_v20  ;;  %vm5026_vm0 = vc.u32 %v11866_v53, %v11858_v0  ;;  %v5088_v23 = vsub.s32 32, %v5087_v47  ;;  %v4833_v7 = vsub.s32 32, %v11884_v24 }
 0x35c   :  { %v4740_v15 = vmul.f32 %v4739_v13, %v4737_v59  ;;  %v4837_v22 = vsub.s32 4294967266, %v11884_v24  ;;  %v5028_v44 = vsel %vm5026_vm0, %v5027_v30, %v11859_v25  ;;  %v5080_v5 = vand.u32 8388607, %v15100_v37 }
 0x35d   :  { %v11901_v54 = vadd.s32 %v5028_v44, %v5024_v40  ;;  %v5091_v36 = vshrl.u32 %v15639_v4, %v5088_v23  ;;  %v5094_v9 = vshrl.u32 %v15641_v39, %v5088_v23  ;;  %v4933_v49 = vclz %v7740_v11 }
 0x35e   :  { %v5090_v62 = vshll.u32 %v15632_v43, %v5087_v47  ;;  %v5093_v60 = vshll.u32 %v15639_v4, %v5087_v47  ;;  %v5097_v21 = vshrl.u32 %v15642_v35, %v5088_v23  ;;  %v5086_v63 = vshrl.u32 %v5085_v26, 5 }
 0x35f   :  { %v5096_v25 = vshll.u32 %v15641_v39, %v5087_v47  ;;  %v5099_v10 = vshll.u32 %v15642_v35, %v5087_v47  ;;  %v5100_v56 = vshrl.u32 %v15653_v1, %v5088_v23  ;;  %v4741_v18 = vxor.u32 2147483648, %v4740_v15 }
 0x360   :  { %vm4763_vm1 = vcmp.lt.s32.totalorder %v11511_v19, 0  ;;  %v5030_v59 = vadd.s32 536870912, %v11901_v54  ;;  %v5092_v20 = vor.u32 %v5091_v36, %v5090_v62  ;;  %v5095_v30 = vor.u32 %v5094_v9, %v5093_v60  ;;  %v11917_v13 = vpop.eup %9155 }
 0x361   :  { %15693 = vst [vmem:[#allocation24_spill] sm:$0xff] %v11917_v13  ;;  %v5098_v11 = vor.u32 %v5097_v21, %v5096_v25  ;;  %v5101_v40 = vor.u32 %v5100_v56, %v5099_v10  ;;  %v5102_v44 = vshll.u32 %v15653_v1, %v5087_v47  ;;  %v5103_v26 = vshrl.u32 %v15644_v29, %v5088_v23  ;;  %v11943_v56 = vpop.f32.mrb[29].mxu0 }
 0x362   :  { %v4835_v37 = vshrl.u32 %v4817_v48, %v4833_v7  ;;  %v4838_v55 = vadd.s32 127, %v4837_v22  ;;  %v5081_v17 = vor.u32 8388608, %v5080_v5  ;;  %v11923_v51 = vadd.f32 %v11803_v57, %v11673_v61  ;;  %15698 = vst [vmem:[#allocation10_spill] sm:$0xff] %v11943_v56 }
 0x363   :  { %v7741_v12 = vadd.s32 4294967294, %v4933_v49  ;;  %v5104_v8 = vor.u32 %v5103_v26, %v5102_v44  ;;  %vm5105_vm3 = vcmp.lt.s32.totalorder %v5086_v63, 1  ;;  %vm5108_vm6 = vcmp.lt.s32.totalorder %v5086_v63, 4 }
 0x364   :  { %15694 = vst [vmem:[#allocation50_spill] sm:$0xff] %v11923_v51  ;;  %v15695_v36 = vand.u32 2147483647, %v11511_v19  ;;  %v5089_v47 = vshrl.u32 %v15632_v43, %v5088_v23  ;;  %vm5107_vm4 = vcmp.lt.s32.totalorder %v5086_v63, 3  ;;  %v5113_v48 = vsel %vm5105_vm3, %v5092_v20, %v5095_v30 }
 0x365   :  { %v5114_v7 = vsel %vm5108_vm6, %v5101_v40, 920167782  ;;  %v11934_v22 = vshrl.u32 %v5030_v59, 30  ;;  %vm5106_vm10 = vcmp.lt.s32.totalorder %v5086_v63, 2  ;;  %v5110_v61 = vsel %vm5108_vm6, %v5098_v11, 2102212464 }
 0x366   :  { %vm11927_vm7 = vcmp.le.f32.partialorder %v15695_v36, 0.7853982  ;;  %v5115_v5 = vsel %vm5107_vm4, %v5098_v11, %v5114_v7  ;;  %v4839_v49 = vshll.u32 %v4838_v55, 23  ;;  %v5121_v60 = vshll.u32 %v5081_v17, 8  ;;  %v15699_v7 = vld [vmem:[#allocation116_spill] sm:$0xff] }
 0x367   :  { %v5116_v62 = vsel %vm5106_vm10, %v5113_v48, %v5115_v5  ;;  %v5180_v21 = vand.u32 2139095040, %v11923_v51  ;;  %vm7742_vm9 = vcmp.lt.s32.totalorder %v7741_v12, 0  ;;  %v5109_v23 = vsel %vm5105_vm3, %v5089_v47, %v5092_v20 }
 0x368   :  { %v5117_v25 = vsel %vm5105_vm3, %v5095_v30, %v5098_v11  ;;  %v5118_v10 = vsel %vm5108_vm6, %v5104_v8, 1326507024  ;;  %v5111_v59 = vsel %vm5107_vm4, %v5095_v30, %v5110_v61  ;;  %v4834_v17 = vshll.u32 %v11771_v41, %v11884_v24  ;;  %v15700_v61 = vld [vmem:[#allocation27_spill] sm:$0xff] }
 0x369   :  { %v5119_v44 = vsel %vm5107_vm4, %v5101_v40, %v5118_v10  ;;  %v11947_v26 = vmul.u32.u64.low %v5121_v60, %v5116_v62  ;;  %v11948_v55 = vmul.u32.u64.high %v5121_v60, %v5116_v62, %v11947_v26  ;;  %v4848_v20 = vsel %vm4763_vm1, %v4847_v45, %v11737_v34  ;;  %v15701_v62 = vld [vmem:[#allocation117_spill] sm:$0xff] }
 0x36a   :  { %v5032_v11 = vshll.u32 %v11934_v22, 30  ;;  %v5120_v8 = vsel %vm5106_vm10, %v5117_v25, %v5119_v44  ;;  %v4742_v30 = vsel %vm4659_vm8, %v4741_v18, %v4740_v15  ;;  %v4840_v36 = vor.u32 4788187, %v4839_v49  ;;  %v15702_v15 = vld [vmem:[#allocation49_spill] sm:$0xff]  ;;  %v15704_v49 = vld [vmem:[#allocation118_spill] sm:$0xff]  ;;  %v15705_v25 = vld [vmem:[#allocation51_spill] sm:$0xff] }
 0x36b   :  { %vm4867_vm12 = vcmp.lt.s32.totalorder %v11638_v32, 0  ;;  %v11961_v40 = vmul.u32.u64.low %v5121_v60, %v5120_v8  ;;  %v11962_v47 = vmul.u32.u64.high %v5121_v60, %v5120_v8, %v11961_v40  ;;  %v4836_v48 = vor.u32 %v4835_v37, %v4834_v17 }
 0x36c   :  { %v11965_v41 = vsel %vm7742_vm9, 0, %v7741_v12  ;;  %v5112_v24 = vsel %vm5106_vm10, %v5109_v23, %v5111_v59  ;;  %v5181_v34 = vshrl.u32 %v5180_v21, 23  ;;  %v5131_v45 = vadd.s32 1, %v11948_v55  ;;  %v15709_v59 = vld [vmem:[#allocation119_spill] sm:$0xff] }
 0x36d   :  { %v8515_v5 = vadd.f32 %v15700_v61, %v15699_v7  ;;  %v11973_v18 = vadd.f32 %v15702_v15, %v15701_v62  ;;  %v11977_v10 = vadd.f32 %v15705_v25, %v15704_v49  ;;  %v4850_v12 = vsel %vm11927_vm7, 0, %v4848_v20 }
 0x36e   :  { %v15706_v37 = vand.u32 2147483647, %v11638_v32  ;;  %v11988_v21 = vsub.s32 %v11901_v54, %v5032_v11  ;;  %v7751_v23 = vadd.s32 4294967169, %v5181_v34  ;;  %v11992_v44 = vadd.f32 %v11598_v28, %v15709_v59 }
 0x36f   :  { %15703 = vst [vmem:[#allocation26_spill] sm:$0xff] %v11973_v18  ;;  %v4745_v17 = vsel %vm11795_vm11, %v11458_v50, %v4742_v30  ;;  %v4841_v8 = vand.u32 2147483647, %v4840_v36  ;;  %v5128_v20 = vmul.u32 %v5121_v60, %v5112_v24  ;;  %vm5130_vm13 = vc.u32 %v11962_v47, %v11947_v26 }
 0x370   :  { %vm11983_vm8 = vcmp.le.f32.partialorder %v15706_v37, 0.7853982  ;;  %15710 = vst [vmem:[#allocation15_spill] sm:$0xff] %v11992_v44  ;;  %v4941_v40 = vsub.s32 4294967266, %v11965_v41  ;;  %v4951_v7 = vsub.s32 4, %v11830_v2  ;;  %v5132_v54 = vsel %vm5130_vm13, %v5131_v45, %v11948_v55 }
 0x371   :  { %v5187_v11 = vadd.s32 1, %v7751_v23  ;;  %9157 = vcosq.f32 %v11890_v52  ;;  %v4843_v28 = vcvt.s32.f32 %v4836_v48  ;;  %v4854_v34 = vadd.s32 3, %v4850_v12  ;;  %v12027_v23 = vpop.f32.mrb[65].mxu1 }
 0x372   :  { %v5133_v61 = vadd.s32 %v5132_v54, %v5128_v20  ;;  %9159 = vsinq.f32 %v11890_v52  ;;  %v12005_v6 = vand.u32 3, %v11881_v27  ;;  %v5035_v60 = vsub.s32 0, %v11988_v21  ;;  %15714 = vst [vmem:[#allocation18_spill] sm:$0xff] %v12027_v23  ;;  %v12112_v9 = vpop.f32.mrb[66].mxu1 }
 0x373   :  { %vm5188_vm11 = vcmp.gt.s32.totalorder %v5187_v11, 0  ;;  %9161 = vcosq.f32 %v4745_v17  ;;  %v12008_v30 = vmul.f32 %v4843_v28, %v4841_v8  ;;  %v4937_v55 = vsub.s32 32, %v11965_v41  ;;  %15725 = vst [vmem:[#allocation35_spill] sm:$0xff] %v12112_v9 }
 0x374   :  { %15711 = vst [vmem:[#allocation54_spill] sm:$0xff] %v12005_v6  ;;  %v5134_v36 = vadd.s32 536870912, %v5133_v61  ;;  %v5189_v24 = vsel %vm5188_vm11, %v5187_v11, 0  ;;  %v4942_v45 = vadd.s32 127, %v4941_v40  ;;  %v12014_v48 = vsel %vm4867_vm12, %v4951_v7, %v11830_v2 }
 0x375   :  { %v5191_v52 = vand.u32 31, %v5189_v24  ;;  %9163 = vsinq.f32 %v4745_v17  ;;  %v12016_v27 = vand.u32 3, %v4854_v34  ;;  %v4921_v62 = vadd.s32 %v11757_v31, %v11774_v42 }
 0x376   :  { %v12020_v15 = vshrl.u32 %v5134_v36, 30  ;;  %v7744_v49 = vmin.u32 %v5035_v60, %v11988_v21  ;;  %v15105_v25 = vand.u32 2147483647, %v11923_v51  ;;  %v12025_v37 = vadd.f32 %v11803_v57, %v8515_v5 }
 0x377   :  { %15712 = vst [vmem:[#allocation28_spill] sm:$0xff] %v12016_v27  ;;  %v5192_v12 = vsub.s32 32, %v5191_v52  ;;  %v4845_v2 = vxor.u32 2147483648, %v12008_v30  ;;  %v4938_v59 = vshll.u32 %v11853_v33, %v11965_v41  ;;  %v4939_v17 = vshrl.u32 %v4921_v62, %v4937_v55 }
 0x378   :  { %15713 = vst [vmem:[#allocation16_spill] sm:$0xff] %v12025_v37  ;;  %v5136_v42 = vshll.u32 %v12020_v15, 30  ;;  %v4943_v8 = vshll.u32 %v4942_v45, 23  ;;  %v5194_v20 = vshll.u32 %v15632_v43, %v5191_v52  ;;  %v5197_v7 = vshll.u32 %v15639_v4, %v5191_v52 }
 0x379   :  { %v5195_v5 = vshrl.u32 %v15639_v4, %v5192_v12  ;;  %v5198_v54 = vshrl.u32 %v15641_v39, %v5192_v12  ;;  %v5201_v33 = vshrl.u32 %v15642_v35, %v5192_v12  ;;  %v5037_v41 = vclz %v7744_v49 }
 0x37a   :  { %v12038_v40 = vsub.s32 %v5133_v61, %v5136_v42  ;;  %v5184_v11 = vand.u32 8388607, %v15105_v25  ;;  %v5190_v28 = vshrl.u32 %v5189_v24, 5  ;;  %v5284_v34 = vand.u32 2139095040, %v12025_v37 }
 0x37b   :  { %v12046_v60 = vpop.eup %9157  ;;  %v5196_v55 = vor.u32 %v5195_v5, %v5194_v20  ;;  %v5199_v61 = vor.u32 %v5198_v54, %v5197_v7  ;;  %v5200_v45 = vshll.u32 %v15641_v39, %v5191_v52  ;;  %vm4971_vm14 = vcmp.lt.s32.totalorder %v11700_v38, 0 }
 0x37c   :  { %15715 = vst [vmem:[#allocation30_spill] sm:$0xff] %v12046_v60  ;;  %v5139_v36 = vsub.s32 0, %v12038_v40  ;;  %v12050_v62 = vpop.eup %9159  ;;  %v5203_v49 = vshll.u32 %v15642_v35, %v5191_v52  ;;  %v5204_v42 = vshrl.u32 %v15653_v1, %v5192_v12  ;;  %v5206_v24 = vshll.u32 %v15653_v1, %v5191_v52 }
 0x37d   :  { %15716 = vst [vmem:[#allocation60_spill] sm:$0xff] %v12050_v62  ;;  %v5207_v25 = vshrl.u32 %v15644_v29, %v5192_v12  ;;  %v12057_v31 = vpop.eup %9161  ;;  %v4940_v18 = vor.u32 %v4939_v17, %v4938_v59  ;;  %v4944_v44 = vor.u32 4788187, %v4943_v8  ;;  %v5055_v20 = vsub.s32 4, %v11934_v22 }
 0x37e   :  { %15717 = vst [vmem:[#allocation62_spill] sm:$0xff] %v12057_v31  ;;  %v5202_v5 = vor.u32 %v5201_v33, %v5200_v45  ;;  %v5185_v7 = vor.u32 8388608, %v5184_v11  ;;  %v5205_v54 = vor.u32 %v5204_v42, %v5203_v49  ;;  %vm5209_vm15 = vcmp.lt.s32.totalorder %v5190_v28, 1 }
 0x37f   :  { %v5208_v6 = vor.u32 %v5207_v25, %v5206_v24  ;;  %v12060_v50 = vpop.eup %9163  ;;  %v7745_v27 = vadd.s32 4294967294, %v5037_v41  ;;  %v7748_v13 = vmin.u32 %v5139_v36, %v12038_v40  ;;  %vm5212_vm5 = vcmp.lt.s32.totalorder %v5190_v28, 4 }
 0x380   :  { %15718 = vst [vmem:[#allocation32_spill] sm:$0xff] %v12060_v50  ;;  %v5217_v52 = vsel %vm5209_vm15, %v5196_v55, %v5199_v61  ;;  %v15719_v60 = vand.u32 2147483647, %v11700_v38  ;;  %v5193_v17 = vshrl.u32 %v15632_v43, %v5192_v12  ;;  %vm5211_vm0 = vcmp.lt.s32.totalorder %v5190_v28, 3 }
 0x381   :  { %v5218_v8 = vsel %vm5212_vm5, %v5205_v54, 920167782  ;;  %v5285_v25 = vshrl.u32 %v5284_v34, 23  ;;  %vm5210_vm3 = vcmp.lt.s32.totalorder %v5190_v28, 2  ;;  %v5214_v33 = vsel %vm5212_vm5, %v5202_v5, 2102212464 }
 0x382   :  { %vm12066_vm2 = vcmp.le.f32.partialorder %v15719_v60, 0.7853982  ;;  %v5219_v11 = vsel %vm5211_vm0, %v5202_v5, %v5218_v8  ;;  %v5221_v41 = vsel %vm5209_vm15, %v5199_v61, %v5202_v5  ;;  %v4945_v36 = vand.u32 2147483647, %v4944_v44 }
 0x383   :  { %v5220_v45 = vsel %vm5210_vm3, %v5217_v52, %v5219_v11  ;;  %v5222_v49 = vsel %vm5212_vm5, %v5208_v6, 1326507024  ;;  %v5225_v42 = vshll.u32 %v5185_v7, 8  ;;  %vm7746_vm6 = vcmp.lt.s32.totalorder %v7745_v27, 0 }
 0x384   :  { %v5141_v60 = vclz %v7748_v13  ;;  %v5213_v24 = vsel %vm5209_vm15, %v5193_v17, %v5196_v55  ;;  %v5223_v31 = vsel %vm5211_vm0, %v5205_v54, %v5222_v49  ;;  %v5215_v50 = vsel %vm5211_vm0, %v5199_v61, %v5214_v33 }
 0x385   :  { %v5224_v12 = vsel %vm5210_vm3, %v5221_v41, %v5223_v31  ;;  %v12075_v62 = vmul.u32.u64.low %v5225_v42, %v5220_v45  ;;  %v12076_v34 = vmul.u32.u64.high %v5225_v42, %v5220_v45, %v12075_v62  ;;  %v4846_v44 = vsel %vm4763_vm1, %v4845_v2, %v12008_v30  ;;  %v12108_v2 = vpop.f32.mrb[30].mxu0  ;;  %v12120_v41 = vpop.f32.mrb[67].mxu1 }
 0x386   :  { %v4947_v5 = vcvt.s32.f32 %v4940_v18  ;;  %v5056_v6 = vsel %vm4971_vm14, %v5055_v20, %v11934_v22  ;;  %v7755_v13 = vadd.s32 4294967169, %v5285_v25  ;;  %v5040_v7 = vsel %vm7746_vm6, 0, %v7745_v27  ;;  %15724 = vst [vmem:[#allocation101_spill] sm:$0xff] %v12108_v2  ;;  %v12114_v25 = vpop.f32.mrb[31].mxu0  ;;  %15727 = vst [vmem:[#allocation104_spill] sm:$0xff] %v12120_v41 }
 0x387   :  { %v12085_v55 = vmul.u32.u64.low %v5225_v42, %v5224_v12  ;;  %v12086_v54 = vmul.u32.u64.high %v5225_v42, %v5224_v12, %v12085_v55  ;;  %v15115_v31 = vand.u32 2147483647, %v12025_v37  ;;  %v7749_v61 = vadd.s32 4294967294, %v5141_v60  ;;  %15726 = vst [vmem:[#allocation102_spill] sm:$0xff] %v12114_v25 }
 0x388   :  { %v5216_v52 = vsel %vm5210_vm3, %v5213_v24, %v5215_v50  ;;  %v5291_v17 = vadd.s32 1, %v7755_v13  ;;  %v12092_v8 = vadd.f32 %v11803_v57, %v11977_v10  ;;  %v12097_v18 = vsel %vm11927_vm7, %v11511_v19, %v4846_v44 }
 0x389   :  { %v12099_v22 = vmul.f32 %v4947_v5, %v4945_v36  ;;  %v15723_v30 = vsel %vm11983_vm8, 0, %v12014_v48  ;;  %v5235_v50 = vadd.s32 1, %v12076_v34  ;;  %v5041_v28 = vsub.s32 32, %v5040_v7 }
 0x38a   :  { %15722 = vst [vmem:[#allocation99_spill] sm:$0xff] %v12092_v8  ;;  %v12105_v27 = vadd.s32 3, %v15723_v30  ;;  %v5045_v10 = vsub.s32 4294967266, %v5040_v7  ;;  %v5058_v20 = vsel %vm12066_vm2, 0, %v5056_v6  ;;  %vm5292_vm1 = vcmp.gt.s32.totalorder %v5291_v17, 0 }
 0x38b   :  { %v5232_v33 = vmul.u32 %v5225_v42, %v5216_v52  ;;  %vm5234_vm7 = vc.u32 %v12086_v54, %v12075_v62  ;;  %v5288_v48 = vand.u32 8388607, %v15115_v31  ;;  %v5293_v11 = vsel %vm5292_vm1, %v5291_v17, 0 }
 0x38c   :  { %v5025_v36 = vadd.s32 %v11858_v0, %v11866_v53  ;;  %vm7750_vm4 = vcmp.lt.s32.totalorder %v7749_v61, 0  ;;  %v5236_v45 = vsel %vm5234_vm7, %v5235_v50, %v12076_v34  ;;  %v5388_v49 = vand.u32 2139095040, %v12092_v8 }
 0x38d   :  { %v12127_v42 = vadd.s32 3, %v5058_v20  ;;  %v5237_v24 = vadd.s32 %v5236_v45, %v5232_v33  ;;  %v5295_v12 = vand.u32 31, %v5293_v11  ;;  %v5042_v44 = vshll.u32 %v11988_v21, %v5040_v7 }
 0x38e   :  { %v5043_v5 = vshrl.u32 %v5025_v36, %v5041_v28  ;;  %v5046_v6 = vadd.s32 127, %v5045_v10  ;;  %v12132_v13 = vadd.s32 %v11947_v26, %v11962_v47  ;;  %v12134_v0 = vsel %vm7750_vm4, 0, %v7749_v61 }
 0x38f   :  { %v5238_v53 = vadd.s32 536870912, %v5237_v24  ;;  %v5289_v34 = vor.u32 8388608, %v5288_v48  ;;  %v5296_v55 = vsub.s32 32, %v5295_v12  ;;  %v5294_v52 = vshrl.u32 %v5293_v11, 5 }
 0x390   :  { %v5298_v17 = vshll.u32 %v15632_v43, %v5295_v12  ;;  %v5301_v30 = vshll.u32 %v15639_v4, %v5295_v12  ;;  %v5389_v50 = vshrl.u32 %v5388_v49, 23  ;;  %v5304_v26 = vshll.u32 %v15641_v39, %v5295_v12 }
 0x391   :  { %v12138_v20 = vshrl.u32 %v5238_v53, 30  ;;  %v5299_v21 = vshrl.u32 %v15639_v4, %v5296_v55  ;;  %v5302_v7 = vshrl.u32 %v15641_v39, %v5296_v55  ;;  %v5305_v47 = vshrl.u32 %v15642_v35, %v5296_v55 }
 0x392   :  { %v5307_v61 = vshll.u32 %v15642_v35, %v5295_v12  ;;  %v5308_v28 = vshrl.u32 %v15653_v1, %v5296_v55  ;;  %v5311_v10 = vshrl.u32 %v15644_v29, %v5296_v55  ;;  %v12147_v33 = vor.u32 %v5043_v5, %v5042_v44 }
 0x393   :  { %v5047_v48 = vshll.u32 %v5046_v6, 23  ;;  %v5240_v11 = vshll.u32 %v12138_v20, 30  ;;  %v5310_v36 = vshll.u32 %v15653_v1, %v5295_v12  ;;  %v5300_v45 = vor.u32 %v5299_v21, %v5298_v17 }
 0x394   :  { %v5303_v49 = vor.u32 %v5302_v7, %v5301_v30  ;;  %v5306_v53 = vor.u32 %v5305_v47, %v5304_v26  ;;  %v5309_v31 = vor.u32 %v5308_v28, %v5307_v61  ;;  %v5145_v60 = vsub.s32 32, %v12134_v0  ;;  %v12158_v61 = vpop.f32.mrb[32].mxu0 }
 0x395   :  { %v5149_v19 = vsub.s32 4294967266, %v12134_v0  ;;  %v12153_v41 = vsub.s32 %v5237_v24, %v5240_v11  ;;  %v5312_v25 = vor.u32 %v5311_v10, %v5310_v36  ;;  %vm5313_vm10 = vcmp.lt.s32.totalorder %v5294_v52, 1 }
 0x396   :  { %vm5316_vm9 = vcmp.lt.s32.totalorder %v5294_v52, 4  ;;  %v5329_v44 = vshll.u32 %v5289_v34, 8  ;;  %v7759_v5 = vadd.s32 4294967169, %v5389_v50  ;;  %v5297_v9 = vshrl.u32 %v15632_v43, %v5296_v55 }
 0x397   :  { %v5243_v6 = vsub.s32 0, %v12153_v41  ;;  %vm5314_vm13 = vcmp.lt.s32.totalorder %v5294_v52, 2  ;;  %v5318_v12 = vsel %vm5316_vm9, %v5306_v53, 2102212464  ;;  %vm5315_vm11 = vcmp.lt.s32.totalorder %v5294_v52, 3 }
 0x398   :  { %v5321_v17 = vsel %vm5313_vm10, %v5300_v45, %v5303_v49  ;;  %v5322_v30 = vsel %vm5316_vm9, %v5309_v31, 920167782  ;;  %v5325_v21 = vsel %vm5313_vm10, %v5303_v49, %v5306_v53  ;;  %v5317_v26 = vsel %vm5313_vm10, %v5297_v9, %v5300_v45 }
 0x399   :  { %v7752_v7 = vmin.u32 %v5243_v6, %v12153_v41  ;;  %v5323_v24 = vsel %vm5315_vm11, %v5306_v53, %v5322_v30  ;;  %v5326_v47 = vsel %vm5316_vm9, %v5312_v25, 1326507024  ;;  %v5319_v28 = vsel %vm5315_vm11, %v5303_v49, %v5318_v12  ;;  %v15728_v53 = vld [vmem:[#allocation120_spill] sm:$0xff]  ;;  %v15729_v6 = vld [vmem:[#allocation121_spill] sm:$0xff] }
 0x39a   :  { %v5324_v34 = vsel %vm5314_vm13, %v5321_v17, %v5323_v24  ;;  %v5327_v50 = vsel %vm5315_vm11, %v5309_v31, %v5326_v47  ;;  %v5395_v10 = vadd.s32 1, %v7759_v5  ;;  %v5150_v11 = vadd.s32 127, %v5149_v19  ;;  %v15731_v17 = vld [vmem:[#allocation122_spill] sm:$0xff] }
 0x39b   :  { %v5328_v55 = vsel %vm5314_vm13, %v5325_v21, %v5327_v50  ;;  %v12162_v36 = vmul.u32.u64.low %v5329_v44, %v5324_v34  ;;  %v12163_v2 = vmul.u32.u64.high %v5329_v44, %v5324_v34, %v12162_v36  ;;  %v15118_v9 = vand.u32 2147483647, %v12092_v8  ;;  %v12207_v50 = vpop.f32.mrb[68].mxu1 }
 0x39c   :  { %v12166_v23 = vmul.u32.u64.low %v5329_v44, %v5328_v55  ;;  %v12167_v56 = vmul.u32.u64.high %v5329_v44, %v5328_v55, %v12166_v23  ;;  %vm5396_vm15 = vcmp.gt.s32.totalorder %v5395_v10, 0  ;;  %v5245_v25 = vclz %v7752_v7  ;;  %v15732_v7 = vld [vmem:[#allocation123_spill] sm:$0xff] }
 0x39d   :  { %v5320_v45 = vsel %vm5314_vm13, %v5317_v26, %v5319_v28  ;;  %v5397_v49 = vsel %vm5396_vm15, %v5395_v10, 0  ;;  %v12173_v31 = vadd.f32 %v11614_v46, %v15728_v53  ;;  %v5048_v19 = vor.u32 4788187, %v5047_v48 }
 0x39e   :  { %v5399_v5 = vand.u32 31, %v5397_v49  ;;  %v12177_v12 = vadd.f32 %v11729_v16, %v15729_v6  ;;  %v12181_v23 = vadd.f32 %v11739_v14, %v15731_v17  ;;  %vm5075_vm5 = vcmp.lt.s32.totalorder %v11807_v3, 0 }
 0x39f   :  { %v5147_v52 = vshrl.u32 %v12132_v13, %v5145_v60  ;;  %v5151_v30 = vshll.u32 %v5150_v11, 23  ;;  %v5339_v21 = vadd.s32 1, %v12163_v2  ;;  %v12188_v46 = vadd.f32 %v11823_v58, %v15732_v7 }
 0x3a0   :  { %15730 = vst [vmem:[#allocation37_spill] sm:$0xff] %v12177_v12  ;;  %v5336_v48 = vmul.u32 %v5329_v44, %v5320_v45  ;;  %vm5338_vm0 = vc.u32 %v12167_v56, %v12162_v36  ;;  %v5392_v16 = vand.u32 8388607, %v15118_v9  ;;  %v5400_v14 = vsub.s32 32, %v5399_v5  ;;  %v12210_v45 = vpop.f32.mrb[33].mxu0 }
 0x3a1   :  { %15733 = vst [vmem:[#allocation78_spill] sm:$0xff] %v12188_v46  ;;  %v15734_v26 = vxor.u32 2147483648, %v12099_v22  ;;  %v5146_v13 = vshll.u32 %v12038_v40, %v12134_v0  ;;  %v7753_v58 = vadd.s32 4294967294, %v5245_v25  ;;  %v5340_v44 = vsel %vm5338_vm0, %v5339_v21, %v12163_v2  ;;  %v12214_v25 = vpop.f32.mrb[69].mxu1 }
 0x3a2   :  { %v5051_v24 = vcvt.s32.f32 %v12147_v33  ;;  %v5159_v47 = vsub.s32 4, %v12020_v15  ;;  %v5341_v28 = vadd.s32 %v5340_v44, %v5336_v48  ;;  %v5403_v34 = vshrl.u32 %v15639_v4, %v5400_v14  ;;  %15735 = vst [vmem:[#allocation106_spill] sm:$0xff] %v12214_v25 }
 0x3a3   :  { %v12199_v60 = vsel %vm4867_vm12, %v15734_v26, %v12099_v22  ;;  %v5049_v10 = vand.u32 2147483647, %v5048_v19  ;;  %v5148_v11 = vor.u32 %v5147_v52, %v5146_v13  ;;  %v5152_v55 = vor.u32 4788187, %v5151_v30 }
 0x3a4   :  { %v5406_v22 = vshrl.u32 %v15641_v39, %v5400_v14  ;;  %v5342_v40 = vadd.s32 536870912, %v5341_v28  ;;  %v5393_v0 = vor.u32 8388608, %v5392_v16  ;;  %v5402_v2 = vshll.u32 %v15632_v43, %v5399_v5 }
 0x3a5   :  { %v5409_v33 = vshrl.u32 %v15642_v35, %v5400_v14  ;;  %vm7754_vm12 = vcmp.lt.s32.totalorder %v7753_v58, 0  ;;  %v5398_v53 = vshrl.u32 %v5397_v49, 5  ;;  %v5405_v6 = vshll.u32 %v15639_v4, %v5399_v5 }
 0x3a6   :  { %v5408_v19 = vshll.u32 %v15641_v39, %v5399_v5  ;;  %v12218_v17 = vshrl.u32 %v5342_v40, 30  ;;  %v5404_v52 = vor.u32 %v5403_v34, %v5402_v2  ;;  %v5411_v30 = vshll.u32 %v15642_v35, %v5399_v5 }
 0x3a7   :  { %v5412_v21 = vshrl.u32 %v15653_v1, %v5400_v14  ;;  %v5407_v7 = vor.u32 %v5406_v22, %v5405_v6  ;;  %v5414_v16 = vshll.u32 %v15653_v1, %v5399_v5  ;;  %v5415_v26 = vshrl.u32 %v15644_v29, %v5400_v14 }
 0x3a8   :  { %v5410_v48 = vor.u32 %v5409_v33, %v5408_v19  ;;  %v5160_v49 = vsel %vm5075_vm5, %v5159_v47, %v12020_v15  ;;  %v12227_v13 = vsel %vm7754_vm12, 0, %v7753_v58  ;;  %v5344_v44 = vshll.u32 %v12218_v17, 30 }
 0x3a9   :  { %v5413_v40 = vor.u32 %v5412_v21, %v5411_v30  ;;  %v5052_v34 = vmul.f32 %v5051_v24, %v5049_v10  ;;  %v15736_v2 = vand.u32 2147483647, %v11807_v3  ;;  %v5153_v22 = vand.u32 2147483647, %v5152_v55 }
 0x3aa   :  { %v5155_v5 = vcvt.s32.f32 %v5148_v11  ;;  %v5416_v33 = vor.u32 %v5415_v26, %v5414_v16  ;;  %v12236_v6 = vsub.s32 %v5341_v28, %v5344_v44  ;;  %vm5417_vm6 = vcmp.lt.s32.totalorder %v5398_v53, 1 }
 0x3ab   :  { %vm12232_vm3 = vcmp.le.f32.partialorder %v15736_v2, 0.7853982  ;;  %vm5420_vm1 = vcmp.lt.s32.totalorder %v5398_v53, 4  ;;  %v5433_v15 = vshll.u32 %v5393_v0, 8  ;;  %v5253_v58 = vsub.s32 4294967266, %v12227_v13 }
 0x3ac   :  { %v5422_v47 = vsel %vm5420_vm1, %v5410_v48, 2102212464  ;;  %v5425_v19 = vsel %vm5417_vm6, %v5404_v52, %v5407_v7  ;;  %v12241_v24 = vadd.f32 %v11803_v57, %v12173_v31  ;;  %v5347_v10 = vsub.s32 0, %v12236_v6 }
 0x3ad   :  { %v5401_v30 = vshrl.u32 %v15632_v43, %v5400_v14  ;;  %vm5419_vm7 = vcmp.lt.s32.totalorder %v5398_v53, 3  ;;  %v5426_v11 = vsel %vm5420_vm1, %v5413_v40, 920167782  ;;  %vm5418_vm4 = vcmp.lt.s32.totalorder %v5398_v53, 2 }
 0x3ae   :  { %15739 = vst [vmem:[#allocation40_spill] sm:$0xff] %v12241_v24  ;;  %v5427_v28 = vsel %vm5419_vm7, %v5410_v48, %v5426_v11  ;;  %v5429_v55 = vsel %vm5417_vm6, %v5407_v7, %v5410_v48  ;;  %v5430_v21 = vsel %vm5420_vm1, %v5416_v33, 1326507024  ;;  %v5423_v0 = vsel %vm5419_vm7, %v5407_v7, %v5422_v47 }
 0x3af   :  { %v5421_v16 = vsel %vm5417_vm6, %v5401_v30, %v5404_v52  ;;  %v5428_v26 = vsel %vm5418_vm4, %v5425_v19, %v5427_v28  ;;  %v5431_v44 = vsel %vm5419_vm7, %v5413_v40, %v5430_v21  ;;  %v7756_v2 = vmin.u32 %v5347_v10, %v12236_v6 }
 0x3b0   :  { %v5432_v31 = vsel %vm5418_vm4, %v5429_v55, %v5431_v44  ;;  %v12248_v12 = vmul.u32.u64.low %v5433_v15, %v5428_v26  ;;  %v12249_v46 = vmul.u32.u64.high %v5433_v15, %v5428_v26, %v12248_v12  ;;  %9165 = vcosq.f32 %v12097_v18  ;;  %v12289_v55 = vpop.f32.mrb[34].mxu0 }
 0x3b1   :  { %v5156_v14 = vmul.f32 %v5155_v5, %v5153_v22  ;;  %v12253_v25 = vmul.u32.u64.low %v5433_v15, %v5432_v31  ;;  %v12254_v11 = vmul.u32.u64.high %v5433_v15, %v5432_v31, %v12253_v25  ;;  %9167 = vsinq.f32 %v12097_v18  ;;  %v15745_v31 = vld [vmem:[#allocation124_spill] sm:$0xff] }
 0x3b2   :  { %v12258_v52 = vand.u32 3, %v12105_v27  ;;  %v5254_v7 = vadd.s32 127, %v5253_v58  ;;  %v5424_v48 = vsel %vm5418_vm4, %v5421_v16, %v5423_v0  ;;  %v4953_v40 = vsel %vm11983_vm8, %v11638_v32, %v12199_v60 }
 0x3b3   :  { %v12266_v33 = vand.u32 3, %v12127_v42  ;;  %v5162_v22 = vsel %vm12232_vm3, 0, %v5160_v49  ;;  %v5492_v25 = vand.u32 2139095040, %v12241_v24  ;;  %v5053_v18 = vxor.u32 2147483648, %v5052_v34 }
 0x3b4   :  { %15740 = vst [vmem:[#allocation31_spill] sm:$0xff] %v12258_v52  ;;  %vm5179_vm10 = vcmp.lt.s32.totalorder %v11923_v51, 0  ;;  %v5249_v27 = vsub.s32 32, %v12227_v13  ;;  %v5349_v53 = vclz %v7756_v2  ;;  %v5443_v5 = vadd.s32 1, %v12249_v46  ;;  %v15787_v52 = vld [vmem:[#allocation71_spill] sm:$0xff] }
 0x3b5   :  { %15741 = vst [vmem:[#allocation108_spill] sm:$0xff] %v12266_v33  ;;  %v5157_v58 = vxor.u32 2147483648, %v5156_v14  ;;  %v5440_v47 = vmul.u32 %v5433_v15, %v5424_v48  ;;  %vm5442_vm8 = vc.u32 %v12254_v11, %v12248_v12  ;;  %v5493_v63 = vshrl.u32 %v5492_v25, 23 }
 0x3b6   :  { %9169 = vcosq.f32 %v4953_v40  ;;  %v5233_v42 = vadd.s32 %v12075_v62, %v12086_v54  ;;  %v5255_v60 = vshll.u32 %v5254_v7, 23  ;;  %v5444_v49 = vsel %vm5442_vm8, %v5443_v5, %v12249_v46  ;;  %v15746_v7 = vld [vmem:[#allocation79_spill] sm:$0xff] }
 0x3b7   :  { %9171 = vsinq.f32 %v4953_v40  ;;  %v5166_v19 = vadd.s32 3, %v5162_v22  ;;  %v15742_v10 = vand.u32 2147483647, %v11923_v51  ;;  %v5445_v15 = vadd.s32 %v5444_v49, %v5440_v47 }
 0x3b8   :  { %v12287_v28 = vadd.f32 %v11803_v57, %v12181_v23  ;;  %v5054_v62 = vsel %vm4971_vm14, %v5053_v18, %v5052_v34  ;;  %v5251_v54 = vshrl.u32 %v5233_v42, %v5249_v27  ;;  %v7757_v46 = vadd.s32 4294967294, %v5349_v53 }
 0x3b9   :  { %vm12281_vm9 = vcmp.le.f32.partialorder %v15742_v10, 0.7853982  ;;  %v7763_v21 = vadd.s32 4294967169, %v5493_v63  ;;  %v5158_v16 = vsel %vm5075_vm5, %v5157_v58, %v5156_v14  ;;  %v5250_v0 = vshll.u32 %v12153_v41, %v12227_v13  ;;  %v12337_v10 = vpop.f32.mrb[70].mxu1 }
 0x3ba   :  { %v5263_v26 = vsub.s32 4, %v12138_v20  ;;  %v5446_v44 = vadd.s32 536870912, %v5445_v15  ;;  %v5256_v2 = vor.u32 4788187, %v5255_v60  ;;  %v15119_v57 = vand.u32 2147483647, %v12241_v24  ;;  %v12303_v34 = vpop.eup %9165 }
 0x3bb   :  { %v5499_v23 = vadd.s32 1, %v7763_v21  ;;  %v12301_v48 = vadd.f32 %v15746_v7, %v15745_v31  ;;  %v5057_v14 = vsel %vm12066_vm2, %v11700_v38, %v5054_v62  ;;  %vm5283_vm14 = vcmp.lt.s32.totalorder %v12025_v37, 0  ;;  %v12312_v40 = vpop.eup %9167  ;;  %v12349_v21 = vpop.f32.mrb[35].mxu0 }
 0x3bc   :  { %v12309_v41 = vshrl.u32 %v5446_v44, 30  ;;  %v5596_v13 = vand.u32 2139095040, %v12287_v28  ;;  %v12314_v22 = vand.u32 3, %v5166_v19  ;;  %v5252_v25 = vor.u32 %v5251_v54, %v5250_v0  ;;  %15750 = vst [vmem:[#allocation5_spill] sm:$0xff] %v12349_v21 }
 0x3bd   :  { %vm7758_vm13 = vcmp.lt.s32.totalorder %v7757_v46, 0  ;;  %vm5500_vm11 = vcmp.gt.s32.totalorder %v5499_v23, 0  ;;  %v5161_v18 = vsel %vm12232_vm3, %v11807_v3, %v5158_v16  ;;  %v12322_v59 = vsel %vm5179_vm10, %v5263_v26, %v12138_v20  ;;  %v12351_v16 = vpop.f32.mrb[71].mxu1 }
 0x3be   :  { %15747 = vst [vmem:[#allocation43_spill] sm:$0xff] %v12314_v22  ;;  %v5367_v27 = vsub.s32 4, %v12218_v17  ;;  %v5448_v53 = vshll.u32 %v12309_v41, 30  ;;  %9173 = vcosq.f32 %v5057_v14  ;;  %v5257_v5 = vand.u32 2147483647, %v5256_v2  ;;  %15751 = vst [vmem:[#allocation64_spill] sm:$0xff] %v12351_v16 }
 0x3bf   :  { %v5496_v58 = vand.u32 8388607, %v15119_v57  ;;  %v5501_v47 = vsel %vm5500_vm11, %v5499_v23, 0  ;;  %9175 = vsinq.f32 %v5057_v14  ;;  %v12328_v63 = vsel %vm7758_vm13, 0, %v7757_v46 }
 0x3c0   :  { %v12330_v9 = vsub.s32 %v5445_v15, %v5448_v53  ;;  %v5597_v42 = vshrl.u32 %v5596_v13, 23  ;;  %v12332_v60 = vpop.eup %9169  ;;  %9177 = vcosq.f32 %v5161_v18  ;;  %v5259_v20 = vcvt.s32.f32 %v5252_v25 }
 0x3c1   :  { %15748 = vst [vmem:[#allocation109_spill] sm:$0xff] %v12332_v60  ;;  %v5503_v19 = vand.u32 31, %v5501_v47  ;;  %v12339_v62 = vpop.eup %9171  ;;  %9179 = vsinq.f32 %v5161_v18  ;;  %v5337_v54 = vadd.s32 %v12162_v36, %v12167_v56  ;;  %v12346_v15 = vsel %vm5283_vm14, %v5367_v27, %v12218_v17 }
 0x3c2   :  { %15749 = vst [vmem:[#allocation58_spill] sm:$0xff] %v12339_v62  ;;  %v5451_v46 = vsub.s32 0, %v12330_v9  ;;  %v12353_v0 = vmul.f32 %v5259_v20, %v5257_v5  ;;  %v5353_v26 = vsub.s32 32, %v12328_v63  ;;  %v5497_v44 = vor.u32 8388608, %v5496_v58 }
 0x3c3   :  { %v5504_v2 = vsub.s32 32, %v5503_v19  ;;  %v5506_v56 = vshll.u32 %v15632_v43, %v5503_v19  ;;  %v5509_v36 = vshll.u32 %v15639_v4, %v5503_v19  ;;  %v7767_v17 = vadd.s32 4294967169, %v5597_v42 }
 0x3c4   :  { %v7760_v23 = vmin.u32 %v5451_v46, %v12330_v9  ;;  %v5512_v14 = vshll.u32 %v15641_v39, %v5503_v19  ;;  %v5502_v18 = vshrl.u32 %v5501_v47, 5  ;;  %v5515_v27 = vshll.u32 %v15642_v35, %v5503_v19 }
 0x3c5   :  { %v5507_v31 = vshrl.u32 %v15639_v4, %v5504_v2  ;;  %v5510_v7 = vshrl.u32 %v15641_v39, %v5504_v2  ;;  %v5513_v13 = vshrl.u32 %v15642_v35, %v5504_v2  ;;  %v5516_v53 = vshrl.u32 %v15653_v1, %v5504_v2 }
 0x3c6   :  { %v5453_v25 = vclz %v7760_v23  ;;  %v5357_v5 = vsub.s32 4294967266, %v12328_v63  ;;  %v5518_v49 = vshll.u32 %v15653_v1, %v5503_v19  ;;  %v5519_v22 = vshrl.u32 %v15644_v29, %v5504_v2 }
 0x3c7   :  { %v5508_v58 = vor.u32 %v5507_v31, %v5506_v56  ;;  %v5511_v20 = vor.u32 %v5510_v7, %v5509_v36  ;;  %v5514_v46 = vor.u32 %v5513_v13, %v5512_v14  ;;  %v5517_v57 = vor.u32 %v5516_v53, %v5515_v27 }
 0x3c8   :  { %v7761_v42 = vadd.s32 4294967294, %v5453_v25  ;;  %v12368_v3 = vpop.eup %9173  ;;  %v5261_v23 = vxor.u32 2147483648, %v12353_v0  ;;  %v15753_v47 = vand.u32 2147483647, %v12025_v37  ;;  %v5537_v32 = vshll.u32 %v5497_v44, 8 }
 0x3c9   :  { %15752 = vst [vmem:[#allocation100_spill] sm:$0xff] %v12368_v3  ;;  %v5603_v36 = vadd.s32 1, %v7767_v17  ;;  %v12378_v31 = vpop.eup %9175  ;;  %v5505_v19 = vshrl.u32 %v15632_v43, %v5504_v2  ;;  %v5520_v7 = vor.u32 %v5519_v22, %v5518_v49  ;;  %vm5521_vm15 = vcmp.lt.s32.totalorder %v5502_v18, 1 }
 0x3ca   :  { %vm12373_vm2 = vcmp.le.f32.partialorder %v15753_v47, 0.7853982  ;;  %vm5524_vm5 = vcmp.lt.s32.totalorder %v5502_v18, 4  ;;  %v12381_v14 = vpop.eup %9177  ;;  %vm7762_vm0 = vcmp.lt.s32.totalorder %v7761_v42, 0  ;;  %v5529_v25 = vsel %vm5521_vm15, %v5508_v58, %v5511_v20 }
 0x3cb   :  { %15756 = vst [vmem:[#allocation72_spill] sm:$0xff] %v12381_v14  ;;  %v5526_v13 = vsel %vm5524_vm5, %v5514_v46, 2102212464  ;;  %v5530_v27 = vsel %vm5524_vm5, %v5517_v57, 920167782  ;;  %v12383_v53 = vpop.eup %9179  ;;  %v5355_v47 = vshrl.u32 %v5337_v54, %v5353_v26  ;;  %v5358_v44 = vadd.s32 127, %v5357_v5 }
 0x3cc   :  { %15757 = vst [vmem:[#allocation103_spill] sm:$0xff] %v12383_v53  ;;  %vm5522_vm12 = vcmp.lt.s32.totalorder %v5502_v18, 2  ;;  %vm5523_vm3 = vcmp.lt.s32.totalorder %v5502_v18, 3  ;;  %v5525_v17 = vsel %vm5521_vm15, %v5505_v19, %v5508_v58  ;;  %v5533_v60 = vsel %vm5521_vm15, %v5511_v20, %v5514_v46 }
 0x3cd   :  { %v5531_v56 = vsel %vm5523_vm3, %v5514_v46, %v5530_v27  ;;  %v5534_v62 = vsel %vm5524_vm5, %v5520_v7, 1326507024  ;;  %v12385_v2 = vsel %vm7762_vm0, 0, %v7761_v42  ;;  %v5527_v22 = vsel %vm5523_vm3, %v5511_v20, %v5526_v13 }
 0x3ce   :  { %v5532_v49 = vsel %vm5522_vm12, %v5529_v25, %v5531_v56  ;;  %v5535_v14 = vsel %vm5523_vm3, %v5517_v57, %v5534_v62  ;;  %vm5604_vm6 = vcmp.gt.s32.totalorder %v5603_v36, 0  ;;  %v5354_v54 = vshll.u32 %v12236_v6, %v12328_v63 }
 0x3cf   :  { %v5536_v16 = vsel %vm5522_vm12, %v5533_v60, %v5535_v14  ;;  %v12389_v33 = vmul.u32.u64.low %v5537_v32, %v5532_v49  ;;  %v12390_v21 = vmul.u32.u64.high %v5537_v32, %v5532_v49, %v12389_v33  ;;  %v15758_v58 = vand.u32 2147483647, %v12287_v28  ;;  %v12405_v60 = vld [vmem:[%s14808_s3] ss:$0 sm:$0xff] }
 0x3d0   :  { %v12395_v26 = vmul.u32.u64.low %v5537_v32, %v5536_v16  ;;  %v12396_v5 = vmul.u32.u64.high %v5537_v32, %v5536_v16, %v12395_v26  ;;  %v5461_v20 = vsub.s32 4294967266, %v12385_v2  ;;  %v5528_v57 = vsel %vm5522_vm12, %v5525_v17, %v5527_v22 }
 0x3d1   :  { %v5600_v46 = vand.u32 8388607, %v15758_v58  ;;  %v5605_v62 = vsel %vm5604_vm6, %v5603_v36, 0  ;;  %v12409_v42 = vadd.f32 %v12405_v60, %v12301_v48  ;;  %v12414_v6 = vsel %vm5179_vm10, %v5261_v23, %v12353_v0 }
 0x3d2   :  { %v15760_v63 = vsel %vm12281_vm9, 0, %v12322_v59  ;;  %v5607_v56 = vand.u32 31, %v5605_v62  ;;  %v12425_v36 = vor.u32 %v5355_v47, %v5354_v54  ;;  %v5359_v48 = vshll.u32 %v5358_v44, 23  ;;  %v12438_v47 = vld [vmem:[%s14808_s3 + $0x1] ss:$0 sm:$0xff] }
 0x3d3   :  { %15759 = vst [vmem:[#allocation75_spill] sm:$0xff] %v12409_v42  ;;  %v12420_v16 = vadd.s32 3, %v15760_v63  ;;  %v5441_v19 = vadd.s32 %v12248_v12, %v12254_v11  ;;  %v5547_v0 = vadd.s32 1, %v12390_v21  ;;  %v5544_v23 = vmul.u32 %v5537_v32, %v5528_v57  ;;  %v12449_v57 = vpop.f32.mrb[36].mxu0 }
 0x3d4   :  { %vm5546_vm1 = vc.u32 %v12396_v5, %v12389_v33  ;;  %v5601_v59 = vor.u32 8388608, %v5600_v46  ;;  %v5608_v7 = vsub.s32 32, %v5607_v56  ;;  %v5462_v14 = vadd.s32 127, %v5461_v20  ;;  %v15761_v46 = vld [vmem:[#allocation46_spill] sm:$0xff]  ;;  %15762 = vst [vmem:[#allocation29_spill] sm:$0xff] %v12449_v57 }
 0x3d5   :  { %v5548_v13 = vsel %vm5546_vm1, %v5547_v0, %v12390_v21  ;;  %v5610_v25 = vshll.u32 %v15632_v43, %v5607_v56  ;;  %v5700_v27 = vand.u32 2139095040, %v12409_v42  ;;  %v5613_v11 = vshll.u32 %v15639_v4, %v5607_v56 }
 0x3d6   :  { %v5549_v12 = vadd.s32 %v5548_v13, %v5544_v23  ;;  %v5611_v32 = vshrl.u32 %v15639_v4, %v5608_v7  ;;  %v5616_v44 = vshll.u32 %v15641_v39, %v5607_v56  ;;  %v5614_v17 = vshrl.u32 %v15641_v39, %v5608_v7 }
 0x3d7   :  { %v5617_v21 = vshrl.u32 %v15642_v35, %v5608_v7  ;;  %v5619_v22 = vshll.u32 %v15642_v35, %v5607_v56  ;;  %v5620_v49 = vshrl.u32 %v15653_v1, %v5608_v7  ;;  %v5606_v26 = vshrl.u32 %v5605_v62, 5 }
 0x3d8   :  { %v5550_v54 = vadd.s32 536870912, %v5549_v12  ;;  %v5612_v58 = vor.u32 %v5611_v32, %v5610_v25  ;;  %v8559_v20 = vadd.f32 %v15761_v46, %v12438_v47  ;;  %v5615_v63 = vor.u32 %v5614_v17, %v5613_v11 }
 0x3d9   :  { %v5618_v0 = vor.u32 %v5617_v21, %v5616_v44  ;;  %v5621_v23 = vor.u32 %v5620_v49, %v5619_v22  ;;  %v5623_v13 = vshrl.u32 %v15644_v29, %v5608_v7  ;;  %v5360_v18 = vor.u32 4788187, %v5359_v48  ;;  %v12469_v49 = vpop.f32.mrb[72].mxu1 }
 0x3da   :  { %v12452_v53 = vshrl.u32 %v5550_v54, 30  ;;  %v5622_v38 = vshll.u32 %v15653_v1, %v5607_v56  ;;  %v12455_v3 = vshll.u32 %v5601_v59, 8  ;;  %v5457_v62 = vsub.s32 32, %v12385_v2  ;;  %15763 = vst [vmem:[#allocation81_spill] sm:$0xff] %v12469_v49  ;;  %v12477_v32 = vpop.f32.mrb[73].mxu1 }
 0x3db   :  { %v5463_v25 = vshll.u32 %v5462_v14, 23  ;;  %v5701_v46 = vshrl.u32 %v5700_v27, 23  ;;  %vm5625_vm7 = vcmp.lt.s32.totalorder %v5606_v26, 1  ;;  %vm5628_vm4 = vcmp.lt.s32.totalorder %v5606_v26, 4  ;;  %15765 = vst [vmem:[#allocation33_spill] sm:$0xff] %v12477_v32 }
 0x3dc   :  { %v5552_v57 = vshll.u32 %v12452_v53, 30  ;;  %v5624_v11 = vor.u32 %v5623_v13, %v5622_v38  ;;  %vm5627_vm10 = vcmp.lt.s32.totalorder %v5606_v26, 3  ;;  %v5630_v48 = vsel %vm5628_vm4, %v5618_v0, 2102212464 }
 0x3dd   :  { %v5633_v44 = vsel %vm5625_vm7, %v5612_v58, %v5615_v63  ;;  %v5634_v56 = vsel %vm5628_vm4, %v5621_v23, 920167782  ;;  %v5609_v17 = vshrl.u32 %v15632_v43, %v5608_v7  ;;  %vm5626_vm8 = vcmp.lt.s32.totalorder %v5606_v26, 2  ;;  %v12475_v7 = vpop.f32.mrb[37].mxu0 }
 0x3de   :  { %v12463_v59 = vsub.s32 %v5549_v12, %v5552_v57  ;;  %v5635_v14 = vsel %vm5627_vm10, %v5618_v0, %v5634_v56  ;;  %v5361_v27 = vand.u32 2147483647, %v5360_v18  ;;  %v5459_v21 = vshrl.u32 %v5441_v19, %v5457_v62  ;;  %15764 = vst [vmem:[#allocation107_spill] sm:$0xff] %v12475_v7 }
 0x3df   :  { %v5636_v38 = vsel %vm5626_vm8, %v5633_v44, %v5635_v14  ;;  %v5637_v22 = vsel %vm5625_vm7, %v5615_v63, %v5618_v0  ;;  %v5629_v13 = vsel %vm5625_vm7, %v5609_v17, %v5612_v58  ;;  %v5631_v12 = vsel %vm5627_vm10, %v5615_v63, %v5630_v48  ;;  %v15767_v14 = vld [vmem:[#allocation52_spill] sm:$0xff] }
 0x3e0   :  { %v5555_v54 = vsub.s32 0, %v12463_v59  ;;  %v5638_v57 = vsel %vm5628_vm4, %v5624_v11, 1326507024  ;;  %vm5387_vm13 = vcmp.lt.s32.totalorder %v12092_v8, 0  ;;  %v7771_v62 = vadd.s32 4294967169, %v5701_v46 }
 0x3e1   :  { %v5639_v18 = vsel %vm5627_vm10, %v5621_v23, %v5638_v57  ;;  %v12482_v19 = vmul.u32.u64.low %v12455_v3, %v5636_v38  ;;  %v12483_v0 = vmul.u32.u64.high %v12455_v3, %v5636_v38, %v12482_v19  ;;  %v5458_v58 = vshll.u32 %v12330_v9, %v12385_v2 }
 0x3e2   :  { %v5464_v63 = vor.u32 4788187, %v5463_v25  ;;  %v5640_v11 = vsel %vm5626_vm8, %v5637_v22, %v5639_v18  ;;  %v15766_v48 = vand.u32 2147483647, %v12409_v42  ;;  %v5707_v23 = vadd.s32 1, %v7771_v62 }
 0x3e3   :  { %v12492_v56 = vmul.u32.u64.low %v12455_v3, %v5640_v11  ;;  %v12493_v17 = vmul.u32.u64.high %v12455_v3, %v5640_v11, %v12492_v56  ;;  %v4210_v57 = vadd.f32 %v8559_v20, %v15767_v14  ;;  %v5363_v38 = vcvt.s32.f32 %v12425_v36 }
 0x3e4   :  { %v5704_v44 = vand.u32 8388607, %v15766_v48  ;;  %v15768_v46 = vsel %vm12373_vm2, 0, %v12346_v15  ;;  %v5460_v2 = vor.u32 %v5459_v21, %v5458_v58  ;;  %v5632_v25 = vsel %vm5626_vm8, %v5629_v13, %v5631_v12 }
 0x3e5   :  { %v5374_v9 = vadd.s32 3, %v15768_v46  ;;  %v5265_v22 = vsel %vm12281_vm9, %v11923_v51, %v12414_v6  ;;  %v7764_v18 = vmin.u32 %v5555_v54, %v12463_v59  ;;  %v5651_v62 = vadd.s32 1, %v12483_v0 }
 0x3e6   :  { %vm5708_vm11 = vcmp.gt.s32.totalorder %v5707_v23, 0  ;;  %v12508_v20 = vmul.f32 %v5363_v38, %v5361_v27  ;;  %v5465_v36 = vand.u32 2147483647, %v5464_v63  ;;  %v5471_v11 = vsub.s32 4, %v12309_v41 }
 0x3e7   :  { %v5709_v15 = vsel %vm5708_vm11, %v5707_v23, 0  ;;  %v5648_v21 = vmul.u32 %v12455_v3, %v5632_v25  ;;  %vm5650_vm15 = vc.u32 %v12493_v17, %v12482_v19  ;;  %v5705_v26 = vor.u32 8388608, %v5704_v44  ;;  %v15771_v23 = vld [vmem:[#allocation82_spill] sm:$0xff] }
 0x3e8   :  { %v5711_v13 = vand.u32 31, %v5709_v15  ;;  %v12515_v30 = vand.u32 3, %v12420_v16  ;;  %v12517_v6 = vand.u32 3, %v5374_v9  ;;  %v5467_v54 = vcvt.s32.f32 %v5460_v2  ;;  %v15772_v2 = vld [vmem:[#allocation74_spill] sm:$0xff] }
 0x3e9   :  { %v5652_v27 = vsel %vm5650_vm15, %v5651_v62, %v12483_v0  ;;  %9181 = vcosq.f32 %v5265_v22  ;;  %v5557_v12 = vclz %v7764_v18  ;;  %v5365_v3 = vxor.u32 2147483648, %v12508_v20 }
 0x3ea   :  { %15769 = vst [vmem:[#allocation110_spill] sm:$0xff] %v12515_v30  ;;  %15770 = vst [vmem:[#allocation34_spill] sm:$0xff] %v12517_v6  ;;  %v5653_v58 = vadd.s32 %v5652_v27, %v5648_v21  ;;  %v5712_v63 = vsub.s32 32, %v5711_v13  ;;  %9183 = vsinq.f32 %v5265_v22  ;;  %v12521_v48 = vmul.f32 %v5467_v54, %v5465_v36  ;;  %v15773_v6 = vld [vmem:[#allocation63_spill] sm:$0xff]  ;;  %v15774_v30 = vld [vmem:[#allocation14_spill] sm:$0xff] }
 0x3eb   :  { %v12526_v44 = vsel %vm5387_vm13, %v5471_v11, %v12309_v41  ;;  %v12528_v56 = vshll.u32 %v5705_v26, 8  ;;  %v4442_v14 = vxor.u32 2147483648, %v15771_v23  ;;  %v7571_v0 = vmul.f32 1.442695, %v4210_v57 }
 0x3ec   :  { %v5654_v16 = vadd.s32 536870912, %v5653_v58  ;;  %v5715_v38 = vshrl.u32 %v15639_v4, %v5712_v63  ;;  %v5718_v46 = vshrl.u32 %v15641_v39, %v5712_v63  ;;  %v5721_v9 = vshrl.u32 %v15642_v35, %v5712_v63 }
 0x3ed   :  { %v4445_v25 = vxor.u32 2147483648, %v15772_v2  ;;  %v7765_v22 = vadd.s32 4294967294, %v5557_v12  ;;  %v5710_v62 = vshrl.u32 %v5709_v15, 5  ;;  %v5720_v41 = vshll.u32 %v15641_v39, %v5711_v13 }
 0x3ee   :  { %v12535_v18 = vshrl.u32 %v5654_v16, 30  ;;  %v5714_v36 = vshll.u32 %v15632_v43, %v5711_v13  ;;  %v5717_v11 = vshll.u32 %v15639_v4, %v5711_v13  ;;  %v5723_v57 = vshll.u32 %v15642_v35, %v5711_v13 }
 0x3ef   :  { %v5724_v21 = vshrl.u32 %v15653_v1, %v5712_v63  ;;  %v5722_v54 = vor.u32 %v5721_v9, %v5720_v41  ;;  %v5727_v27 = vshrl.u32 %v15644_v29, %v5712_v63  ;;  %vm4440_vm9 = vcmp.lt.s32.totalorder %v15773_v6, 2 }
 0x3f0   :  { %v5656_v26 = vshll.u32 %v12535_v18, 30  ;;  %9185 = vpow2.f32 %v7571_v0  ;;  %v5716_v12 = vor.u32 %v5715_v38, %v5714_v36  ;;  %v5719_v15 = vor.u32 %v5718_v46, %v5717_v11 }
 0x3f1   :  { %v5725_v16 = vor.u32 %v5724_v21, %v5723_v57  ;;  %v5726_v51 = vshll.u32 %v15653_v1, %v5711_v13  ;;  %vm4437_vm5 = vweird.f32 %v15774_v30  ;;  %vm7766_vm0 = vcmp.lt.s32.totalorder %v7765_v22, 0 }
 0x3f2   :  { %v12547_v32 = vsub.s32 %v5653_v58, %v5656_v26  ;;  %vm4441_vm12 = vcmp.eq.s32.totalorder %v15773_v6, 0  ;;  %vm4444_vm3 = vcmp.eq.s32.totalorder %v15773_v6, 2  ;;  %v15775_v9 = vand.u32 2147483647, %v12092_v8  ;;  %v15784_v6 = vld [vmem:[#allocation18_spill] sm:$0xff] }
 0x3f3   :  { %v5728_v0 = vor.u32 %v5727_v27, %v5726_v51  ;;  %vm5732_vm1 = vcmp.lt.s32.totalorder %v5710_v62, 4  ;;  %v4443_v38 = vsel %vm4441_vm12, %v15772_v2, %v4442_v14  ;;  %v4446_v13 = vsel %vm4444_vm3, %v4445_v25, %v15771_v23  ;;  %v12559_v46 = vpop.eup %9181  ;;  %v12569_v14 = vpop.f32.mrb[38].mxu0 }
 0x3f4   :  { %vm12553_vm6 = vcmp.le.f32.partialorder %v15775_v9, 0.7853982  ;;  %15778 = vst [vmem:[#allocation111_spill] sm:$0xff] %v12559_v46  ;;  %v5659_v58 = vsub.s32 0, %v12547_v32  ;;  %v5713_v36 = vshrl.u32 %v15632_v43, %v5712_v63  ;;  %vm5729_vm7 = vcmp.lt.s32.totalorder %v5710_v62, 1  ;;  %v12564_v57 = vpop.eup %9183 }
 0x3f5   :  { %v5734_v11 = vsel %vm5732_vm1, %v5722_v54, 2102212464  ;;  %15779 = vst [vmem:[#allocation112_spill] sm:$0xff] %v12564_v57  ;;  %v12566_v21 = vsel %vm7766_vm0, 0, %v7765_v22  ;;  %vm5731_vm4 = vcmp.lt.s32.totalorder %v5710_v62, 3  ;;  %v5737_v51 = vsel %vm5729_vm7, %v5716_v12, %v5719_v15 }
 0x3f6   :  { %v5738_v26 = vsel %vm5732_vm1, %v5725_v16, 920167782  ;;  %v7768_v23 = vmin.u32 %v5659_v58, %v12547_v32  ;;  %vm5730_vm10 = vcmp.lt.s32.totalorder %v5710_v62, 2  ;;  %v5733_v2 = vsel %vm5729_vm7, %v5713_v36, %v5716_v12 }
 0x3f7   :  { %v5739_v25 = vsel %vm5731_vm4, %v5722_v54, %v5738_v26  ;;  %v5735_v27 = vsel %vm5731_vm4, %v5719_v15, %v5734_v11  ;;  %v5741_v9 = vsel %vm5729_vm7, %v5719_v15, %v5722_v54  ;;  %v5742_v46 = vsel %vm5732_vm1, %v5728_v0, 1326507024  ;;  %v15780_v0 = vld [vmem:[#allocation12_spill] sm:$0xff] }
 0x3f8   :  { %v5740_v63 = vsel %vm5730_vm10, %v5737_v51, %v5739_v25  ;;  %v5661_v57 = vclz %v7768_v23  ;;  %v5743_v22 = vsel %vm5731_vm4, %v5725_v16, %v5742_v46  ;;  %v5366_v58 = vsel %vm5283_vm14, %v5365_v3, %v12508_v20  ;;  %v15781_v3 = vld [vmem:[#allocation125_spill] sm:$0xff]  ;;  %v15782_v23 = vld [vmem:[#allocation10_spill] sm:$0xff] }
 0x3f9   :  { %v12575_v7 = vmul.u32.u64.low %v12528_v56, %v5740_v63  ;;  %v12576_v49 = vmul.u32.u64.high %v12528_v56, %v5740_v63, %v12575_v7  ;;  %v5469_v12 = vxor.u32 2147483648, %v12521_v48  ;;  %v5744_v36 = vsel %vm5730_vm10, %v5741_v9, %v5743_v22 }
 0x3fa   :  { %v4447_v54 = vsel %vm4440_vm9, %v4443_v38, %v4446_v13  ;;  %v9186_v15 = vpop.eup %9185  ;;  %vm4333_vm8 = vweird.f32 %v15780_v0  ;;  %v5565_v16 = vsub.s32 4294967266, %v12566_v21  ;;  %v7769_v46 = vadd.s32 4294967294, %v5661_v57 }
 0x3fb   :  { %v12589_v11 = vmul.u32.u64.low %v12528_v56, %v5744_v36  ;;  %v12590_v51 = vmul.u32.u64.high %v12528_v56, %v5744_v36, %v12589_v11  ;;  %v5736_v26 = vsel %vm5730_vm10, %v5733_v2, %v5735_v27  ;;  %v4448_v20 = vsel %vm4437_vm5, nan, %v4447_v54  ;;  %v15785_v27 = vld [vmem:[#allocation48_spill] sm:$0xff]  ;;  %v15786_v54 = vld [vmem:[#allocation61_spill] sm:$0xff] }
 0x3fc   :  { %v12597_v25 = vadd.f32 %v15782_v23, %v15781_v3  ;;  %v8560_v38 = vadd.f32 %v12438_v47, %v15784_v6  ;;  %v5474_v13 = vsel %vm12553_vm6, 0, %v12526_v44  ;;  %vm7770_vm14 = vcmp.lt.s32.totalorder %v7769_v46, 0  ;;  %v12628_v11 = vpop.f32.mrb[39].mxu0 }
 0x3fd   :  { %v5755_v57 = vadd.s32 1, %v12576_v49  ;;  %v7634_v63 = vmul.f32 %v9186_v15, %v4448_v20  ;;  %v5369_v30 = vsel %vm12373_vm2, %v12025_v37, %v5366_v58  ;;  %v5470_v62 = vsel %vm5387_vm13, %v5469_v12, %v12521_v48  ;;  %v15788_v58 = vld [vmem:[#allocation68_spill] sm:$0xff]  ;;  %v12623_v15 = vpop.f32.mrb[74].mxu1 }
 0x3fe   :  { %15783 = vst [vmem:[#allocation113_spill] sm:$0xff] %v12597_v25  ;;  %v12611_v2 = vsel %vm7770_vm14, 0, %v7769_v46  ;;  %v4209_v9 = vadd.f32 %v8560_v38, %v15785_v27  ;;  %vm5491_vm11 = vcmp.lt.s32.totalorder %v12241_v24, 0  ;;  %v5561_v44 = vsub.s32 32, %v12566_v21 }
 0x3ff   :  { %v5566_v22 = vadd.s32 127, %v5565_v16  ;;  %v5752_v36 = vmul.u32 %v12528_v56, %v5736_v26  ;;  %7666 = vst [vmem:[#allocation2 + $0x8] sm:$0xff] %v7634_v63  ;;  %vm4336_vm15 = vcmp.lt.s32.totalorder %v15786_v54, 2  ;;  %vm5754_vm2 = vc.u32 %v12590_v51, %v12575_v7  ;;  %v12630_v26 = vpop.f32.mrb[75].mxu1  ;;  %v15793_v63 = vld [vmem:[#allocation126_spill] sm:$0xff] }
 0x400   :  { %vm4337_vm9 = vcmp.eq.s32.totalorder %v15786_v54, 0  ;;  %v4338_v48 = vxor.u32 2147483648, %v15787_v52  ;;  %v4341_v12 = vxor.u32 2147483648, %v15788_v58  ;;  %v5669_v46 = vsub.s32 4294967266, %v12611_v2  ;;  %15789 = vst [vmem:[#allocation39_spill] sm:$0xff] %v12630_v26 }
 0x401   :  { %v5756_v16 = vsel %vm5754_vm2, %v5755_v57, %v12576_v49  ;;  %vm4340_vm13 = vcmp.eq.s32.totalorder %v15786_v54, 2  ;;  %v7569_v56 = vmul.f32 1.442695, %v4209_v9  ;;  %v15790_v20 = vand.u32 2147483647, %v12241_v24  ;;  %v15794_v49 = vld [vmem:[#allocation101_spill] sm:$0xff] }
 0x402   :  { %v5757_v23 = vadd.s32 %v5756_v16, %v5752_v36  ;;  %v4339_v6 = vsel %vm4337_vm9, %v15788_v58, %v4338_v48  ;;  %v4342_v38 = vsel %vm4340_vm13, %v4341_v12, %v15787_v52  ;;  %v8525_v57 = vadd.f32 %v15794_v49, %v15793_v63  ;;  %v15795_v52 = vld [vmem:[#allocation35_spill] sm:$0xff] }
 0x403   :  { %vm12634_vm5 = vcmp.le.f32.partialorder %v15790_v20, 0.7853982  ;;  %v5545_v27 = vadd.s32 %v12389_v33, %v12396_v5  ;;  %v5575_v9 = vsub.s32 4, %v12452_v53  ;;  %v4343_v25 = vsel %vm4336_vm15, %v4339_v6, %v4342_v38  ;;  %v15796_v38 = vld [vmem:[#allocation23_spill] sm:$0xff] }
 0x404   :  { %9187 = vpow2.f32 %v7569_v56  ;;  %v5758_v20 = vadd.s32 536870912, %v5757_v23  ;;  %v4344_v36 = vsel %vm4333_vm8, nan, %v4343_v25  ;;  %v12650_v48 = vadd.f32 %v12405_v60, %v8525_v57 }
 0x405   :  { %v8561_v58 = vadd.f32 %v15795_v52, %v12438_v47  ;;  %9189 = vcosq.f32 %v5369_v30  ;;  %v5473_v33 = vsel %vm12553_vm6, %v12092_v8, %v5470_v62  ;;  %v5563_v5 = vshrl.u32 %v5545_v27, %v5561_v44 }
 0x406   :  { %v5567_v12 = vshll.u32 %v5566_v22, 23  ;;  %v5665_v54 = vsub.s32 32, %v12611_v2  ;;  %v5670_v16 = vadd.s32 127, %v5669_v46  ;;  %v12658_v56 = vshrl.u32 %v5758_v20, 30 }
 0x407   :  { %v5804_v0 = vand.u32 2139095040, %v12650_v48  ;;  %9191 = vsinq.f32 %v5369_v30  ;;  %v5478_v25 = vadd.s32 3, %v5474_v13  ;;  %v5562_v6 = vshll.u32 %v12463_v59, %v12566_v21 }
 0x408   :  { %v4212_v63 = vadd.f32 %v8561_v58, %v15796_v38  ;;  %v5576_v41 = vsel %vm5491_vm11, %v5575_v9, %v12452_v53  ;;  %v5649_v62 = vadd.s32 %v12482_v19, %v12493_v17  ;;  %v5760_v44 = vshll.u32 %v12658_v56, 30 }
 0x409   :  { %v5805_v22 = vshrl.u32 %v5804_v0, 23  ;;  %9193 = vcosq.f32 %v5473_v33  ;;  %v5564_v46 = vor.u32 %v5563_v5, %v5562_v6  ;;  %v5568_v49 = vor.u32 4788187, %v5567_v12  ;;  %v15798_v5 = vld [vmem:[#allocation60_spill] sm:$0xff]  ;;  %v15799_v12 = vld [vmem:[#allocation30_spill] sm:$0xff] }
 0x40a   :  { %vm5595_vm0 = vcmp.lt.s32.totalorder %v12287_v28, 0  ;;  %v5667_v13 = vshrl.u32 %v5649_v62, %v5665_v54  ;;  %v5671_v30 = vshll.u32 %v5670_v16, 23  ;;  %v12671_v59 = vsub.s32 %v5757_v23, %v5760_v44  ;;  %v15803_v62 = vld [vmem:[#allocation102_spill] sm:$0xff] }
 0x40b   :  { %v7775_v21 = vadd.s32 4294967169, %v5805_v22  ;;  %9195 = vsinq.f32 %v5473_v33  ;;  %v12673_v57 = vand.u32 3, %v5478_v25  ;;  %v5578_v53 = vsel %vm12634_vm5, 0, %v5576_v41  ;;  %v15802_v41 = vld [vmem:[#allocation127_spill] sm:$0xff]  ;;  %v15805_v22 = vld [vmem:[#allocation66_spill] sm:$0xff] }
 0x40c   :  { %v15140_v19 = vand.u32 2147483647, %v12650_v48  ;;  %v5666_v17 = vshll.u32 %v12547_v32, %v12611_v2  ;;  %v5679_v27 = vsub.s32 4, %v12535_v18  ;;  %v5763_v9 = vsub.s32 0, %v12671_v59  ;;  %v15801_v2 = vld [vmem:[#allocation98_spill] sm:$0xff] }
 0x40d   :  { %15797 = vst [vmem:[#allocation114_spill] sm:$0xff] %v12673_v57  ;;  %v5811_v20 = vadd.s32 1, %v7775_v21  ;;  %v5569_v23 = vand.u32 2147483647, %v5568_v49  ;;  %v5571_v58 = vcvt.s32.f32 %v5564_v46  ;;  %v4650_v33 = vxor.u32 2147483648, %v15798_v5 }
 0x40e   :  { %v9188_v52 = vpop.eup %9187  ;;  %v4653_v54 = vxor.u32 2147483648, %v15799_v12  ;;  %v5668_v16 = vor.u32 %v5667_v13, %v5666_v17  ;;  %v5672_v0 = vor.u32 4788187, %v5671_v30  ;;  %v7575_v6 = vmul.f32 1.442695, %v4212_v63 }
 0x40f   :  { %v7633_v25 = vmul.f32 %v9188_v52, %v4344_v36  ;;  %v12684_v38 = vpop.eup %9189  ;;  %v5808_v32 = vand.u32 8388607, %v15140_v19  ;;  %vm5812_vm12 = vcmp.gt.s32.totalorder %v5811_v20, 0  ;;  %vm4649_vm3 = vcmp.eq.s32.totalorder %v15801_v2, 0  ;;  %v15806_v36 = vld [vmem:[#allocation104_spill] sm:$0xff] }
 0x410   :  { %15800 = vst [vmem:[#allocation42_spill] sm:$0xff] %v12684_v38  ;;  %v12691_v44 = vadd.f32 %v15803_v62, %v15802_v41  ;;  %vm4645_vm6 = vweird.f32 %v15805_v22  ;;  %v7772_v46 = vmin.u32 %v5763_v9, %v12671_v59  ;;  %v5813_v49 = vsel %vm5812_vm12, %v5811_v20, 0  ;;  %v15808_v20 = vld [vmem:[#allocation20_spill] sm:$0xff] }
 0x411   :  { %7665 = vst [vmem:[#allocation2] sm:$0xff] %v7633_v25  ;;  %vm4652_vm1 = vcmp.eq.s32.totalorder %v15801_v2, 2  ;;  %v8562_v63 = vadd.f32 %v12438_v47, %v15806_v36  ;;  %v12698_v13 = vpop.eup %9191  ;;  %v12700_v30 = vadd.s32 3, %v5578_v53  ;;  %v5815_v21 = vand.u32 31, %v5813_v49 }
 0x412   :  { %15804 = vst [vmem:[#allocation115_spill] sm:$0xff] %v12691_v44  ;;  %15807 = vst [vmem:[#allocation116_spill] sm:$0xff] %v12698_v13  ;;  %v4651_v17 = vsel %vm4649_vm3, %v15799_v12, %v4650_v33  ;;  %v4654_v52 = vsel %vm4652_vm1, %v4653_v54, %v15798_v5  ;;  %v12704_v41 = vmul.f32 %v5571_v58, %v5569_v23  ;;  %9197 = vpow2.f32 %v7575_v6  ;;  %v12715_v58 = vpop.f32.mrb[40].mxu0 }
 0x413   :  { %v12709_v9 = vsel %vm5595_vm0, %v5679_v27, %v12535_v18  ;;  %v4211_v25 = vadd.f32 %v8562_v63, %v15808_v20  ;;  %v12712_v62 = vpop.eup %9193  ;;  %v5673_v36 = vand.u32 2147483647, %v5672_v0  ;;  %v5675_v53 = vcvt.s32.f32 %v5668_v16  ;;  %15809 = vst [vmem:[#allocation27_spill] sm:$0xff] %v12715_v58 }
 0x414   :  { %v5816_v19 = vsub.s32 32, %v5815_v21  ;;  %vm4648_vm7 = vcmp.lt.s32.totalorder %v15801_v2, 2  ;;  %v5765_v33 = vclz %v7772_v46  ;;  %v5809_v12 = vor.u32 8388608, %v5808_v32 }
 0x415   :  { %v5814_v5 = vshrl.u32 %v5813_v49, 5  ;;  %v4655_v23 = vsel %vm4648_vm7, %v4651_v17, %v4654_v52  ;;  %v12717_v54 = vpop.eup %9195  ;;  %v5818_v18 = vshll.u32 %v15632_v43, %v5815_v21  ;;  %v5821_v6 = vshll.u32 %v15639_v4, %v5815_v21 }
 0x416   :  { %v5819_v27 = vshrl.u32 %v15639_v4, %v5816_v19  ;;  %v5822_v0 = vshrl.u32 %v15641_v39, %v5816_v19  ;;  %v5824_v16 = vshll.u32 %v15641_v39, %v5815_v21  ;;  %v5825_v2 = vshrl.u32 %v15642_v35, %v5816_v19 }
 0x417   :  { %v5827_v32 = vshll.u32 %v15642_v35, %v5815_v21  ;;  %v5830_v46 = vshll.u32 %v15653_v1, %v5815_v21  ;;  %v5828_v17 = vshrl.u32 %v15653_v1, %v5816_v19  ;;  %v5831_v52 = vshrl.u32 %v15644_v29, %v5816_v19 }
 0x418   :  { %v5820_v49 = vor.u32 %v5819_v27, %v5818_v18  ;;  %v5823_v63 = vor.u32 %v5822_v0, %v5821_v6  ;;  %v5573_v20 = vxor.u32 2147483648, %v12704_v41  ;;  %v12730_v44 = vmul.f32 %v5675_v53, %v5673_v36  ;;  %v15813_v36 = vld [vmem:[#allocation24_spill] sm:$0xff] }
 0x419   :  { %v7773_v58 = vadd.s32 4294967294, %v5765_v33  ;;  %v5826_v37 = vor.u32 %v5825_v2, %v5824_v16  ;;  %v5829_v38 = vor.u32 %v5828_v17, %v5827_v32  ;;  %v5832_v13 = vor.u32 %v5831_v52, %v5830_v46 }
 0x41a   :  { %v12732_v26 = vshll.u32 %v5809_v12, 8  ;;  %v4656_v57 = vsel %vm4645_vm6, nan, %v4655_v23  ;;  %v15810_v21 = vand.u32 2147483647, %v12287_v28  ;;  %v5817_v27 = vshrl.u32 %v15632_v43, %v5816_v19  ;;  %v12746_v19 = vpop.f32.mrb[76].mxu1 }
 0x41b   :  { %vm5833_vm10 = vcmp.lt.s32.totalorder %v5814_v5, 1  ;;  %vm5836_vm8 = vcmp.lt.s32.totalorder %v5814_v5, 4  ;;  %v4546_v53 = vxor.u32 2147483648, %v15813_v36  ;;  %vm5835_vm14 = vcmp.lt.s32.totalorder %v5814_v5, 3 }
 0x41c   :  { %vm12738_vm4 = vcmp.le.f32.partialorder %v15810_v21, 0.7853982  ;;  %v5838_v33 = vsel %vm5836_vm8, %v5826_v37, 2102212464  ;;  %v5841_v6 = vsel %vm5833_vm10, %v5820_v49, %v5823_v63  ;;  %v5842_v12 = vsel %vm5836_vm8, %v5829_v38, 920167782  ;;  %v9198_v0 = vpop.eup %9197 }
 0x41d   :  { %vm7774_vm15 = vcmp.lt.s32.totalorder %v7773_v58, 0  ;;  %vm5834_vm2 = vcmp.lt.s32.totalorder %v5814_v5, 2  ;;  %v5843_v22 = vsel %vm5835_vm14, %v5826_v37, %v5842_v12  ;;  %v5845_v23 = vsel %vm5833_vm10, %v5823_v63, %v5826_v37  ;;  %v12756_v12 = vpop.f32.mrb[41].mxu0  ;;  %v12758_v37 = vpop.f32.mrb[77].mxu1 }
 0x41e   :  { %v5837_v16 = vsel %vm5833_vm10, %v5817_v27, %v5820_v49  ;;  %v5844_v2 = vsel %vm5834_vm2, %v5841_v6, %v5843_v22  ;;  %v5846_v32 = vsel %vm5836_vm8, %v5832_v13, 1326507024  ;;  %v7636_v46 = vmul.f32 %v9198_v0, %v4656_v57  ;;  %v15814_v49 = vld [vmem:[#allocation56_spill] sm:$0xff]  ;;  %v15815_v13 = vld [vmem:[#allocation65_spill] sm:$0xff]  ;;  %v15817_v0 = vld [vmem:[#allocation67_spill] sm:$0xff] }
 0x41f   :  { %vm5699_vm9 = vcmp.lt.s32.totalorder %v12409_v42, 0  ;;  %v5839_v17 = vsel %vm5835_vm14, %v5823_v63, %v5838_v33  ;;  %v5847_v52 = vsel %vm5835_vm14, %v5829_v38, %v5846_v32  ;;  %vm4541_vm13 = vweird.f32 %v15814_v49  ;;  %v15816_v27 = vld [vmem:[#allocation84_spill] sm:$0xff] }
 0x420   :  { %v12752_v21 = vmul.u32.u64.low %v12732_v26, %v5844_v2  ;;  %v12753_v8 = vmul.u32.u64.high %v12732_v26, %v5844_v2, %v12752_v21  ;;  %v5848_v57 = vsel %vm5834_vm2, %v5845_v23, %v5847_v52  ;;  %7668 = vst [vmem:[#allocation2 + $0x18] sm:$0xff] %v7636_v46  ;;  %vm4545_vm12 = vcmp.eq.s32.totalorder %v15815_v13, 0 }
 0x421   :  { %v4549_v63 = vxor.u32 2147483648, %v15816_v27  ;;  %v7573_v33 = vmul.f32 1.442695, %v4211_v25  ;;  %v12765_v38 = vmul.u32.u64.low %v12732_v26, %v5848_v57  ;;  %v12766_v6 = vmul.u32.u64.high %v12732_v26, %v5848_v57, %v12765_v38 }
 0x422   :  { %vm4548_vm3 = vcmp.eq.s32.totalorder %v15815_v13, 2  ;;  %v8527_v22 = vadd.f32 %v12158_v61, %v15817_v0  ;;  %v12772_v2 = vsel %vm7774_vm15, 0, %v7773_v58  ;;  %v5840_v23 = vsel %vm5834_vm2, %v5837_v16, %v5839_v17 }
 0x423   :  { %9199 = vpow2.f32 %v7573_v33  ;;  %v8563_v32 = vadd.f32 %v12207_v50, %v12438_v47  ;;  %v5859_v25 = vadd.s32 1, %v12753_v8  ;;  %v4547_v46 = vsel %vm4545_vm12, %v15816_v27, %v4546_v53  ;;  %v15818_v50 = vld [vmem:[#allocation105_spill] sm:$0xff] }
 0x424   :  { %v4550_v52 = vsel %vm4548_vm3, %v4549_v63, %v15813_v36  ;;  %v12781_v57 = vadd.f32 %v12405_v60, %v8527_v22  ;;  %v5574_v61 = vsel %vm5491_vm11, %v5573_v20, %v12704_v41  ;;  %v5682_v5 = vsel %vm12738_vm4, 0, %v12709_v9 }
 0x425   :  { %v5783_v58 = vsub.s32 4, %v12658_v56  ;;  %v4214_v16 = vadd.f32 %v8563_v32, %v15818_v50  ;;  %v5773_v17 = vsub.s32 4294967266, %v12772_v2  ;;  %v5856_v53 = vmul.u32 %v12732_v26, %v5840_v23 }
 0x426   :  { %vm5858_vm6 = vc.u32 %v12766_v6, %v12752_v21  ;;  %vm4544_vm1 = vcmp.lt.s32.totalorder %v15815_v13, 2  ;;  %v12797_v36 = vand.u32 3, %v12700_v30  ;;  %v5908_v9 = vand.u32 2139095040, %v12781_v57 }
 0x427   :  { %v5860_v41 = vsel %vm5858_vm6, %v5859_v25, %v12753_v8  ;;  %v4551_v20 = vsel %vm4544_vm1, %v4547_v46, %v4550_v52  ;;  %v12804_v27 = vsel %vm12634_vm5, %v12241_v24, %v5574_v61  ;;  %v5677_v26 = vxor.u32 2147483648, %v12730_v44  ;;  %v15822_v61 = vld [vmem:[#allocation70_spill] sm:$0xff] }
 0x428   :  { %v12807_v63 = vadd.s32 3, %v5682_v5  ;;  %v15819_v33 = vand.u32 2147483647, %v12409_v42  ;;  %v5861_v30 = vadd.s32 %v5860_v41, %v5856_v53  ;;  %v5753_v8 = vadd.s32 %v12575_v7, %v12590_v51  ;;  %v15824_v51 = vld [vmem:[#allocation106_spill] sm:$0xff]  ;;  %v15825_v41 = vld [vmem:[#allocation25_spill] sm:$0xff] }
 0x429   :  { %v5769_v38 = vsub.s32 32, %v12772_v2  ;;  %v12821_v3 = vsel %vm5699_vm9, %v5783_v58, %v12658_v56  ;;  %v5909_v0 = vshrl.u32 %v5908_v9, 23  ;;  %v5774_v22 = vadd.s32 127, %v5773_v17  ;;  %v15826_v9 = vld [vmem:[#allocation47_spill] sm:$0xff] }
 0x42a   :  { %vm12811_vm11 = vcmp.le.f32.partialorder %v15819_v33, 0.7853982  ;;  %v5862_v23 = vadd.s32 536870912, %v5861_v30  ;;  %v4552_v32 = vsel %vm4541_vm13, nan, %v4551_v20  ;;  %v15148_v25 = vand.u32 2147483647, %v12781_v57 }
 0x42b   :  { %v7779_v46 = vadd.s32 4294967169, %v5909_v0  ;;  %v7579_v52 = vmul.f32 1.442695, %v4214_v16  ;;  %v12828_v7 = vadd.f32 %v12210_v45, %v15822_v61  ;;  %v8564_v5 = vadd.f32 %v12438_v47, %v15824_v51  ;;  %v15827_v0 = vld [vmem:[#allocation28_spill] sm:$0xff] }
 0x42c   :  { %v5678_v56 = vsel %vm5595_vm0, %v5677_v26, %v12730_v44  ;;  %v12835_v58 = vshrl.u32 %v5862_v23, 30  ;;  %v4858_v49 = vxor.u32 2147483648, %v12312_v40  ;;  %v4861_v50 = vxor.u32 2147483648, %v12303_v34 }
 0x42d   :  { %15823 = vst [vmem:[#allocation117_spill] sm:$0xff] %v12828_v7  ;;  %v9200_v17 = vpop.eup %9199  ;;  %v5770_v16 = vshll.u32 %v12671_v59, %v12772_v2  ;;  %v5771_v53 = vshrl.u32 %v5753_v8, %v5769_v38  ;;  %v5915_v45 = vadd.s32 1, %v7779_v46  ;;  %v12842_v20 = vadd.f32 %v8564_v5, %v15825_v41 }
 0x42e   :  { %vm4853_vm5 = vweird.f32 %v15826_v9  ;;  %v5775_v33 = vshll.u32 %v5774_v22, 23  ;;  %v5864_v44 = vshll.u32 %v12835_v58, 30  ;;  %v7635_v26 = vmul.f32 %v9200_v17, %v4552_v32 }
 0x42f   :  { %vm4857_vm0 = vcmp.eq.s32.totalorder %v15827_v0, 0  ;;  %v5912_v23 = vand.u32 8388607, %v15148_v25  ;;  %vm5916_vm7 = vcmp.gt.s32.totalorder %v5915_v45, 0  ;;  %vm4860_vm10 = vcmp.eq.s32.totalorder %v15827_v0, 2 }
 0x430   :  { %9201 = vpow2.f32 %v7579_v52  ;;  %v12850_v59 = vsub.s32 %v5861_v30, %v5864_v44  ;;  %7667 = vst [vmem:[#allocation2 + $0x10] sm:$0xff] %v7635_v26  ;;  %v5917_v2 = vsel %vm5916_vm7, %v5915_v45, 0  ;;  %v4859_v8 = vsel %vm4857_vm0, %v12303_v34, %v4858_v49 }
 0x431   :  { %v4862_v38 = vsel %vm4860_vm10, %v4861_v50, %v12312_v40  ;;  %9203 = vcosq.f32 %v12804_v27  ;;  %v12858_v22 = vsel %vm12738_vm4, %v12287_v28, %v5678_v56  ;;  %v5919_v46 = vand.u32 31, %v5917_v2 }
 0x432   :  { %v12863_v30 = vor.u32 %v5771_v53, %v5770_v16  ;;  %v12865_v52 = vor.u32 4788187, %v5775_v33  ;;  %v5867_v34 = vsub.s32 0, %v12850_v59  ;;  %vm4856_vm8 = vcmp.lt.s32.totalorder %v15827_v0, 2  ;;  %v12882_v0 = vpop.f32.mrb[42].mxu0 }
 0x433   :  { %v5913_v40 = vor.u32 8388608, %v5912_v23  ;;  %v12869_v61 = vshrl.u32 %v5917_v2, 5  ;;  %v5920_v51 = vsub.s32 32, %v5919_v46  ;;  %v4863_v18 = vsel %vm4856_vm8, %v4859_v8, %v4862_v38  ;;  %15828 = vst [vmem:[#allocation49_spill] sm:$0xff] %v12882_v0  ;;  %v15870_v0 = vld [vmem:[#allocation55_spill] sm:$0xff] }
 0x434   :  { %v7776_v5 = vmin.u32 %v5867_v34, %v12850_v59  ;;  %v5922_v56 = vshll.u32 %v15632_v43, %v5919_v46  ;;  %v5925_v49 = vshll.u32 %v15639_v4, %v5919_v46  ;;  %v5928_v50 = vshll.u32 %v15641_v39, %v5919_v46 }
 0x435   :  { %v5923_v17 = vshrl.u32 %v15639_v4, %v5920_v51  ;;  %v5926_v16 = vshrl.u32 %v15641_v39, %v5920_v51  ;;  %v5929_v53 = vshrl.u32 %v15642_v35, %v5920_v51  ;;  %v5931_v45 = vshll.u32 %v15642_v35, %v5919_v46 }
 0x436   :  { %v5869_v41 = vclz %v7776_v5  ;;  %v5932_v33 = vshrl.u32 %v15653_v1, %v5920_v51  ;;  %v5934_v44 = vshll.u32 %v15653_v1, %v5919_v46  ;;  %v5935_v26 = vshrl.u32 %v15644_v29, %v5920_v51 }
 0x437   :  { %v5924_v23 = vor.u32 %v5923_v17, %v5922_v56  ;;  %v5927_v2 = vor.u32 %v5926_v16, %v5925_v49  ;;  %v5930_v8 = vor.u32 %v5929_v53, %v5928_v50  ;;  %v4864_v38 = vsel %vm4853_vm5, nan, %v4863_v18 }
 0x438   :  { %v7777_v34 = vadd.s32 4294967294, %v5869_v41  ;;  %v5933_v25 = vor.u32 %v5932_v33, %v5931_v45  ;;  %v5936_v32 = vor.u32 %v5935_v26, %v5934_v44  ;;  %vm5937_vm4 = vcmp.lt.s32.totalorder %v12869_v61, 1  ;;  %v15829_v26 = vld [vmem:[#allocation32_spill] sm:$0xff] }
 0x439   :  { %v5779_v7 = vcvt.s32.f32 %v12863_v30  ;;  %vm5939_vm14 = vcmp.lt.s32.totalorder %v12869_v61, 3  ;;  %vm5940_vm15 = vcmp.lt.s32.totalorder %v12869_v61, 4  ;;  %v5945_v46 = vsel %vm5937_vm4, %v5924_v23, %v5927_v2 }
 0x43a   :  { %v9202_v5 = vpop.eup %9201  ;;  %vm7778_vm2 = vcmp.lt.s32.totalorder %v7777_v34, 0  ;;  %v5946_v56 = vsel %vm5940_vm15, %v5933_v25, 920167782  ;;  %v5949_v9 = vsel %vm5937_vm4, %v5927_v2, %v5930_v8  ;;  %v5942_v17 = vsel %vm5940_vm15, %v5930_v8, 2102212464 }
 0x43b   :  { %v7638_v18 = vmul.f32 %v9202_v5, %v4864_v38  ;;  %v12894_v49 = vpop.eup %9203  ;;  %v12896_v50 = vsel %vm7778_vm2, 0, %v7777_v34  ;;  %v5947_v30 = vsel %vm5939_vm14, %v5930_v8, %v5946_v56  ;;  %v5950_v16 = vsel %vm5940_vm15, %v5936_v32, 1326507024  ;;  %v15830_v34 = vld [vmem:[#allocation62_spill] sm:$0xff]  ;;  %v12909_v8 = vpop.f32.mrb[78].mxu1  ;;  %v15832_v32 = vld [vmem:[#allocation69_spill] sm:$0xff] }
 0x43c   :  { %v5921_v53 = vshrl.u32 %v15632_v43, %v5920_v51  ;;  %vm5938_vm13 = vcmp.lt.s32.totalorder %v12869_v61, 2  ;;  %v5953_v45 = vshll.u32 %v5913_v40, 8  ;;  %v7577_v41 = vmul.f32 1.442695, %v12842_v20  ;;  %15831 = vst [vmem:[#allocation118_spill] sm:$0xff] %v12909_v8  ;;  %v12921_v56 = vpop.f32.mrb[79].mxu1 }
 0x43d   :  { %7670 = vst [vmem:[#allocation2 + $0x28] sm:$0xff] %v7638_v18  ;;  %v5948_v33 = vsel %vm5938_vm13, %v5945_v46, %v5947_v30  ;;  %v5951_v44 = vsel %vm5939_vm14, %v5933_v25, %v5950_v16  ;;  %v4754_v38 = vxor.u32 2147483648, %v15829_v26  ;;  %v4757_v5 = vxor.u32 2147483648, %v15830_v34  ;;  %v12919_v25 = vpop.f32.mrb[43].mxu0  ;;  %15834 = vst [vmem:[#allocation119_spill] sm:$0xff] %v12921_v56  ;;  %v15835_v8 = vld [vmem:[#allocation54_spill] sm:$0xff] }
 0x43e   :  { %vm4749_vm12 = vweird.f32 %v15832_v32  ;;  %v5877_v51 = vsub.s32 4294967266, %v12896_v50  ;;  %v5941_v40 = vsel %vm5937_vm4, %v5921_v53, %v5924_v23  ;;  %v5943_v20 = vsel %vm5939_vm14, %v5927_v2, %v5942_v17  ;;  %15833 = vst [vmem:[#allocation51_spill] sm:$0xff] %v12919_v25  ;;  %v15836_v23 = vld [vmem:[#allocation73_spill] sm:$0xff] }
 0x43f   :  { %v5952_v46 = vsel %vm5938_vm13, %v5949_v9, %v5951_v44  ;;  %v12926_v16 = vmul.u32.u64.low %v5953_v45, %v5948_v33  ;;  %v12927_v24 = vmul.u32.u64.high %v5953_v45, %v5948_v33, %v12926_v16  ;;  %vm4753_vm3 = vcmp.eq.s32.totalorder %v15835_v8, 0 }
 0x440   :  { %v12923_v18 = vmul.u32.u64.low %v5953_v45, %v5952_v46  ;;  %v12924_v30 = vmul.u32.u64.high %v5953_v45, %v5952_v46, %v12923_v18  ;;  %vm4756_vm6 = vcmp.eq.s32.totalorder %v15835_v8, 2  ;;  %9205 = vpow2.f32 %v7577_v41 }
 0x441   :  { %v8529_v2 = vadd.f32 %v12289_v55, %v15836_v23  ;;  %v5944_v9 = vsel %vm5938_vm13, %v5941_v40, %v5943_v20  ;;  %v4755_v17 = vsel %vm4753_vm3, %v15830_v34, %v4754_v38  ;;  %v4758_v53 = vsel %vm4756_vm6, %v4757_v5, %v15829_v26  ;;  %v15837_v38 = vld [vmem:[#allocation53_spill] sm:$0xff]  ;;  %v15838_v40 = vld [vmem:[#allocation100_spill] sm:$0xff]  ;;  %v15839_v18 = vld [vmem:[#allocation59_spill] sm:$0xff] }
 0x442   :  { %v8565_v33 = vadd.f32 %v12337_v10, %v12438_v47  ;;  %v5777_v44 = vand.u32 2147483647, %v12865_v52  ;;  %v5873_v46 = vsub.s32 32, %v12896_v50  ;;  %vm4752_vm1 = vcmp.lt.s32.totalorder %v15835_v8, 2 }
 0x443   :  { %v12944_v41 = vadd.f32 %v12405_v60, %v8529_v2  ;;  %v5878_v55 = vadd.s32 127, %v5877_v51  ;;  %vm5962_vm5 = vc.u32 %v12924_v30, %v12926_v16  ;;  %v5963_v61 = vadd.s32 1, %v12927_v24  ;;  %v15843_v60 = vld [vmem:[#allocation108_spill] sm:$0xff] }
 0x444   :  { %v4216_v26 = vadd.f32 %v8565_v33, %v15837_v38  ;;  %v5857_v10 = vadd.s32 %v12752_v21, %v12766_v6  ;;  %v5960_v34 = vmul.u32 %v5953_v45, %v5944_v9  ;;  %v4759_v52 = vsel %vm4752_vm1, %v4755_v17, %v4758_v53  ;;  %v15841_v9 = vld [vmem:[#allocation5_spill] sm:$0xff] }
 0x445   :  { %v6012_v5 = vand.u32 2139095040, %v12944_v41  ;;  %v5964_v8 = vsel %vm5962_vm5, %v5963_v61, %v12927_v24  ;;  %v5066_v51 = vxor.u32 2147483648, %v12378_v31  ;;  %v5069_v20 = vxor.u32 2147483648, %v15838_v40  ;;  %v15840_v24 = vld [vmem:[#allocation77_spill] sm:$0xff] }
 0x446   :  { %vm5061_vm0 = vweird.f32 %v15839_v18  ;;  %v5780_v23 = vmul.f32 %v5779_v7, %v5777_v44  ;;  %v5875_v2 = vshrl.u32 %v5857_v10, %v5873_v46  ;;  %v5965_v33 = vadd.s32 %v5964_v8, %v5960_v34 }
 0x447   :  { %v6013_v38 = vshrl.u32 %v6012_v5, 23  ;;  %v5874_v21 = vshll.u32 %v12850_v59, %v12896_v50  ;;  %v5879_v6 = vshll.u32 %v5878_v55, 23  ;;  %v4760_v45 = vsel %vm4749_vm12, nan, %v4759_v52  ;;  %v15845_v50 = vld [vmem:[#allocation64_spill] sm:$0xff] }
 0x448   :  { %v12964_v17 = vadd.f32 %v15841_v9, %v15840_v24  ;;  %v5966_v53 = vadd.s32 536870912, %v5965_v33  ;;  %vm5065_vm7 = vcmp.eq.s32.totalorder %v15843_v60, 0  ;;  %vm5068_vm10 = vcmp.eq.s32.totalorder %v15843_v60, 2  ;;  %v15846_v24 = vld [vmem:[#allocation45_spill] sm:$0xff] }
 0x449   :  { %v7783_v61 = vadd.s32 4294967169, %v6013_v38  ;;  %v15844_v7 = vand.u32 2147483647, %v12944_v41  ;;  %v5067_v46 = vsel %vm5065_vm7, %v15838_v40, %v5066_v51  ;;  %v5070_v59 = vsel %vm5068_vm10, %v5069_v20, %v12378_v31 }
 0x44a   :  { %15842 = vst [vmem:[#allocation120_spill] sm:$0xff] %v12964_v17  ;;  %v8566_v32 = vadd.f32 %v12438_v47, %v15845_v50  ;;  %v9206_v55 = vpop.eup %9205  ;;  %v5781_v10 = vxor.u32 2147483648, %v5780_v23  ;;  %v12974_v34 = vor.u32 %v5875_v2, %v5874_v21  ;;  %v12976_v52 = vshrl.u32 %v5966_v53, 30 }
 0x44b   :  { %v6016_v44 = vand.u32 8388607, %v15844_v7  ;;  %v6019_v5 = vadd.s32 1, %v7783_v61  ;;  %v12978_v8 = vor.u32 4788187, %v5879_v6  ;;  %v7637_v38 = vmul.f32 %v9206_v55, %v4760_v45  ;;  %v13014_v55 = vpop.f32.mrb[44].mxu0 }
 0x44c   :  { %vm5064_vm8 = vcmp.lt.s32.totalorder %v15843_v60, 2  ;;  %v12982_v9 = vadd.f32 %v8566_v32, %v15846_v24  ;;  %v5968_v31 = vshll.u32 %v12976_v52, 30  ;;  %v7583_v47 = vmul.f32 1.442695, %v4216_v26  ;;  %15848 = vst [vmem:[#allocation121_spill] sm:$0xff] %v13014_v55 }
 0x44d   :  { %vm6020_vm4 = vcmp.gt.s32.totalorder %v6019_v5, 0  ;;  %v5071_v51 = vsel %vm5064_vm8, %v5067_v46, %v5070_v59  ;;  %9207 = vsinq.f32 %v12804_v27  ;;  %v12987_v40 = vand.u32 3, %v12807_v63  ;;  %7669 = vst [vmem:[#allocation2 + $0x20] sm:$0xff] %v7637_v38 }
 0x44e   :  { %v6017_v20 = vor.u32 8388608, %v6016_v44  ;;  %v6021_v2 = vsel %vm6020_vm4, %v6019_v5, 0  ;;  %9209 = vcosq.f32 %v12858_v22  ;;  %v15847_v60 = vsel %vm12811_vm11, 0, %v12821_v3 }
 0x44f   :  { %v12994_v21 = vadd.s32 3, %v15847_v60  ;;  %v12996_v6 = vsub.s32 %v5965_v33, %v5968_v31  ;;  %v6023_v45 = vand.u32 31, %v6021_v2  ;;  %v5782_v27 = vsel %vm5699_vm9, %v5781_v10, %v5780_v23 }
 0x450   :  { %v5881_v63 = vand.u32 2147483647, %v12978_v8  ;;  %v5883_v26 = vcvt.s32.f32 %v12974_v34  ;;  %v5072_v53 = vsel %vm5061_vm0, nan, %v5071_v51  ;;  %v6022_v7 = vshrl.u32 %v6021_v2, 5 }
 0x451   :  { %v5971_v61 = vsub.s32 0, %v12996_v6  ;;  %v6024_v44 = vsub.s32 32, %v6023_v45  ;;  %9211 = vpow2.f32 %v7583_v47  ;;  %v6026_v3 = vshll.u32 %v15632_v43, %v6023_v45 }
 0x452   :  { %v6029_v33 = vshll.u32 %v15639_v4, %v6023_v45  ;;  %v6032_v46 = vshll.u32 %v15641_v39, %v6023_v45  ;;  %v13008_v59 = vshll.u32 %v6017_v20, 8  ;;  %v6035_v18 = vshll.u32 %v15642_v35, %v6023_v45 }
 0x453   :  { %v7780_v23 = vmin.u32 %v5971_v61, %v12996_v6  ;;  %v6027_v50 = vshrl.u32 %v15639_v4, %v6024_v44  ;;  %v6038_v32 = vshll.u32 %v15653_v1, %v6023_v45  ;;  %v6030_v10 = vshrl.u32 %v15641_v39, %v6024_v44 }
 0x454   :  { %v6033_v34 = vshrl.u32 %v15642_v35, %v6024_v44  ;;  %v6036_v5 = vshrl.u32 %v15653_v1, %v6024_v44  ;;  %v6039_v8 = vshrl.u32 %v15644_v29, %v6024_v44  ;;  %v6025_v24 = vshrl.u32 %v15632_v43, %v6024_v44 }
 0x455   :  { %v5973_v38 = vclz %v7780_v23  ;;  %v6028_v31 = vor.u32 %v6027_v50, %v6026_v3  ;;  %vm6041_vm9 = vcmp.lt.s32.totalorder %v6022_v7, 1  ;;  %vm5803_vm14 = vcmp.lt.s32.totalorder %v12650_v48, 0 }
 0x456   :  { %v6031_v51 = vor.u32 %v6030_v10, %v6029_v33  ;;  %v6034_v47 = vor.u32 %v6033_v34, %v6032_v46  ;;  %v6037_v20 = vor.u32 %v6036_v5, %v6035_v18  ;;  %v6040_v2 = vor.u32 %v6039_v8, %v6038_v32 }
 0x457   :  { %v7781_v60 = vadd.s32 4294967294, %v5973_v38  ;;  %vm6042_vm15 = vcmp.lt.s32.totalorder %v6022_v7, 2  ;;  %vm6043_vm2 = vcmp.lt.s32.totalorder %v6022_v7, 3  ;;  %vm6044_vm13 = vcmp.lt.s32.totalorder %v6022_v7, 4  ;;  %v13022_v45 = vpop.eup %9207 }
 0x458   :  { %v6046_v61 = vsel %vm6044_vm13, %v6034_v47, 2102212464  ;;  %v6049_v17 = vsel %vm6041_vm9, %v6028_v31, %v6031_v51  ;;  %v6050_v23 = vsel %vm6044_vm13, %v6037_v20, 920167782  ;;  %v6053_v44 = vsel %vm6041_vm9, %v6031_v51, %v6034_v47  ;;  %v13026_v3 = vpop.eup %9209 }
 0x459   :  { %vm7782_vm12 = vcmp.lt.s32.totalorder %v7781_v60, 0  ;;  %v6045_v33 = vsel %vm6041_vm9, %v6025_v24, %v6028_v31  ;;  %v6051_v46 = vsel %vm6043_vm2, %v6034_v47, %v6050_v23  ;;  %v6054_v50 = vsel %vm6044_vm13, %v6040_v2, 1326507024  ;;  %v13052_v47 = vpop.f32.mrb[80].mxu1  ;;  %v15853_v2 = vld [vmem:[#allocation80_spill] sm:$0xff] }
 0x45a   :  { %v5976_v18 = vsel %vm7782_vm12, 0, %v7781_v60  ;;  %v6047_v32 = vsel %vm6043_vm2, %v6031_v51, %v6046_v61  ;;  %v6052_v10 = vsel %vm6042_vm15, %v6049_v17, %v6051_v46  ;;  %v6055_v34 = vsel %vm6043_vm2, %v6037_v20, %v6054_v50  ;;  %15852 = vst [vmem:[#allocation122_spill] sm:$0xff] %v13052_v47  ;;  %v15854_v60 = vld [vmem:[#allocation29_spill] sm:$0xff]  ;;  %v13066_v7 = vpop.f32.mrb[81].mxu1 }
 0x45b   :  { %v9212_v5 = vpop.eup %9211  ;;  %v5884_v8 = vmul.f32 %v5883_v26, %v5881_v63  ;;  %v5887_v38 = vsub.s32 4, %v12835_v58  ;;  %v5981_v55 = vsub.s32 4294967266, %v5976_v18  ;;  %v6056_v56 = vsel %vm6042_vm15, %v6053_v44, %v6055_v34  ;;  %v13060_v23 = vld [vmem:[%s14808_s3 + $0x1] ss:$0 sm:$0xff]  ;;  %15857 = vst [vmem:[#allocation124_spill] sm:$0xff] %v13066_v7  ;;  %v15858_v44 = vld [vmem:[#allocation58_spill] sm:$0xff] }
 0x45c   :  { %v15849_v25 = vand.u32 2147483647, %v12650_v48  ;;  %v13039_v24 = vmul.u32.u64.low %v13008_v59, %v6056_v56  ;;  %v13040_v31 = vmul.u32.u64.high %v13008_v59, %v6056_v56, %v13039_v24  ;;  %9213 = vsinq.f32 %v12858_v22  ;;  %v15855_v22 = vld [vmem:[#allocation81_spill] sm:$0xff] }
 0x45d   :  { %v13043_v17 = vmul.u32.u64.low %v13008_v59, %v6052_v10  ;;  %v13044_v51 = vmul.u32.u64.high %v13008_v59, %v6052_v10, %v13043_v17  ;;  %v5785_v63 = vsel %vm12811_vm11, %v12409_v42, %v5782_v27  ;;  %v7640_v26 = vmul.f32 %v9212_v5, %v5072_v53  ;;  %v13064_v27 = vpop.f32.mrb[45].mxu0  ;;  %v15859_v46 = vld [vmem:[#allocation109_spill] sm:$0xff] }
 0x45e   :  { %vm13034_vm3 = vcmp.le.f32.partialorder %v15849_v25, 0.7853982  ;;  %v6048_v25 = vsel %vm6042_vm15, %v6045_v33, %v6047_v32  ;;  %v5977_v20 = vsub.s32 32, %v5976_v18  ;;  %v7581_v56 = vmul.f32 1.442695, %v12982_v9  ;;  %15856 = vst [vmem:[#allocation123_spill] sm:$0xff] %v13064_v27 }
 0x45f   :  { %v8531_v61 = vadd.f32 %v15854_v60, %v15853_v2  ;;  %v8567_v13 = vadd.f32 %v13060_v23, %v15855_v22  ;;  %v5888_v53 = vsel %vm5803_vm14, %v5887_v38, %v12835_v58  ;;  %v5982_v9 = vadd.s32 127, %v5981_v55  ;;  %7672 = vst [vmem:[#allocation2 + $0x38] sm:$0xff] %v7640_v26  ;;  %v15860_v32 = vld [vmem:[#allocation57_spill] sm:$0xff]  ;;  %v15861_v58 = vld [vmem:[#allocation31_spill] sm:$0xff] }
 0x460   :  { %v4962_v33 = vxor.u32 2147483648, %v15858_v44  ;;  %v4965_v50 = vxor.u32 2147483648, %v15859_v46  ;;  %vm4957_vm11 = vweird.f32 %v15860_v32  ;;  %v5885_v10 = vxor.u32 2147483648, %v5884_v8  ;;  %v13084_v55 = vld [vmem:[%s14808_s3] ss:$0 sm:$0xff] }
 0x461   :  { %v5961_v34 = vadd.s32 %v12926_v16, %v12924_v30  ;;  %vm6066_vm6 = vc.u32 %v13040_v31, %v13043_v17  ;;  %v6067_v5 = vadd.s32 1, %v13044_v51  ;;  %v6064_v24 = vmul.u32 %v13008_v59, %v6048_v25  ;;  %v15862_v16 = vld [vmem:[#allocation22_spill] sm:$0xff] }
 0x462   :  { %vm4961_vm1 = vcmp.eq.s32.totalorder %v15861_v58, 0  ;;  %9215 = vpow2.f32 %v7581_v56  ;;  %v13087_v38 = vadd.f32 %v13084_v55, %v8531_v61  ;;  %vm4964_vm5 = vcmp.eq.s32.totalorder %v15861_v58, 2 }
 0x463   :  { %v5979_v26 = vshrl.u32 %v5961_v34, %v5977_v20  ;;  %v6068_v30 = vsel %vm6066_vm6, %v6067_v5, %v13044_v51  ;;  %v4218_v2 = vadd.f32 %v8567_v13, %v15862_v16  ;;  %v5983_v60 = vshll.u32 %v5982_v9, 23  ;;  %v15868_v16 = vld [vmem:[#allocation112_spill] sm:$0xff] }
 0x464   :  { %v6069_v59 = vadd.s32 %v6068_v30, %v6064_v24  ;;  %v4963_v25 = vsel %vm4961_vm1, %v15859_v46, %v4962_v33  ;;  %v4966_v56 = vsel %vm4964_vm5, %v4965_v50, %v15858_v44  ;;  %9217 = vcosq.f32 %v5785_v63  ;;  %v15865_v50 = vld [vmem:[#allocation107_spill] sm:$0xff] }
 0x465   :  { %v13095_v22 = vand.u32 3, %v12994_v21  ;;  %v5978_v61 = vshll.u32 %v12996_v6, %v5976_v18  ;;  %v6116_v20 = vand.u32 2139095040, %v13087_v38  ;;  %v5886_v51 = vsel %vm5803_vm14, %v5885_v10, %v5884_v8  ;;  %v15864_v21 = vld [vmem:[#allocation83_spill] sm:$0xff]  ;;  %v15867_v10 = vld [vmem:[#allocation33_spill] sm:$0xff] }
 0x466   :  { %v5890_v13 = vsel %vm13034_vm3, 0, %v5888_v53  ;;  %vm5907_vm0 = vcmp.lt.s32.totalorder %v12781_v57, 0  ;;  %v6070_v9 = vadd.s32 536870912, %v6069_v59  ;;  %vm4960_vm7 = vcmp.lt.s32.totalorder %v15861_v58, 2  ;;  %v13109_v6 = vpop.eup %9213  ;;  %v15872_v58 = vld [vmem:[#allocation50_spill] sm:$0xff] }
 0x467   :  { %15863 = vst [vmem:[#allocation79_spill] sm:$0xff] %v13095_v22  ;;  %v5980_v44 = vor.u32 %v5979_v26, %v5978_v61  ;;  %v4967_v33 = vsel %vm4960_vm7, %v4963_v25, %v4966_v56  ;;  %v6117_v46 = vshrl.u32 %v6116_v20, 23  ;;  %v13107_v34 = vadd.f32 %v15865_v50, %v15864_v21  ;;  %v15869_v25 = vld [vmem:[#allocation111_spill] sm:$0xff] }
 0x468   :  { %9219 = vsinq.f32 %v5785_v63  ;;  %v5984_v18 = vor.u32 4788187, %v5983_v60  ;;  %v13111_v8 = vshrl.u32 %v6070_v9, 30  ;;  %v8568_v53 = vadd.f32 %v13060_v23, %v15867_v10 }
 0x469   :  { %15866 = vst [vmem:[#allocation46_spill] sm:$0xff] %v13107_v34  ;;  %v13118_v5 = vsel %vm13034_vm3, %v12650_v48, %v5886_v51  ;;  %v5894_v24 = vadd.s32 3, %v5890_v13  ;;  %v7787_v26 = vadd.s32 4294967169, %v6117_v46  ;;  %v4968_v63 = vsel %vm4957_vm11, nan, %v4967_v33  ;;  %v15871_v46 = vld [vmem:[#allocation110_spill] sm:$0xff] }
 0x46a   :  { %v6072_v30 = vshll.u32 %v13111_v8, 30  ;;  %v5274_v60 = vxor.u32 2147483648, %v15868_v16  ;;  %v5277_v56 = vxor.u32 2147483648, %v15869_v25  ;;  %v5987_v61 = vcvt.s32.f32 %v5980_v44 }
 0x46b   :  { %v5991_v20 = vsub.s32 4, %v12976_v52  ;;  %v6123_v9 = vadd.s32 1, %v7787_v26  ;;  %v4217_v51 = vadd.f32 %v8568_v53, %v15870_v0  ;;  %v5985_v13 = vand.u32 2147483647, %v5984_v18 }
 0x46c   :  { %v9216_v21 = vpop.eup %9215  ;;  %v13128_v50 = vsub.s32 %v6069_v59, %v6072_v30  ;;  %vm5273_vm10 = vcmp.eq.s32.totalorder %v15871_v46, 0  ;;  %v7587_v10 = vmul.f32 1.442695, %v4218_v2  ;;  %vm5269_vm8 = vweird.f32 %v15872_v58 }
 0x46d   :  { %v7639_v32 = vmul.f32 %v9216_v21, %v4968_v63  ;;  %v15873_v33 = vand.u32 2147483647, %v13087_v38  ;;  %vm6124_vm4 = vcmp.gt.s32.totalorder %v6123_v9, 0  ;;  %vm5276_vm9 = vcmp.eq.s32.totalorder %v15871_v46, 2 }
 0x46e   :  { %v6075_v44 = vsub.s32 0, %v13128_v50  ;;  %v6125_v26 = vsel %vm6124_vm4, %v6123_v9, 0  ;;  %v5275_v53 = vsel %vm5273_vm10, %v15869_v25, %v5274_v60  ;;  %v5278_v59 = vsel %vm5276_vm9, %v5277_v56, %v15868_v16  ;;  %v13138_v18 = vpop.eup %9217 }
 0x46f   :  { %v6120_v34 = vand.u32 8388607, %v15873_v33  ;;  %15874 = vst [vmem:[#allocation52_spill] sm:$0xff] %v13138_v18  ;;  %9221 = vcosq.f32 %v13118_v5  ;;  %v13141_v2 = vand.u32 3, %v5894_v24  ;;  %v13146_v30 = vsel %vm5907_vm0, %v5991_v20, %v12976_v52  ;;  %7671 = vst [vmem:[#allocation2 + $0x30] sm:$0xff] %v7639_v32 }
 0x470   :  { %v6127_v63 = vand.u32 31, %v6125_v26  ;;  %v13148_v0 = vmul.f32 %v5987_v61, %v5985_v13  ;;  %v7784_v9 = vmin.u32 %v6075_v44, %v13128_v50  ;;  %vm5272_vm14 = vcmp.lt.s32.totalorder %v15871_v46, 2  ;;  %v13159_v13 = vpop.f32.mrb[46].mxu0 }
 0x471   :  { %15875 = vst [vmem:[#allocation82_spill] sm:$0xff] %v13141_v2  ;;  %9223 = vpow2.f32 %v7587_v10  ;;  %v6121_v16 = vor.u32 8388608, %v6120_v34  ;;  %v13152_v60 = vshrl.u32 %v6125_v26, 5  ;;  %v5279_v24 = vsel %vm5272_vm14, %v5275_v53, %v5278_v59  ;;  %15877 = vst [vmem:[#allocation63_spill] sm:$0xff] %v13159_v13  ;;  %v13202_v2 = vpop.f32.mrb[82].mxu1 }
 0x472   :  { %v6128_v25 = vsub.s32 32, %v6127_v63  ;;  %v13154_v56 = vpop.eup %9219  ;;  %v6077_v21 = vclz %v7784_v9  ;;  %v6130_v52 = vshll.u32 %v15632_v43, %v6127_v63  ;;  %v6133_v20 = vshll.u32 %v15639_v4, %v6127_v63 }
 0x473   :  { %15876 = vst [vmem:[#allocation74_spill] sm:$0xff] %v13154_v56  ;;  %v6136_v61 = vshll.u32 %v15641_v39, %v6127_v63  ;;  %v6139_v10 = vshll.u32 %v15642_v35, %v6127_v63  ;;  %v6142_v26 = vshll.u32 %v15653_v1, %v6127_v63  ;;  %v13168_v27 = vshll.u32 %v6121_v16, 8 }
 0x474   :  { %v6131_v32 = vshrl.u32 %v15639_v4, %v6128_v25  ;;  %v6134_v46 = vshrl.u32 %v15641_v39, %v6128_v25  ;;  %v6137_v34 = vshrl.u32 %v15642_v35, %v6128_v25  ;;  %v7785_v33 = vadd.s32 4294967294, %v6077_v21  ;;  %v15878_v21 = vld [vmem:[#allocation103_spill] sm:$0xff] }
 0x475   :  { %v6140_v44 = vshrl.u32 %v15653_v1, %v6128_v25  ;;  %v6143_v53 = vshrl.u32 %v15644_v29, %v6128_v25  ;;  %v5280_v22 = vsel %vm5269_vm8, nan, %v5279_v24  ;;  %vm6145_vm2 = vcmp.lt.s32.totalorder %v13152_v60, 1 }
 0x476   :  { %v6132_v59 = vor.u32 %v6131_v32, %v6130_v52  ;;  %v6135_v9 = vor.u32 %v6134_v46, %v6133_v20  ;;  %v6138_v7 = vor.u32 %v6137_v34, %v6136_v61  ;;  %vm7786_vm15 = vcmp.lt.s32.totalorder %v7785_v33, 0 }
 0x477   :  { %v6141_v13 = vor.u32 %v6140_v44, %v6139_v10  ;;  %v6144_v47 = vor.u32 %v6143_v53, %v6142_v26  ;;  %v13172_v42 = vsel %vm7786_vm15, 0, %v7785_v33  ;;  %v5170_v18 = vxor.u32 2147483648, %v15878_v21  ;;  %v15882_v26 = vld [vmem:[#allocation72_spill] sm:$0xff]  ;;  %v15893_v10 = vld [vmem:[#allocation39_spill] sm:$0xff] }
 0x478   :  { %v7585_v63 = vmul.f32 1.442695, %v4217_v51  ;;  %v6129_v56 = vshrl.u32 %v15632_v43, %v6128_v25  ;;  %vm6147_vm13 = vcmp.lt.s32.totalorder %v13152_v60, 3  ;;  %vm6148_vm12 = vcmp.lt.s32.totalorder %v13152_v60, 4 }
 0x479   :  { %v6153_v16 = vsel %vm6145_vm2, %v6132_v59, %v6135_v9  ;;  %v13181_v52 = vpop.eup %9221  ;;  %v6150_v58 = vsel %vm6148_vm12, %v6138_v7, 2102212464  ;;  %v6154_v24 = vsel %vm6148_vm12, %v6141_v13, 920167782  ;;  %v6157_v20 = vsel %vm6145_vm2, %v6135_v9, %v6138_v7 }
 0x47a   :  { %v6158_v61 = vsel %vm6148_vm12, %v6144_v47, 1326507024  ;;  %v6085_v51 = vsub.s32 4294967266, %v13172_v42  ;;  %vm6146_vm3 = vcmp.lt.s32.totalorder %v13152_v60, 2  ;;  %v6155_v25 = vsel %vm6147_vm13, %v6138_v7, %v6154_v24 }
 0x47b   :  { %v9224_v32 = vpop.eup %9223  ;;  %v6159_v46 = vsel %vm6147_vm13, %v6141_v13, %v6158_v61  ;;  %v15879_v34 = vand.u32 2147483647, %v12781_v57  ;;  %v6156_v47 = vsel %vm6146_vm3, %v6153_v16, %v6155_v25  ;;  %v5173_v53 = vxor.u32 2147483648, %v15882_v26  ;;  %v13214_v16 = vpop.f32.mrb[83].mxu1  ;;  %v15886_v25 = vld [vmem:[#allocation43_spill] sm:$0xff] }
 0x47c   :  { %v6160_v33 = vsel %vm6146_vm3, %v6157_v20, %v6159_v46  ;;  %v7642_v44 = vmul.f32 %v9224_v32, %v5280_v22  ;;  %v6149_v7 = vsel %vm6145_vm2, %v6129_v56, %v6132_v59  ;;  %v6151_v13 = vsel %vm6147_vm13, %v6135_v9, %v6150_v58  ;;  %15884 = vst [vmem:[#allocation12_spill] sm:$0xff] %v13214_v16  ;;  %v15885_v20 = vld [vmem:[#allocation76_spill] sm:$0xff] }
 0x47d   :  { %vm13193_vm11 = vcmp.le.f32.partialorder %v15879_v34, 0.7853982  ;;  %v13209_v24 = vmul.u32.u64.low %v13168_v27, %v6160_v33  ;;  %v13210_v61 = vmul.u32.u64.high %v13168_v27, %v6160_v33, %v13209_v24  ;;  %v13212_v34 = vpop.f32.mrb[47].mxu0  ;;  %vm5165_vm6 = vweird.f32 %v15885_v20  ;;  %v15887_v33 = vld [vmem:[#allocation90_spill] sm:$0xff] }
 0x47e   :  { %15883 = vst [vmem:[#allocation14_spill] sm:$0xff] %v13212_v34  ;;  %v5989_v22 = vxor.u32 2147483648, %v13148_v0  ;;  %v6065_v32 = vadd.s32 %v13043_v17, %v13040_v31  ;;  %v13221_v56 = vmul.u32.u64.low %v13168_v27, %v6156_v47  ;;  %v13222_v59 = vmul.u32.u64.high %v13168_v27, %v6156_v47, %v13221_v56  ;;  %7674 = vst [vmem:[#allocation2 + $0x48] sm:$0xff] %v7642_v44 }
 0x47f   :  { %v6081_v9 = vsub.s32 32, %v13172_v42  ;;  %v6086_v58 = vadd.s32 127, %v6085_v51  ;;  %vm5169_vm1 = vcmp.eq.s32.totalorder %v15886_v25, 0  ;;  %9225 = vpow2.f32 %v7585_v63 }
 0x480   :  { %v6152_v46 = vsel %vm6146_vm3, %v6149_v7, %v6151_v13  ;;  %vm5172_vm5 = vcmp.eq.s32.totalorder %v15886_v25, 2  ;;  %v8533_v31 = vadd.f32 %v12569_v14, %v15887_v33  ;;  %v8569_v17 = vadd.f32 %v13060_v23, %v12623_v15  ;;  %v15888_v15 = vld [vmem:[#allocation15_spill] sm:$0xff] }
 0x481   :  { %vm6170_vm7 = vc.u32 %v13210_v61, %v13221_v56  ;;  %vm5168_vm10 = vcmp.lt.s32.totalorder %v15886_v25, 2  ;;  %v5171_v51 = vsel %vm5169_vm1, %v15882_v26, %v5170_v18  ;;  %v5174_v63 = vsel %vm5172_vm5, %v5173_v53, %v15878_v21  ;;  %v15889_v18 = vld [vmem:[#allocation85_spill] sm:$0xff] }
 0x482   :  { %v5990_v60 = vsel %vm5907_vm0, %v5989_v22, %v13148_v0  ;;  %vm6011_vm8 = vcmp.lt.s32.totalorder %v12944_v41, 0  ;;  %v6171_v14 = vadd.s32 1, %v13222_v59  ;;  %v13245_v47 = vadd.f32 %v13084_v55, %v8533_v31 }
 0x483   :  { %v4220_v44 = vadd.f32 %v8569_v17, %v15888_v15  ;;  %v6083_v7 = vshrl.u32 %v6065_v32, %v6081_v9  ;;  %v6087_v13 = vshll.u32 %v6086_v58, 23  ;;  %v6168_v24 = vmul.u32 %v13168_v27, %v6152_v46  ;;  %v15891_v46 = vld [vmem:[#allocation99_spill] sm:$0xff]  ;;  %v15892_v15 = vld [vmem:[#allocation114_spill] sm:$0xff] }
 0x484   :  { %v13251_v21 = vadd.f32 %v12628_v11, %v15889_v18  ;;  %v6172_v26 = vsel %vm6170_vm7, %v6171_v14, %v13222_v59  ;;  %v5175_v0 = vsel %vm5168_vm10, %v5171_v51, %v5174_v63  ;;  %v15157_v53 = vand.u32 2147483647, %v13245_v47 }
 0x485   :  { %v6220_v22 = vand.u32 2139095040, %v13245_v47  ;;  %9227 = vsinq.f32 %v13118_v5  ;;  %v5994_v32 = vsel %vm13193_vm11, 0, %v13146_v30  ;;  %v6095_v9 = vsub.s32 4, %v13111_v8 }
 0x486   :  { %15890 = vst [vmem:[#allocation125_spill] sm:$0xff] %v13251_v21  ;;  %v6173_v27 = vadd.s32 %v6172_v26, %v6168_v24  ;;  %v6082_v11 = vshll.u32 %v13128_v50, %v13172_v42  ;;  %v5482_v59 = vxor.u32 2147483648, %v12717_v54  ;;  %v5485_v25 = vxor.u32 2147483648, %v12712_v62  ;;  %v13354_v21 = vpop.f32.mrb[84].mxu1 }
 0x487   :  { %v6221_v58 = vshrl.u32 %v6220_v22, 23  ;;  %vm5477_vm0 = vweird.f32 %v15891_v46  ;;  %v13269_v5 = vsel %vm13193_vm11, %v12781_v57, %v5990_v60  ;;  %v6088_v33 = vor.u32 4788187, %v6087_v13 }
 0x488   :  { %v6174_v30 = vadd.s32 536870912, %v6173_v27  ;;  %v5176_v31 = vsel %vm5165_vm6, nan, %v5175_v0  ;;  %v6084_v17 = vor.u32 %v6083_v7, %v6082_v11  ;;  %v6224_v42 = vand.u32 8388607, %v15157_v53  ;;  %v15894_v0 = vld [vmem:[#allocation26_spill] sm:$0xff] }
 0x489   :  { %v7791_v51 = vadd.s32 4294967169, %v6221_v58  ;;  %v7591_v50 = vmul.f32 1.442695, %v4220_v44  ;;  %v9226_v63 = vpop.eup %9225  ;;  %vm5481_vm4 = vcmp.eq.s32.totalorder %v15892_v15, 0  ;;  %vm5484_vm9 = vcmp.eq.s32.totalorder %v15892_v15, 2 }
 0x48a   :  { %v13275_v14 = vshrl.u32 %v6174_v30, 30  ;;  %v8570_v60 = vadd.f32 %v13060_v23, %v15893_v10  ;;  %v7641_v13 = vmul.f32 %v9226_v63, %v5176_v31  ;;  %v5483_v20 = vsel %vm5481_vm4, %v12712_v62, %v5482_v59 }
 0x48b   :  { %v6227_v24 = vadd.s32 1, %v7791_v51  ;;  %v5486_v7 = vsel %vm5484_vm9, %v5485_v25, %v12717_v54  ;;  %v6089_v18 = vand.u32 2147483647, %v6088_v33  ;;  %v13286_v44 = vsel %vm6011_vm8, %v6095_v9, %v13111_v8 }
 0x48c   :  { %v6176_v26 = vshll.u32 %v13275_v14, 30  ;;  %v4219_v22 = vadd.f32 %v8570_v60, %v15894_v0  ;;  %7673 = vst [vmem:[#allocation2 + $0x40] sm:$0xff] %v7641_v13  ;;  %v6225_v11 = vor.u32 8388608, %v6224_v42  ;;  %vm5480_vm15 = vcmp.lt.s32.totalorder %v15892_v15, 2  ;;  %v13331_v0 = vpop.f32.mrb[48].mxu0 }
 0x48d   :  { %vm6228_vm14 = vcmp.gt.s32.totalorder %v6227_v24, 0  ;;  %9229 = vpow2.f32 %v7591_v50  ;;  %v6091_v58 = vcvt.s32.f32 %v6084_v17  ;;  %v5487_v59 = vsel %vm5480_vm15, %v5483_v20, %v5486_v7  ;;  %15898 = vst [vmem:[#allocation10_spill] sm:$0xff] %v13331_v0 }
 0x48e   :  { %v13291_v62 = vsub.s32 %v6173_v27, %v6176_v26  ;;  %v6229_v54 = vsel %vm6228_vm14, %v6227_v24, 0  ;;  %9231 = vcosq.f32 %v13269_v5  ;;  %v13294_v25 = vadd.s32 3, %v5994_v32 }
 0x48f   :  { %v15895_v8 = vand.u32 2147483647, %v12944_v41  ;;  %v6231_v33 = vand.u32 31, %v6229_v54  ;;  %v13302_v30 = vpop.eup %9227  ;;  %v13304_v31 = vmul.f32 %v6091_v58, %v6089_v18  ;;  %v13311_v17 = vadd.s32 %v13221_v56, %v13210_v61 }
 0x490   :  { %v6179_v32 = vsub.s32 0, %v13291_v62  ;;  %v13314_v51 = vshrl.u32 %v6229_v54, 5  ;;  %v13316_v50 = vshll.u32 %v6225_v11, 8  ;;  %v5488_v63 = vsel %vm5477_vm0, nan, %v5487_v59  ;;  %v15899_v59 = vld [vmem:[#allocation34_spill] sm:$0xff] }
 0x491   :  { %vm13298_vm2 = vcmp.le.f32.partialorder %v15895_v8, 0.7853982  ;;  %v6232_v42 = vsub.s32 32, %v6231_v33  ;;  %v6234_v10 = vshll.u32 %v15632_v43, %v6231_v33  ;;  %v6237_v60 = vshll.u32 %v15639_v4, %v6231_v33  ;;  %v15900_v8 = vld [vmem:[#allocation116_spill] sm:$0xff] }
 0x492   :  { %v7788_v15 = vmin.u32 %v6179_v32, %v13291_v62  ;;  %v6240_v13 = vshll.u32 %v15641_v39, %v6231_v33  ;;  %v6243_v20 = vshll.u32 %v15642_v35, %v6231_v33  ;;  %v6246_v18 = vshll.u32 %v15653_v1, %v6231_v33 }
 0x493   :  { %v6235_v61 = vshrl.u32 %v15639_v4, %v6232_v42  ;;  %v6238_v56 = vshrl.u32 %v15641_v39, %v6232_v42  ;;  %v6241_v24 = vshrl.u32 %v15642_v35, %v6232_v42  ;;  %v6244_v46 = vshrl.u32 %v15653_v1, %v6232_v42 }
 0x494   :  { %v6181_v7 = vclz %v7788_v15  ;;  %v6247_v26 = vshrl.u32 %v15644_v29, %v6232_v42  ;;  %vm5377_vm13 = vcmp.eq.s32.totalorder %v15899_v59, 0  ;;  %v5378_v32 = vxor.u32 2147483648, %v15900_v8 }
 0x495   :  { %v6236_v11 = vor.u32 %v6235_v61, %v6234_v10  ;;  %v6239_v58 = vor.u32 %v6238_v56, %v6237_v60  ;;  %v6242_v54 = vor.u32 %v6241_v24, %v6240_v13  ;;  %v6245_v27 = vor.u32 %v6244_v46, %v6243_v20 }
 0x496   :  { %v7789_v53 = vadd.s32 4294967294, %v6181_v7  ;;  %v6248_v16 = vor.u32 %v6247_v26, %v6246_v18  ;;  %vm6249_vm12 = vcmp.lt.s32.totalorder %v13314_v51, 1  ;;  %vm6251_vm3 = vcmp.lt.s32.totalorder %v13314_v51, 3 }
 0x497   :  { %v9230_v15 = vpop.eup %9229  ;;  %vm6252_vm11 = vcmp.lt.s32.totalorder %v13314_v51, 4  ;;  %v6257_v33 = vsel %vm6249_vm12, %v6236_v11, %v6239_v58  ;;  %vm5380_vm6 = vcmp.eq.s32.totalorder %v15899_v59, 2  ;;  %v6261_v60 = vsel %vm6249_vm12, %v6239_v58, %v6242_v54 }
 0x498   :  { %vm7790_vm1 = vcmp.lt.s32.totalorder %v7789_v53, 0  ;;  %v6258_v10 = vsel %vm6252_vm11, %v6245_v27, 920167782  ;;  %v7644_v13 = vmul.f32 %v9230_v15, %v5488_v63  ;;  %v13343_v61 = vpop.eup %9231  ;;  %v6254_v24 = vsel %vm6252_vm11, %v6242_v54, 2102212464 }
 0x499   :  { %v6184_v56 = vsel %vm7790_vm1, 0, %v7789_v53  ;;  %v6259_v20 = vsel %vm6251_vm3, %v6242_v54, %v6258_v10  ;;  %v6262_v7 = vsel %vm6252_vm11, %v6248_v16, 1326507024  ;;  %v6233_v18 = vshrl.u32 %v15632_v43, %v6232_v42  ;;  %v15901_v53 = vld [vmem:[#allocation42_spill] sm:$0xff]  ;;  %v15902_v54 = vld [vmem:[#allocation16_spill] sm:$0xff] }
 0x49a   :  { %v6189_v46 = vsub.s32 4294967266, %v6184_v56  ;;  %vm6250_vm5 = vcmp.lt.s32.totalorder %v13314_v51, 2  ;;  %7676 = vst [vmem:[#allocation2 + $0x58] sm:$0xff] %v7644_v13  ;;  %v7589_v26 = vmul.f32 1.442695, %v4219_v22  ;;  %v6185_v0 = vsub.s32 32, %v6184_v56 }
 0x49b   :  { %v6260_v34 = vsel %vm6250_vm5, %v6257_v33, %v6259_v20  ;;  %v6263_v63 = vsel %vm6251_vm3, %v6245_v27, %v6262_v7  ;;  %v5381_v15 = vxor.u32 2147483648, %v15901_v53  ;;  %vm5373_vm7 = vweird.f32 %v15902_v54  ;;  %v13363_v33 = vpop.f32.mrb[49].mxu0  ;;  %v13365_v13 = vpop.f32.mrb[85].mxu1 }
 0x49c   :  { %v6190_v16 = vadd.s32 127, %v6189_v46  ;;  %v6253_v42 = vsel %vm6249_vm12, %v6233_v18, %v6236_v11  ;;  %v6255_v22 = vsel %vm6251_vm3, %v6239_v58, %v6254_v24  ;;  %v6264_v10 = vsel %vm6250_vm5, %v6261_v60, %v6263_v63  ;;  %v15903_v60 = vld [vmem:[#allocation91_spill] sm:$0xff] }
 0x49d   :  { %v13368_v27 = vmul.u32.u64.low %v13316_v50, %v6264_v10  ;;  %v13369_v20 = vmul.u32.u64.high %v13316_v50, %v6264_v10, %v13368_v27  ;;  %v13372_v7 = vmul.u32.u64.low %v13316_v50, %v6260_v34  ;;  %v13373_v46 = vmul.u32.u64.high %v13316_v50, %v6260_v34, %v13372_v7  ;;  %v15904_v24 = vld [vmem:[#allocation27_spill] sm:$0xff] }
 0x49e   :  { %v6191_v11 = vshll.u32 %v6190_v16, 23  ;;  %v5379_v58 = vsel %vm5377_vm13, %v15901_v53, %v5378_v32  ;;  %9233 = vpow2.f32 %v7589_v26  ;;  %v8535_v18 = vadd.f32 %v15904_v24, %v15903_v60 }
 0x49f   :  { %v6187_v63 = vshrl.u32 %v13311_v17, %v6185_v0  ;;  %v6256_v10 = vsel %vm6250_vm5, %v6253_v42, %v6255_v22  ;;  %v5382_v34 = vsel %vm5380_vm6, %v5381_v15, %v15900_v8  ;;  %v8571_v16 = vadd.f32 %v13060_v23, %v12746_v19  ;;  %v15905_v0 = vld [vmem:[#allocation78_spill] sm:$0xff] }
 0x4a0   :  { %v6093_v27 = vxor.u32 2147483648, %v13304_v31  ;;  %v6186_v32 = vshll.u32 %v13291_v62, %v6184_v56  ;;  %vm5376_vm10 = vcmp.lt.s32.totalorder %v15899_v59, 2  ;;  %v13393_v26 = vadd.f32 %v13084_v55, %v8535_v18 }
 0x4a1   :  { %v6192_v17 = vor.u32 4788187, %v6191_v11  ;;  %vm6274_vm0 = vc.u32 %v13369_v20, %v13372_v7  ;;  %v6275_v51 = vadd.s32 1, %v13373_v46  ;;  %v4222_v8 = vadd.f32 %v8571_v16, %v15905_v0 }
 0x4a2   :  { %v6272_v53 = vmul.u32 %v13316_v50, %v6256_v10  ;;  %v5383_v19 = vsel %vm5376_vm10, %v5379_v58, %v5382_v34  ;;  %v15158_v15 = vand.u32 2147483647, %v13393_v26  ;;  %v6324_v62 = vand.u32 2139095040, %v13393_v26 }
 0x4a3   :  { %v6188_v56 = vor.u32 %v6187_v63, %v6186_v32  ;;  %v6276_v59 = vsel %vm6274_vm0, %v6275_v51, %v13373_v46  ;;  %v5690_v42 = vxor.u32 2147483648, %v13109_v6  ;;  %v5693_v22 = vxor.u32 2147483648, %v13026_v3  ;;  %v15907_v63 = vld [vmem:[#allocation92_spill] sm:$0xff] }
 0x4a4   :  { %vm5685_vm4 = vweird.f32 %v12287_v28  ;;  %v6094_v11 = vsel %vm6011_vm8, %v6093_v27, %v13304_v31  ;;  %v15906_v50 = vsel %vm13298_vm2, 0, %v13286_v44  ;;  %v6277_v60 = vadd.s32 %v6276_v59, %v6272_v53 }
 0x4a5   :  { %v6102_v58 = vadd.s32 3, %v15906_v50  ;;  %v6325_v24 = vshrl.u32 %v6324_v62, 23  ;;  %v6193_v18 = vand.u32 2147483647, %v6192_v17  ;;  %v5384_v46 = vsel %vm5373_vm7, nan, %v5383_v19 }
 0x4a6   :  { %vm5689_vm9 = vcmp.eq.s32.totalorder %v12987_v40, 0  ;;  %v13418_v10 = vadd.f32 %v12756_v12, %v15907_v63  ;;  %v6278_v34 = vadd.s32 536870912, %v6277_v60  ;;  %v6328_v31 = vand.u32 8388607, %v15158_v15 }
 0x4a7   :  { %v7795_v16 = vadd.s32 4294967169, %v6325_v24  ;;  %vm5692_vm8 = vcmp.eq.s32.totalorder %v12987_v40, 2  ;;  %v6195_v44 = vcvt.s32.f32 %v6188_v56  ;;  %v5691_v27 = vsel %vm5689_vm9, %v13026_v3, %v5690_v42  ;;  %v15909_v56 = vld [vmem:[#allocation37_spill] sm:$0xff] }
 0x4a8   :  { %15908 = vst [vmem:[#allocation18_spill] sm:$0xff] %v13418_v10  ;;  %v5694_v32 = vsel %vm5692_vm8, %v5693_v22, %v13109_v6  ;;  %v8572_v54 = vadd.f32 %v13060_v23, %v12758_v37  ;;  %v9234_v17 = vpop.eup %9233  ;;  %v6199_v51 = vsub.s32 4, %v13275_v14  ;;  %v13428_v12 = vshrl.u32 %v6278_v34, 30 }
 0x4a9   :  { %v6331_v0 = vadd.s32 1, %v7795_v16  ;;  %vm5688_vm14 = vcmp.lt.s32.totalorder %v12987_v40, 2  ;;  %v13431_v53 = vmul.f32 %v6195_v44, %v6193_v18  ;;  %v7643_v19 = vmul.f32 %v9234_v17, %v5384_v46 }
 0x4aa   :  { %v7595_v62 = vmul.f32 1.442695, %v4222_v8  ;;  %v13434_v59 = vadd.f32 %v8572_v54, %v15909_v56  ;;  %v6280_v3 = vshll.u32 %v13428_v12, 30  ;;  %v6329_v6 = vor.u32 8388608, %v6328_v31  ;;  %v13473_v31 = vpop.f32.mrb[50].mxu0 }
 0x4ab   :  { %vm6332_vm15 = vcmp.gt.s32.totalorder %v6331_v0, 0  ;;  %v5695_v37 = vsel %vm5688_vm14, %v5691_v27, %v5694_v32  ;;  %9235 = vsinq.f32 %v13269_v5  ;;  %v13439_v42 = vand.u32 3, %v13294_v25  ;;  %7675 = vst [vmem:[#allocation2 + $0x50] sm:$0xff] %v7643_v19  ;;  %15910 = vst [vmem:[#allocation48_spill] sm:$0xff] %v13473_v31 }
 0x4ac   :  { %vm6115_vm13 = vcmp.lt.s32.totalorder %v13087_v38, 0  ;;  %v6333_v40 = vsel %vm6332_vm15, %v6331_v0, 0  ;;  %v13445_v8 = vsel %vm13298_vm2, %v12944_v41, %v6094_v11  ;;  %v13447_v22 = vand.u32 3, %v6102_v58 }
 0x4ad   :  { %v13449_v50 = vsub.s32 %v6277_v60, %v6280_v3  ;;  %v6335_v24 = vand.u32 31, %v6333_v40  ;;  %v13455_v5 = vsel %vm6115_vm13, %v6199_v51, %v13275_v14  ;;  %v13459_v25 = vadd.s32 %v13372_v7, %v13369_v20 }
 0x4ae   :  { %v5696_v9 = vsel %vm5685_vm4, nan, %v5695_v37  ;;  %v13464_v60 = vshll.u32 %v6329_v6, 8  ;;  %9237 = vpow2.f32 %v7595_v62  ;;  %v6334_v46 = vshrl.u32 %v6333_v40, 5 }
 0x4af   :  { %v6283_v11 = vsub.s32 0, %v13449_v50  ;;  %v6336_v58 = vsub.s32 32, %v6335_v24  ;;  %v6338_v63 = vshll.u32 %v15632_v43, %v6335_v24  ;;  %v6341_v34 = vshll.u32 %v15639_v4, %v6335_v24 }
 0x4b0   :  { %v6344_v14 = vshll.u32 %v15641_v39, %v6335_v24  ;;  %v6347_v28 = vshll.u32 %v15642_v35, %v6335_v24  ;;  %v6350_v7 = vshll.u32 %v15653_v1, %v6335_v24  ;;  %v5586_v19 = vxor.u32 2147483648, %v13022_v45 }
 0x4b1   :  { %v7792_v16 = vmin.u32 %v6283_v11, %v13449_v50  ;;  %v6339_v20 = vshrl.u32 %v15639_v4, %v6336_v58  ;;  %v6342_v44 = vshrl.u32 %v15641_v39, %v6336_v58  ;;  %v6345_v27 = vshrl.u32 %v15642_v35, %v6336_v58 }
 0x4b2   :  { %v6348_v32 = vshrl.u32 %v15653_v1, %v6336_v58  ;;  %v6351_v54 = vshrl.u32 %v15644_v29, %v6336_v58  ;;  %v6337_v51 = vshrl.u32 %v15632_v43, %v6336_v58  ;;  %v15911_v62 = vand.u32 2147483647, %v13087_v38 }
 0x4b3   :  { %v6285_v17 = vclz %v7792_v16  ;;  %v6340_v0 = vor.u32 %v6339_v20, %v6338_v63  ;;  %v6343_v3 = vor.u32 %v6342_v44, %v6341_v34  ;;  %v6346_v6 = vor.u32 %v6345_v27, %v6344_v14 }
 0x4b4   :  { %vm13483_vm2 = vcmp.le.f32.partialorder %v15911_v62, 0.7853982  ;;  %v6349_v37 = vor.u32 %v6348_v32, %v6347_v28  ;;  %v6352_v40 = vor.u32 %v6351_v54, %v6350_v7  ;;  %vm6353_vm12 = vcmp.lt.s32.totalorder %v6334_v46, 1 }
 0x4b5   :  { %v7793_v24 = vadd.s32 4294967294, %v6285_v17  ;;  %vm6355_vm3 = vcmp.lt.s32.totalorder %v6334_v46, 3  ;;  %vm6356_vm11 = vcmp.lt.s32.totalorder %v6334_v46, 4  ;;  %v13487_v11 = vpop.eup %9235  ;;  %v6361_v63 = vsel %vm6353_vm12, %v6340_v0, %v6343_v3 }
 0x4b6   :  { %v6358_v58 = vsel %vm6356_vm11, %v6346_v6, 2102212464  ;;  %v6362_v16 = vsel %vm6356_vm11, %v6349_v37, 920167782  ;;  %v6365_v20 = vsel %vm6353_vm12, %v6343_v3, %v6346_v6  ;;  %vm6354_vm1 = vcmp.lt.s32.totalorder %v6334_v46, 2 }
 0x4b7   :  { %vm7794_vm6 = vcmp.lt.s32.totalorder %v7793_v24, 0  ;;  %v6363_v62 = vsel %vm6355_vm3, %v6346_v6, %v6362_v16  ;;  %v6366_v15 = vsel %vm6356_vm11, %v6352_v40, 1326507024  ;;  %v6357_v34 = vsel %vm6353_vm12, %v6337_v51, %v6340_v0 }
 0x4b8   :  { %v6288_v18 = vsel %vm7794_vm6, 0, %v7793_v24  ;;  %v6364_v14 = vsel %vm6354_vm1, %v6361_v63, %v6363_v62  ;;  %v6367_v28 = vsel %vm6355_vm3, %v6349_v37, %v6366_v15  ;;  %v9238_v7 = vpop.eup %9237  ;;  %v6359_v32 = vsel %vm6355_vm3, %v6343_v3, %v6358_v58  ;;  %v13505_v37 = vpop.f32.mrb[86].mxu1  ;;  %v15915_v58 = vld [vmem:[#allocation89_spill] sm:$0xff] }
 0x4b9   :  { %v6289_v44 = vsub.s32 32, %v6288_v18  ;;  %v6293_v27 = vsub.s32 4294967266, %v6288_v18  ;;  %v6368_v54 = vsel %vm6354_vm1, %v6365_v20, %v6367_v28  ;;  %v7646_v0 = vmul.f32 %v9238_v7, %v5696_v9  ;;  %15914 = vst [vmem:[#allocation61_spill] sm:$0xff] %v13505_v37  ;;  %v15916_v63 = vld [vmem:[#allocation49_spill] sm:$0xff]  ;;  %v15917_v20 = vld [vmem:[#allocation118_spill] sm:$0xff]  ;;  %v13516_v9 = vpop.f32.mrb[87].mxu1 }
 0x4ba   :  { %v13495_v17 = vmul.u32.u64.low %v13464_v60, %v6368_v54  ;;  %v13496_v31 = vmul.u32.u64.high %v13464_v60, %v6368_v54, %v13495_v17  ;;  %v13499_v6 = vmul.u32.u64.low %v13464_v60, %v6364_v14  ;;  %v13500_v40 = vmul.u32.u64.high %v13464_v60, %v6364_v14, %v13499_v6  ;;  %v13514_v14 = vpop.f32.mrb[51].mxu0  ;;  %15919 = vst [vmem:[#allocation68_spill] sm:$0xff] %v13516_v9 }
 0x4bb   :  { %v6294_v51 = vadd.s32 127, %v6293_v27  ;;  %vm5585_vm5 = vcmp.eq.s32.totalorder %v12797_v36, 0  ;;  %v5589_v15 = vxor.u32 2147483648, %v12894_v49  ;;  %vm6219_vm7 = vcmp.lt.s32.totalorder %v13245_v47, 0  ;;  %15918 = vst [vmem:[#allocation71_spill] sm:$0xff] %v13514_v14  ;;  %7678 = vst [vmem:[#allocation2 + $0x68] sm:$0xff] %v7646_v0 }
 0x4bc   :  { %v6360_v3 = vsel %vm6354_vm1, %v6357_v34, %v6359_v32  ;;  %v7593_v24 = vmul.f32 1.442695, %v13434_v59  ;;  %v8537_v16 = vadd.f32 %v15916_v63, %v15915_v58  ;;  %v8573_v62 = vadd.f32 %v13060_v23, %v15917_v20  ;;  %v15921_v27 = vld [vmem:[#allocation40_spill] sm:$0xff]  ;;  %v13543_v0 = vpop.f32.mrb[52].mxu0 }
 0x4bd   :  { %v15920_v28 = vxor.u32 2147483648, %v13431_v53  ;;  %v6202_v59 = vsel %vm13483_vm2, 0, %v13455_v5  ;;  %v6295_v46 = vshll.u32 %v6294_v51, 23  ;;  %v5587_v34 = vsel %vm5585_vm5, %v12894_v49, %v5586_v19  ;;  %15923 = vst [vmem:[#allocation126_spill] sm:$0xff] %v13543_v0  ;;  %v15936_v14 = vld [vmem:[#allocation52_spill] sm:$0xff] }
 0x4be   :  { %vm5581_vm10 = vweird.f32 %v15921_v27  ;;  %v6291_v32 = vshrl.u32 %v13459_v25, %v6289_v44  ;;  %vm6378_vm0 = vc.u32 %v13496_v31, %v13499_v6  ;;  %v6379_v54 = vadd.s32 1, %v13500_v40  ;;  %v15922_v44 = vld [vmem:[#allocation115_spill] sm:$0xff] }
 0x4bf   :  { %v6198_v7 = vsel %vm6115_vm13, %v15920_v28, %v13431_v53  ;;  %vm5588_vm4 = vcmp.eq.s32.totalorder %v12797_v36, 2  ;;  %v6290_v53 = vshll.u32 %v13449_v50, %v6288_v18  ;;  %v6376_v5 = vmul.u32 %v13464_v60, %v6360_v3 }
 0x4c0   :  { %9239 = vpow2.f32 %v7593_v24  ;;  %v13538_v17 = vadd.f32 %v13084_v55, %v8537_v16  ;;  %v6296_v49 = vor.u32 4788187, %v6295_v46  ;;  %v6380_v19 = vsel %vm6378_vm0, %v6379_v54, %v13500_v40  ;;  %v15928_v46 = vld [vmem:[#allocation51_spill] sm:$0xff] }
 0x4c1   :  { %v5590_v25 = vsel %vm5588_vm4, %v5589_v15, %v13022_v45  ;;  %v4224_v51 = vadd.f32 %v8573_v62, %v15922_v44  ;;  %9241 = vcosq.f32 %v13445_v8  ;;  %v6303_v58 = vsub.s32 4, %v13428_v12 }
 0x4c2   :  { %v6381_v50 = vadd.s32 %v6380_v19, %v6376_v5  ;;  %v15159_v18 = vand.u32 2147483647, %v13538_v17  ;;  %v6206_v60 = vadd.s32 3, %v6202_v59  ;;  %v15924_v55 = vand.u32 2147483647, %v13245_v47  ;;  %v15927_v59 = vld [vmem:[#allocation87_spill] sm:$0xff] }
 0x4c3   :  { %v6292_v40 = vor.u32 %v6291_v32, %v6290_v53  ;;  %vm5584_vm8 = vcmp.lt.s32.totalorder %v12797_v36, 2  ;;  %v6428_v45 = vand.u32 2139095040, %v13538_v17  ;;  %v13559_v15 = vsel %vm13483_vm2, %v13087_v38, %v6198_v7  ;;  %v15929_v32 = vld [vmem:[#allocation119_spill] sm:$0xff] }
 0x4c4   :  { %vm13550_vm9 = vcmp.le.f32.partialorder %v15924_v55, 0.7853982  ;;  %v6382_v24 = vadd.s32 536870912, %v6381_v50  ;;  %v5591_v63 = vsel %vm5584_vm8, %v5587_v34, %v5590_v25  ;;  %v5898_v16 = vxor.u32 2147483648, %v13302_v30 }
 0x4c5   :  { %vm5893_vm14 = vweird.f32 %v12650_v48  ;;  %v6297_v20 = vand.u32 2147483647, %v6296_v49  ;;  %v6429_v62 = vshrl.u32 %v6428_v45, 23  ;;  %v5901_v28 = vxor.u32 2147483648, %v13181_v52  ;;  %v15930_v49 = vld [vmem:[#allocation82_spill] sm:$0xff] }
 0x4c6   :  { %v13566_v36 = vadd.f32 %v15928_v46, %v15927_v59  ;;  %v13571_v56 = vsel %vm6219_vm7, %v6303_v58, %v13428_v12  ;;  %v13573_v7 = vshrl.u32 %v6382_v24, 30  ;;  %v6432_v34 = vand.u32 8388607, %v15159_v18 }
 0x4c7   :  { %v8574_v54 = vadd.f32 %v13060_v23, %v15929_v32  ;;  %v6299_v53 = vcvt.s32.f32 %v6292_v40  ;;  %v7799_v5 = vadd.s32 4294967169, %v6429_v62  ;;  %vm5897_vm15 = vcmp.eq.s32.totalorder %v15930_v49, 0  ;;  %v15931_v23 = vld [vmem:[#allocation113_spill] sm:$0xff] }
 0x4c8   :  { %vm5900_vm13 = vcmp.eq.s32.totalorder %v15930_v49, 2  ;;  %v6384_v19 = vshll.u32 %v13573_v7, 30  ;;  %v5592_v12 = vsel %vm5581_vm10, nan, %v5591_v63  ;;  %v5899_v25 = vsel %vm5897_vm15, %v13181_v52, %v5898_v16 }
 0x4c9   :  { %v5902_v44 = vsel %vm5900_vm13, %v5901_v28, %v13302_v30  ;;  %v13586_v58 = vmul.f32 %v6299_v53, %v6297_v20  ;;  %v6435_v55 = vadd.s32 1, %v7799_v5  ;;  %v7599_v45 = vmul.f32 1.442695, %v4224_v51  ;;  %v15932_v5 = vld [vmem:[#allocation74_spill] sm:$0xff] }
 0x4ca   :  { %v4223_v40 = vadd.f32 %v8574_v54, %v15931_v23  ;;  %v9240_v24 = vpop.eup %9239  ;;  %9243 = vsinq.f32 %v13445_v8  ;;  %v13590_v62 = vsub.s32 %v6381_v50, %v6384_v19  ;;  %v6433_v59 = vor.u32 8388608, %v6432_v34 }
 0x4cb   :  { %vm5896_vm2 = vcmp.lt.s32.totalorder %v15930_v49, 2  ;;  %v13593_v27 = vand.u32 3, %v6206_v60  ;;  %v7645_v63 = vmul.f32 %v9240_v24, %v5592_v12  ;;  %vm6436_vm12 = vcmp.gt.s32.totalorder %v6435_v55, 0  ;;  %v13595_v30 = vpop.eup %9241 }
 0x4cc   :  { %v5903_v52 = vsel %vm5896_vm2, %v5899_v25, %v5902_v44  ;;  %9245 = vcosq.f32 %v13559_v15  ;;  %v6387_v8 = vsub.s32 0, %v13590_v62  ;;  %v6437_v50 = vsel %vm6436_vm12, %v6435_v55, 0 }
 0x4cd   :  { %v6377_v60 = vadd.s32 %v13499_v6, %v13496_v31  ;;  %7677 = vst [vmem:[#allocation2 + $0x60] sm:$0xff] %v7645_v63  ;;  %v6439_v20 = vand.u32 31, %v6437_v50  ;;  %9247 = vpow2.f32 %v7599_v45  ;;  %v6438_v46 = vshrl.u32 %v6437_v50, 5 }
 0x4ce   :  { %v7796_v28 = vmin.u32 %v6387_v8, %v13590_v62  ;;  %v13606_v34 = vshll.u32 %v6433_v59, 8  ;;  %v5904_v32 = vsel %vm5893_vm14, nan, %v5903_v52  ;;  %v7597_v19 = vmul.f32 1.442695, %v4223_v40 }
 0x4cf   :  { %v6440_v54 = vsub.s32 32, %v6439_v20  ;;  %v6442_v53 = vshll.u32 %v15632_v43, %v6439_v20  ;;  %v6445_v31 = vshll.u32 %v15639_v4, %v6439_v20  ;;  %v6448_v6 = vshll.u32 %v15641_v39, %v6439_v20 }
 0x4d0   :  { %v6389_v12 = vclz %v7796_v28  ;;  %v6451_v25 = vshll.u32 %v15642_v35, %v6439_v20  ;;  %v6454_v45 = vshll.u32 %v15653_v1, %v6439_v20  ;;  %vm6457_vm3 = vcmp.lt.s32.totalorder %v6438_v46, 1 }
 0x4d1   :  { %v6443_v44 = vshrl.u32 %v15639_v4, %v6440_v54  ;;  %v6446_v55 = vshrl.u32 %v15641_v39, %v6440_v54  ;;  %v6449_v48 = vshrl.u32 %v15642_v35, %v6440_v54  ;;  %v6452_v24 = vshrl.u32 %v15653_v1, %v6440_v54 }
 0x4d2   :  { %v7797_v23 = vadd.s32 4294967294, %v6389_v12  ;;  %v6455_v40 = vshrl.u32 %v15644_v29, %v6440_v54  ;;  %v6441_v59 = vshrl.u32 %v15632_v43, %v6440_v54  ;;  %vm6460_vm6 = vcmp.lt.s32.totalorder %v6438_v46, 4 }
 0x4d3   :  { %v6444_v63 = vor.u32 %v6443_v44, %v6442_v53  ;;  %v6447_v52 = vor.u32 %v6446_v55, %v6445_v31  ;;  %v6450_v8 = vor.u32 %v6449_v48, %v6448_v6  ;;  %v6453_v28 = vor.u32 %v6452_v24, %v6451_v25  ;;  %v13630_v55 = vpop.f32.mrb[88].mxu1 }
 0x4d4   :  { %v13622_v50 = vpop.eup %9243  ;;  %vm7798_vm11 = vcmp.lt.s32.totalorder %v7797_v23, 0  ;;  %v6456_v18 = vor.u32 %v6455_v40, %v6454_v45  ;;  %vm6458_vm1 = vcmp.lt.s32.totalorder %v6438_v46, 2  ;;  %vm6459_vm5 = vcmp.lt.s32.totalorder %v6438_v46, 3  ;;  %15933 = vst [vmem:[#allocation101_spill] sm:$0xff] %v13630_v55  ;;  %v13634_v40 = vpop.f32.mrb[53].mxu0  ;;  %v15941_v46 = vld [vmem:[#allocation88_spill] sm:$0xff] }
 0x4d5   :  { %v6392_v51 = vsel %vm7798_vm11, 0, %v7797_v23  ;;  %v6462_v20 = vsel %vm6460_vm6, %v6450_v8, 2102212464  ;;  %v6461_v0 = vsel %vm6457_vm3, %v6441_v59, %v6444_v63  ;;  %v6465_v54 = vsel %vm6457_vm3, %v6444_v63, %v6447_v52  ;;  %15934 = vst [vmem:[#allocation35_spill] sm:$0xff] %v13634_v40  ;;  %v13636_v59 = vpop.f32.mrb[89].mxu1 }
 0x4d6   :  { %v13624_v12 = vpop.eup %9245  ;;  %v6393_v16 = vsub.s32 32, %v6392_v51  ;;  %v6397_v49 = vsub.s32 4294967266, %v6392_v51  ;;  %v6463_v31 = vsel %vm6459_vm5, %v6447_v52, %v6462_v20  ;;  %v6466_v6 = vsel %vm6460_vm6, %v6453_v28, 920167782  ;;  %15935 = vst [vmem:[#allocation23_spill] sm:$0xff] %v13636_v59 }
 0x4d7   :  { %v9248_v53 = vpop.eup %9247  ;;  %v6469_v25 = vsel %vm6457_vm3, %v6447_v52, %v6450_v8  ;;  %v6470_v44 = vsel %vm6460_vm6, %v6456_v18, 1326507024  ;;  %v6467_v23 = vsel %vm6459_vm5, %v6450_v8, %v6466_v6  ;;  %v5797_v52 = vxor.u32 2147483648, %v15936_v14  ;;  %v15937_v18 = vld [vmem:[#allocation75_spill] sm:$0xff] }
 0x4d8   :  { %v6395_v48 = vshrl.u32 %v6377_v60, %v6393_v16  ;;  %v6398_v45 = vadd.s32 127, %v6397_v49  ;;  %v6471_v24 = vsel %vm6459_vm5, %v6453_v28, %v6470_v44  ;;  %v6468_v63 = vsel %vm6458_vm1, %v6465_v54, %v6467_v23  ;;  %v13654_v54 = vpop.f32.mrb[54].mxu0 }
 0x4d9   :  { %v6472_v20 = vsel %vm6458_vm1, %v6469_v25, %v6471_v24  ;;  %v7648_v9 = vmul.f32 %v9248_v53, %v5904_v32  ;;  %vm5789_vm10 = vweird.f32 %v15937_v18  ;;  %v6394_v16 = vshll.u32 %v13590_v62, %v6392_v51  ;;  %v15938_v32 = vld [vmem:[#allocation79_spill] sm:$0xff]  ;;  %15939 = vst [vmem:[#allocation60_spill] sm:$0xff] %v13654_v54 }
 0x4da   :  { %v6399_v60 = vshll.u32 %v6398_v45, 23  ;;  %v13644_v49 = vmul.u32.u64.low %v13606_v34, %v6472_v20  ;;  %v13645_v8 = vmul.u32.u64.high %v13606_v34, %v6472_v20, %v13644_v49  ;;  %v6464_v28 = vsel %vm6458_vm1, %v6461_v0, %v6463_v31  ;;  %v15942_v31 = vld [vmem:[#allocation121_spill] sm:$0xff] }
 0x4db   :  { %v13649_v6 = vmul.u32.u64.low %v13606_v34, %v6468_v63  ;;  %v13650_v44 = vmul.u32.u64.high %v13606_v34, %v6468_v63, %v13649_v6  ;;  %7680 = vst [vmem:[#allocation2 + $0x78] sm:$0xff] %v7648_v9  ;;  %vm5793_vm0 = vcmp.eq.s32.totalorder %v15938_v32, 0  ;;  %v6396_v53 = vor.u32 %v6395_v48, %v6394_v16  ;;  %v13667_v45 = vld [vmem:[%s14808_s3 + $0x1] ss:$0 sm:$0xff]  ;;  %v15943_v48 = vld [vmem:[#allocation122_spill] sm:$0xff]  ;;  %v15945_v16 = vld [vmem:[#allocation120_spill] sm:$0xff] }
 0x4dc   :  { %v6400_v25 = vor.u32 4788187, %v6399_v60  ;;  %vm5796_vm4 = vcmp.eq.s32.totalorder %v15938_v32, 2  ;;  %9249 = vpow2.f32 %v7597_v19  ;;  %vm6323_vm8 = vcmp.lt.s32.totalorder %v13393_v26, 0  ;;  %v13684_v20 = vld [vmem:[%s14808_s3] ss:$0 sm:$0xff] }
 0x4dd   :  { %v15940_v62 = vxor.u32 2147483648, %v15932_v5  ;;  %v5798_v51 = vsel %vm5796_vm4, %v5797_v52, %v15932_v5  ;;  %v8539_v9 = vadd.f32 %v15942_v31, %v15941_v46  ;;  %v8575_v23 = vadd.f32 %v13667_v45, %v15943_v48 }
 0x4de   :  { %v15944_v19 = vxor.u32 2147483648, %v13586_v58  ;;  %vm6482_vm14 = vc.u32 %v13645_v8, %v13649_v6  ;;  %vm5792_vm15 = vcmp.lt.s32.totalorder %v15938_v32, 2  ;;  %v6401_v5 = vand.u32 2147483647, %v6400_v25 }
 0x4df   :  { %v5795_v0 = vsel %vm5793_vm0, %v15936_v14, %v15940_v62  ;;  %v6480_v14 = vmul.u32 %v13606_v34, %v6464_v28  ;;  %v6483_v63 = vadd.s32 1, %v13650_v44  ;;  %v13687_v52 = vadd.f32 %v13684_v20, %v8539_v9  ;;  %v15946_v28 = vld [vmem:[#allocation86_spill] sm:$0xff]  ;;  %v15947_v62 = vld [vmem:[#allocation123_spill] sm:$0xff] }
 0x4e0   :  { %v6302_v24 = vsel %vm6219_vm7, %v15944_v19, %v13586_v58  ;;  %v4226_v58 = vadd.f32 %v8575_v23, %v15945_v16  ;;  %v6403_v60 = vcvt.s32.f32 %v6396_v53  ;;  %v5799_v34 = vsel %vm5792_vm15, %v5795_v0, %v5798_v51 }
 0x4e1   :  { %v6106_v49 = vxor.u32 2147483648, %v13622_v50  ;;  %v13693_v32 = vadd.f32 %v15947_v62, %v15946_v28  ;;  %v15949_v25 = vand.u32 2147483647, %v13393_v26  ;;  %v6484_v31 = vsel %vm6482_vm14, %v6483_v63, %v13650_v44 }
 0x4e2   :  { %v15160_v9 = vand.u32 2147483647, %v13687_v52  ;;  %v6532_v48 = vand.u32 2139095040, %v13687_v52  ;;  %v6109_v53 = vxor.u32 2147483648, %v13595_v30  ;;  %vm6101_vm13 = vweird.f32 %v12944_v41 }
 0x4e3   :  { %15948 = vst [vmem:[#allocation30_spill] sm:$0xff] %v13693_v32  ;;  %vm13697_vm7 = vcmp.le.f32.partialorder %v15949_v25, 0.7853982  ;;  %9251 = vsinq.f32 %v13559_v15  ;;  %v15952_v0 = vsel %vm13550_vm9, 0, %v13571_v56  ;;  %v6407_v23 = vsub.s32 4, %v13573_v7 }
 0x4e4   :  { %v6310_v51 = vadd.s32 3, %v15952_v0  ;;  %v6485_v19 = vadd.s32 %v6484_v31, %v6480_v14  ;;  %v6305_v44 = vsel %vm13550_vm9, %v13245_v47, %v6302_v24  ;;  %v6404_v63 = vmul.f32 %v6403_v60, %v6401_v5  ;;  %v15953_v60 = vld [vmem:[#allocation124_spill] sm:$0xff] }
 0x4e5   :  { %v5800_v16 = vsel %vm5789_vm10, nan, %v5799_v34  ;;  %v6533_v28 = vshrl.u32 %v6532_v48, 23  ;;  %v6536_v15 = vand.u32 8388607, %v15160_v9  ;;  %vm6105_vm2 = vcmp.eq.s32.totalorder %v13447_v22, 0 }
 0x4e6   :  { %v6486_v62 = vadd.s32 536870912, %v6485_v19  ;;  %vm6108_vm12 = vcmp.eq.s32.totalorder %v13447_v22, 2  ;;  %v6107_v14 = vsel %vm6105_vm2, %v13595_v30, %v6106_v49  ;;  %v7603_v3 = vmul.f32 1.442695, %v4226_v58  ;;  %v9250_v24 = vpop.eup %9249  ;;  %v15954_v49 = vld [vmem:[#allocation117_spill] sm:$0xff] }
 0x4e7   :  { %v7803_v56 = vadd.s32 4294967169, %v6533_v28  ;;  %v6110_v25 = vsel %vm6108_vm12, %v6109_v53, %v13622_v50  ;;  %9253 = vcosq.f32 %v6305_v44  ;;  %v13726_v18 = vsel %vm6323_vm8, %v6407_v23, %v13573_v7 }
 0x4e8   :  { %v13728_v5 = vshrl.u32 %v6486_v62, 30  ;;  %v8576_v34 = vadd.f32 %v13667_v45, %v15953_v60  ;;  %v6405_v31 = vxor.u32 2147483648, %v6404_v63  ;;  %v7647_v48 = vmul.f32 %v9250_v24, %v5800_v16 }
 0x4e9   :  { %v6539_v0 = vadd.s32 1, %v7803_v56  ;;  %vm6104_vm9 = vcmp.lt.s32.totalorder %v13447_v22, 2  ;;  %v6537_v50 = vor.u32 8388608, %v6536_v15  ;;  %v13737_v28 = vand.u32 3, %v6310_v51 }
 0x4ea   :  { %v6488_v30 = vshll.u32 %v13728_v5, 30  ;;  %v6111_v58 = vsel %vm6104_vm9, %v6107_v14, %v6110_v25  ;;  %v13735_v53 = vadd.f32 %v8576_v34, %v15954_v49  ;;  %7679 = vst [vmem:[#allocation2 + $0x70] sm:$0xff] %v7647_v48  ;;  %9255 = vpow2.f32 %v7603_v3 }
 0x4eb   :  { %vm6540_vm3 = vcmp.gt.s32.totalorder %v6539_v0, 0  ;;  %v6002_v7 = vxor.u32 2147483648, %v13487_v11  ;;  %9257 = vsinq.f32 %v6305_v44  ;;  %v13747_v62 = vsel %vm6323_vm8, %v6405_v31, %v6404_v63 }
 0x4ec   :  { %v13743_v22 = vsub.s32 %v6485_v19, %v6488_v30  ;;  %v6541_v16 = vsel %vm6540_vm3, %v6539_v0, 0  ;;  %v6481_v51 = vadd.s32 %v13649_v6, %v13645_v8  ;;  %v6112_v56 = vsel %vm6101_vm13, nan, %v6111_v58 }
 0x4ed   :  { %v6543_v15 = vand.u32 31, %v6541_v16  ;;  %v13753_v14 = vpop.eup %9251  ;;  %v13756_v25 = vshll.u32 %v6537_v50, 8  ;;  %vm6001_vm11 = vcmp.eq.s32.totalorder %v13439_v42, 0  ;;  %v6005_v19 = vxor.u32 2147483648, %v13343_v61 }
 0x4ee   :  { %v6491_v44 = vsub.s32 0, %v13743_v22  ;;  %v6542_v3 = vshrl.u32 %v6541_v16, 5  ;;  %v13762_v8 = vsel %vm6001_vm11, %v13343_v61, %v6002_v7  ;;  %vm6004_vm6 = vcmp.eq.s32.totalorder %v13439_v42, 2 }
 0x4ef   :  { %v6544_v63 = vsub.s32 32, %v6543_v15  ;;  %v6546_v24 = vshll.u32 %v15632_v43, %v6543_v15  ;;  %v6549_v6 = vshll.u32 %v15639_v4, %v6543_v15  ;;  %v6552_v60 = vshll.u32 %v15641_v39, %v6543_v15 }
 0x4f0   :  { %v7800_v41 = vmin.u32 %v6491_v44, %v13743_v22  ;;  %v6555_v34 = vshll.u32 %v15642_v35, %v6543_v15  ;;  %v6558_v30 = vshll.u32 %v15653_v1, %v6543_v15  ;;  %vm6561_vm1 = vcmp.lt.s32.totalorder %v6542_v3, 1 }
 0x4f1   :  { %v6547_v31 = vshrl.u32 %v15639_v4, %v6544_v63  ;;  %v6550_v48 = vshrl.u32 %v15641_v39, %v6544_v63  ;;  %v6553_v0 = vshrl.u32 %v15642_v35, %v6544_v63  ;;  %v13773_v61 = vpop.eup %9253  ;;  %v6545_v58 = vshrl.u32 %v15632_v43, %v6544_v63 }
 0x4f2   :  { %v6493_v50 = vclz %v7800_v41  ;;  %v6556_v49 = vshrl.u32 %v15653_v1, %v6544_v63  ;;  %v6559_v7 = vshrl.u32 %v15644_v29, %v6544_v63  ;;  %vm6563_vm5 = vcmp.lt.s32.totalorder %v6542_v3, 3  ;;  %v13778_v41 = vpop.f32.mrb[90].mxu1 }
 0x4f3   :  { %v6548_v16 = vor.u32 %v6547_v31, %v6546_v24  ;;  %v6551_v44 = vor.u32 %v6550_v48, %v6549_v6  ;;  %v6554_v9 = vor.u32 %v6553_v0, %v6552_v60  ;;  %vm6564_vm10 = vcmp.lt.s32.totalorder %v6542_v3, 4  ;;  %v13782_v6 = vpop.f32.mrb[55].mxu0  ;;  %v13786_v0 = vpop.f32.mrb[91].mxu1 }
 0x4f4   :  { %v7801_v23 = vadd.s32 4294967294, %v6493_v50  ;;  %v6557_v54 = vor.u32 %v6556_v49, %v6555_v34  ;;  %v6560_v59 = vor.u32 %v6559_v7, %v6558_v30  ;;  %v9256_v40 = vpop.eup %9255  ;;  %vm6562_vm4 = vcmp.lt.s32.totalorder %v6542_v3, 2 }
 0x4f5   :  { %v6565_v15 = vsel %vm6561_vm1, %v6545_v58, %v6548_v16  ;;  %v6569_v55 = vsel %vm6561_vm1, %v6548_v16, %v6551_v44  ;;  %v6573_v32 = vsel %vm6561_vm1, %v6551_v44, %v6554_v9  ;;  %v13780_v37 = vpop.eup %9257  ;;  %v6566_v10 = vsel %vm6564_vm10, %v6554_v9, 2102212464 }
 0x4f6   :  { %vm7802_vm0 = vcmp.lt.s32.totalorder %v7801_v23, 0  ;;  %v6570_v63 = vsel %vm6564_vm10, %v6557_v54, 920167782  ;;  %v7650_v24 = vmul.f32 %v9256_v40, %v6112_v56  ;;  %v6567_v34 = vsel %vm6563_vm5, %v6551_v44, %v6566_v10 }
 0x4f7   :  { %v6496_v60 = vsel %vm7802_vm0, 0, %v7801_v23  ;;  %v6571_v31 = vsel %vm6563_vm5, %v6554_v9, %v6570_v63  ;;  %v6574_v48 = vsel %vm6564_vm10, %v6560_v59, 1326507024  ;;  %v7601_v58 = vmul.f32 1.442695, %v13735_v53 }
 0x4f8   :  { %v6497_v30 = vsub.s32 32, %v6496_v60  ;;  %v6501_v50 = vsub.s32 4294967266, %v6496_v60  ;;  %7682 = vst [vmem:[#allocation2 + $0x88] sm:$0xff] %v7650_v24  ;;  %vm6427_vm8 = vcmp.lt.s32.totalorder %v13538_v17, 0  ;;  %v6498_v40 = vshll.u32 %v13743_v22, %v6496_v60 }
 0x4f9   :  { %v6572_v56 = vsel %vm6562_vm4, %v6569_v55, %v6571_v31  ;;  %v6575_v23 = vsel %vm6563_vm5, %v6557_v54, %v6574_v48  ;;  %v6006_v10 = vsel %vm6004_vm6, %v6005_v19, %v13487_v11  ;;  %vm5997_vm14 = vweird.f32 %v12781_v57  ;;  %v15958_v19 = vld [vmem:[#allocation93_spill] sm:$0xff] }
 0x4fa   :  { %v6499_v59 = vshrl.u32 %v6481_v51, %v6497_v30  ;;  %v6502_v9 = vadd.s32 127, %v6501_v50  ;;  %v6568_v49 = vsel %vm6562_vm4, %v6565_v15, %v6567_v34  ;;  %v6576_v7 = vsel %vm6562_vm4, %v6573_v32, %v6575_v23  ;;  %v15959_v32 = vld [vmem:[#allocation63_spill] sm:$0xff] }
 0x4fb   :  { %v13797_v16 = vmul.u32.u64.low %v13756_v25, %v6576_v7  ;;  %v13798_v53 = vmul.u32.u64.high %v13756_v25, %v6576_v7, %v13797_v16  ;;  %v13801_v44 = vmul.u32.u64.low %v13756_v25, %v6572_v56  ;;  %v13802_v22 = vmul.u32.u64.high %v13756_v25, %v6572_v56, %v13801_v44 }
 0x4fc   :  { %v15955_v55 = vand.u32 2147483647, %v13538_v17  ;;  %v6500_v11 = vor.u32 %v6499_v59, %v6498_v40  ;;  %v6503_v51 = vshll.u32 %v6502_v9, 23  ;;  %9259 = vpow2.f32 %v7601_v58  ;;  %v15962_v16 = vld [vmem:[#allocation94_spill] sm:$0xff] }
 0x4fd   :  { %v8541_v3 = vadd.f32 %v15959_v32, %v15958_v19  ;;  %v6409_v15 = vsel %vm13697_vm7, %v13393_v26, %v13747_v62  ;;  %v15960_v63 = vsel %vm13697_vm7, 0, %v13726_v18  ;;  %vm6000_vm13 = vcmp.lt.s32.totalorder %v13439_v42, 2  ;;  %v15961_v62 = vld [vmem:[#allocation125_spill] sm:$0xff] }
 0x4fe   :  { %vm13807_vm15 = vcmp.le.f32.partialorder %v15955_v55, 0.7853982  ;;  %v6414_v24 = vadd.s32 3, %v15960_v63  ;;  %v8577_v60 = vadd.f32 %v13667_v45, %v13202_v2  ;;  %v6504_v34 = vor.u32 4788187, %v6503_v51 }
 0x4ff   :  { %v6511_v31 = vsub.s32 4, %v13728_v5  ;;  %v6584_v48 = vmul.u32 %v13756_v25, %v6568_v49  ;;  %v13827_v30 = vadd.f32 %v13684_v20, %v8541_v3  ;;  %vm6586_vm2 = vc.u32 %v13798_v53, %v13801_v44  ;;  %v15964_v3 = vld [vmem:[#allocation12_spill] sm:$0xff] }
 0x500   :  { %v6587_v46 = vadd.s32 1, %v13802_v22  ;;  %v6007_v18 = vsel %vm6000_vm13, %v13762_v8, %v6006_v10  ;;  %v4228_v42 = vadd.f32 %v8577_v60, %v15961_v62  ;;  %v6505_v50 = vand.u32 2147483647, %v6504_v34 }
 0x501   :  { %v6507_v58 = vcvt.s32.f32 %v6500_v11  ;;  %v15161_v2 = vand.u32 2147483647, %v13827_v30  ;;  %v6636_v40 = vand.u32 2139095040, %v13827_v30  ;;  %9261 = vcosq.f32 %v6409_v15 }
 0x502   :  { %v6588_v25 = vsel %vm6586_vm2, %v6587_v46, %v13802_v22  ;;  %v6314_v56 = vxor.u32 2147483648, %v13780_v37  ;;  %v6317_v23 = vxor.u32 2147483648, %v13773_v61  ;;  %vm6309_vm7 = vweird.f32 %v13245_v47  ;;  %v15963_v22 = vld [vmem:[#allocation14_spill] sm:$0xff] }
 0x503   :  { %v6508_v59 = vmul.f32 %v6507_v58, %v6505_v50  ;;  %v6512_v8 = vsel %vm6427_vm8, %v6511_v31, %v13728_v5  ;;  %v6589_v10 = vadd.s32 %v6588_v25, %v6584_v48  ;;  %v6637_v9 = vshrl.u32 %v6636_v40, 23  ;;  %v15965_v50 = vld [vmem:[#allocation46_spill] sm:$0xff] }
 0x504   :  { %v6008_v49 = vsel %vm5997_vm14, nan, %v6007_v18  ;;  %v6640_v7 = vand.u32 8388607, %v15161_v2  ;;  %vm6313_vm12 = vcmp.eq.s32.totalorder %v13737_v28, 0  ;;  %v13850_v55 = vadd.f32 %v15963_v22, %v15962_v16 }
 0x505   :  { %v6509_v11 = vxor.u32 2147483648, %v6508_v59  ;;  %v6590_v51 = vadd.s32 536870912, %v6589_v10  ;;  %v7807_v19 = vadd.s32 4294967169, %v6637_v9  ;;  %vm6316_vm9 = vcmp.eq.s32.totalorder %v13737_v28, 2  ;;  %v13888_v9 = vpop.f32.mrb[56].mxu0 }
 0x506   :  { %v6514_v5 = vsel %vm13807_vm15, 0, %v6512_v8  ;;  %v6315_v57 = vsel %vm6313_vm12, %v13773_v61, %v6314_v56  ;;  %v6318_v32 = vsel %vm6316_vm9, %v6317_v23, %v13780_v37  ;;  %v8578_v63 = vadd.f32 %v13667_v45, %v15964_v3  ;;  %v9260_v60 = vpop.eup %9259 }
 0x507   :  { %v6510_v34 = vsel %vm6427_vm8, %v6509_v11, %v6508_v59  ;;  %v13861_v31 = vshrl.u32 %v6590_v51, 30  ;;  %v6643_v48 = vadd.s32 1, %v7807_v19  ;;  %v7607_v46 = vmul.f32 1.442695, %v4228_v42 }
 0x508   :  { %v7649_v18 = vmul.f32 %v9260_v60, %v6008_v49  ;;  %v6641_v62 = vor.u32 8388608, %v6640_v7  ;;  %vm6312_vm3 = vcmp.lt.s32.totalorder %v13737_v28, 2  ;;  %v13865_v58 = vadd.f32 %v8578_v63, %v15965_v50 }
 0x509   :  { %v6513_v37 = vsel %vm13807_vm15, %v13538_v17, %v6510_v34  ;;  %v6592_v61 = vshll.u32 %v13861_v31, 30  ;;  %vm6644_vm11 = vcmp.gt.s32.totalorder %v6643_v48, 0  ;;  %v6319_v40 = vsel %vm6312_vm3, %v6315_v57, %v6318_v32 }
 0x50a   :  { %9263 = vsinq.f32 %v6409_v15  ;;  %v13871_v25 = vand.u32 3, %v6414_v24  ;;  %v13873_v56 = vadd.s32 3, %v6514_v5  ;;  %7681 = vst [vmem:[#allocation2 + $0x80] sm:$0xff] %v7649_v18  ;;  %v6645_v42 = vsel %vm6644_vm11, %v6643_v48, 0 }
 0x50b   :  { %v13877_v28 = vadd.s32 %v13801_v44, %v13798_v53  ;;  %v13879_v23 = vsub.s32 %v6589_v10, %v6592_v61  ;;  %v6647_v59 = vand.u32 31, %v6645_v42  ;;  %9265 = vpow2.f32 %v7607_v46  ;;  %v13881_v54 = vpop.eup %9261 }
 0x50c   :  { %9267 = vcosq.f32 %v6513_v37  ;;  %v13884_v15 = vshll.u32 %v6641_v62, 8  ;;  %v6320_v24 = vsel %vm6309_vm7, nan, %v6319_v40  ;;  %v6646_v49 = vshrl.u32 %v6645_v42, 5 }
 0x50d   :  { %9269 = vsinq.f32 %v6513_v37  ;;  %v6595_v53 = vsub.s32 0, %v13879_v23  ;;  %v6648_v44 = vsub.s32 32, %v6647_v59  ;;  %v6650_v7 = vshll.u32 %v15632_v43, %v6647_v59 }
 0x50e   :  { %v6653_v16 = vshll.u32 %v15639_v4, %v6647_v59  ;;  %v6656_v22 = vshll.u32 %v15641_v39, %v6647_v59  ;;  %v6659_v51 = vshll.u32 %v15642_v35, %v6647_v59  ;;  %v6662_v19 = vshll.u32 %v15653_v1, %v6647_v59 }
 0x50f   :  { %v7804_v11 = vmin.u32 %v6595_v53, %v13879_v23  ;;  %v6651_v47 = vshrl.u32 %v15639_v4, %v6648_v44  ;;  %v6654_v5 = vshrl.u32 %v15641_v39, %v6648_v44  ;;  %v6657_v57 = vshrl.u32 %v15642_v35, %v6648_v44 }
 0x510   :  { %v6660_v32 = vshrl.u32 %v15653_v1, %v6648_v44  ;;  %v6663_v3 = vshrl.u32 %v15644_v29, %v6648_v44  ;;  %v6649_v60 = vshrl.u32 %v15632_v43, %v6648_v44  ;;  %vm6531_vm6 = vcmp.lt.s32.totalorder %v13687_v52, 0  ;;  %v13910_v44 = vpop.f32.mrb[92].mxu1 }
 0x511   :  { %v6597_v63 = vclz %v7804_v11  ;;  %v6652_v34 = vor.u32 %v6651_v47, %v6650_v7  ;;  %v6655_v46 = vor.u32 %v6654_v5, %v6653_v16  ;;  %v6658_v18 = vor.u32 %v6657_v57, %v6656_v22  ;;  %v13913_v11 = vpop.f32.mrb[57].mxu0  ;;  %v13915_v47 = vpop.f32.mrb[93].mxu1 }
 0x512   :  { %v6661_v62 = vor.u32 %v6660_v32, %v6659_v51  ;;  %v6664_v50 = vor.u32 %v6663_v3, %v6662_v19  ;;  %vm6665_vm1 = vcmp.lt.s32.totalorder %v6646_v49, 1  ;;  %vm6667_vm5 = vcmp.lt.s32.totalorder %v6646_v49, 3 }
 0x513   :  { %v7805_v37 = vadd.s32 4294967294, %v6597_v63  ;;  %vm6668_vm10 = vcmp.lt.s32.totalorder %v6646_v49, 4  ;;  %v6673_v42 = vsel %vm6665_vm1, %v6652_v34, %v6655_v46  ;;  %v6677_v53 = vsel %vm6665_vm1, %v6655_v46, %v6658_v18 }
 0x514   :  { %v13906_v61 = vpop.eup %9263  ;;  %v6670_v40 = vsel %vm6668_vm10, %v6658_v18, 2102212464  ;;  %v6674_v59 = vsel %vm6668_vm10, %v6661_v62, 920167782  ;;  %vm6666_vm4 = vcmp.lt.s32.totalorder %v6646_v49, 2  ;;  %v6669_v5 = vsel %vm6665_vm1, %v6649_v60, %v6652_v34 }
 0x515   :  { %v9266_v7 = vpop.eup %9265  ;;  %vm7806_vm0 = vcmp.lt.s32.totalorder %v7805_v37, 0  ;;  %v6675_v16 = vsel %vm6667_vm5, %v6658_v18, %v6674_v59  ;;  %v6678_v22 = vsel %vm6668_vm10, %v6664_v50, 1326507024  ;;  %v15966_v63 = vand.u32 2147483647, %v13687_v52 }
 0x516   :  { %v13917_v51 = vpop.eup %9267  ;;  %v6600_v19 = vsel %vm7806_vm0, 0, %v7805_v37  ;;  %v6676_v57 = vsel %vm6666_vm4, %v6673_v42, %v6675_v16  ;;  %v6679_v32 = vsel %vm6667_vm5, %v6661_v62, %v6678_v22  ;;  %v6671_v59 = vsel %vm6667_vm5, %v6655_v46, %v6670_v40  ;;  %v13939_v42 = vpop.f32.mrb[58].mxu0 }
 0x517   :  { %v9270_v3 = vpop.eup %9269  ;;  %vm13924_vm8 = vcmp.le.f32.partialorder %v15966_v63, 0.7853982  ;;  %v6601_v18 = vsub.s32 32, %v6600_v19  ;;  %v6605_v50 = vsub.s32 4294967266, %v6600_v19  ;;  %v6680_v48 = vsel %vm6666_vm4, %v6677_v53, %v6679_v32  ;;  %v15969_v53 = vld [vmem:[#allocation11_spill] sm:$0xff] }
 0x518   :  { %v13931_v37 = vmul.u32.u64.low %v13884_v15, %v6680_v48  ;;  %v13932_v60 = vmul.u32.u64.high %v13884_v15, %v6680_v48, %v13931_v37  ;;  %v13935_v34 = vmul.u32.u64.low %v13884_v15, %v6676_v57  ;;  %v13936_v62 = vmul.u32.u64.high %v13884_v15, %v6676_v57, %v13935_v34  ;;  %v15970_v48 = vld [vmem:[#allocation10_spill] sm:$0xff] }
 0x519   :  { %v6602_v16 = vshll.u32 %v13879_v23, %v6600_v19  ;;  %v6603_v22 = vshrl.u32 %v13877_v28, %v6601_v18  ;;  %v6606_v63 = vadd.s32 127, %v6605_v50  ;;  %v7652_v10 = vmul.f32 %v9266_v7, %v6320_v24 }
 0x51a   :  { %v6672_v46 = vsel %vm6666_vm4, %v6669_v5, %v6671_v59  ;;  %v7605_v40 = vmul.f32 1.442695, %v13865_v58  ;;  %v8543_v32 = vadd.f32 %v15970_v48, %v15969_v53  ;;  %v8579_v57 = vadd.f32 %v13667_v45, %v13354_v21  ;;  %v15974_v53 = vld [vmem:[#allocation95_spill] sm:$0xff] }
 0x51b   :  { %vm6205_vm14 = vweird.f32 %v13087_v38  ;;  %v6519_v37 = vand.u32 3, %v13873_v56  ;;  %v6604_v8 = vor.u32 %v6603_v22, %v6602_v16  ;;  %v6607_v23 = vshll.u32 %v6606_v63, 23  ;;  %7684 = vst [vmem:[#allocation2 + $0x98] sm:$0xff] %v7652_v10 }
 0x51c   :  { %vm6209_vm15 = vcmp.eq.s32.totalorder %v13593_v27, 0  ;;  %v15971_v28 = vsub.s32 4, %v13861_v31  ;;  %vm6690_vm13 = vc.u32 %v13932_v60, %v13935_v34  ;;  %v6691_v21 = vadd.s32 1, %v13936_v62 }
 0x51d   :  { %vm6212_vm2 = vcmp.eq.s32.totalorder %v13593_v27, 2  ;;  %v6608_v24 = vor.u32 4788187, %v6607_v23  ;;  %v6688_v56 = vmul.u32 %v13884_v15, %v6672_v46  ;;  %9271 = vpow2.f32 %v7605_v40 }
 0x51e   :  { %v6616_v58 = vsel %vm6531_vm6, %v15971_v28, %v13861_v31  ;;  %v13963_v10 = vadd.f32 %v13684_v20, %v8543_v32  ;;  %v6692_v49 = vsel %vm6690_vm13, %v6691_v21, %v13936_v62  ;;  %v15972_v7 = vxor.u32 2147483648, %v13753_v14 }
 0x51f   :  { %v15973_v19 = vxor.u32 2147483648, %v13624_v12  ;;  %v4230_v18 = vadd.f32 %v8579_v57, %v13566_v36  ;;  %v6609_v50 = vand.u32 2147483647, %v6608_v24  ;;  %v6611_v59 = vcvt.s32.f32 %v6604_v8 }
 0x520   :  { %v6211_v31 = vsel %vm6209_vm15, %v13624_v12, %v15972_v7  ;;  %v6693_v16 = vadd.s32 %v6692_v49, %v6688_v56  ;;  %v15162_v15 = vand.u32 2147483647, %v13963_v10  ;;  %v6618_v22 = vsel %vm13924_vm8, 0, %v6616_v58 }
 0x521   :  { %v6214_v5 = vsel %vm6212_vm2, %v15973_v19, %v13753_v14  ;;  %vm6208_vm7 = vcmp.lt.s32.totalorder %v13593_v27, 2  ;;  %v6740_v62 = vand.u32 2139095040, %v13963_v10  ;;  %v6522_v63 = vxor.u32 2147483648, %v9270_v3  ;;  %v15975_v19 = vld [vmem:[#allocation18_spill] sm:$0xff] }
 0x522   :  { %vm6517_vm12 = vweird.f32 %v13538_v17  ;;  %v6612_v46 = vmul.f32 %v6611_v59, %v6609_v50  ;;  %v6694_v12 = vadd.s32 536870912, %v6693_v16  ;;  %v6215_v14 = vsel %vm6208_vm7, %v6211_v31, %v6214_v5 }
 0x523   :  { %v6744_v36 = vand.u32 8388607, %v15162_v15  ;;  %v6741_v8 = vshrl.u32 %v6740_v62, 23  ;;  %vm6521_vm9 = vcmp.eq.s32.totalorder %v6519_v37, 0  ;;  %v6525_v40 = vxor.u32 2147483648, %v13917_v51 }
 0x524   :  { %v13984_v48 = vadd.f32 %v13363_v33, %v15974_v53  ;;  %v6613_v27 = vxor.u32 2147483648, %v6612_v46  ;;  %v6695_v32 = vshrl.u32 %v6694_v12, 30  ;;  %vm6524_vm3 = vcmp.eq.s32.totalorder %v6519_v37, 2 }
 0x525   :  { %v8580_v57 = vadd.f32 %v13667_v45, %v13365_v13  ;;  %v6216_v23 = vsel %vm6205_vm14, nan, %v6215_v14  ;;  %v7811_v28 = vadd.s32 4294967169, %v6741_v8  ;;  %v6523_v58 = vsel %vm6521_vm9, %v13917_v51, %v6522_v63 }
 0x526   :  { %v6526_v21 = vsel %vm6524_vm3, %v6525_v40, %v9270_v3  ;;  %v6614_v24 = vsel %vm6531_vm6, %v6613_v27, %v6612_v46  ;;  %v6696_v56 = vshll.u32 %v6695_v32, 30  ;;  %v6745_v49 = vor.u32 8388608, %v6744_v36  ;;  %v14019_v40 = vpop.f32.mrb[94].mxu1 }
 0x527   :  { %v7611_v33 = vmul.f32 1.442695, %v4230_v18  ;;  %v6719_v7 = vsub.s32 4, %v6695_v32  ;;  %v6747_v31 = vadd.s32 1, %v7811_v28  ;;  %vm6520_vm11 = vcmp.lt.s32.totalorder %v6519_v37, 2  ;;  %v9272_v50 = vpop.eup %9271 }
 0x528   :  { %v4229_v5 = vadd.f32 %v8580_v57, %v15975_v19  ;;  %v6617_v38 = vsel %vm13924_vm8, %v13687_v52, %v6614_v24  ;;  %vm6635_vm1 = vcmp.lt.s32.totalorder %v13827_v30, 0  ;;  %v13998_v13 = vsub.s32 %v6693_v16, %v6696_v56  ;;  %v14024_v57 = vpop.f32.mrb[59].mxu0 }
 0x529   :  { %v6527_v51 = vsel %vm6520_vm11, %v6523_v58, %v6526_v21  ;;  %v14000_v3 = vadd.s32 3, %v6618_v22  ;;  %v6689_v18 = vadd.s32 %v13935_v34, %v13932_v60  ;;  %v7651_v59 = vmul.f32 %v9272_v50, %v6216_v23  ;;  %v14026_v23 = vpop.f32.mrb[95].mxu1 }
 0x52a   :  { %vm6748_vm6 = vcmp.gt.s32.totalorder %v6747_v31, 0  ;;  %v6699_v37 = vsub.s32 0, %v13998_v13  ;;  %v14005_v63 = vshll.u32 %v6745_v49, 8  ;;  %9273 = vpow2.f32 %v7611_v33 }
 0x52b   :  { %v6749_v62 = vsel %vm6748_vm6, %v6747_v31, 0  ;;  %9275 = vcosq.f32 %v6617_v38  ;;  %v14009_v2 = vsel %vm6635_vm1, %v6719_v7, %v6695_v32  ;;  %7683 = vst [vmem:[#allocation2 + $0x90] sm:$0xff] %v7651_v59  ;;  %v6528_v22 = vsel %vm6517_vm12, nan, %v6527_v51  ;;  %v14042_v51 = vpop.f32.mrb[60].mxu0 }
 0x52c   :  { %v6751_v16 = vand.u32 31, %v6749_v62  ;;  %9277 = vsinq.f32 %v6617_v38  ;;  %v7808_v60 = vmin.u32 %v6699_v37, %v13998_v13  ;;  %v14014_v34 = vshrl.u32 %v6749_v62, 5 }
 0x52d   :  { %v6418_v46 = vxor.u32 2147483648, %v13906_v61  ;;  %v6421_v36 = vxor.u32 2147483648, %v13881_v54  ;;  %v7609_v8 = vmul.f32 1.442695, %v4229_v5  ;;  %v15976_v56 = vand.u32 2147483647, %v13827_v30 }
 0x52e   :  { %v6752_v12 = vsub.s32 32, %v6751_v16  ;;  %v6754_v14 = vshll.u32 %v15632_v43, %v6751_v16  ;;  %v6701_v53 = vclz %v7808_v60  ;;  %v6757_v27 = vshll.u32 %v15639_v4, %v6751_v16 }
 0x52f   :  { %v6760_v17 = vshll.u32 %v15641_v39, %v6751_v16  ;;  %v6763_v32 = vshll.u32 %v15642_v35, %v6751_v16  ;;  %v6766_v24 = vshll.u32 %v15653_v1, %v6751_v16  ;;  %vm14034_vm5 = vcmp.le.f32.partialorder %v15976_v56, 0.7853982 }
 0x530   :  { %v6755_v28 = vshrl.u32 %v15639_v4, %v6752_v12  ;;  %v6758_v58 = vshrl.u32 %v15641_v39, %v6752_v12  ;;  %v6761_v21 = vshrl.u32 %v15642_v35, %v6752_v12  ;;  %v7809_v33 = vadd.s32 4294967294, %v6701_v53 }
 0x531   :  { %v6764_v7 = vshrl.u32 %v15653_v1, %v6752_v12  ;;  %v6767_v31 = vshrl.u32 %v15644_v29, %v6752_v12  ;;  %vm6769_vm10 = vcmp.lt.s32.totalorder %v14014_v34, 1  ;;  %v6753_v19 = vshrl.u32 %v15632_v43, %v6752_v12 }
 0x532   :  { %v6756_v5 = vor.u32 %v6755_v28, %v6754_v14  ;;  %v6759_v50 = vor.u32 %v6758_v58, %v6757_v27  ;;  %v6762_v38 = vor.u32 %v6761_v21, %v6760_v17  ;;  %vm7810_vm0 = vcmp.lt.s32.totalorder %v7809_v33, 0 }
 0x533   :  { %v6765_v59 = vor.u32 %v6764_v7, %v6763_v32  ;;  %v6768_v37 = vor.u32 %v6767_v31, %v6766_v24  ;;  %vm6770_vm4 = vcmp.lt.s32.totalorder %v14014_v34, 2  ;;  %v6704_v62 = vsel %vm7810_vm0, 0, %v7809_v33 }
 0x534   :  { %vm6771_vm8 = vcmp.lt.s32.totalorder %v14014_v34, 3  ;;  %vm6772_vm14 = vcmp.lt.s32.totalorder %v14014_v34, 4  ;;  %v6773_v16 = vsel %vm6769_vm10, %v6753_v19, %v6756_v5  ;;  %v9274_v60 = vpop.eup %9273  ;;  %v6705_v12 = vsub.s32 32, %v6704_v62 }
 0x535   :  { %v6709_v14 = vsub.s32 4294967266, %v6704_v62  ;;  %v6774_v53 = vsel %vm6772_vm14, %v6762_v38, 2102212464  ;;  %v6777_v27 = vsel %vm6769_vm10, %v6756_v5, %v6759_v50  ;;  %v14051_v17 = vpop.eup %9275  ;;  %v6706_v32 = vshll.u32 %v13998_v13, %v6704_v62 }
 0x536   :  { %v6778_v28 = vsel %vm6772_vm14, %v6765_v59, 920167782  ;;  %v6781_v58 = vsel %vm6769_vm10, %v6759_v50, %v6762_v38  ;;  %v6782_v21 = vsel %vm6772_vm14, %v6768_v37, 1326507024  ;;  %v14056_v24 = vpop.eup %9277  ;;  %v6707_v56 = vshrl.u32 %v6689_v18, %v6705_v12 }
 0x537   :  { %v6710_v33 = vadd.s32 127, %v6709_v14  ;;  %v6779_v7 = vsel %vm6771_vm8, %v6762_v38, %v6778_v28  ;;  %v6783_v31 = vsel %vm6771_vm8, %v6765_v59, %v6782_v21  ;;  %v6775_v19 = vsel %vm6771_vm8, %v6759_v50, %v6774_v53  ;;  %v15980_v53 = vld [vmem:[#allocation48_spill] sm:$0xff] }
 0x538   :  { %v6780_v13 = vsel %vm6770_vm4, %v6777_v27, %v6779_v7  ;;  %v6784_v5 = vsel %vm6770_vm4, %v6781_v58, %v6783_v31  ;;  %v7654_v37 = vmul.f32 %v9274_v60, %v6528_v22  ;;  %v6708_v62 = vor.u32 %v6707_v56, %v6706_v32  ;;  %v15979_v60 = vld [vmem:[#allocation7_spill] sm:$0xff]  ;;  %v15981_v32 = vld [vmem:[#allocation61_spill] sm:$0xff]  ;;  %v15982_v7 = vld [vmem:[#allocation96_spill] sm:$0xff] }
 0x539   :  { %v6711_v15 = vshll.u32 %v6710_v33, 23  ;;  %v14069_v18 = vmul.u32.u64.low %v14005_v63, %v6784_v5  ;;  %v14070_v12 = vmul.u32.u64.high %v14005_v63, %v6784_v5, %v14069_v18  ;;  %v6722_v38 = vsel %vm14034_vm5, 0, %v14009_v2  ;;  %v15983_v31 = vld [vmem:[#allocation71_spill] sm:$0xff] }
 0x53a   :  { %v14076_v59 = vmul.u32.u64.low %v14005_v63, %v6780_v13  ;;  %v14077_v50 = vmul.u32.u64.high %v14005_v63, %v6780_v13, %v14076_v59  ;;  %7686 = vst [vmem:[#allocation2 + $0xa8] sm:$0xff] %v7654_v37  ;;  %vm6416_vm15 = vcmp.lt.s32.totalorder %v13871_v25, 2  ;;  %vm6417_vm13 = vcmp.eq.s32.totalorder %v13871_v25, 0  ;;  %v15984_v13 = vld [vmem:[#allocation68_spill] sm:$0xff] }
 0x53b   :  { %v6712_v14 = vor.u32 4788187, %v6711_v15  ;;  %vm6420_vm2 = vcmp.eq.s32.totalorder %v13871_v25, 2  ;;  %9279 = vpow2.f32 %v7609_v8  ;;  %v6776_v22 = vsel %vm6770_vm4, %v6773_v16, %v6775_v19 }
 0x53c   :  { %v6419_v2 = vsel %vm6417_vm13, %v13881_v54, %v6418_v46  ;;  %v8545_v27 = vadd.f32 %v15980_v53, %v15979_v60  ;;  %v8581_v28 = vadd.f32 %v13667_v45, %v15981_v32  ;;  %v6715_v15 = vcvt.s32.f32 %v6708_v62 }
 0x53d   :  { %v6713_v58 = vand.u32 2147483647, %v6712_v14  ;;  %vm6794_vm7 = vc.u32 %v14070_v12, %v14076_v59  ;;  %v6422_v34 = vsel %vm6420_vm2, %v6421_v36, %v13906_v61  ;;  %v6726_v8 = vadd.s32 3, %v6722_v38 }
 0x53e   :  { %v6795_v16 = vadd.s32 1, %v14077_v50  ;;  %v14099_v46 = vadd.f32 %v13684_v20, %v8545_v27  ;;  %v4232_v21 = vadd.f32 %v8581_v28, %v13850_v55  ;;  %v6792_v33 = vmul.u32 %v14005_v63, %v6776_v22 }
 0x53f   :  { %v6716_v56 = vmul.f32 %v6715_v15, %v6713_v58  ;;  %v14105_v19 = vadd.f32 %v15983_v31, %v15982_v7  ;;  %v8582_v5 = vadd.f32 %v13667_v45, %v15984_v13  ;;  %v6423_v61 = vsel %vm6416_vm15, %v6419_v2, %v6422_v34  ;;  %v15986_v31 = vld [vmem:[#allocation9_spill] sm:$0xff]  ;;  %v15987_v13 = vld [vmem:[#allocation126_spill] sm:$0xff] }
 0x540   :  { %v6796_v54 = vsel %vm6794_vm7, %v6795_v16, %v14077_v50  ;;  %v6841_v36 = vand.u32 2147483647, %v14099_v46  ;;  %v6844_v37 = vand.u32 2139095040, %v14099_v46  ;;  %vm6413_vm12 = vweird.f32 %v13393_v26  ;;  %v15985_v50 = vld [vmem:[#allocation30_spill] sm:$0xff] }
 0x541   :  { %v6623_v55 = vand.u32 3, %v14000_v3  ;;  %v6717_v63 = vxor.u32 2147483648, %v6716_v56  ;;  %v6797_v62 = vadd.s32 %v6796_v54, %v6792_v33  ;;  %vm6621_vm9 = vweird.f32 %v13687_v52 }
 0x542   :  { %v6845_v18 = vshrl.u32 %v6844_v37, 23  ;;  %v6848_v38 = vand.u32 8388607, %v6841_v36  ;;  %v4231_v14 = vadd.f32 %v8582_v5, %v15985_v50  ;;  %v14122_v22 = vand.u32 3, %v6726_v8  ;;  %v15988_v50 = vld [vmem:[#allocation101_spill] sm:$0xff] }
 0x543   :  { %v6718_v25 = vsel %vm6635_vm1, %v6717_v63, %v6716_v56  ;;  %v6798_v2 = vadd.s32 536870912, %v6797_v62  ;;  %v6424_v60 = vsel %vm6413_vm12, nan, %v6423_v61  ;;  %v7615_v53 = vmul.f32 1.442695, %v4232_v21  ;;  %v14134_v56 = vpop.f32.mrb[61].mxu0 }
 0x544   :  { %v6721_v26 = vsel %vm14034_vm5, %v13827_v30, %v6718_v25  ;;  %v7815_v3 = vadd.s32 4294967169, %v6845_v18  ;;  %v6626_v27 = vxor.u32 2147483648, %v14056_v24  ;;  %v6849_v58 = vor.u32 8388608, %v6848_v38 }
 0x545   :  { %v9280_v32 = vpop.eup %9279  ;;  %v14128_v28 = vshrl.u32 %v6798_v2, 30  ;;  %vm6625_vm3 = vcmp.eq.s32.totalorder %v6623_v55, 0  ;;  %v6629_v15 = vxor.u32 2147483648, %v14051_v17  ;;  %9281 = vsinq.f32 %v6721_v26 }
 0x546   :  { %v7653_v34 = vmul.f32 %v9280_v32, %v6424_v60  ;;  %v6851_v8 = vadd.s32 1, %v7815_v3  ;;  %vm6628_vm11 = vcmp.eq.s32.totalorder %v6623_v55, 2  ;;  %vm6624_vm1 = vcmp.lt.s32.totalorder %v6623_v55, 2 }
 0x547   :  { %v6800_v16 = vshll.u32 %v14128_v28, 30  ;;  %v6627_v49 = vsel %vm6625_vm3, %v14051_v17, %v6626_v27  ;;  %v6630_v21 = vsel %vm6628_vm11, %v6629_v15, %v14056_v24  ;;  %v7613_v7 = vmul.f32 1.442695, %v4231_v14 }
 0x548   :  { %7685 = vst [vmem:[#allocation2 + $0xa0] sm:$0xff] %v7653_v34  ;;  %vm6852_vm6 = vcmp.gt.s32.totalorder %v6851_v8, 0  ;;  %v6631_v33 = vsel %vm6624_vm1, %v6627_v49, %v6630_v21  ;;  %v8547_v5 = vadd.f32 %v15987_v13, %v15986_v31  ;;  %v14140_v54 = vadd.s32 %v14076_v59, %v14070_v12 }
 0x549   :  { %v14142_v61 = vsub.s32 %v6797_v62, %v6800_v16  ;;  %v6853_v37 = vsel %vm6852_vm6, %v6851_v8, 0  ;;  %9283 = vpow2.f32 %v7615_v53  ;;  %v6823_v17 = vsub.s32 4, %v14128_v28 }
 0x54a   :  { %9285 = vcosq.f32 %v6721_v26  ;;  %v6855_v24 = vand.u32 31, %v6853_v37  ;;  %v14145_v55 = vshll.u32 %v6849_v58, 8  ;;  %v6854_v18 = vshrl.u32 %v6853_v37, 5 }
 0x54b   :  { %v6803_v63 = vsub.s32 0, %v14142_v61  ;;  %v14150_v38 = vsel %vm6621_vm9, nan, %v6631_v33  ;;  %9287 = vpow2.f32 %v7613_v7  ;;  %v14154_v62 = vadd.f32 %v13684_v20, %v8547_v5 }
 0x54c   :  { %v6856_v12 = vsub.s32 32, %v6855_v24  ;;  %v6858_v59 = vshll.u32 %v15632_v43, %v6855_v24  ;;  %v14158_v14 = vadd.f32 %v13667_v45, %v15988_v50  ;;  %v6861_v2 = vshll.u32 %v15639_v4, %v6855_v24 }
 0x54d   :  { %v7812_v25 = vmin.u32 %v6803_v63, %v14142_v61  ;;  %v6864_v60 = vshll.u32 %v15641_v39, %v6855_v24  ;;  %v6867_v52 = vshll.u32 %v15642_v35, %v6855_v24  ;;  %vm6729_vm5 = vcmp.eq.s32.totalorder %v14122_v22, 0 }
 0x54e   :  { %v6859_v26 = vshrl.u32 %v15639_v4, %v6856_v12  ;;  %v6862_v3 = vshrl.u32 %v15641_v39, %v6856_v12  ;;  %v6865_v20 = vshrl.u32 %v15642_v35, %v6856_v12  ;;  %v6870_v53 = vshll.u32 %v15653_v1, %v6855_v24 }
 0x54f   :  { %v6805_v45 = vclz %v7812_v25  ;;  %v6857_v27 = vshrl.u32 %v15632_v43, %v6856_v12  ;;  %v6868_v32 = vshrl.u32 %v15653_v1, %v6856_v12  ;;  %v6871_v58 = vshrl.u32 %v15644_v29, %v6856_v12  ;;  %v9282_v15 = vpop.eup %9281 }
 0x550   :  { %v6860_v34 = vor.u32 %v6859_v26, %v6858_v59  ;;  %v6863_v8 = vor.u32 %v6862_v3, %v6861_v2  ;;  %v6866_v16 = vor.u32 %v6865_v20, %v6864_v60  ;;  %vm6873_vm10 = vcmp.lt.s32.totalorder %v6854_v18, 1 }
 0x551   :  { %vm6732_vm0 = vcmp.eq.s32.totalorder %v14122_v22, 2  ;;  %v7813_v49 = vadd.s32 4294967294, %v6805_v45  ;;  %v6869_v21 = vor.u32 %v6868_v32, %v6867_v52  ;;  %v6872_v33 = vor.u32 %v6871_v58, %v6870_v53 }
 0x552   :  { %vm6875_vm4 = vcmp.lt.s32.totalorder %v6854_v18, 3  ;;  %vm6728_vm8 = vcmp.lt.s32.totalorder %v14122_v22, 2  ;;  %vm6876_vm14 = vcmp.lt.s32.totalorder %v6854_v18, 4  ;;  %v6877_v7 = vsel %vm6873_vm10, %v6857_v27, %v6860_v34 }
 0x553   :  { %v6881_v31 = vsel %vm6873_vm10, %v6860_v34, %v6863_v8  ;;  %v6885_v13 = vsel %vm6873_vm10, %v6863_v8, %v6866_v16  ;;  %v9284_v5 = vpop.eup %9283  ;;  %vm7814_vm15 = vcmp.lt.s32.totalorder %v7813_v49, 0  ;;  %v6878_v37 = vsel %vm6876_vm14, %v6866_v16, 2102212464 }
 0x554   :  { %v6882_v24 = vsel %vm6876_vm14, %v6869_v21, 920167782  ;;  %v6730_v63 = vxor.u32 2147483648, %v9282_v15  ;;  %v9286_v12 = vpop.eup %9285  ;;  %v6808_v59 = vsel %vm7814_vm15, 0, %v7813_v49  ;;  %v6879_v50 = vsel %vm6875_vm4, %v6863_v8, %v6878_v37 }
 0x555   :  { %v6883_v25 = vsel %vm6875_vm4, %v6866_v16, %v6882_v24  ;;  %v6886_v2 = vsel %vm6876_vm14, %v6872_v33, 1326507024  ;;  %v9288_v60 = vpop.eup %9287  ;;  %v6809_v52 = vsub.s32 32, %v6808_v59  ;;  %v6810_v26 = vshll.u32 %v14142_v61, %v6808_v59  ;;  %v14181_v16 = vpop.f32.mrb[62].mxu0 }
 0x556   :  { %v6813_v3 = vsub.s32 4294967266, %v6808_v59  ;;  %vm6874_vm13 = vcmp.lt.s32.totalorder %v6854_v18, 2  ;;  %v6887_v45 = vsel %vm6875_vm4, %v6869_v21, %v6886_v2  ;;  %v6731_v27 = vsel %vm6729_vm5, %v9286_v12, %v6730_v63 }
 0x557   :  { %v6880_v20 = vsel %vm6874_vm13, %v6877_v7, %v6879_v50  ;;  %v6884_v53 = vsel %vm6874_vm13, %v6881_v31, %v6883_v25  ;;  %v6811_v32 = vshrl.u32 %v14140_v54, %v6809_v52  ;;  %v6888_v34 = vsel %vm6874_vm13, %v6885_v13, %v6887_v45  ;;  %v15991_v52 = vld [vmem:[#allocation23_spill] sm:$0xff] }
 0x558   :  { %v6814_v58 = vadd.s32 127, %v6813_v3  ;;  %v6733_v8 = vxor.u32 2147483648, %v9286_v12  ;;  %v14184_v49 = vmul.u32.u64.low %v14145_v55, %v6888_v34  ;;  %v14185_v33 = vmul.u32.u64.high %v14145_v55, %v6888_v34, %v14184_v49 }
 0x559   :  { %v14188_v61 = vmul.u32.u64.low %v14145_v55, %v6884_v53  ;;  %v14189_v7 = vmul.u32.u64.high %v14145_v55, %v6884_v53, %v14188_v61  ;;  %v6812_v18 = vor.u32 %v6811_v32, %v6810_v26  ;;  %v7655_v54 = vmul.f32 %v9288_v60, %v14150_v38 }
 0x55a   :  { %v6815_v21 = vshll.u32 %v6814_v58, 23  ;;  %v6734_v31 = vsel %vm6732_vm0, %v6733_v8, %v9282_v15  ;;  %vm6725_vm2 = vweird.f32 %v13827_v30  ;;  %vm6739_vm7 = vcmp.lt.s32.totalorder %v13963_v10, 0 }
 0x55b   :  { %v6735_v13 = vsel %vm6728_vm8, %v6731_v27, %v6734_v31  ;;  %v6948_v37 = vand.u32 2139095040, %v14154_v62  ;;  %v6824_v63 = vsel %vm6739_vm7, %v6823_v17, %v14128_v28  ;;  %v6896_v15 = vmul.u32 %v14145_v55, %v6880_v20  ;;  %7687 = vst [vmem:[#allocation2 + $0xb0] sm:$0xff] %v7655_v54  ;;  %v15989_v17 = vld [vmem:[#allocation17_spill] sm:$0xff]  ;;  %v15990_v55 = vld [vmem:[#allocation35_spill] sm:$0xff] }
 0x55c   :  { %v6816_v24 = vor.u32 4788187, %v6815_v21  ;;  %v6736_v12 = vsel %vm6725_vm2, nan, %v6735_v13  ;;  %vm6898_vm12 = vc.u32 %v14185_v33, %v14188_v61  ;;  %v6899_v30 = vadd.s32 1, %v14189_v7 }
 0x55d   :  { %v7656_v38 = vmul.f32 %v9284_v5, %v6736_v12  ;;  %v6945_v22 = vand.u32 2147483647, %v14154_v62  ;;  %v6819_v50 = vcvt.s32.f32 %v6812_v18  ;;  %v6949_v25 = vshrl.u32 %v6948_v37, 23  ;;  %v14220_v5 = vld [vmem:[%s14808_s3 + $0x1] ss:$0 sm:$0xff]  ;;  %v15996_v18 = vld [vmem:[#allocation60_spill] sm:$0xff] }
 0x55e   :  { %v6817_v59 = vand.u32 2147483647, %v6816_v24  ;;  %v14210_v2 = vadd.f32 %v14158_v14, %v14105_v19  ;;  %v6900_v28 = vsel %vm6898_vm12, %v6899_v30, %v14189_v7  ;;  %v14215_v60 = vadd.f32 %v15990_v55, %v15989_v17  ;;  %v15995_v7 = vld [vmem:[#allocation36_spill] sm:$0xff] }
 0x55f   :  { %7688 = vst [vmem:[#allocation2 + $0xb8] sm:$0xff] %v7656_v38  ;;  %v8584_v26 = vadd.f32 %v14220_v5, %v15991_v52  ;;  %v15992_v3 = vand.u32 2147483647, %v13963_v10  ;;  %v6901_v20 = vadd.s32 %v6900_v28, %v6896_v15  ;;  %v7819_v53 = vadd.s32 4294967169, %v6949_v25  ;;  %v14259_v28 = vld [vmem:[%s14808_s3] ss:$0 sm:$0xff] }
 0x560   :  { %v6820_v14 = vmul.f32 %v6819_v50, %v6817_v59  ;;  %v6952_v27 = vand.u32 8388607, %v6945_v22  ;;  %v8549_v21 = vadd.f32 %v15996_v18, %v15995_v7  ;;  %v14250_v38 = vadd.s32 %v14188_v61, %v14185_v33  ;;  %s9376_s3 = smov [#allocation2]  }
 0x561   :  { %vm14226_vm9 = vcmp.le.f32.partialorder %v15992_v3, 0.7853982  ;;  %v4233_v32 = vadd.f32 %v8584_v26, %v13984_v48  ;;  %v6902_v34 = vadd.s32 536870912, %v6901_v20  ;;  %v6955_v8 = vadd.s32 1, %v7819_v53  ;;  %s7702_s13 = sshll.u32 %s9376_s3, 4  ;;  %s7703_s13 = int_to_ptr.vmem [resolvable:$true] %s7702_s13 }
 0x562   :  { %v6826_v45 = vsel %vm14226_vm9, 0, %v6824_v63  ;;  %v6821_v58 = vxor.u32 2147483648, %v6820_v14  ;;  %v6953_v24 = vor.u32 8388608, %v6952_v27  ;;  %v14244_v63 = vpop.f32.mrb[63].mxu0  ;;  %v14262_v17 = vadd.f32 %v14259_v28, %v8549_v21  ;;  %s9345_s14 = scalar_lea.vmem %s7703_s13, 4096  ;;  %p9350_p1 = scmp.lt.s32.totalorder %s7703_s13, %s7703_s13 }
 0x563   :  { %v7617_v49 = vmul.f32 1.442695, %v4233_v32  ;;  %v6830_v54 = vadd.s32 3, %v6826_v45  ;;  %v14239_v13 = vshrl.u32 %v6902_v34, 30  ;;  %vm6956_vm3 = vcmp.gt.s32.totalorder %v6955_v8, 0  ;;  %p9346_p0 = scmp.ne.s32.totalorder %s7703_s13, %s9345_s14  ;;  %p9351_p2 = scmp.lt.s32.totalorder %s9345_s14, %s9345_s14 }
 0x564   :  { %v6822_v31 = vsel %vm6739_vm7, %v6821_v58, %v6820_v14  ;;  %v6957_v48 = vsel %vm6956_vm3, %v6955_v8, 0  ;;  %v14254_v25 = vshll.u32 %v6953_v24, 8  ;;  %vm6829_vm0 = vweird.f32 %v13963_v10 }
 0x565   :  { %v6825_v37 = vsel %vm14226_vm9, %v13963_v10, %v6822_v31  ;;  %v6904_v15 = vshll.u32 %v14239_v13, 30  ;;  %v6959_v12 = vand.u32 31, %v6957_v48  ;;  %9289 = vpow2.f32 %v7617_v49  ;;  %p9352_p3 = por %p9351_p2, %p9350_p1 }
 0x566   :  { %9291 = vsinq.f32 %v6825_v37  ;;  %v14247_v30 = vand.u32 3, %v6830_v54  ;;  %v6958_v52 = vshrl.u32 %v6957_v48, 5  ;;  %vm6843_vm4 = vcmp.lt.s32.totalorder %v14099_v46, 0 }
 0x567   :  { %v14252_v59 = vsub.s32 %v6901_v20, %v6904_v15  ;;  %9293 = vcosq.f32 %v6825_v37  ;;  %v6960_v50 = vsub.s32 32, %v6959_v12  ;;  %v6962_v33 = vshll.u32 %v15632_v43, %v6959_v12  ;;  %p9353_p4 = pnand %p9352_p3, %p9346_p0 }
 0x568   :  { %v6965_v61 = vshll.u32 %v15639_v4, %v6959_v12  ;;  %v6968_v19 = vshll.u32 %v15641_v39, %v6959_v12  ;;  %v6971_v53 = vshll.u32 %v15642_v35, %v6959_v12  ;;  %v6974_v27 = vshll.u32 %v15653_v1, %v6959_v12 }
 0x569   :  { %v6907_v55 = vsub.s32 0, %v14252_v59  ;;  %v6963_v26 = vshrl.u32 %v15639_v4, %v6960_v50  ;;  %v6966_v3 = vshrl.u32 %v15641_v39, %v6960_v50  ;;  %v6969_v14 = vshrl.u32 %v15642_v35, %v6960_v50 }
 0x56a   :  { %v6972_v45 = vshrl.u32 %v15653_v1, %v6960_v50  ;;  %v6975_v8 = vshrl.u32 %v15644_v29, %v6960_v50  ;;  %vm6977_vm11 = vcmp.lt.s32.totalorder %v6958_v52, 1  ;;  %vm6980_vm1 = vcmp.lt.s32.totalorder %v6958_v52, 4 }
 0x56b   :  { %v7816_v20 = vmin.u32 %v6907_v55, %v14252_v59  ;;  %v6964_v32 = vor.u32 %v6963_v26, %v6962_v33  ;;  %v6967_v58 = vor.u32 %v6966_v3, %v6965_v61  ;;  %v6970_v34 = vor.u32 %v6969_v14, %v6968_v19 }
 0x56c   :  { %v6973_v7 = vor.u32 %v6972_v45, %v6971_v53  ;;  %vm6833_vm6 = vcmp.eq.s32.totalorder %v14247_v30, 0  ;;  %v6961_v18 = vshrl.u32 %v15632_v43, %v6960_v50  ;;  %v6976_v21 = vor.u32 %v6975_v8, %v6974_v27 }
 0x56d   :  { %v6909_v49 = vclz %v7816_v20  ;;  %v6982_v31 = vsel %vm6980_vm1, %v6970_v34, 2102212464  ;;  %v6985_v54 = vsel %vm6977_vm11, %v6964_v32, %v6967_v58  ;;  %vm6979_vm5 = vcmp.lt.s32.totalorder %v6958_v52, 3 }
 0x56e   :  { %v6986_v24 = vsel %vm6980_vm1, %v6973_v7, 920167782  ;;  %v6989_v48 = vsel %vm6977_vm11, %v6967_v58, %v6970_v34  ;;  %vm6832_vm10 = vcmp.lt.s32.totalorder %v14247_v30, 2  ;;  %vm6978_vm8 = vcmp.lt.s32.totalorder %v6958_v52, 2 }
 0x56f   :  { %v7817_v37 = vadd.s32 4294967294, %v6909_v49  ;;  %v9290_v15 = vpop.eup %9289  ;;  %v6981_v12 = vsel %vm6977_vm11, %v6961_v18, %v6964_v32  ;;  %v6987_v50 = vsel %vm6979_vm5, %v6970_v34, %v6986_v24  ;;  %v6990_v55 = vsel %vm6980_vm1, %v6976_v21, 1326507024 }
 0x570   :  { %v9292_v33 = vpop.eup %9291  ;;  %v6983_v61 = vsel %vm6979_vm5, %v6967_v58, %v6982_v31  ;;  %v6988_v26 = vsel %vm6978_vm8, %v6985_v54, %v6987_v50  ;;  %v6991_v3 = vsel %vm6979_vm5, %v6973_v7, %v6990_v55  ;;  %vm14296_vm15 = vcmp.le.f32.partialorder %v6841_v36, 0.7853982 }
 0x571   :  { %vm7818_vm14 = vcmp.lt.s32.totalorder %v7817_v37, 0  ;;  %v9294_v19 = vpop.eup %9293  ;;  %v6992_v20 = vsel %vm6978_vm8, %v6989_v48, %v6991_v3  ;;  %v14290_v53 = vmul.u32.u64.low %v14254_v25, %v6988_v26  ;;  %v14291_v45 = vmul.u32.u64.high %v14254_v25, %v6988_v26, %v14290_v53 }
 0x572   :  { %v6912_v14 = vsel %vm7818_vm14, 0, %v7817_v37  ;;  %v6927_v34 = vsub.s32 4, %v14239_v13  ;;  %vm6836_vm13 = vcmp.eq.s32.totalorder %v14247_v30, 2  ;;  %v6984_v8 = vsel %vm6978_vm8, %v6981_v12, %v6983_v61 }
 0x573   :  { %v6913_v32 = vsub.s32 32, %v6912_v14  ;;  %v6917_v58 = vsub.s32 4294967266, %v6912_v14  ;;  %v14304_v49 = vmul.u32.u64.low %v14254_v25, %v6992_v20  ;;  %v14305_v7 = vmul.u32.u64.high %v14254_v25, %v6992_v20, %v14304_v49 }
 0x574   :  { %v6834_v18 = vxor.u32 2147483648, %v9292_v33  ;;  %v6914_v21 = vshll.u32 %v14252_v59, %v6912_v14  ;;  %v6837_v54 = vxor.u32 2147483648, %v9294_v19  ;;  %v7003_v37 = vadd.s32 1, %v14291_v45 }
 0x575   :  { %v6915_v36 = vshrl.u32 %v14250_v38, %v6913_v32  ;;  %v6918_v31 = vadd.s32 127, %v6917_v58  ;;  %v7052_v48 = vand.u32 2139095040, %v14262_v17  ;;  %v8585_v52 = vadd.f32 %v14220_v5, %v13778_v41 }
 0x576   :  { %v6835_v24 = vsel %vm6833_vm6, %v9294_v19, %v6834_v18  ;;  %v6838_v55 = vsel %vm6836_vm13, %v6837_v54, %v9292_v33  ;;  %v7049_v59 = vand.u32 2147483647, %v14262_v17  ;;  %v7000_v38 = vmul.u32 %v14254_v25, %v6984_v8  ;;  %v15999_v8 = vld [vmem:[#allocation38_spill] sm:$0xff]  ;;  %v16000_v18 = vld [vmem:[#allocation13_spill] sm:$0xff] }
 0x577   :  { %v6916_v12 = vor.u32 %v6915_v36, %v6914_v21  ;;  %v6919_v50 = vshll.u32 %v6918_v31, 23  ;;  %vm7002_vm2 = vc.u32 %v14305_v7, %v14290_v53  ;;  %v6839_v61 = vsel %vm6832_vm10, %v6835_v24, %v6838_v55 }
 0x578   :  { %v7053_v26 = vshrl.u32 %v7052_v48, 23  ;;  %v6928_v41 = vsel %vm6843_vm4, %v6927_v34, %v14239_v13  ;;  %v7004_v19 = vsel %vm7002_vm2, %v7003_v37, %v14291_v45  ;;  %v6840_v33 = vsel %vm6829_vm0, nan, %v6839_v61 }
 0x579   :  { %v6920_v3 = vor.u32 4788187, %v6919_v50  ;;  %v6923_v14 = vcvt.s32.f32 %v6916_v12  ;;  %v7005_v20 = vadd.s32 %v7004_v19, %v7000_v38  ;;  %v7657_v25 = vmul.f32 %v9290_v15, %v6840_v33 }
 0x57a   :  { %v7823_v32 = vadd.s32 4294967169, %v7053_v26  ;;  %v8550_v30 = vadd.f32 %v13782_v6, %v15999_v8  ;;  %v8586_v49 = vadd.f32 %v14220_v5, %v13786_v0  ;;  %v8551_v21 = vadd.f32 %v13888_v9, %v16000_v18  ;;  %v16001_v0 = vld [vmem:[#allocation19_spill] sm:$0xff] }
 0x57b   :  { %v6921_v58 = vand.u32 2147483647, %v6920_v3  ;;  %v6930_v13 = vsel %vm14296_vm15, 0, %v6928_v41  ;;  %v7006_v45 = vadd.s32 536870912, %v7005_v20  ;;  %7689 = vst [vmem:[#allocation2 + $0xc0] sm:$0xff] %v7657_v25  ;;  %v14347_v9 = vadd.f32 %v13913_v11, %v16001_v0 }
 0x57c   :  { %v7059_v10 = vadd.s32 1, %v7823_v32  ;;  %v14337_v36 = vadd.f32 %v8585_v52, %v8550_v30  ;;  %v14340_v15 = vadd.f32 %v8586_v49, %v14215_v60  ;;  %v7619_v6 = vmul.f32 1.442695, %v14210_v2 }
 0x57d   :  { %v6924_v34 = vmul.f32 %v6923_v14, %v6921_v58  ;;  %v14342_v31 = vshrl.u32 %v7006_v45, 30  ;;  %v6934_v37 = vadd.s32 3, %v6930_v13  ;;  %v7056_v24 = vand.u32 8388607, %v7049_v59 }
 0x57e   :  { %vm7060_vm7 = vcmp.gt.s32.totalorder %v7059_v10, 0  ;;  %9295 = vpow2.f32 %v7619_v6  ;;  %v14386_v6 = vadd.f32 %v14259_v28, %v8551_v21  ;;  %vm6933_vm1 = vweird.f32 %v14099_v46 }
 0x57f   :  { %v6925_v54 = vxor.u32 2147483648, %v6924_v34  ;;  %v7061_v48 = vsel %vm7060_vm7, %v7059_v10, 0  ;;  %v7008_v52 = vshll.u32 %v14342_v31, 30  ;;  %v14359_v55 = vand.u32 3, %v6934_v37 }
 0x580   :  { %v7063_v12 = vand.u32 31, %v7061_v48  ;;  %v7057_v38 = vor.u32 8388608, %v7056_v24  ;;  %v14361_v61 = vshrl.u32 %v7061_v48, 5  ;;  %vm14438_vm8 = vcmp.le.f32.partialorder %v6945_v22, 0.7853982 }
 0x581   :  { %v6926_v60 = vsel %vm6843_vm4, %v6925_v54, %v6924_v34  ;;  %v14357_v50 = vsub.s32 %v7005_v20, %v7008_v52  ;;  %v7001_v20 = vadd.s32 %v14290_v53, %v14305_v7  ;;  %vm6940_vm12 = vcmp.eq.s32.totalorder %v14359_v55, 2 }
 0x582   :  { %v6929_v2 = vsel %vm14296_vm15, %v14099_v46, %v6926_v60  ;;  %v7064_v11 = vsub.s32 32, %v7063_v12  ;;  %v7066_v3 = vshll.u32 %v15632_v43, %v7063_v12  ;;  %v7069_v41 = vshll.u32 %v15639_v4, %v7063_v12 }
 0x583   :  { %9297 = vcosq.f32 %v6929_v2  ;;  %v7011_v26 = vsub.s32 0, %v14357_v50  ;;  %v7072_v33 = vshll.u32 %v15641_v39, %v7063_v12  ;;  %v7075_v32 = vshll.u32 %v15642_v35, %v7063_v12 }
 0x584   :  { %9299 = vsinq.f32 %v6929_v2  ;;  %v7067_v27 = vshrl.u32 %v15639_v4, %v7064_v11  ;;  %v7070_v19 = vshrl.u32 %v15641_v39, %v7064_v11  ;;  %v7073_v14 = vshrl.u32 %v15642_v35, %v7064_v11 }
 0x585   :  { %v7820_v25 = vmin.u32 %v7011_v26, %v14357_v50  ;;  %v7076_v58 = vshrl.u32 %v15653_v1, %v7064_v11  ;;  %v14376_v18 = vshll.u32 %v7057_v38, 8  ;;  %vm6937_vm9 = vcmp.eq.s32.totalorder %v14359_v55, 0 }
 0x586   :  { %v7068_v8 = vor.u32 %v7067_v27, %v7066_v3  ;;  %v7071_v30 = vor.u32 %v7070_v19, %v7069_v41  ;;  %v7074_v49 = vor.u32 %v7073_v14, %v7072_v33  ;;  %v7078_v10 = vshll.u32 %v15653_v1, %v7063_v12 }
 0x587   :  { %v7013_v13 = vclz %v7820_v25  ;;  %v7077_v45 = vor.u32 %v7076_v58, %v7075_v32  ;;  %v7079_v53 = vshrl.u32 %v15644_v29, %v7064_v11  ;;  %v7031_v7 = vsub.s32 4, %v14342_v31 }
 0x588   :  { %vm6936_vm3 = vcmp.lt.s32.totalorder %v14359_v55, 2  ;;  %v7065_v34 = vshrl.u32 %v15632_v43, %v7064_v11  ;;  %vm7081_vm11 = vcmp.lt.s32.totalorder %v14361_v61, 1  ;;  %vm7084_vm6 = vcmp.lt.s32.totalorder %v14361_v61, 4  ;;  %v9296_v52 = vpop.eup %9295 }
 0x589   :  { %v7821_v0 = vadd.s32 4294967294, %v7013_v13  ;;  %v7080_v54 = vor.u32 %v7079_v53, %v7078_v10  ;;  %v7089_v37 = vsel %vm7081_vm11, %v7068_v8, %v7071_v30  ;;  %vm7082_vm5 = vcmp.lt.s32.totalorder %v14361_v61, 2 }
 0x58a   :  { %vm7083_vm10 = vcmp.lt.s32.totalorder %v14361_v61, 3  ;;  %v7086_v24 = vsel %vm7084_vm6, %v7074_v49, 2102212464  ;;  %v7090_v48 = vsel %vm7084_vm6, %v7077_v45, 920167782  ;;  %v7093_v12 = vsel %vm7081_vm11, %v7071_v30, %v7074_v49 }
 0x58b   :  { %vm7822_vm0 = vcmp.lt.s32.totalorder %v7821_v0, 0  ;;  %v7091_v21 = vsel %vm7083_vm10, %v7074_v49, %v7090_v48  ;;  %v7094_v60 = vsel %vm7084_vm6, %v7080_v54, 1326507024  ;;  %v7085_v38 = vsel %vm7081_vm11, %v7065_v34, %v7068_v8 }
 0x58c   :  { %v7016_v11 = vsel %vm7822_vm0, 0, %v7821_v0  ;;  %v7092_v26 = vsel %vm7082_vm5, %v7089_v37, %v7091_v21  ;;  %v7095_v3 = vsel %vm7083_vm10, %v7077_v45, %v7094_v60  ;;  %v7087_v14 = vsel %vm7083_vm10, %v7071_v30, %v7086_v24 }
 0x58d   :  { %v9298_v2 = vpop.eup %9297  ;;  %v7017_v27 = vsub.s32 32, %v7016_v11  ;;  %v7021_v19 = vsub.s32 4294967266, %v7016_v11  ;;  %v7096_v32 = vsel %vm7082_vm5, %v7093_v12, %v7095_v3  ;;  %v7018_v49 = vshll.u32 %v14357_v50, %v7016_v11  ;;  %v16004_v3 = vld [vmem:[#allocation41_spill] sm:$0xff] }
 0x58e   :  { %v9300_v41 = vpop.eup %9299  ;;  %v6941_v33 = vxor.u32 2147483648, %v9298_v2  ;;  %v14409_v58 = vmul.u32.u64.low %v14376_v18, %v7092_v26  ;;  %v14410_v8 = vmul.u32.u64.high %v14376_v18, %v7092_v26, %v14409_v58  ;;  %v8588_v0 = vadd.f32 %v14220_v5, %v13915_v47 }
 0x58f   :  { %v6938_v25 = vxor.u32 2147483648, %v9300_v41  ;;  %v7019_v13 = vshrl.u32 %v7001_v20, %v7017_v27  ;;  %v7022_v10 = vadd.s32 127, %v7021_v19  ;;  %v7088_v20 = vsel %vm7082_vm5, %v7085_v38, %v7087_v14 }
 0x590   :  { %v6942_v45 = vsel %vm6940_vm12, %v6941_v33, %v9300_v41  ;;  %v14418_v30 = vmul.u32.u64.low %v14376_v18, %v7096_v32  ;;  %v14419_v34 = vmul.u32.u64.high %v14376_v18, %v7096_v32, %v14418_v30  ;;  %vm6947_vm4 = vcmp.lt.s32.totalorder %v14154_v62, 0  ;;  %v16005_v33 = vld [vmem:[#allocation97_spill] sm:$0xff] }
 0x591   :  { %v6939_v53 = vsel %vm6937_vm9, %v9298_v2, %v6938_v25  ;;  %v7020_v54 = vor.u32 %v7019_v13, %v7018_v49  ;;  %v7023_v37 = vshll.u32 %v7022_v10, 23  ;;  %v7107_v48 = vadd.s32 1, %v14410_v8  ;;  %v16006_v10 = vld [vmem:[#allocation21_spill] sm:$0xff] }
 0x592   :  { %v6943_v50 = vsel %vm6936_vm3, %v6939_v53, %v6942_v45  ;;  %v7156_v21 = vand.u32 2139095040, %v14386_v6  ;;  %v7032_v47 = vsel %vm6947_vm4, %v7031_v7, %v14342_v31  ;;  %v7153_v55 = vand.u32 2147483647, %v14386_v6 }
 0x593   :  { %v6944_v24 = vsel %vm6933_vm1, nan, %v6943_v50  ;;  %v7024_v12 = vor.u32 4788187, %v7023_v37  ;;  %v7104_v46 = vmul.u32 %v14376_v18, %v7088_v20  ;;  %vm7106_vm14 = vc.u32 %v14419_v34, %v14409_v58 }
 0x594   :  { %v7658_v60 = vmul.f32 %v9296_v52, %v6944_v24  ;;  %v7157_v2 = vshrl.u32 %v7156_v21, 23  ;;  %v7027_v38 = vcvt.s32.f32 %v7020_v54  ;;  %v7108_v26 = vsel %vm7106_vm14, %v7107_v48, %v14410_v8 }
 0x595   :  { %v7025_v11 = vand.u32 2147483647, %v7024_v12  ;;  %v14446_v31 = vadd.f32 %v8588_v0, %v14347_v9  ;;  %v7034_v7 = vsel %vm14438_vm8, 0, %v7032_v47  ;;  %v7109_v22 = vadd.s32 %v7108_v26, %v7104_v46 }
 0x596   :  { %7690 = vst [vmem:[#allocation2 + $0xc8] sm:$0xff] %v7658_v60  ;;  %v7827_v52 = vadd.s32 4294967169, %v7157_v2  ;;  %v8553_v41 = vadd.f32 %v13939_v42, %v16004_v3  ;;  %v7160_v27 = vand.u32 8388607, %v7153_v55  ;;  %v8587_v19 = vadd.f32 %v14220_v5, %v13910_v44 }
 0x597   :  { %v7028_v18 = vmul.f32 %v7027_v38, %v7025_v11  ;;  %v8554_v14 = vadd.f32 %v14024_v57, %v16005_v33  ;;  %v7110_v9 = vadd.s32 536870912, %v7109_v22  ;;  %v7621_v25 = vmul.f32 1.442695, %v14340_v15 }
 0x598   :  { %v7163_v32 = vadd.s32 1, %v7827_v52  ;;  %v7038_v49 = vadd.s32 3, %v7034_v7  ;;  %v14463_v42 = vadd.f32 %v14042_v51, %v16006_v10  ;;  %v7161_v53 = vor.u32 8388608, %v7160_v27 }
 0x599   :  { %v7029_v8 = vxor.u32 2147483648, %v7028_v18  ;;  %v14459_v13 = vadd.f32 %v8587_v19, %v8554_v14  ;;  %v7111_v45 = vshrl.u32 %v7110_v9, 30  ;;  %v14468_v57 = vadd.f32 %v14259_v28, %v8553_v41 }
 0x59a   :  { %vm7164_vm15 = vcmp.gt.s32.totalorder %v7163_v32, 0  ;;  %9301 = vpow2.f32 %v7621_v25  ;;  %v14473_v51 = vand.u32 3, %v7038_v49  ;;  %vm7051_vm13 = vcmp.lt.s32.totalorder %v14262_v17, 0 }
 0x59b   :  { %v7030_v44 = vsel %vm6947_vm4, %v7029_v8, %v7028_v18  ;;  %v7165_v30 = vsel %vm7164_vm15, %v7163_v32, 0  ;;  %v7112_v0 = vshll.u32 %v7111_v45, 30  ;;  %v7135_v54 = vsub.s32 4, %v7111_v45 }
 0x59c   :  { %v7033_v15 = vsel %vm14438_vm8, %v14154_v62, %v7030_v44  ;;  %v7167_v37 = vand.u32 31, %v7165_v30  ;;  %vm14478_vm2 = vcmp.le.f32.partialorder %v7049_v59, 0.7853982  ;;  %v7105_v20 = vadd.s32 %v14409_v58, %v14419_v34 }
 0x59d   :  { %9303 = vcosq.f32 %v7033_v15  ;;  %v14483_v24 = vsub.s32 %v7109_v22, %v7112_v0  ;;  %v14485_v48 = vshrl.u32 %v7165_v30, 5  ;;  %v14487_v12 = vshll.u32 %v7161_v53, 8 }
 0x59e   :  { %9305 = vsinq.f32 %v7033_v15  ;;  %v7168_v21 = vsub.s32 32, %v7167_v37  ;;  %v7260_v47 = vand.u32 2139095040, %v14468_v57  ;;  %v14493_v61 = vsel %vm7051_vm13, %v7135_v54, %v7111_v45 }
 0x59f   :  { %v7115_v60 = vsub.s32 0, %v14483_v24  ;;  %v7170_v59 = vshll.u32 %v15632_v43, %v7167_v37  ;;  %v7173_v46 = vshll.u32 %v15639_v4, %v7167_v37  ;;  %vm7044_vm7 = vcmp.eq.s32.totalorder %v14473_v51, 2 }
 0x5a0   :  { %v7171_v58 = vshrl.u32 %v15639_v4, %v7168_v21  ;;  %v7174_v34 = vshrl.u32 %v15641_v39, %v7168_v21  ;;  %v7176_v2 = vshll.u32 %v15641_v39, %v7167_v37  ;;  %v7177_v11 = vshrl.u32 %v15642_v35, %v7168_v21 }
 0x5a1   :  { %v7824_v38 = vmin.u32 %v7115_v60, %v14483_v24  ;;  %vm7041_vm12 = vcmp.eq.s32.totalorder %v14473_v51, 0  ;;  %v7179_v26 = vshll.u32 %v15642_v35, %v7167_v37  ;;  %v7180_v7 = vshrl.u32 %v15653_v1, %v7168_v21 }
 0x5a2   :  { %v7182_v22 = vshll.u32 %v15653_v1, %v7167_v37  ;;  %vm7040_vm9 = vcmp.lt.s32.totalorder %v14473_v51, 2  ;;  %v7172_v52 = vor.u32 %v7171_v58, %v7170_v59  ;;  %v7175_v3 = vor.u32 %v7174_v34, %v7173_v46 }
 0x5a3   :  { %v7178_v41 = vor.u32 %v7177_v11, %v7176_v2  ;;  %v7183_v18 = vshrl.u32 %v15644_v29, %v7168_v21  ;;  %vm7037_vm3 = vweird.f32 %v14154_v62  ;;  %v7117_v27 = vclz %v7824_v38  ;;  %v16009_v62 = vld [vmem:[#allocation44_spill] sm:$0xff] }
 0x5a4   :  { %v7138_v19 = vsel %vm14478_vm2, 0, %v14493_v61  ;;  %vm7185_vm11 = vcmp.lt.s32.totalorder %v14485_v48, 1  ;;  %v7261_v33 = vshrl.u32 %v7260_v47, 23  ;;  %v7169_v14 = vshrl.u32 %v15632_v43, %v7168_v21  ;;  %v9302_v32 = vpop.eup %9301 }
 0x5a5   :  { %v7181_v9 = vor.u32 %v7180_v7, %v7179_v26  ;;  %v7184_v25 = vor.u32 %v7183_v18, %v7182_v22  ;;  %vm7186_vm1 = vcmp.lt.s32.totalorder %v14485_v48, 2  ;;  %v7825_v8 = vadd.s32 4294967294, %v7117_v27 }
 0x5a6   :  { %vm7187_vm6 = vcmp.lt.s32.totalorder %v14485_v48, 3  ;;  %vm7188_vm5 = vcmp.lt.s32.totalorder %v14485_v48, 4  ;;  %v7193_v49 = vsel %vm7185_vm11, %v7172_v52, %v7175_v3  ;;  %v7189_v45 = vsel %vm7185_vm11, %v7169_v14, %v7172_v52 }
 0x5a7   :  { %v9304_v10 = vpop.eup %9303  ;;  %v7190_v44 = vsel %vm7188_vm5, %v7178_v41, 2102212464  ;;  %v7194_v53 = vsel %vm7188_vm5, %v7181_v9, 920167782  ;;  %v7197_v30 = vsel %vm7185_vm11, %v7175_v3, %v7178_v41  ;;  %vm7826_vm10 = vcmp.lt.s32.totalorder %v7825_v8, 0 }
 0x5a8   :  { %v9306_v15 = vpop.eup %9305  ;;  %v7045_v0 = vxor.u32 2147483648, %v9304_v10  ;;  %v7195_v54 = vsel %vm7187_vm6, %v7178_v41, %v7194_v53  ;;  %v7198_v37 = vsel %vm7188_vm5, %v7184_v25, 1326507024  ;;  %v7120_v21 = vsel %vm7826_vm10, 0, %v7825_v8 }
 0x5a9   :  { %v7042_v47 = vxor.u32 2147483648, %v9306_v15  ;;  %v7191_v60 = vsel %vm7187_vm6, %v7175_v3, %v7190_v44  ;;  %v7196_v61 = vsel %vm7186_vm1, %v7193_v49, %v7195_v54  ;;  %v7121_v59 = vsub.s32 32, %v7120_v21 }
 0x5aa   :  { %v7122_v46 = vshll.u32 %v14483_v24, %v7120_v21  ;;  %v7125_v58 = vsub.s32 4294967266, %v7120_v21  ;;  %v7046_v34 = vsel %vm7044_vm7, %v7045_v0, %v9306_v15  ;;  %v7199_v11 = vsel %vm7187_vm6, %v7181_v9, %v7198_v37 }
 0x5ab   :  { %v7043_v2 = vsel %vm7041_vm12, %v9304_v10, %v7042_v47  ;;  %v14532_v38 = vmul.u32.u64.low %v14487_v12, %v7196_v61  ;;  %v14533_v26 = vmul.u32.u64.high %v14487_v12, %v7196_v61, %v14532_v38  ;;  %v7123_v7 = vshrl.u32 %v7105_v20, %v7121_v59 }
 0x5ac   :  { %v7126_v22 = vadd.s32 127, %v7125_v58  ;;  %v7047_v52 = vsel %vm7040_vm9, %v7043_v2, %v7046_v34  ;;  %v7200_v24 = vsel %vm7186_vm1, %v7197_v30, %v7199_v11  ;;  %v7192_v41 = vsel %vm7186_vm1, %v7189_v45, %v7191_v60 }
 0x5ad   :  { %v7048_v3 = vsel %vm7037_vm3, nan, %v7047_v52  ;;  %v14544_v18 = vmul.u32.u64.low %v14487_v12, %v7200_v24  ;;  %v14545_v27 = vmul.u32.u64.high %v14487_v12, %v7200_v24, %v14544_v18  ;;  %v7124_v14 = vor.u32 %v7123_v7, %v7122_v46 }
 0x5ae   :  { %v7127_v9 = vshll.u32 %v7126_v22, 23  ;;  %v7659_v20 = vmul.f32 %v9302_v32, %v7048_v3  ;;  %v7831_v25 = vadd.s32 4294967169, %v7261_v33  ;;  %v7211_v51 = vadd.s32 1, %v14533_v26 }
 0x5af   :  { %v7623_v49 = vmul.f32 1.442695, %v14337_v36  ;;  %v14551_v44 = vadd.f32 %v14134_v56, %v16009_v62  ;;  %v7142_v48 = vadd.s32 3, %v7138_v19  ;;  %v7208_v45 = vmul.u32 %v14487_v12, %v7192_v41 }
 0x5b0   :  { %v7128_v8 = vor.u32 4788187, %v7127_v9  ;;  %7691 = vst [vmem:[#allocation2 + $0xd0] sm:$0xff] %v7659_v20  ;;  %v7267_v10 = vadd.s32 1, %v7831_v25  ;;  %vm7210_vm0 = vc.u32 %v14545_v27, %v14532_v38  ;;  %v7257_v53 = vand.u32 2147483647, %v14468_v57 }
 0x5b1   :  { %v7131_v33 = vcvt.s32.f32 %v7124_v14  ;;  %v7212_v30 = vsel %vm7210_vm0, %v7211_v51, %v14533_v26  ;;  %v14557_v37 = vand.u32 3, %v7142_v48  ;;  %9307 = vpow2.f32 %v7623_v49 }
 0x5b2   :  { %v7129_v32 = vand.u32 2147483647, %v7128_v8  ;;  %vm7268_vm4 = vcmp.gt.s32.totalorder %v7267_v10, 0  ;;  %v7213_v15 = vadd.s32 %v7212_v30, %v7208_v45  ;;  %v14561_v12 = vadd.f32 %v14220_v5, %v14026_v23 }
 0x5b3   :  { %v7269_v36 = vsel %vm7268_vm4, %v7267_v10, 0  ;;  %v7264_v21 = vand.u32 8388607, %v7257_v53  ;;  %v14567_v60 = vadd.f32 %v14259_v28, %v14463_v42  ;;  %v14570_v61 = vadd.s32 %v14532_v38, %v14545_v27 }
 0x5b4   :  { %v7132_v0 = vmul.f32 %v7131_v33, %v7129_v32  ;;  %v7271_v54 = vand.u32 31, %v7269_v36  ;;  %v7214_v56 = vadd.s32 536870912, %v7213_v15  ;;  %v7270_v46 = vshrl.u32 %v7269_v36, 5 }
 0x5b5   :  { %v7265_v27 = vor.u32 8388608, %v7264_v21  ;;  %v7361_v51 = vand.u32 2147483647, %v14567_v60  ;;  %v7364_v8 = vand.u32 2139095040, %v14567_v60  ;;  %vm7148_vm8 = vcmp.eq.s32.totalorder %v14557_v37, 2 }
 0x5b6   :  { %v7133_v19 = vxor.u32 2147483648, %v7132_v0  ;;  %v7272_v47 = vsub.s32 32, %v7271_v54  ;;  %v14572_v59 = vshrl.u32 %v7214_v56, 30  ;;  %v7274_v58 = vshll.u32 %v15632_v43, %v7271_v54 }
 0x5b7   :  { %v7277_v2 = vshll.u32 %v15639_v4, %v7271_v54  ;;  %v7280_v26 = vshll.u32 %v15641_v39, %v7271_v54  ;;  %v7283_v52 = vshll.u32 %v15642_v35, %v7271_v54  ;;  %v7286_v14 = vshll.u32 %v15653_v1, %v7271_v54 }
 0x5b8   :  { %v7134_v23 = vsel %vm7051_vm13, %v7133_v19, %v7132_v0  ;;  %v7275_v34 = vshrl.u32 %v15639_v4, %v7272_v47  ;;  %v7278_v11 = vshrl.u32 %v15641_v39, %v7272_v47  ;;  %v7216_v38 = vshll.u32 %v14572_v59, 30 }
 0x5b9   :  { %v7137_v42 = vsel %vm14478_vm2, %v14262_v17, %v7134_v23  ;;  %v7281_v7 = vshrl.u32 %v15642_v35, %v7272_v47  ;;  %v7284_v24 = vshrl.u32 %v15653_v1, %v7272_v47  ;;  %v7287_v9 = vshrl.u32 %v15644_v29, %v7272_v47 }
 0x5ba   :  { %9309 = vcosq.f32 %v7137_v42  ;;  %v7276_v22 = vor.u32 %v7275_v34, %v7274_v58  ;;  %v14588_v3 = vsub.s32 %v7213_v15, %v7216_v38  ;;  %v7279_v41 = vor.u32 %v7278_v11, %v7277_v2 }
 0x5bb   :  { %9311 = vsinq.f32 %v7137_v42  ;;  %v7282_v18 = vor.u32 %v7281_v7, %v7280_v26  ;;  %v7285_v50 = vor.u32 %v7284_v24, %v7283_v52  ;;  %v7273_v25 = vshrl.u32 %v15632_v43, %v7272_v47  ;;  %v9308_v10 = vpop.eup %9307 }
 0x5bc   :  { %v7219_v20 = vsub.s32 0, %v14588_v3  ;;  %v7288_v49 = vor.u32 %v7287_v9, %v7286_v14  ;;  %vm7289_vm14 = vcmp.lt.s32.totalorder %v7270_v46, 1  ;;  %vm7291_vm15 = vcmp.lt.s32.totalorder %v7270_v46, 3  ;;  %v16010_v14 = vld [vmem:[#allocation6_spill] sm:$0xff] }
 0x5bd   :  { %vm7292_vm13 = vcmp.lt.s32.totalorder %v7270_v46, 4  ;;  %vm7145_vm2 = vcmp.eq.s32.totalorder %v14557_v37, 0  ;;  %v7297_v45 = vsel %vm7289_vm14, %v7276_v22, %v7279_v41  ;;  %vm7144_vm7 = vcmp.lt.s32.totalorder %v14557_v37, 2 }
 0x5be   :  { %v7828_v62 = vmin.u32 %v7219_v20, %v14588_v3  ;;  %v7294_v48 = vsel %vm7292_vm13, %v7282_v18, 2102212464  ;;  %v7298_v32 = vsel %vm7292_vm13, %v7285_v50, 920167782  ;;  %v7301_v30 = vsel %vm7289_vm14, %v7279_v41, %v7282_v18 }
 0x5bf   :  { %v7299_v33 = vsel %vm7291_vm15, %v7282_v18, %v7298_v32  ;;  %v7302_v15 = vsel %vm7292_vm13, %v7288_v49, 1326507024  ;;  %v7305_v36 = vshll.u32 %v7265_v27, 8  ;;  %vm7141_vm12 = vweird.f32 %v14262_v17 }
 0x5c0   :  { %vm7155_vm9 = vcmp.lt.s32.totalorder %v14386_v6, 0  ;;  %v7221_v0 = vclz %v7828_v62  ;;  %vm7290_vm3 = vcmp.lt.s32.totalorder %v7270_v46, 2  ;;  %v7293_v54 = vsel %vm7289_vm14, %v7273_v25, %v7276_v22 }
 0x5c1   :  { %v7295_v56 = vsel %vm7291_vm15, %v7279_v41, %v7294_v48  ;;  %v7300_v19 = vsel %vm7290_vm3, %v7297_v45, %v7299_v33  ;;  %v7303_v21 = vsel %vm7291_vm15, %v7285_v50, %v7302_v15  ;;  %v7365_v47 = vshrl.u32 %v7364_v8, 23 }
 0x5c2   :  { %v14610_v58 = vand.u32 8388607, %v7361_v51  ;;  %v7829_v23 = vadd.s32 4294967294, %v7221_v0  ;;  %v7304_v34 = vsel %vm7290_vm3, %v7301_v30, %v7303_v21  ;;  %v7296_v38 = vsel %vm7290_vm3, %v7293_v54, %v7295_v56 }
 0x5c3   :  { %v14612_v2 = vmul.u32.u64.low %v7305_v36, %v7300_v19  ;;  %v14613_v11 = vmul.u32.u64.high %v7305_v36, %v7300_v19, %v14612_v2  ;;  %v14616_v26 = vmul.u32.u64.low %v7305_v36, %v7304_v34  ;;  %v14617_v7 = vmul.u32.u64.high %v7305_v36, %v7304_v34, %v14616_v26  ;;  %v16013_v19 = vld [vmem:[#allocation8_spill] sm:$0xff] }
 0x5c4   :  { %v9310_v42 = vpop.eup %9309  ;;  %v7835_v22 = vadd.s32 4294967169, %v7365_v47  ;;  %vm7830_vm11 = vcmp.lt.s32.totalorder %v7829_v23, 0  ;;  %v7239_v24 = vsub.s32 4, %v14572_v59  ;;  %v14622_v41 = vadd.f32 %v14561_v12, %v14551_v44 }
 0x5c5   :  { %v9312_v52 = vpop.eup %9311  ;;  %v7149_v46 = vxor.u32 2147483648, %v9310_v42  ;;  %v7224_v27 = vsel %vm7830_vm11, 0, %v7829_v23  ;;  %v8557_v9 = vadd.f32 %v14181_v16, %v16010_v14  ;;  %v7312_v49 = vmul.u32 %v7305_v36, %v7296_v38 }
 0x5c6   :  { %v7146_v18 = vxor.u32 2147483648, %v9312_v52  ;;  %v7371_v50 = vadd.s32 1, %v7835_v22  ;;  %v7225_v25 = vsub.s32 32, %v7224_v27  ;;  %v7229_v8 = vsub.s32 4294967266, %v7224_v27 }
 0x5c7   :  { %v7150_v20 = vsel %vm7148_vm8, %v7149_v46, %v9312_v52  ;;  %v7226_v48 = vshll.u32 %v14588_v3, %v7224_v27  ;;  %vm7314_vm1 = vc.u32 %v14617_v7, %v14612_v2  ;;  %v7315_v44 = vadd.s32 1, %v14613_v11 }
 0x5c8   :  { %v7147_v62 = vsel %vm7145_vm2, %v9310_v42, %v7146_v18  ;;  %v7227_v16 = vshrl.u32 %v14570_v61, %v7225_v25  ;;  %v7230_v45 = vadd.s32 127, %v7229_v8  ;;  %vm7372_vm6 = vcmp.gt.s32.totalorder %v7371_v50, 0 }
 0x5c9   :  { %v7151_v12 = vsel %vm7144_vm7, %v7147_v62, %v7150_v20  ;;  %v7240_v33 = vsel %vm7155_vm9, %v7239_v24, %v14572_v59  ;;  %v7316_v3 = vsel %vm7314_vm1, %v7315_v44, %v14613_v11  ;;  %v7373_v30 = vsel %vm7372_vm6, %v7371_v50, 0 }
 0x5ca   :  { %v7152_v32 = vsel %vm7141_vm12, nan, %v7151_v12  ;;  %v7228_v36 = vor.u32 %v7227_v16, %v7226_v48  ;;  %v7231_v0 = vshll.u32 %v7230_v45, 23  ;;  %v7317_v54 = vadd.s32 %v7316_v3, %v7312_v49 }
 0x5cb   :  { %v7660_v15 = vmul.f32 %v9308_v10, %v7152_v32  ;;  %v7375_v37 = vand.u32 31, %v7373_v30  ;;  %vm14645_vm5 = vcmp.le.f32.partialorder %v7153_v55, 0.7853982  ;;  %v14651_v59 = vadd.f32 %v14244_v63, %v16013_v19 }
 0x5cc   :  { %v7232_v17 = vor.u32 4788187, %v7231_v0  ;;  %v7318_v56 = vadd.s32 536870912, %v7317_v54  ;;  %v7242_v10 = vsel %vm14645_vm5, 0, %v7240_v33  ;;  %v7625_v21 = vmul.f32 1.442695, %v14446_v31 }
 0x5cd   :  { %7692 = vst [vmem:[#allocation2 + $0xd8] sm:$0xff] %v7660_v15  ;;  %v14658_v47 = vadd.f32 %v14220_v5, %v14019_v40  ;;  %v7376_v23 = vsub.s32 32, %v7375_v37  ;;  %v7235_v34 = vcvt.s32.f32 %v7228_v36  ;;  %v7369_v42 = vor.u32 8388608, %v14610_v58 }
 0x5ce   :  { %v7233_v55 = vand.u32 2147483647, %v7232_v17  ;;  %v14660_v11 = vshrl.u32 %v7318_v56, 30  ;;  %v7374_v38 = vshrl.u32 %v7373_v30, 5  ;;  %v7384_v40 = vshll.u32 %v15641_v39, %v7375_v37 }
 0x5cf   :  { %v7379_v63 = vshrl.u32 %v15639_v4, %v7376_v23  ;;  %v7382_v26 = vshrl.u32 %v15641_v39, %v7376_v23  ;;  %v7385_v22 = vshrl.u32 %v15642_v35, %v7376_v23  ;;  %v7388_v5 = vshrl.u32 %v15653_v1, %v7376_v23 }
 0x5d0   :  { %v7236_v52 = vmul.f32 %v7235_v34, %v7233_v55  ;;  %v7320_v31 = vshll.u32 %v14660_v11, 30  ;;  %v7378_v46 = vshll.u32 %v15632_v43, %v7375_v37  ;;  %v7381_v24 = vshll.u32 %v15639_v4, %v7375_v37 }
 0x5d1   :  { %v7387_v58 = vshll.u32 %v15642_v35, %v7375_v37  ;;  %v7391_v18 = vshrl.u32 %v15644_v29, %v7376_v23  ;;  %9313 = vpow2.f32 %v7625_v21  ;;  %v7386_v14 = vor.u32 %v7385_v22, %v7384_v40 }
 0x5d2   :  { %v7237_v27 = vxor.u32 2147483648, %v7236_v52  ;;  %v14673_v50 = vsub.s32 %v7317_v54, %v7320_v31  ;;  %v7380_v20 = vor.u32 %v7379_v63, %v7378_v46  ;;  %v7383_v25 = vor.u32 %v7382_v26, %v7381_v24 }
 0x5d3   :  { %v7389_v8 = vor.u32 %v7388_v5, %v7387_v58  ;;  %v7390_v49 = vshll.u32 %v15653_v1, %v7375_v37  ;;  %v7246_v48 = vadd.s32 3, %v7242_v10  ;;  %v7409_v12 = vshll.u32 %v7369_v42, 8 }
 0x5d4   :  { %v7238_v62 = vsel %vm7155_vm9, %v7237_v27, %v7236_v52  ;;  %v7323_v44 = vsub.s32 0, %v14673_v50  ;;  %vm7396_vm10 = vcmp.lt.s32.totalorder %v7374_v38, 4  ;;  %v14683_v32 = vadd.f32 %v14259_v28, %v8557_v9 }
 0x5d5   :  { %v7241_v16 = vsel %vm14645_vm5, %v14386_v6, %v7238_v62  ;;  %v7392_v45 = vor.u32 %v7391_v18, %v7390_v49  ;;  %vm7393_vm0 = vcmp.lt.s32.totalorder %v7374_v38, 1  ;;  %v7398_v3 = vsel %vm7396_vm10, %v7386_v14, 2102212464 }
 0x5d6   :  { %9315 = vcosq.f32 %v7241_v16  ;;  %v7832_v33 = vmin.u32 %v7323_v44, %v14673_v50  ;;  %v7377_v30 = vshrl.u32 %v15632_v43, %v7376_v23  ;;  %v7401_v15 = vsel %vm7393_vm0, %v7380_v20, %v7383_v25 }
 0x5d7   :  { %9317 = vsinq.f32 %v7241_v16  ;;  %v7402_v36 = vsel %vm7396_vm10, %v7389_v8, 920167782  ;;  %vm7394_vm4 = vcmp.lt.s32.totalorder %v7374_v38, 2  ;;  %vm7395_vm8 = vcmp.lt.s32.totalorder %v7374_v38, 3 }
 0x5d8   :  { %v7325_v0 = vclz %v7832_v33  ;;  %v7405_v54 = vsel %vm7393_vm0, %v7383_v25, %v7386_v14  ;;  %v7397_v37 = vsel %vm7393_vm0, %v7377_v30, %v7380_v20  ;;  %v7399_v61 = vsel %vm7395_vm8, %v7383_v25, %v7398_v3 }
 0x5d9   :  { %v7403_v28 = vsel %vm7395_vm8, %v7386_v14, %v7402_v36  ;;  %v7406_v9 = vsel %vm7396_vm10, %v7392_v45, 1326507024  ;;  %v7247_v17 = vand.u32 3, %v7246_v48  ;;  %vm7259_vm14 = vcmp.lt.s32.totalorder %v14468_v57, 0 }
 0x5da   :  { %v7833_v56 = vadd.s32 4294967294, %v7325_v0  ;;  %v7404_v19 = vsel %vm7394_vm4, %v7401_v15, %v7403_v28  ;;  %v7407_v10 = vsel %vm7395_vm8, %v7389_v8, %v7406_v9  ;;  %v7400_v42 = vsel %vm7394_vm4, %v7397_v37, %v7399_v61 }
 0x5db   :  { %v7408_v21 = vsel %vm7394_vm4, %v7405_v54, %v7407_v10  ;;  %v14693_v23 = vmul.u32.u64.low %v7409_v12, %v7404_v19  ;;  %v14694_v55 = vmul.u32.u64.high %v7409_v12, %v7404_v19, %v14693_v23  ;;  %v9314_v34 = vpop.eup %9313  ;;  %vm7245_vm13 = vweird.f32 %v14386_v6 }
 0x5dc   :  { %vm7834_vm15 = vcmp.lt.s32.totalorder %v7833_v56, 0  ;;  %v14698_v63 = vmul.u32.u64.low %v7409_v12, %v7408_v21  ;;  %v14699_v26 = vmul.u32.u64.high %v7409_v12, %v7408_v21, %v14698_v63  ;;  %vm14704_vm2 = vcmp.le.f32.partialorder %v7257_v53, 0.7853982 }
 0x5dd   :  { %v7328_v52 = vsel %vm7834_vm15, 0, %v7833_v56  ;;  %v7343_v31 = vsub.s32 4, %v14660_v11  ;;  %v7468_v40 = vand.u32 2139095040, %v14683_v32  ;;  %vm7252_vm7 = vcmp.eq.s32.totalorder %v7247_v17, 2 }
 0x5de   :  { %v7313_v38 = vadd.s32 %v14612_v2, %v14617_v7  ;;  %v7329_v5 = vsub.s32 32, %v7328_v52  ;;  %v7333_v46 = vsub.s32 4294967266, %v7328_v52  ;;  %v7416_v24 = vmul.u32 %v7409_v12, %v7400_v42 }
 0x5df   :  { %v7419_v58 = vadd.s32 1, %v14694_v55  ;;  %v7469_v18 = vshrl.u32 %v7468_v40, 23  ;;  %v14715_v53 = vadd.f32 %v14658_v47, %v14651_v59  ;;  %v7330_v14 = vshll.u32 %v14673_v50, %v7328_v52 }
 0x5e0   :  { %v9316_v27 = vpop.eup %9315  ;;  %v7331_v20 = vshrl.u32 %v7313_v38, %v7329_v5  ;;  %v7334_v25 = vadd.s32 127, %v7333_v46  ;;  %vm7418_vm12 = vc.u32 %v14699_v26, %v14693_v23  ;;  %v7344_v7 = vsel %vm7259_vm14, %v7343_v31, %v14660_v11 }
 0x5e1   :  { %v9318_v8 = vpop.eup %9317  ;;  %v7253_v2 = vxor.u32 2147483648, %v9316_v27  ;;  %v7420_v49 = vsel %vm7418_vm12, %v7419_v58, %v14694_v55  ;;  %v7839_v62 = vadd.s32 4294967169, %v7469_v18  ;;  %vm7248_vm9 = vcmp.lt.s32.totalorder %v7247_v17, 2 }
 0x5e2   :  { %v7250_v48 = vxor.u32 2147483648, %v9318_v8  ;;  %v7332_v59 = vor.u32 %v7331_v20, %v7330_v14  ;;  %v7335_v47 = vshll.u32 %v7334_v25, 23  ;;  %v7421_v44 = vadd.s32 %v7420_v49, %v7416_v24 }
 0x5e3   :  { %vm7249_vm3 = vcmp.eq.s32.totalorder %v7247_v17, 0  ;;  %v7254_v50 = vsel %vm7252_vm7, %v7253_v2, %v9318_v8  ;;  %v7475_v12 = vadd.s32 1, %v7839_v62  ;;  %v7346_v33 = vsel %vm14704_vm2, 0, %v7344_v7 }
 0x5e4   :  { %v7251_v16 = vsel %vm7249_vm3, %v9316_v27, %v7250_v48  ;;  %v7336_v45 = vor.u32 4788187, %v7335_v47  ;;  %v7422_v3 = vadd.s32 536870912, %v7421_v44  ;;  %v7339_v11 = vcvt.s32.f32 %v7332_v59 }
 0x5e5   :  { %v7255_v30 = vsel %vm7248_vm9, %v7251_v16, %v7254_v50  ;;  %v7465_v15 = vand.u32 2147483647, %v14683_v32  ;;  %vm7476_vm11 = vcmp.gt.s32.totalorder %v7475_v12, 0  ;;  %v7350_v56 = vadd.s32 3, %v7346_v33 }
 0x5e6   :  { %v7256_v36 = vsel %vm7245_vm13, nan, %v7255_v30  ;;  %v7337_v0 = vand.u32 2147483647, %v7336_v45  ;;  %v14730_v54 = vshrl.u32 %v7422_v3, 30  ;;  %v7477_v37 = vsel %vm7476_vm11, %v7475_v12, 0 }
 0x5e7   :  { %v7661_v61 = vmul.f32 %v9314_v34, %v7256_v36  ;;  %v7479_v28 = vand.u32 31, %v7477_v37  ;;  %v7627_v19 = vmul.f32 1.442695, %v14459_v13  ;;  %v7472_v6 = vand.u32 8388607, %v7465_v15 }
 0x5e8   :  { %v7340_v9 = vmul.f32 %v7339_v11, %v7337_v0  ;;  %v7424_v17 = vshll.u32 %v14730_v54, 30  ;;  %v7478_v42 = vshrl.u32 %v7477_v37, 5  ;;  %v7351_v8 = vand.u32 3, %v7350_v56 }
 0x5e9   :  { %7693 = vst [vmem:[#allocation2 + $0xe0] sm:$0xff] %v7661_v61  ;;  %v7480_v10 = vsub.s32 32, %v7479_v28  ;;  %v7482_v63 = vshll.u32 %v15632_v43, %v7479_v28  ;;  %v7485_v52 = vshll.u32 %v15639_v4, %v7479_v28  ;;  %v7488_v38 = vshll.u32 %v15641_v39, %v7479_v28 }
 0x5ea   :  { %v7341_v21 = vxor.u32 2147483648, %v7340_v9  ;;  %v14734_v55 = vsub.s32 %v7421_v44, %v7424_v17  ;;  %v7491_v58 = vshll.u32 %v15642_v35, %v7479_v28  ;;  %v7473_v2 = vor.u32 8388608, %v7472_v6 }
 0x5eb   :  { %v7483_v34 = vshrl.u32 %v15639_v4, %v7480_v10  ;;  %v7486_v31 = vshrl.u32 %v15641_v39, %v7480_v10  ;;  %v7489_v5 = vshrl.u32 %v15642_v35, %v7480_v10  ;;  %v7492_v4 = vshrl.u32 %v15653_v1, %v7480_v10 }
 0x5ec   :  { %v7342_v40 = vsel %vm7259_vm14, %v7341_v21, %v7340_v9  ;;  %v7427_v13 = vsub.s32 0, %v14734_v55  ;;  %v7494_v39 = vshll.u32 %v15653_v1, %v7479_v28  ;;  %v7495_v25 = vshrl.u32 %v15644_v29, %v7480_v10 }
 0x5ed   :  { %v7345_v46 = vsel %vm14704_vm2, %v14468_v57, %v7342_v40  ;;  %v7484_v24 = vor.u32 %v7483_v34, %v7482_v63  ;;  %v7487_v27 = vor.u32 %v7486_v31, %v7485_v52  ;;  %v7490_v14 = vor.u32 %v7489_v5, %v7488_v38 }
 0x5ee   :  { %9319 = vcosq.f32 %v7345_v46  ;;  %v7836_v18 = vmin.u32 %v7427_v13, %v14734_v55  ;;  %v7493_v20 = vor.u32 %v7492_v4, %v7491_v58  ;;  %v7417_v35 = vadd.s32 %v14693_v23, %v14699_v26 }
 0x5ef   :  { %9321 = vsinq.f32 %v7345_v46  ;;  %v7481_v7 = vshrl.u32 %v15632_v43, %v7480_v10  ;;  %v7496_v49 = vor.u32 %v7495_v25, %v7494_v39  ;;  %vm7497_vm1 = vcmp.lt.s32.totalorder %v7478_v42, 1 }
 0x5f0   :  { %9323 = vpow2.f32 %v7627_v19  ;;  %v7429_v22 = vclz %v7836_v18  ;;  %vm7499_vm6 = vcmp.lt.s32.totalorder %v7478_v42, 3  ;;  %vm7500_vm5 = vcmp.lt.s32.totalorder %v7478_v42, 4 }
 0x5f1   :  { %v7505_v48 = vsel %vm7497_vm1, %v7484_v24, %v7487_v27  ;;  %v7502_v59 = vsel %vm7500_vm5, %v7490_v14, 2102212464  ;;  %v7506_v1 = vsel %vm7500_vm5, %v7493_v20, 920167782  ;;  %v7509_v29 = vsel %vm7497_vm1, %v7487_v27, %v7490_v14 }
 0x5f2   :  { %v7837_v62 = vadd.s32 4294967294, %v7429_v22  ;;  %v7510_v47 = vsel %vm7500_vm5, %v7496_v49, 1326507024  ;;  %vm7498_vm0 = vcmp.lt.s32.totalorder %v7478_v42, 2  ;;  %v7507_v44 = vsel %vm7499_vm6, %v7490_v14, %v7506_v1 }
 0x5f3   :  { %v7511_v23 = vsel %vm7499_vm6, %v7493_v20, %v7510_v47  ;;  %v7508_v43 = vsel %vm7498_vm0, %v7505_v48, %v7507_v44  ;;  %v7513_v12 = vshll.u32 %v7473_v2, 8  ;;  %v7501_v33 = vsel %vm7497_vm1, %v7481_v7, %v7484_v24 }
 0x5f4   :  { %vm7838_vm10 = vcmp.lt.s32.totalorder %v7837_v62, 0  ;;  %v7512_v50 = vsel %vm7498_vm0, %v7509_v29, %v7511_v23  ;;  %v7503_v3 = vsel %vm7499_vm6, %v7487_v27, %v7502_v59  ;;  %vm7356_vm4 = vcmp.eq.s32.totalorder %v7351_v8, 2 }
 0x5f5   :  { %v7432_v26 = vsel %vm7838_vm10, 0, %v7837_v62  ;;  %v14766_v30 = vmul.u32.u64.low %v7513_v12, %v7512_v50  ;;  %v14767_v11 = vmul.u32.u64.high %v7513_v12, %v7512_v50, %v14766_v30  ;;  %v7504_v19 = vsel %vm7498_vm0, %v7501_v33, %v7503_v3 }
 0x5f6   :  { %v7433_v16 = vsub.s32 32, %v7432_v26  ;;  %v7437_v45 = vsub.s32 4294967266, %v7432_v26  ;;  %v14769_v36 = vmul.u32.u64.low %v7513_v12, %v7508_v43  ;;  %v14770_v0 = vmul.u32.u64.high %v7513_v12, %v7508_v43, %v14769_v36 }
 0x5f7   :  { %v7434_v61 = vshll.u32 %v14734_v55, %v7432_v26  ;;  %vm7353_vm8 = vcmp.eq.s32.totalorder %v7351_v8, 0  ;;  %vm7352_vm15 = vcmp.lt.s32.totalorder %v7351_v8, 2  ;;  %v7520_v40 = vmul.u32 %v7513_v12, %v7504_v19 }
 0x5f8   :  { %v9320_v37 = vpop.eup %9319  ;;  %v7435_v28 = vshrl.u32 %v7417_v35, %v7433_v16  ;;  %v7438_v9 = vadd.s32 127, %v7437_v45  ;;  %vm7522_vm14 = vc.u32 %v14767_v11, %v14769_v36  ;;  %v7523_v52 = vadd.s32 1, %v14770_v0 }
 0x5f9   :  { %v9322_v17 = vpop.eup %9321  ;;  %v7357_v56 = vxor.u32 2147483648, %v9320_v37  ;;  %vm7349_vm13 = vweird.f32 %v14468_v57  ;;  %v7447_v4 = vsub.s32 4, %v14730_v54  ;;  %vm7363_vm2 = vcmp.lt.s32.totalorder %v14567_v60, 0 }
 0x5fa   :  { %v9324_v10 = vpop.eup %9323  ;;  %v7354_v21 = vxor.u32 2147483648, %v9322_v17  ;;  %v7436_v6 = vor.u32 %v7435_v28, %v7434_v61  ;;  %v7439_v63 = vshll.u32 %v7438_v9, 23  ;;  %v7524_v42 = vsel %vm7522_vm14, %v7523_v52, %v14770_v0 }
 0x5fb   :  { %v7358_v34 = vsel %vm7356_vm4, %v7357_v56, %v9322_v17  ;;  %v7525_v24 = vadd.s32 %v7524_v42, %v7520_v40  ;;  %v7448_v39 = vsel %vm7363_vm2, %v7447_v4, %v14730_v54  ;;  %vm7362_vm7 = vcmp.le.f32.partialorder %v7361_v51, 0.7853982 }
 0x5fc   :  { %v7355_v31 = vsel %vm7353_vm8, %v9320_v37, %v7354_v21  ;;  %v7440_v55 = vor.u32 4788187, %v7439_v63  ;;  %v7443_v46 = vcvt.s32.f32 %v7436_v6  ;;  %v7450_v22 = vsel %vm7362_vm7, 0, %v7448_v39 }
 0x5fd   :  { %v7359_v13 = vsel %vm7352_vm15, %v7355_v31, %v7358_v34  ;;  %v7526_v27 = vadd.s32 536870912, %v7525_v24  ;;  %v7629_v35 = vmul.f32 1.442695, %v14622_v41  ;;  %v7454_v49 = vadd.s32 3, %v7450_v22 }
 0x5fe   :  { %v7360_v38 = vsel %vm7349_vm13, nan, %v7359_v13  ;;  %v7441_v5 = vand.u32 2147483647, %v7440_v55  ;;  %v7521_v23 = vadd.s32 %v14769_v36, %v14767_v11  ;;  %vm7453_vm1 = vweird.f32 %v14567_v60 }
 0x5ff   :  { %v7662_v58 = vmul.f32 %v9324_v10, %v7360_v38  ;;  %v7527_v20 = vshrl.u32 %v7526_v27, 30  ;;  %v7455_v59 = vand.u32 3, %v7454_v49  ;;  %vm7467_vm6 = vcmp.lt.s32.totalorder %v14683_v32, 0 }
 0x600   :  { %v7444_v18 = vmul.f32 %v7443_v46, %v7441_v5  ;;  %vm7466_vm5 = vcmp.le.f32.partialorder %v7465_v15, 0.7853982  ;;  %v7631_v6 = vmul.f32 1.442695, %v14715_v53  ;;  %vm7557_vm8 = vweird.f32 %v14683_v32 }
 0x601   :  { %7694 = vst [vmem:[#allocation2 + $0xe8] sm:$0xff] %v7662_v58  ;;  %v7528_v25 = vshll.u32 %v7527_v20, 30  ;;  %vm7460_vm9 = vcmp.eq.s32.totalorder %v7455_v59, 2  ;;  %vm7456_vm3 = vcmp.lt.s32.totalorder %v7455_v59, 2  ;;  %vm7457_vm11 = vcmp.eq.s32.totalorder %v7455_v59, 0 }
 0x602   :  { %v7445_v14 = vxor.u32 2147483648, %v7444_v18  ;;  %v7551_v17 = vsub.s32 4, %v7527_v20 }
 0x603   :  { %v7529_v2 = vsub.s32 %v7525_v24, %v7528_v25 }
 0x604   :  { %v7446_v57 = vsel %vm7363_vm2, %v7445_v14, %v7444_v18 }
 0x605   :  { %v7449_v8 = vsel %vm7362_vm7, %v14567_v60, %v7446_v57  ;;  %v7531_v7 = vsub.s32 0, %v7529_v2  ;;  %v7552_v60 = vsel %vm7467_vm6, %v7551_v17, %v7527_v20 }
 0x606   :  { %9325 = vcosq.f32 %v7449_v8  ;;  %v7554_v21 = vsel %vm7466_vm5, 0, %v7552_v60 }
 0x607   :  { %9327 = vsinq.f32 %v7449_v8  ;;  %v7840_v62 = vmin.u32 %v7531_v7, %v7529_v2  ;;  %v7558_v63 = vadd.s32 3, %v7554_v21 }
 0x608   :  { %9329 = vpow2.f32 %v7629_v35 }
 0x609   :  { %v7533_v48 = vclz %v7840_v62  ;;  %v7559_v34 = vand.u32 3, %v7558_v63 }
 0x60b   :  { %v7841_v54 = vadd.s32 4294967294, %v7533_v48  ;;  %vm7564_vm10 = vcmp.eq.s32.totalorder %v7559_v34, 2  ;;  %vm7561_vm0 = vcmp.eq.s32.totalorder %v7559_v34, 0  ;;  %vm7560_vm4 = vcmp.lt.s32.totalorder %v7559_v34, 2 }
 0x60d   :  { %vm7842_vm12 = vcmp.lt.s32.totalorder %v7841_v54, 0 }
 0x60e   :  { %v7536_v47 = vsel %vm7842_vm12, 0, %v7841_v54 }
 0x60f   :  { %v7537_v26 = vsub.s32 32, %v7536_v47  ;;  %v7541_v43 = vsub.s32 4294967266, %v7536_v47  ;;  %v7538_v12 = vshll.u32 %v7529_v2, %v7536_v47 }
 0x610   :  { %v9326_v1 = vpop.eup %9325 }
 0x611   :  { %v9328_v51 = vpop.eup %9327  ;;  %v7461_v29 = vxor.u32 2147483648, %v9326_v1  ;;  %v7539_v16 = vshrl.u32 %v7521_v23, %v7537_v26  ;;  %v7542_v45 = vadd.s32 127, %v7541_v43 }
 0x612   :  { %v7458_v44 = vxor.u32 2147483648, %v9328_v51  ;;  %v9330_v3 = vpop.eup %9329 }
 0x613   :  { %v7462_v41 = vsel %vm7460_vm9, %v7461_v29, %v9328_v51  ;;  %v7540_v0 = vor.u32 %v7539_v16, %v7538_v12  ;;  %v7543_v37 = vshll.u32 %v7542_v45, 23 }
 0x614   :  { %v7459_v50 = vsel %vm7457_vm11, %v9326_v1, %v7458_v44 }
 0x615   :  { %v7463_v33 = vsel %vm7456_vm3, %v7459_v50, %v7462_v41  ;;  %v7544_v28 = vor.u32 4788187, %v7543_v37  ;;  %v7547_v36 = vcvt.s32.f32 %v7540_v0 }
 0x616   :  { %v7464_v30 = vsel %vm7453_vm1, nan, %v7463_v33 }
 0x617   :  { %v7663_v61 = vmul.f32 %v9330_v3, %v7464_v30  ;;  %v7545_v11 = vand.u32 2147483647, %v7544_v28 }
 0x619   :  { %7695 = vst [vmem:[#allocation2 + $0xf0] sm:$0xff] %v7663_v61  ;;  %v7548_v9 = vmul.f32 %v7547_v36, %v7545_v11 }
 0x61b   :  { %v7549_v56 = vxor.u32 2147483648, %v7548_v9 }
 0x61d   :  { %v7550_v19 = vsel %vm7467_vm6, %v7549_v56, %v7548_v9 }
 0x61e   :  { %v7553_v10 = vsel %vm7466_vm5, %v14683_v32, %v7550_v19 }
 0x61f   :  { %9331 = vcosq.f32 %v7553_v10 }
 0x620   :  { %9333 = vsinq.f32 %v7553_v10 }
 0x621   :  { %9335 = vpow2.f32 %v7631_v6 }
 0x629   :  { %v9332_v52 = vpop.eup %9331 }
 0x62a   :  { %v9334_v31 = vpop.eup %9333  ;;  %v7565_v55 = vxor.u32 2147483648, %v9332_v52 }
 0x62b   :  { %v7562_v40 = vxor.u32 2147483648, %v9334_v31  ;;  %v9336_v38 = vpop.eup %9335 }
 0x62c   :  { %v7566_v13 = vsel %vm7564_vm10, %v7565_v55, %v9334_v31 }
 0x62d   :  { %v7563_v15 = vsel %vm7561_vm0, %v9332_v52, %v7562_v40 }
 0x62e   :  { %v7567_v42 = vsel %vm7560_vm4, %v7563_v15, %v7566_v13 }
 0x62f   :  { %v7568_v5 = vsel %vm7557_vm8, nan, %v7567_v42 }
 0x630   :  { %v7664_v53 = vmul.f32 %v9336_v38, %v7568_v5 }
 0x632   :  { %7696 = vst [vmem:[#allocation2 + $0xf8] sm:$0xff] %v7664_v53 }
 0x633   :  { %9356 = shalt.err (!%p9353_p4)
}
 0x634   :  { %s9357_s17 = scalar_lea.hbm %s14809_s4, 4096 }
 0x635   :  { %p9358_p5 = scmp.ne.s32.totalorder %s14809_s4, %s9357_s17  ;;  %p9361_p6 = scmp.lt.u32.totalorder %s9357_s17, %s14809_s4 }
 0x637   :  { %p9363_p7 = pnand %p9361_p6, %p9358_p5 }
 0x639   :  { %9366 = shalt.err (!%p9363_p7)
}
 0x63a   :  { %s9377_s2 = smov 128   ;;  %s9378_s21 = smov 8  }
 0x63b   :  { %7708 = dma.vmem_to_hbm [thread:$0]  %s7703_s13, 4096, %s14809_s4, [#allocation3], %s9377_s2, %s9377_s2, %s9378_s21  }
 0x63c   :  { %9367 = dma.done.wait [#allocation3], 4096  }
 0x63d   :  { %9368 = vsyncadd [#allocation3], 4294963200 }
 0x63e   :  { %7712 = vsyncpa [#allocation3], 1 }

</bundles_post_ra>
